<compile_context>
chip_gen: v7x
topology: tpu7x:2x2x1
jax: 0.10.0
libtpu: 0.0.40
codegen_flags: <defaults>
</compile_context>

<pallas_src>
import jax
import jax.numpy as jnp
import numpy as np
from jax.experimental import pallas as pl
from jax.experimental.pallas import tpu as pltpu


ENC_TK = 2048   # >= 2 MiB bf16 weight tile per K step once a real large-F encoder lands


# ------------------------------ fused kernel ---------------------------------

def _make_fused_kernel(*, n, k, k_pad, qk, d, scale=10.0, eps=1e-8):
    nd = n * d

    def kernel(xs_ref, xq_ref, we_ref, be_ref,
               w1m_ref, b1r_ref, w2b_ref, b2r_ref, w3v_ref, b3c_ref,
               o_ref, acc_s_ref, acc_q_ref, s_ref, p_ref):
        ki = pl.program_id(0)

        @pl.when(ki == 0)
        def _():
            acc_s_ref[...] = jnp.zeros_like(acc_s_ref)
            acc_q_ref[...] = jnp.zeros_like(acc_q_ref)

        # ---- encoder: K-tiled matmul, bf16 MXU operands, f32 accumulate ------
        wt = we_ref[...]                                            # (tk, d) bf16
        acc_s_ref[...] += jnp.dot(xs_ref[...].astype(jnp.bfloat16), wt,
                                  preferred_element_type=jnp.float32)
        acc_q_ref[...] += jnp.dot(xq_ref[...].astype(jnp.bfloat16), wt,
                                  preferred_element_type=jnp.float32)

        # ---- last K step: bias/ReLU + whole ProtoNet + cosine/log_softmax ----
        @pl.when(ki == pl.num_programs(0) - 1)
        def _():
            be = be_ref[...]                                        # (1, d)

            # class-stack the support features on the lane axis -> (k, n*d)
            for c in range(n):
                s_ref[0:k, c * d:(c + 1) * d] = jnp.maximum(
                    acc_s_ref[c * k:(c + 1) * k, :] + be, 0.0)
            if k_pad != k:   # zero rows so the K=k_pad im2col contraction is exact
                s_ref[k:k_pad, :] = jnp.zeros((k_pad - k, nd), jnp.float32)
            q = jnp.maximum(acc_q_ref[...] + be, 0.0)               # (qk, d)

            # conv1 (1->c1): ONE im2col MXU matmul; zero padding + bias already
            # folded into w1m/b1r at prep time (no zero stores, no h1 scratch).
            h1 = jnp.maximum(
                jnp.dot(w1m_ref[...], s_ref[...],
                        preferred_element_type=jnp.float32) + b1r_ref[...], 0.0)
            # conv2 (c1->c2): all r_cnt window matmuls folded into ONE
            # block-shifted matmul over the padded-h1 slab.
            h2 = jnp.maximum(
                jnp.dot(w2b_ref[...], h1,
                        preferred_element_type=jnp.float32) + b2r_ref[...], 0.0)
            # conv3 (c2->1, stride k): weighted sublane reduction (XLU), no M=1 matmul.
            proto_flat = b3c_ref[...] + jnp.sum(w3v_ref[...] * h2,
                                                axis=0, keepdims=True)   # (1, n*d)

            # un-stack classes into the (n, d) prototype matrix
            for c in range(n):
                p_ref[c:c + 1, :] = proto_flat[:, c * d:(c + 1) * d]
            proto = p_ref[...]

            # scaled cosine similarity + log_softmax; rsqrt -> EUP, no divides
            inv_q = jax.lax.rsqrt(
                jnp.maximum(jnp.sum(q * q, axis=1, keepdims=True), eps * eps))
            inv_p = jax.lax.rsqrt(
                jnp.maximum(jnp.sum(proto * proto, axis=1, keepdims=True), eps * eps))
            sims = jax.lax.dot_general(
                q * inv_q, proto * inv_p, (((1,), (1,)), ((), ())),
                preferred_element_type=jnp.float32) * scale              # (qk, n)
            mx = jnp.max(sims, axis=1, keepdims=True)
            z = sims - mx
            # NOTE: if N_WAY grows, pad the class axis to a multiple of 128 for
            # lane-dense stores; at n=2 the masked store is negligible.
            o_ref[...] = z - jnp.log(jnp.sum(jnp.exp(z), axis=1, keepdims=True))

    return kernel


def fused_forward(xs, xq, we_bf, be, pp, *, n, k, qk, d, tk):
    w1m, b1r, w2b, b2r, w3v, b3c = pp
    m_s = n * k
    f_pad = we_bf.shape[0]
    assert f_pad % tk == 0, "feature axis must be padded to a multiple of tk at prep time"
    kt = f_pad // tk
    k_pad = int(w1m.shape[1])

    kernel = _make_fused_kernel(n=n, k=k, k_pad=k_pad, qk=qk, d=d)

    def const(shape):
        return pl.BlockSpec(shape, lambda ki: (0, 0))

    grid_spec = pltpu.PrefetchScalarGridSpec(
        num_scalar_prefetch=0,
        grid=(kt,),
        in_specs=[
            pl.BlockSpec((m_s, tk), lambda ki: (0, ki)),   # support rows, K-tiled
            pl.BlockSpec((qk, tk), lambda ki: (0, ki)),    # query rows,   K-tiled
            pl.BlockSpec((tk, d), lambda ki: (ki, 0)),     # bf16 encoder weight, K-tiled
            const(be.shape),
            const(w1m.shape), const(b1r.shape),
            const(w2b.shape), const(b2r.shape),
            const(w3v.shape), const(b3c.shape),
        ],
        out_specs=pl.BlockSpec((qk, n), lambda ki: (0, 0)),
        scratch_shapes=[
            pltpu.VMEM((m_s, d), jnp.float32),       # support feature accumulator
            pltpu.VMEM((qk, d), jnp.float32),        # query feature accumulator
            pltpu.VMEM((k_pad, n * d), jnp.float32), # class-stacked support (lane axis)
            pltpu.VMEM((n, d), jnp.float32),         # prototypes
        ],
    )
    return pl.pallas_call(
        kernel,
        out_shape=jax.ShapeDtypeStruct((qk, n), jnp.float32),
        grid_spec=grid_spec,
        # Default VMEM limit is ample here (~4 MiB live); set vmem_limit_bytes when a
        # real large-F encoder lands and tiles grow.
        compiler_params=pltpu.CompilerParams(dimension_semantics=("arbitrary",)),
    )(xs, xq, we_bf, be, w1m, b1r, w2b, b2r, w3v, b3c)


# --------------------------- parameter preparation ---------------------------

def prepare_encoder_params(we, be):
    """One-time: cast the encoder weight to bf16 (halves the dominant HBM read) and
    zero-pad the feature axis to a multiple of the K tile so a large, non-divisible F
    tiles cleanly instead of staging the whole weight in one VMEM block."""
    f, _ = we.shape
    tk = int(f) if f <= ENC_TK else ENC_TK
    f_pad = -(-int(f) // tk) * tk
    we_bf = we.astype(jnp.bfloat16)
    if f_pad != f:
        we_bf = jnp.pad(we_bf, ((0, f_pad - f), (0, 0)))
    return we_bf, be.astype(jnp.float32), tk


def prepare_protonet_params(w1, b1, w2, b2, w3, b3, k):
    """One-time reshape of the PyTorch conv weights (c_out, c_in, kh) into the fused
    kernel's layouts: conv1 as an im2col matmul with the zero padding and bias folded
    in, conv2 as one block-shifted matmul, conv3 as a per-row reduction weight."""
    pad = (k - 1) // 2
    c1, c2 = int(w1.shape[0]), int(w2.shape[0])
    h1_len = 2 * pad + 1                    # conv1 out height (stride 1, in height k)
    h2_len = h1_len + 2 * pad - k + 1       # conv2 out height (stride 1)
    h3_len = (h2_len + 2 * pad - k) // k + 1
    assert h3_len == 1, "ProtoNet must collapse the K-shot axis to a single row"
    r_cnt = min(h2_len, k - pad)            # conv2 rows inside conv3's receptive field
    rows_pad_h1 = r_cnt + k - 1             # padded-conv1 rows conv2 actually reads
    k_pad = -(-k // 8) * 8                  # pad the im2col contraction dim to 8 lanes

    w1 = np.asarray(w1); b1 = np.asarray(b1)
    w2 = np.asarray(w2); b2 = np.asarray(b2)
    w3 = np.asarray(w3); b3 = np.asarray(b3)

    # conv1 im2col weight / bias over padded-h1 row index j (top pad rows are zero).
    w1m = np.zeros((rows_pad_h1 * c1, k_pad), np.float32)
    b1r = np.zeros((rows_pad_h1 * c1, 1), np.float32)
    for j in range(rows_pad_h1):
        ho = j - pad                        # conv1 output row (or a zero pad row)
        if 0 <= ho < h1_len:
            b1r[j * c1:(j + 1) * c1, 0] = b1
            for h_in in range(k):
                kh = h_in - ho + pad
                if 0 <= kh < k:
                    w1m[j * c1:(j + 1) * c1, h_in] = w1[:, 0, kh]

    # conv2: r_cnt window matmuls folded into one block-shifted weight.
    w2b = np.zeros((r_cnt * c2, rows_pad_h1 * c1), np.float32)
    for r in range(r_cnt):
        for kh in range(k):
            j = r + kh
            w2b[r * c2:(r + 1) * c2, j * c1:(j + 1) * c1] = w2[:, :, kh]
    b2r = np.tile(b2.reshape(1, c2), (r_cnt, 1)).reshape(r_cnt * c2, 1).astype(np.float32)

    # conv3 taps kh = pad + r are the only ones hitting real conv2 rows.
    w3v = np.transpose(w3[0, :, pad:pad + r_cnt], (1, 0)).reshape(r_cnt * c2, 1)
    w3v = w3v.astype(np.float32)
    b3c = b3.reshape(1, 1).astype(np.float32)

    return (jnp.asarray(w1m), jnp.asarray(b1r), jnp.asarray(w2b),
            jnp.asarray(b2r), jnp.asarray(w3v), jnp.asarray(b3c))


# ------------------------------ full forward ---------------------------------

def res_channel_net_forward(support, query, we_bf, be, pp, *, k, tk):
    n, kk, _, _, _ = support.shape
    qk = query.shape[0]
    assert kk == k, "K-shot mismatch"
    d = we_bf.shape[1]
    f_pad = we_bf.shape[0]
    xs = support.reshape(n * k, -1)
    xq = query.reshape(qk, -1)
    f = xs.shape[1]
    if f_pad != f:   # feature axis was zero-padded to a multiple of tk at prep time
        xs = jnp.pad(xs, ((0, 0), (0, f_pad - f)))
        xq = jnp.pad(xq, ((0, 0), (0, f_pad - f)))
    return fused_forward(xs, xq, we_bf, be, pp, n=n, k=k, qk=qk, d=d, tk=tk)


# ------------------------------ JAX reference --------------------------------

def ref_forward(support, query, we, be, w1, b1, w2, b2, w3, b3, k, *, bf16_encoder):
    n = support.shape[0]
    qk = query.shape[0]
    pad = (k - 1) // 2
    xs = support.reshape(n * k, -1)
    xq = query.reshape(qk, -1)
    if bf16_encoder:   # match the kernel's intentional bf16 MXU operands
        xs, xq, w_e = (xs.astype(jnp.bfloat16), xq.astype(jnp.bfloat16),
                       we.astype(jnp.bfloat16))
    else:
        w_e = we
    sf = jax.nn.relu(jnp.dot(xs, w_e, preferred_element_type=jnp.float32) + be)
    qf = jax.nn.relu(jnp.dot(xq, w_e, preferred_element_type=jnp.float32) + be)
    d = qf.shape[1]

    def conv(x, wgt, bias, stride, relu):
        y = jax.lax.conv_general_dilated(
            x, wgt[..., None], (stride, 1), ((pad, pad), (0, 0)),
            dimension_numbers=("NCHW", "OIHW", "NCHW"))
        y = y + bias[None, :, None, None]
        return jax.nn.relu(y) if relu else y

    x = sf.reshape(n, 1, k, d)
    x = conv(x, w1, b1, 1, True)
    x = conv(x, w2, b2, 1, True)
    x = conv(x, w3, b3, k, False)
    proto = x.reshape(n, d)

    qn = qf / jnp.maximum(jnp.linalg.norm(qf, axis=1, keepdims=True), 1e-8)
    pn = proto / jnp.maximum(jnp.linalg.norm(proto, axis=1, keepdims=True), 1e-8)
    sims = (qn @ pn.T) * 10.0
    return jax.nn.log_softmax(sims, axis=1)


# ---------------------------------- main --------------------------------------

if __name__ == "__main__":
    K = 5           # K-shot
    IN_CHANNEL = 4
    W = 16
    N_WAY = 2
    QK = 3
    D = 512         # last entry of self.Channels

    key = jax.random.PRNGKey(0)
    ks = jax.random.split(key, 10)
    support = jax.random.normal(ks[0], (N_WAY, K, IN_CHANNEL, W, W), jnp.float32)
    query = jax.random.normal(ks[1], (QK, IN_CHANNEL, W, W), jnp.float32)

    F = IN_CHANNEL * W * W
    we = jax.random.normal(ks[2], (F, D), jnp.float32) * 0.02
    be = jax.random.normal(ks[3], (1, D), jnp.float32) * 0.01

    def conv_w(kk_, c_out, c_in, kh):
        return jax.random.normal(kk_, (c_out, c_in, kh), jnp.float32) / jnp.sqrt(c_in * kh)

    w1 = conv_w(ks[4], 32, 1, K)
    b1 = jax.random.normal(ks[5], (32,), jnp.float32) * 0.01
    w2 = conv_w(ks[6], 64, 32, K)
    b2 = jax.random.normal(ks[7], (64,), jnp.float32) * 0.01
    w3 = conv_w(ks[8], 1, 64, K)
    b3 = jax.random.normal(ks[9], (1,), jnp.float32) * 0.01

    # one-time (out of the per-forward path) weight preparation
    we_bf, be_p, tk = prepare_encoder_params(we, be)
    pp = prepare_protonet_params(w1, b1, w2, b2, w3, b3, K)

    forward = jax.jit(res_channel_net_forward, static_argnames=("k", "tk"))
    out = forward(support, query, we_bf, be_p, pp, k=K, tk=tk)
    out = jax.block_until_ready(out)

    # matched-precision reference (bf16 encoder matmul, like the kernel) + f32 sanity
    ref_bf = ref_forward(support, query, we, be, w1, b1, w2, b2, w3, b3, K,
                         bf16_encoder=True)
    ref_f32 = ref_forward(support, query, we, be, w1, b1, w2, b2, w3, b3, K,
                          bf16_encoder=False)

    assert out.shape == (QK, N_WAY)
    assert bool(jnp.all(jnp.isfinite(out)))
    assert bool(jnp.allclose(jnp.sum(jnp.exp(out), axis=1), 1.0, atol=1e-3))
    assert bool(jnp.allclose(out, ref_bf, atol=2e-2, rtol=2e-2))
    assert bool(jnp.allclose(out, ref_f32, atol=1e-1, rtol=1e-1))
    print("KERNEL_OK")
</pallas_src>

<mosaic_0001>
module attributes {stable_mosaic.version = 11 : i64} {
  func.func @kernel(%arg0: i32, %arg1: memref<10x1024xf32, #tpu.memory_space<vmem>>, %arg2: memref<3x1024xf32, #tpu.memory_space<vmem>>, %arg3: memref<1024x512xbf16, #tpu.memory_space<vmem>>, %arg4: memref<1x512xf32, #tpu.memory_space<vmem>>, %arg5: memref<224x8xf32, #tpu.memory_space<vmem>>, %arg6: memref<224x1xf32, #tpu.memory_space<vmem>>, %arg7: memref<192x224xf32, #tpu.memory_space<vmem>>, %arg8: memref<192x1xf32, #tpu.memory_space<vmem>>, %arg9: memref<192x1xf32, #tpu.memory_space<vmem>>, %arg10: memref<1x1xf32, #tpu.memory_space<vmem>>, %arg11: memref<3x2xf32, #tpu.memory_space<vmem>>, %arg12: memref<10x512xf32, #tpu.memory_space<vmem>>, %arg13: memref<3x512xf32, #tpu.memory_space<vmem>>, %arg14: memref<8x1024xf32, #tpu.memory_space<vmem>>, %arg15: memref<2x512xf32, #tpu.memory_space<vmem>>) attributes {dimension_semantics = [#tpu.dimension_semantics<arbitrary>], iteration_bounds = array<i64: 1>, scalar_prefetch = 0 : i64, scratch_operands = 4 : i64, tpu.core_type = #tpu.core_type<tc>, window_params = [{transform_indices = @transform_0, window_bounds = array<i64: 10, 1024>}, {transform_indices = @transform_1, window_bounds = array<i64: 3, 1024>}, {transform_indices = @transform_2, window_bounds = array<i64: 1024, 512>}, {pipeline_mode = #tpu.pipeline_mode<synchronous>, transform_indices = @transform_3, window_bounds = array<i64: 1, 512>}, {pipeline_mode = #tpu.pipeline_mode<synchronous>, transform_indices = @transform_4, window_bounds = array<i64: 224, 8>}, {pipeline_mode = #tpu.pipeline_mode<synchronous>, transform_indices = @transform_5, window_bounds = array<i64: 224, 1>}, {pipeline_mode = #tpu.pipeline_mode<synchronous>, transform_indices = @transform_6, window_bounds = array<i64: 192, 224>}, {pipeline_mode = #tpu.pipeline_mode<synchronous>, transform_indices = @transform_7, window_bounds = array<i64: 192, 1>}, {pipeline_mode = #tpu.pipeline_mode<synchronous>, transform_indices = @transform_8, window_bounds = array<i64: 192, 1>}, {pipeline_mode = #tpu.pipeline_mode<synchronous>, transform_indices = @transform_9, window_bounds = array<i64: 1, 1>}, {pipeline_mode = #tpu.pipeline_mode<synchronous>, transform_indices = @transform_10, window_bounds = array<i64: 3, 2>}]} {
    %c0_i32 = arith.constant 0 : i32
    %0 = arith.cmpi eq, %arg0, %c0_i32 : i32
    %1 = arith.extui %0 : i1 to i32
    %c0_i32_0 = arith.constant 0 : i32
    %2 = arith.cmpi ne, %1, %c0_i32_0 : i32
    scf.if %2 {
      %cst_17 = arith.constant 0.000000e+00 : f32
      %19 = vector.broadcast %cst_17 : f32 to vector<10x512xf32>
      %c0_18 = arith.constant 0 : index
      %c0_19 = arith.constant 0 : index
      %20 = vector.load %arg12[%c0_18, %c0_19] : memref<10x512xf32, #tpu.memory_space<vmem>>, vector<10x512xf32>
      tpu.vector_store %arg12[%c0_18, %c0_19], %19 {strides = array<i32>} : memref<10x512xf32, #tpu.memory_space<vmem>>, vector<10x512xf32>,
      %cst_20 = arith.constant 0.000000e+00 : f32
      %21 = vector.broadcast %cst_20 : f32 to vector<3x512xf32>
      %c0_21 = arith.constant 0 : index
      %c0_22 = arith.constant 0 : index
      %22 = vector.load %arg13[%c0_21, %c0_22] : memref<3x512xf32, #tpu.memory_space<vmem>>, vector<3x512xf32>
      tpu.vector_store %arg13[%c0_21, %c0_22], %21 {strides = array<i32>} : memref<3x512xf32, #tpu.memory_space<vmem>>, vector<3x512xf32>,
    } else {
    }
    %c0 = arith.constant 0 : index
    %c0_1 = arith.constant 0 : index
    %3 = vector.load %arg3[%c0, %c0_1] : memref<1024x512xbf16, #tpu.memory_space<vmem>>, vector<1024x512xbf16>
    %c0_2 = arith.constant 0 : index
    %c0_3 = arith.constant 0 : index
    %4 = vector.load %arg12[%c0_2, %c0_3] : memref<10x512xf32, #tpu.memory_space<vmem>>, vector<10x512xf32>
    %c0_4 = arith.constant 0 : index
    %c0_5 = arith.constant 0 : index
    %5 = vector.load %arg1[%c0_4, %c0_5] : memref<10x1024xf32, #tpu.memory_space<vmem>>, vector<10x1024xf32>
    %6 = arith.truncf %5 : vector<10x1024xf32> to vector<10x1024xbf16>
    %cst = arith.constant dense<0.000000e+00> : vector<10x512xf32>
    %7 = tpu.matmul %6, %3, %cst {dimension_numbers = #tpu.dot_dimension_numbers<[1], [0], [0], [1], [0, 0, 1, 1], [], []>} : vector<10x1024xbf16>, vector<1024x512xbf16>, vector<10x512xf32> -> vector<10x512xf32>
    %8 = arith.addf %4, %7 : vector<10x512xf32>
    %c0_6 = arith.constant 0 : index
    %c0_7 = arith.constant 0 : index
    %9 = vector.load %arg12[%c0_6, %c0_7] : memref<10x512xf32, #tpu.memory_space<vmem>>, vector<10x512xf32>
    tpu.vector_store %arg12[%c0_6, %c0_7], %8 {strides = array<i32>} : memref<10x512xf32, #tpu.memory_space<vmem>>, vector<10x512xf32>,
    %c0_8 = arith.constant 0 : index
    %c0_9 = arith.constant 0 : index
    %10 = vector.load %arg13[%c0_8, %c0_9] : memref<3x512xf32, #tpu.memory_space<vmem>>, vector<3x512xf32>
    %c0_10 = arith.constant 0 : index
    %c0_11 = arith.constant 0 : index
    %11 = vector.load %arg2[%c0_10, %c0_11] : memref<3x1024xf32, #tpu.memory_space<vmem>>, vector<3x1024xf32>
    %12 = arith.truncf %11 : vector<3x1024xf32> to vector<3x1024xbf16>
    %cst_12 = arith.constant dense<0.000000e+00> : vector<3x512xf32>
    %13 = tpu.matmul %12, %3, %cst_12 {dimension_numbers = #tpu.dot_dimension_numbers<[1], [0], [0], [1], [0, 0, 1, 1], [], []>} : vector<3x1024xbf16>, vector<1024x512xbf16>, vector<3x512xf32> -> vector<3x512xf32>
    %14 = arith.addf %10, %13 : vector<3x512xf32>
    %c0_13 = arith.constant 0 : index
    %c0_14 = arith.constant 0 : index
    %15 = vector.load %arg13[%c0_13, %c0_14] : memref<3x512xf32, #tpu.memory_space<vmem>>, vector<3x512xf32>
    tpu.vector_store %arg13[%c0_13, %c0_14], %14 {strides = array<i32>} : memref<3x512xf32, #tpu.memory_space<vmem>>, vector<3x512xf32>,
    %c0_i32_15 = arith.constant 0 : i32
    %16 = arith.cmpi eq, %arg0, %c0_i32_15 : i32
    %17 = arith.extui %16 : i1 to i32
    %c0_i32_16 = arith.constant 0 : i32
    %18 = arith.cmpi ne, %17, %c0_i32_16 : i32
    scf.if %18 {
      %c0_17 = arith.constant 0 : index
      %c0_18 = arith.constant 0 : index
      %19 = vector.load %arg4[%c0_17, %c0_18] : memref<1x512xf32, #tpu.memory_space<vmem>>, vector<1x512xf32>
      %c0_19 = arith.constant 0 : index
      %c0_20 = arith.constant 0 : index
      %20 = vector.load %arg12[%c0_19, %c0_20] : memref<10x512xf32, #tpu.memory_space<vmem>>, vector<5x512xf32>
      %21 = vector.broadcast %19 : vector<1x512xf32> to vector<5x512xf32>
      %22 = arith.addf %20, %21 : vector<5x512xf32>
      %cst_21 = arith.constant 0.000000e+00 : f32
      %23 = vector.broadcast %cst_21 : f32 to vector<5x512xf32>
      %24 = arith.maximumf %22, %23 : vector<5x512xf32>
      %c0_22 = arith.constant 0 : index
      %c0_23 = arith.constant 0 : index
      %25 = vector.load %arg14[%c0_22, %c0_23] : memref<8x1024xf32, #tpu.memory_space<vmem>>, vector<5x512xf32>
      tpu.vector_store %arg14[%c0_22, %c0_23], %24 {strides = array<i32>} : memref<8x1024xf32, #tpu.memory_space<vmem>>, vector<5x512xf32>,
      %c5 = arith.constant 5 : index
      %c0_24 = arith.constant 0 : index
      %26 = vector.load %arg12[%c5, %c0_24] : memref<10x512xf32, #tpu.memory_space<vmem>>, vector<5x512xf32>
      %27 = vector.broadcast %19 : vector<1x512xf32> to vector<5x512xf32>
      %28 = arith.addf %26, %27 : vector<5x512xf32>
      %cst_25 = arith.constant 0.000000e+00 : f32
      %29 = vector.broadcast %cst_25 : f32 to vector<5x512xf32>
      %30 = arith.maximumf %28, %29 : vector<5x512xf32>
      %c0_26 = arith.constant 0 : index
      %c512 = arith.constant 512 : index
      %31 = vector.load %arg14[%c0_26, %c512] : memref<8x1024xf32, #tpu.memory_space<vmem>>, vector<5x512xf32>
      tpu.vector_store %arg14[%c0_26, %c512], %30 {strides = array<i32>} : memref<8x1024xf32, #tpu.memory_space<vmem>>, vector<5x512xf32>,
      %cst_27 = arith.constant 0.000000e+00 : f32
      %32 = vector.broadcast %cst_27 : f32 to vector<3x1024xf32>
      %c5_28 = arith.constant 5 : index
      %c0_29 = arith.constant 0 : index
      %33 = vector.load %arg14[%c5_28, %c0_29] : memref<8x1024xf32, #tpu.memory_space<vmem>>, vector<3x1024xf32>
      tpu.vector_store %arg14[%c5_28, %c0_29], %32 {strides = array<i32>} : memref<8x1024xf32, #tpu.memory_space<vmem>>, vector<3x1024xf32>,
      %c0_30 = arith.constant 0 : index
      %c0_31 = arith.constant 0 : index
      %34 = vector.load %arg13[%c0_30, %c0_31] : memref<3x512xf32, #tpu.memory_space<vmem>>, vector<3x512xf32>
      %35 = vector.broadcast %19 : vector<1x512xf32> to vector<3x512xf32>
      %36 = arith.addf %34, %35 : vector<3x512xf32>
      %cst_32 = arith.constant 0.000000e+00 : f32
      %37 = vector.broadcast %cst_32 : f32 to vector<3x512xf32>
      %38 = arith.maximumf %36, %37 : vector<3x512xf32>
      %c0_33 = arith.constant 0 : index
      %c0_34 = arith.constant 0 : index
      %39 = vector.load %arg5[%c0_33, %c0_34] : memref<224x8xf32, #tpu.memory_space<vmem>>, vector<224x8xf32>
      %c0_35 = arith.constant 0 : index
      %c0_36 = arith.constant 0 : index
      %40 = vector.load %arg14[%c0_35, %c0_36] : memref<8x1024xf32, #tpu.memory_space<vmem>>, vector<8x1024xf32>
      %cst_37 = arith.constant dense<0.000000e+00> : vector<224x1024xf32>
      %41 = tpu.matmul %39, %40, %cst_37 {dimension_numbers = #tpu.dot_dimension_numbers<[1], [0], [0], [1], [0, 0, 1, 1], [], []>} : vector<224x8xf32>, vector<8x1024xf32>, vector<224x1024xf32> -> vector<224x1024xf32>
      %c0_38 = arith.constant 0 : index
      %c0_39 = arith.constant 0 : index
      %42 = vector.load %arg6[%c0_38, %c0_39] : memref<224x1xf32, #tpu.memory_space<vmem>>, vector<224x1xf32>
      %43 = vector.broadcast %42 : vector<224x1xf32> to vector<224x1024xf32>
      %44 = arith.addf %41, %43 : vector<224x1024xf32>
      %cst_40 = arith.constant 0.000000e+00 : f32
      %45 = vector.broadcast %cst_40 : f32 to vector<224x1024xf32>
      %46 = arith.maximumf %44, %45 : vector<224x1024xf32>
      %c0_41 = arith.constant 0 : index
      %c0_42 = arith.constant 0 : index
      %47 = vector.load %arg7[%c0_41, %c0_42] : memref<192x224xf32, #tpu.memory_space<vmem>>, vector<192x224xf32>
      %cst_43 = arith.constant dense<0.000000e+00> : vector<192x1024xf32>
      %48 = tpu.matmul %47, %46, %cst_43 {dimension_numbers = #tpu.dot_dimension_numbers<[1], [0], [0], [1], [0, 0, 1, 1], [], []>} : vector<192x224xf32>, vector<224x1024xf32>, vector<192x1024xf32> -> vector<192x1024xf32>
      %c0_44 = arith.constant 0 : index
      %c0_45 = arith.constant 0 : index
      %49 = vector.load %arg8[%c0_44, %c0_45] : memref<192x1xf32, #tpu.memory_space<vmem>>, vector<192x1xf32>
      %50 = vector.broadcast %49 : vector<192x1xf32> to vector<192x1024xf32>
      %51 = arith.addf %48, %50 : vector<192x1024xf32>
      %cst_46 = arith.constant 0.000000e+00 : f32
      %52 = vector.broadcast %cst_46 : f32 to vector<192x1024xf32>
      %53 = arith.maximumf %51, %52 : vector<192x1024xf32>
      %c0_47 = arith.constant 0 : index
      %c0_48 = arith.constant 0 : index
      %54 = vector.load %arg10[%c0_47, %c0_48] : memref<1x1xf32, #tpu.memory_space<vmem>>, vector<1x1xf32>
      %c0_49 = arith.constant 0 : index
      %c0_50 = arith.constant 0 : index
      %55 = vector.load %arg9[%c0_49, %c0_50] : memref<192x1xf32, #tpu.memory_space<vmem>>, vector<192x1xf32>
      %56 = vector.broadcast %55 : vector<192x1xf32> to vector<192x1024xf32>
      %57 = arith.mulf %56, %53 : vector<192x1024xf32>
      %cst_51 = arith.constant dense<0.000000e+00> : vector<1024xf32>
      %58 = vector.multi_reduction <add>, %57, %cst_51 [0] : vector<192x1024xf32> to vector<1024xf32>
      %59 = vector.shape_cast %58 : vector<1024xf32> to vector<1x1024xf32>
      %60 = vector.broadcast %54 : vector<1x1xf32> to vector<1x1024xf32>
      %61 = arith.addf %60, %59 : vector<1x1024xf32>
      %62 = vector.extract_strided_slice %61 {offsets = [0, 0], sizes = [1, 512], strides = [1, 1]} : vector<1x1024xf32> to vector<1x512xf32>
      %c0_52 = arith.constant 0 : index
      %c0_53 = arith.constant 0 : index
      %63 = vector.load %arg15[%c0_52, %c0_53] : memref<2x512xf32, #tpu.memory_space<vmem>>, vector<1x512xf32>
      tpu.vector_store %arg15[%c0_52, %c0_53], %62 {strides = array<i32>} : memref<2x512xf32, #tpu.memory_space<vmem>>, vector<1x512xf32>,
      %64 = vector.extract_strided_slice %61 {offsets = [0, 512], sizes = [1, 512], strides = [1, 1]} : vector<1x1024xf32> to vector<1x512xf32>
      %c1 = arith.constant 1 : index
      %c0_54 = arith.constant 0 : index
      %65 = vector.load %arg15[%c1, %c0_54] : memref<2x512xf32, #tpu.memory_space<vmem>>, vector<1x512xf32>
      tpu.vector_store %arg15[%c1, %c0_54], %64 {strides = array<i32>} : memref<2x512xf32, #tpu.memory_space<vmem>>, vector<1x512xf32>,
      %c0_55 = arith.constant 0 : index
      %c0_56 = arith.constant 0 : index
      %66 = vector.load %arg15[%c0_55, %c0_56] : memref<2x512xf32, #tpu.memory_space<vmem>>, vector<2x512xf32>
      %67 = arith.mulf %38, %38 : vector<3x512xf32>
      %cst_57 = arith.constant dense<0.000000e+00> : vector<3xf32>
      %68 = vector.multi_reduction <add>, %67, %cst_57 [1] : vector<3x512xf32> to vector<3xf32>
      %69 = vector.shape_cast %68 : vector<3xf32> to vector<3x1xf32>
      %cst_58 = arith.constant 1.000000e-16 : f32
      %70 = vector.broadcast %cst_58 : f32 to vector<3x1xf32>
      %71 = arith.maximumf %69, %70 : vector<3x1xf32>
      %72 = math.rsqrt %71 : vector<3x1xf32>
      %73 = arith.mulf %66, %66 : vector<2x512xf32>
      %cst_59 = arith.constant dense<0.000000e+00> : vector<2xf32>
      %74 = vector.multi_reduction <add>, %73, %cst_59 [1] : vector<2x512xf32> to vector<2xf32>
      %75 = vector.shape_cast %74 : vector<2xf32> to vector<2x1xf32>
      %cst_60 = arith.constant 1.000000e-16 : f32
      %76 = vector.broadcast %cst_60 : f32 to vector<2x1xf32>
      %77 = arith.maximumf %75, %76 : vector<2x1xf32>
      %78 = math.rsqrt %77 : vector<2x1xf32>
      %79 = vector.broadcast %72 : vector<3x1xf32> to vector<3x512xf32>
      %80 = arith.mulf %38, %79 : vector<3x512xf32>
      %81 = vector.broadcast %78 : vector<2x1xf32> to vector<2x512xf32>
      %82 = arith.mulf %66, %81 : vector<2x512xf32>
      %cst_61 = arith.constant dense<0.000000e+00> : vector<3x2xf32>
      %83 = tpu.matmul %80, %82, %cst_61 {dimension_numbers = #tpu.dot_dimension_numbers<[1], [1], [0], [0], [0, 0, 1, 0], [], []>} : vector<3x512xf32>, vector<2x512xf32>, vector<3x2xf32> -> vector<3x2xf32>
      %cst_62 = arith.constant 1.000000e+01 : f32
      %84 = vector.broadcast %cst_62 : f32 to vector<3x2xf32>
      %85 = arith.mulf %83, %84 : vector<3x2xf32>
      %cst_63 = arith.constant dense<0xFF800000> : vector<3xf32>
      %86 = vector.multi_reduction <maximumf>, %85, %cst_63 [1] : vector<3x2xf32> to vector<3xf32>
      %87 = vector.shape_cast %86 : vector<3xf32> to vector<3x1xf32>
      %88 = vector.broadcast %87 : vector<3x1xf32> to vector<3x2xf32>
      %89 = arith.subf %85, %88 : vector<3x2xf32>
      %90 = math.exp %89 : vector<3x2xf32>
      %cst_64 = arith.constant dense<0.000000e+00> : vector<3xf32>
      %91 = vector.multi_reduction <add>, %90, %cst_64 [1] : vector<3x2xf32> to vector<3xf32>
      %92 = vector.shape_cast %91 : vector<3xf32> to vector<3x1xf32>
      %93 = math.log %92 : vector<3x1xf32>
      %94 = vector.broadcast %93 : vector<3x1xf32> to vector<3x2xf32>
      %95 = arith.subf %89, %94 : vector<3x2xf32>
      %c0_65 = arith.constant 0 : index
      %c0_66 = arith.constant 0 : index
      %96 = vector.load %arg11[%c0_65, %c0_66] : memref<3x2xf32, #tpu.memory_space<vmem>>, vector<3x2xf32>
      tpu.vector_store %arg11[%c0_65, %c0_66], %95 {strides = array<i32>} : memref<3x2xf32, #tpu.memory_space<vmem>>, vector<3x2xf32>,
    } else {
    }
    return
  }
  func.func @transform_0(%arg0: i32) -> (i32, i32) {
    %c0_i32 = arith.constant 0 : i32
    %c0_i32_0 = arith.constant 0 : i32
    return %c0_i32, %arg0 : i32, i32
  }
  func.func @transform_1(%arg0: i32) -> (i32, i32) {
    %c0_i32 = arith.constant 0 : i32
    %c0_i32_0 = arith.constant 0 : i32
    return %c0_i32, %arg0 : i32, i32
  }
  func.func @transform_2(%arg0: i32) -> (i32, i32) {
    %c0_i32 = arith.constant 0 : i32
    %c0_i32_0 = arith.constant 0 : i32
    return %arg0, %c0_i32 : i32, i32
  }
  func.func @transform_3(%arg0: i32) -> (i32, i32) {
    %c0_i32 = arith.constant 0 : i32
    %c0_i32_0 = arith.constant 0 : i32
    %c0_i32_1 = arith.constant 0 : i32
    return %c0_i32, %c0_i32_0 : i32, i32
  }
  func.func @transform_4(%arg0: i32) -> (i32, i32) {
    %c0_i32 = arith.constant 0 : i32
    %c0_i32_0 = arith.constant 0 : i32
    %c0_i32_1 = arith.constant 0 : i32
    return %c0_i32, %c0_i32_0 : i32, i32
  }
  func.func @transform_5(%arg0: i32) -> (i32, i32) {
    %c0_i32 = arith.constant 0 : i32
    %c0_i32_0 = arith.constant 0 : i32
    %c0_i32_1 = arith.constant 0 : i32
    return %c0_i32, %c0_i32_0 : i32, i32
  }
  func.func @transform_6(%arg0: i32) -> (i32, i32) {
    %c0_i32 = arith.constant 0 : i32
    %c0_i32_0 = arith.constant 0 : i32
    %c0_i32_1 = arith.constant 0 : i32
    return %c0_i32, %c0_i32_0 : i32, i32
  }
  func.func @transform_7(%arg0: i32) -> (i32, i32) {
    %c0_i32 = arith.constant 0 : i32
    %c0_i32_0 = arith.constant 0 : i32
    %c0_i32_1 = arith.constant 0 : i32
    return %c0_i32, %c0_i32_0 : i32, i32
  }
  func.func @transform_8(%arg0: i32) -> (i32, i32) {
    %c0_i32 = arith.constant 0 : i32
    %c0_i32_0 = arith.constant 0 : i32
    %c0_i32_1 = arith.constant 0 : i32
    return %c0_i32, %c0_i32_0 : i32, i32
  }
  func.func @transform_9(%arg0: i32) -> (i32, i32) {
    %c0_i32 = arith.constant 0 : i32
    %c0_i32_0 = arith.constant 0 : i32
    %c0_i32_1 = arith.constant 0 : i32
    return %c0_i32, %c0_i32_0 : i32, i32
  }
  func.func @transform_10(%arg0: i32) -> (i32, i32) {
    %c0_i32 = arith.constant 0 : i32
    %c0_i32_0 = arith.constant 0 : i32
    %c0_i32_1 = arith.constant 0 : i32
    return %c0_i32, %c0_i32_0 : i32, i32
  }
}

</mosaic_0001>

<bundles_post_ra>
// kernel: res_channel_net_forward.1
= control target key start
LH: loop header
LB: loop body
LE: loop exit
PB: predicated region body
PF: predicated region fallthrough
CT: control target
= control target key end

     0   :  { %s10142_s0 = inlined_call_operand.vmem [shape: f32[10,1024], index: 0, kind: input, shape index: {}]   ;;  %s10143_s1 = inlined_call_operand.vmem [shape: f32[3,1024], index: 1, kind: input, shape index: {}]   ;;  %s10144_s2 = inlined_call_operand.hbm [shape: bf16[1024,512], index: 2, kind: input, shape index: {}]   ;;  %s10145_s3 = inlined_call_operand.vmem [shape: f32[1,512], index: 3, kind: input, shape index: {}]   ;;  %s10146_s4 = inlined_call_operand.vmem [shape: f32[224,8], index: 4, kind: input, shape index: {}]   ;;  %s10147_s5 = inlined_call_operand.vmem [shape: f32[224,1], index: 5, kind: input, shape index: {}]   ;;  %s10148_s6 = inlined_call_operand.vmem [shape: f32[192,224], index: 6, kind: input, shape index: {}]   ;;  %s10149_s7 = inlined_call_operand.vmem [shape: f32[192,1], index: 7, kind: input, shape index: {}]   ;;  %s10150_s8 = inlined_call_operand.vmem [shape: f32[192,1], index: 8, kind: input, shape index: {}]   ;;  %s10151_s9 = inlined_call_operand.<no memory space> [shape: f32[1,1], index: 9, kind: input, shape index: {}]   ;;  %s10152_s10 = inlined_call_operand.vmem [shape: f32[3,2], index: 10, kind: output, shape index: {}]  }
   0x1   :  { %v15_v0 = vstv %s10151_s9 }
   0x2   :  { %16 = vst [vmem:[#allocation6] sm:$0x1] %v15_v0 }
   0x3   :  { %17 = vsyncpa [#allocation8], 0  ;;  %s7464_s15 = smov [#allocation7]   ;;  %s7440_s19 = scalar_lea.hbm %s10144_s2, 32768 }
   0x4   :  { %s27_s16 = sshll.u32 %s7464_s15, 4  ;;  %p7441_p0 = scmp.ne.s32.totalorder %s10144_s2, %s7440_s19  ;;  %s28_s16 = int_to_ptr.vmem [resolvable:$true] %s27_s16 }
   0x5   :  { %p7444_p1 = scmp.lt.u32.totalorder %s7440_s19, %s10144_s2 }
   0x7   :  { %p7446_p2 = pnand %p7444_p1, %p7441_p0 }
   0x9   :  { %7449 = shalt.err (!%p7446_p2)
}
   0xa   :  { %s7450_s9 = scalar_lea.vmem %s28_s16, 32768  ;;  %p7455_p4 = scmp.lt.s32.totalorder %s28_s16, %s28_s16 }
   0xb   :  { %p7451_p3 = scmp.ne.s32.totalorder %s28_s16, %s7450_s9  ;;  %p7456_p5 = scmp.lt.s32.totalorder %s7450_s9, %s7450_s9 }
   0xd   :  { %p7457_p6 = por %p7456_p5, %p7455_p4 }
   0xf   :  { %p7458_p7 = pnand %p7457_p6, %p7451_p3 }
  0x11   :  { %7461 = shalt.err (!%p7458_p7)
}
  0x12   :  { %s7465_s24 = smov 256   ;;  %s7466_s25 = smov 16  }
  0x13   :  { %33 = dma.hbm_to_vmem [thread:$0]  %s10144_s2, 32768, %s28_s16, [#allocation8], %s7465_s24, %s7465_s24, %s7466_s25  }
  0x14   :  { %7462 = dma.done.wait [#allocation8], 32768  }
  0x15   :  { %7463 = vsyncadd [#allocation8], 4294934528  ;;  %v6875_v1 = vld [vmem:[#allocation7 + $0x4] ss:$16 sps:$4 sm:$0xff]   ;;  %v6877_v2 = vld [vmem:[#allocation7 + $0xc] ss:$16 sps:$4 sm:$0xff]  }
  0x16   :  { %1633 = vmatprep.subr.bf16.mxu0 %v6875_v1  ;;  %v6879_v3 = vld [vmem:[#allocation7] ss:$16 sps:$4 sm:$0xff]   ;;  %v6880_v4 = vld [vmem:[#allocation7 + $0x8] ss:$16 sps:$4 sm:$0xff]   ;;  %1805 = vmatprep.subr.bf16.mxu1 %v6877_v2  ;;  %v6881_v5 = vld [vmem:[#allocation7 + $0x24] ss:$16 sps:$4 sm:$0xff]  }
  0x17   :  { %1634 = vmatpush1.bf16.msra.mxu0 %v6879_v3  ;;  %1806 = vmatpush1.bf16.msra.mxu1 %v6880_v4  ;;  %v6883_v6 = vld [vmem:[#allocation7 + $0x2c] ss:$16 sps:$4 sm:$0xff]   ;;  %v6885_v7 = vld [vmem:[#allocation7 + $0x20] ss:$16 sps:$4 sm:$0xff]   ;;  %v6886_v8 = vld [vmem:[#allocation7 + $0x28] ss:$16 sps:$4 sm:$0xff]  }
  0x18   :  { %1635 = vmatprep.subr.bf16.mxu0 %v6881_v5  ;;  %1807 = vmatprep.subr.bf16.mxu1 %v6883_v6  ;;  %v6887_v9 = vld [vmem:[#allocation7 + $0x44] ss:$16 sps:$4 sm:$0xff]   ;;  %v6889_v10 = vld [vmem:[#allocation7 + $0x4c] ss:$16 sps:$4 sm:$0xff]   ;;  %v6891_v11 = vld [vmem:[#allocation7 + $0x40] ss:$16 sps:$4 sm:$0xff]  }
  0x19   :  { %v6892_v12 = vld [vmem:[#allocation7 + $0x48] ss:$16 sps:$4 sm:$0xff]   ;;  %v6893_v13 = vld [vmem:[#allocation7 + $0x64] ss:$16 sps:$4 sm:$0xff]   ;;  %v6895_v14 = vld [vmem:[#allocation7 + $0x6c] ss:$16 sps:$4 sm:$0xff]  }
  0x1a   :  { %v6897_v15 = vld [vmem:[#allocation7 + $0x60] ss:$16 sps:$4 sm:$0xff]   ;;  %v6898_v16 = vld [vmem:[#allocation7 + $0x68] ss:$16 sps:$4 sm:$0xff]   ;;  %v6899_v17 = vld [vmem:[#allocation7 + $0x84] ss:$16 sps:$4 sm:$0xff]  }
  0x1b   :  { %1636 = vmatpush1.bf16.msra.mxu0 %v6885_v7  ;;  %1808 = vmatpush1.bf16.msra.mxu1 %v6886_v8  ;;  %v6901_v18 = vld [vmem:[#allocation7 + $0x8c] ss:$16 sps:$4 sm:$0xff]   ;;  %v6903_v19 = vld [vmem:[#allocation7 + $0x80] ss:$16 sps:$4 sm:$0xff]   ;;  %v6904_v20 = vld [vmem:[#allocation7 + $0x88] ss:$16 sps:$4 sm:$0xff]  }
  0x1c   :  { %1637 = vmatprep.subr.bf16.mxu0 %v6887_v9  ;;  %1809 = vmatprep.subr.bf16.mxu1 %v6889_v10  ;;  %v6905_v21 = vld [vmem:[#allocation7 + $0xa4] ss:$16 sps:$4 sm:$0xff]   ;;  %v6907_v22 = vld [vmem:[#allocation7 + $0xac] ss:$16 sps:$4 sm:$0xff]   ;;  %v6909_v23 = vld [vmem:[#allocation7 + $0xa0] ss:$16 sps:$4 sm:$0xff]  }
  0x1d   :  { %v6910_v24 = vld [vmem:[#allocation7 + $0xa8] ss:$16 sps:$4 sm:$0xff]   ;;  %v6911_v25 = vld [vmem:[#allocation7 + $0xc4] ss:$16 sps:$4 sm:$0xff]   ;;  %v6913_v26 = vld [vmem:[#allocation7 + $0xcc] ss:$16 sps:$4 sm:$0xff]  }
  0x1e   :  { %v6915_v27 = vld [vmem:[#allocation7 + $0xc0] ss:$16 sps:$4 sm:$0xff]   ;;  %v6916_v28 = vld [vmem:[#allocation7 + $0xc8] ss:$16 sps:$4 sm:$0xff]   ;;  %v6917_v29 = vld [vmem:[#allocation7 + $0xe4] ss:$16 sps:$4 sm:$0xff]  }
  0x1f   :  { %1638 = vmatpush1.bf16.msra.mxu0 %v6891_v11  ;;  %1810 = vmatpush1.bf16.msra.mxu1 %v6892_v12  ;;  %v6919_v30 = vld [vmem:[#allocation7 + $0xec] ss:$16 sps:$4 sm:$0xff]   ;;  %v6921_v31 = vld [vmem:[#allocation7 + $0xe0] ss:$16 sps:$4 sm:$0xff]   ;;  %v6922_v32 = vld [vmem:[#allocation7 + $0xe8] ss:$16 sps:$4 sm:$0xff]  }
  0x20   :  { %1639 = vmatprep.subr.bf16.mxu0 %v6893_v13  ;;  %1811 = vmatprep.subr.bf16.mxu1 %v6895_v14  ;;  %v6923_v33 = vld [vmem:[#allocation7 + $0x104] ss:$16 sps:$4 sm:$0xff]   ;;  %v6925_v34 = vld [vmem:[#allocation7 + $0x10c] ss:$16 sps:$4 sm:$0xff]   ;;  %v6927_v35 = vld [vmem:[#allocation7 + $0x100] ss:$16 sps:$4 sm:$0xff]  }
  0x21   :  { %v6928_v36 = vld [vmem:[#allocation7 + $0x108] ss:$16 sps:$4 sm:$0xff]   ;;  %v6929_v37 = vld [vmem:[#allocation7 + $0x124] ss:$16 sps:$4 sm:$0xff]   ;;  %v6931_v38 = vld [vmem:[#allocation7 + $0x12c] ss:$16 sps:$4 sm:$0xff]  }
  0x22   :  { %v6933_v39 = vld [vmem:[#allocation7 + $0x120] ss:$16 sps:$4 sm:$0xff]   ;;  %v6934_v40 = vld [vmem:[#allocation7 + $0x128] ss:$16 sps:$4 sm:$0xff]   ;;  %v6935_v41 = vld [vmem:[#allocation7 + $0x144] ss:$16 sps:$4 sm:$0xff]  }
  0x23   :  { %1640 = vmatpush1.bf16.msra.mxu0 %v6897_v15  ;;  %1812 = vmatpush1.bf16.msra.mxu1 %v6898_v16  ;;  %v6937_v42 = vld [vmem:[#allocation7 + $0x14c] ss:$16 sps:$4 sm:$0xff]   ;;  %v6939_v43 = vld [vmem:[#allocation7 + $0x140] ss:$16 sps:$4 sm:$0xff]   ;;  %v6940_v44 = vld [vmem:[#allocation7 + $0x148] ss:$16 sps:$4 sm:$0xff]  }
  0x24   :  { %1641 = vmatprep.subr.bf16.mxu0 %v6899_v17  ;;  %1813 = vmatprep.subr.bf16.mxu1 %v6901_v18  ;;  %v6941_v45 = vld [vmem:[#allocation7 + $0x164] ss:$16 sps:$4 sm:$0xff]   ;;  %v6943_v46 = vld [vmem:[#allocation7 + $0x16c] ss:$16 sps:$4 sm:$0xff]   ;;  %v6945_v49 = vld [vmem:[#allocation7 + $0x160] ss:$16 sps:$4 sm:$0xff]  }
  0x25   :  { %v330_v47 = vld [vmem:[%s10142_s0 + $0x8] sm:$0xff]  ;;  %v6946_v50 = vld [vmem:[#allocation7 + $0x168] ss:$16 sps:$4 sm:$0xff]   ;;  %vm2432_vm0 = vcmask 1042432   ;;  %vm2675_vm1 = vcmask 64512   ;;  %vm4108_vm2 = vcmask 785408  }
  0x26   :  { %v338_v48 = vld [vmem:[%s10142_s0 + $0x48] sm:$0x3]  ;;  %v6947_v52 = vld [vmem:[#allocation7 + $0x184] ss:$16 sps:$4 sm:$0xff]   ;;  %v6952_v55 = vld [vmem:[#allocation7 + $0x188] ss:$16 sps:$4 sm:$0xff]  }
  0x27   :  { %1642 = vmatpush1.bf16.msra.mxu0 %v6903_v19  ;;  %1814 = vmatpush1.bf16.msra.mxu1 %v6904_v20  ;;  %v346_v51 = vpack.c.bf16 %v338_v48, %v330_v47  ;;  %v6949_v53 = vld [vmem:[#allocation7 + $0x18c] ss:$16 sps:$4 sm:$0xff]   ;;  %v6951_v54 = vld [vmem:[#allocation7 + $0x180] ss:$16 sps:$4 sm:$0xff]   ;;  %v6953_v56 = vld [vmem:[#allocation7 + $0x1a4] ss:$16 sps:$4 sm:$0xff]  }
  0x28   :  { %1643 = vmatprep.subr.bf16.mxu0 %v6905_v21  ;;  %1815 = vmatprep.subr.bf16.mxu1 %v6907_v22  ;;  %v6955_v57 = vld [vmem:[#allocation7 + $0x1ac] ss:$16 sps:$4 sm:$0xff]   ;;  %v6957_v58 = vld [vmem:[#allocation7 + $0x1a0] ss:$16 sps:$4 sm:$0xff]   ;;  %v6958_v59 = vld [vmem:[#allocation7 + $0x1a8] ss:$16 sps:$4 sm:$0xff]  }
  0x29   :  { %1665 = vmatprep.mubr.bf16.mxu0 %v346_v51  ;;  %1837 = vmatprep.mubr.bf16.mxu1 %v346_v51  ;;  %v6959_v60 = vld [vmem:[#allocation7 + $0x1c4] ss:$16 sps:$4 sm:$0xff]   ;;  %v6961_v61 = vld [vmem:[#allocation7 + $0x1cc] ss:$16 sps:$4 sm:$0xff]   ;;  %v6963_v62 = vld [vmem:[#allocation7 + $0x1c0] ss:$16 sps:$4 sm:$0xff]  }
  0x2a   :  { %v6964_v63 = vld [vmem:[#allocation7 + $0x1c8] ss:$16 sps:$4 sm:$0xff]   ;;  %v6965_v0 = vld [vmem:[#allocation7 + $0x1e4] ss:$16 sps:$4 sm:$0xff]   ;;  %v6967_v1 = vld [vmem:[#allocation7 + $0x1ec] ss:$16 sps:$4 sm:$0xff]  }
  0x2b   :  { %1644 = vmatpush1.bf16.msra.mxu0 %v6909_v23  ;;  %1816 = vmatpush1.bf16.msra.mxu1 %v6910_v24  ;;  %v6969_v2 = vld [vmem:[#allocation7 + $0x1e0] ss:$16 sps:$4 sm:$0xff]   ;;  %v6970_v3 = vld [vmem:[#allocation7 + $0x1e8] ss:$16 sps:$4 sm:$0xff]   ;;  %v6973_v4 = vld [vmem:[#allocation7 + $0x204] ss:$16 sps:$4 sm:$0xff]  }
  0x2c   :  { %1645 = vmatprep.subr.bf16.mxu0 %v6911_v25  ;;  %1817 = vmatprep.subr.bf16.mxu1 %v6913_v26  ;;  %v329_v5 = vld [vmem:[%s10142_s0] sm:$0xff]  ;;  %v6971_v8 = vld [vmem:[#allocation7 + $0x200] ss:$16 sps:$4 sm:$0xff]   ;;  %vm5903_vm4 = vcmask 1041408   ;;  %vm6105_vm5 = vcmask 10240  }
  0x2d   :  { %v337_v6 = vld [vmem:[%s10142_s0 + $0x40] sm:$0x3]  ;;  %v6976_v7 = vld [vmem:[#allocation7 + $0x20c] ss:$16 sps:$4 sm:$0xff]   ;;  %v6977_v13 = vld [vmem:[#allocation7 + $0x220] ss:$16 sps:$4 sm:$0xff]  }
  0x2e   :  { %v6974_v9 = vld [vmem:[#allocation7 + $0x208] ss:$16 sps:$4 sm:$0xff]   ;;  %v345_v10 = vpack.c.bf16 %v337_v6, %v329_v5  ;;  %v6979_v11 = vld [vmem:[#allocation7 + $0x224] ss:$16 sps:$4 sm:$0xff]   ;;  %v6982_v12 = vld [vmem:[#allocation7 + $0x22c] ss:$16 sps:$4 sm:$0xff]  }
  0x2f   :  { %1646 = vmatpush1.bf16.msra.mxu0 %v6915_v27  ;;  %1818 = vmatpush1.bf16.msra.mxu1 %v6916_v28  ;;  %v6980_v14 = vld [vmem:[#allocation7 + $0x228] ss:$16 sps:$4 sm:$0xff]   ;;  %v6985_v15 = vld [vmem:[#allocation7 + $0x244] ss:$16 sps:$4 sm:$0xff]   ;;  %v6988_v16 = vld [vmem:[#allocation7 + $0x24c] ss:$16 sps:$4 sm:$0xff]  }
  0x30   :  { %1647 = vmatprep.subr.bf16.mxu0 %v6917_v29  ;;  %1819 = vmatprep.subr.bf16.mxu1 %v6919_v30  ;;  %v6983_v17 = vld [vmem:[#allocation7 + $0x240] ss:$16 sps:$4 sm:$0xff]   ;;  %v6986_v18 = vld [vmem:[#allocation7 + $0x248] ss:$16 sps:$4 sm:$0xff]   ;;  %v6991_v19 = vld [vmem:[#allocation7 + $0x264] ss:$16 sps:$4 sm:$0xff]  }
  0x31   :  { %v6994_v20 = vld [vmem:[#allocation7 + $0x26c] ss:$16 sps:$4 sm:$0xff]   ;;  %v6989_v21 = vld [vmem:[#allocation7 + $0x260] ss:$16 sps:$4 sm:$0xff]   ;;  %v6992_v22 = vld [vmem:[#allocation7 + $0x268] ss:$16 sps:$4 sm:$0xff]  }
  0x32   :  { %v6997_v23 = vld [vmem:[#allocation7 + $0x284] ss:$16 sps:$4 sm:$0xff]   ;;  %v7000_v24 = vld [vmem:[#allocation7 + $0x28c] ss:$16 sps:$4 sm:$0xff]   ;;  %v6995_v25 = vld [vmem:[#allocation7 + $0x280] ss:$16 sps:$4 sm:$0xff]  }
  0x33   :  { %1648 = vmatpush1.bf16.msra.mxu0 %v6921_v31  ;;  %1820 = vmatpush1.bf16.msra.mxu1 %v6922_v32  ;;  %v6998_v26 = vld [vmem:[#allocation7 + $0x288] ss:$16 sps:$4 sm:$0xff]   ;;  %v7003_v27 = vld [vmem:[#allocation7 + $0x2a4] ss:$16 sps:$4 sm:$0xff]   ;;  %v7006_v28 = vld [vmem:[#allocation7 + $0x2ac] ss:$16 sps:$4 sm:$0xff]  }
  0x34   :  { %1649 = vmatprep.subr.bf16.mxu0 %v6923_v33  ;;  %1821 = vmatprep.subr.bf16.mxu1 %v6925_v34  ;;  %v7001_v29 = vld [vmem:[#allocation7 + $0x2a0] ss:$16 sps:$4 sm:$0xff]   ;;  %v7004_v30 = vld [vmem:[#allocation7 + $0x2a8] ss:$16 sps:$4 sm:$0xff]   ;;  %v7009_v31 = vld [vmem:[#allocation7 + $0x2c4] ss:$16 sps:$4 sm:$0xff]  }
  0x35   :  { %v7012_v32 = vld [vmem:[#allocation7 + $0x2cc] ss:$16 sps:$4 sm:$0xff]   ;;  %v7025_v48 = vld [vmem:[#allocation7 + $0x320] ss:$16 sps:$4 sm:$0xff]   ;;  %v7058_v5 = vld [vmem:[#allocation7 + $0x3c8] ss:$16 sps:$4 sm:$0xff]  }
  0x36   :  { %v332_v33 = vld [vmem:[%s10142_s0 + $0x18] sm:$0xff] }
  0x37   :  { %1650 = vmatpush1.bf16.msra.mxu0 %v6927_v35  ;;  %1822 = vmatpush1.bf16.msra.mxu1 %v6928_v36  ;;  %v340_v34 = vld [vmem:[%s10142_s0 + $0x58] sm:$0x3]  ;;  %v7010_v36 = vld [vmem:[#allocation7 + $0x2c8] ss:$16 sps:$4 sm:$0xff]   ;;  %v7063_v6 = vld [vmem:[#allocation7 + $0x3e4] ss:$16 sps:$4 sm:$0xff]  }
  0x38   :  { %1651 = vmatprep.subr.bf16.mxu0 %v6929_v37  ;;  %1823 = vmatprep.subr.bf16.mxu1 %v6931_v38  ;;  %v7007_v35 = vld [vmem:[#allocation7 + $0x2c0] ss:$16 sps:$4 sm:$0xff]   ;;  %v348_v37 = vpack.c.bf16 %v340_v34, %v332_v33  ;;  %v7015_v38 = vld [vmem:[#allocation7 + $0x2e4] ss:$16 sps:$4 sm:$0xff]   ;;  %v7030_v47 = vld [vmem:[#allocation7 + $0x32c] ss:$16 sps:$4 sm:$0xff]  }
  0x39   :  { %v7036_v51 = vld [vmem:[#allocation7 + $0x34c] ss:$16 sps:$4 sm:$0xff]   ;;  %v7611_v34 = vld [vmem:[#allocation7 + $0x480] ss:$16 sps:$4 sm:$0xff]  }
  0x3a   :  { %v7609_v33 = vld [vmem:[#allocation7 + $0x48c] ss:$16 sps:$4 sm:$0xff]  }
  0x3b   :  { %1652 = vmatpush1.bf16.msra.mxu0 %v6933_v39  ;;  %1824 = vmatpush1.bf16.msra.mxu1 %v6934_v40  ;;  %v7018_v39 = vld [vmem:[#allocation7 + $0x2ec] ss:$16 sps:$4 sm:$0xff]   ;;  %v7013_v40 = vld [vmem:[#allocation7 + $0x2e0] ss:$16 sps:$4 sm:$0xff]  }
  0x3c   :  { %1653 = vmatprep.subr.bf16.mxu0 %v6935_v41  ;;  %1825 = vmatprep.subr.bf16.mxu1 %v6937_v42  ;;  %v7016_v41 = vld [vmem:[#allocation7 + $0x2e8] ss:$16 sps:$4 sm:$0xff]   ;;  %v7021_v42 = vld [vmem:[#allocation7 + $0x304] ss:$16 sps:$4 sm:$0xff]  }
  0x3f   :  { %1654 = vmatpush1.bf16.msra.mxu0 %v6939_v43  ;;  %1826 = vmatpush1.bf16.msra.mxu1 %v6940_v44  ;;  %v7024_v43 = vld [vmem:[#allocation7 + $0x30c] ss:$16 sps:$4 sm:$0xff]   ;;  %v7019_v44 = vld [vmem:[#allocation7 + $0x300] ss:$16 sps:$4 sm:$0xff]  }
  0x40   :  { %1655 = vmatprep.subr.bf16.mxu0 %v6941_v45  ;;  %1827 = vmatprep.subr.bf16.mxu1 %v6943_v46  ;;  %v7022_v45 = vld [vmem:[#allocation7 + $0x308] ss:$16 sps:$4 sm:$0xff]   ;;  %v7027_v46 = vld [vmem:[#allocation7 + $0x324] ss:$16 sps:$4 sm:$0xff]  }
  0x43   :  { %1656 = vmatpush1.bf16.msra.mxu0 %v6945_v49  ;;  %1828 = vmatpush1.bf16.msra.mxu1 %v6946_v50  ;;  %v7028_v49 = vld [vmem:[#allocation7 + $0x328] ss:$16 sps:$4 sm:$0xff]   ;;  %v7033_v50 = vld [vmem:[#allocation7 + $0x344] ss:$16 sps:$4 sm:$0xff]  }
  0x44   :  { %1657 = vmatprep.subr.bf16.mxu0 %v6947_v52  ;;  %1829 = vmatprep.subr.bf16.mxu1 %v6949_v53  ;;  %v7031_v52 = vld [vmem:[#allocation7 + $0x340] ss:$16 sps:$4 sm:$0xff]   ;;  %v7034_v53 = vld [vmem:[#allocation7 + $0x348] ss:$16 sps:$4 sm:$0xff]  }
  0x47   :  { %1658 = vmatpush1.bf16.msra.mxu0 %v6951_v54  ;;  %1830 = vmatpush1.bf16.msra.mxu1 %v6952_v55  ;;  %v7039_v54 = vld [vmem:[#allocation7 + $0x364] ss:$16 sps:$4 sm:$0xff]   ;;  %v7042_v55 = vld [vmem:[#allocation7 + $0x36c] ss:$16 sps:$4 sm:$0xff]  }
  0x48   :  { %1659 = vmatprep.subr.bf16.mxu0 %v6953_v56  ;;  %1831 = vmatprep.subr.bf16.mxu1 %v6955_v57  ;;  %v7037_v56 = vld [vmem:[#allocation7 + $0x360] ss:$16 sps:$4 sm:$0xff]   ;;  %v7040_v57 = vld [vmem:[#allocation7 + $0x368] ss:$16 sps:$4 sm:$0xff]  }
  0x4b   :  { %1660 = vmatpush1.bf16.msra.mxu0 %v6957_v58  ;;  %1832 = vmatpush1.bf16.msra.mxu1 %v6958_v59  ;;  %v7045_v58 = vld [vmem:[#allocation7 + $0x384] ss:$16 sps:$4 sm:$0xff]   ;;  %v7048_v59 = vld [vmem:[#allocation7 + $0x38c] ss:$16 sps:$4 sm:$0xff]  }
  0x4c   :  { %1661 = vmatprep.subr.bf16.mxu0 %v6959_v60  ;;  %1833 = vmatprep.subr.bf16.mxu1 %v6961_v61  ;;  %v7043_v60 = vld [vmem:[#allocation7 + $0x380] ss:$16 sps:$4 sm:$0xff]   ;;  %v7046_v61 = vld [vmem:[#allocation7 + $0x388] ss:$16 sps:$4 sm:$0xff]  }
  0x4f   :  { %1662 = vmatpush1.bf16.msra.mxu0 %v6963_v62  ;;  %1834 = vmatpush1.bf16.msra.mxu1 %v6964_v63  ;;  %v7051_v62 = vld [vmem:[#allocation7 + $0x3a4] ss:$16 sps:$4 sm:$0xff]   ;;  %v7054_v63 = vld [vmem:[#allocation7 + $0x3ac] ss:$16 sps:$4 sm:$0xff]  }
  0x50   :  { %1663 = vmatprep.subr.bf16.mxu0 %v6965_v0  ;;  %1835 = vmatprep.subr.bf16.mxu1 %v6967_v1  ;;  %v7049_v0 = vld [vmem:[#allocation7 + $0x3a0] ss:$16 sps:$4 sm:$0xff]   ;;  %v7052_v1 = vld [vmem:[#allocation7 + $0x3a8] ss:$16 sps:$4 sm:$0xff]  }
  0x53   :  { %1664 = vmatpush1.bf16.msra.mxu0 %v6969_v2  ;;  %1836 = vmatpush1.bf16.msra.mxu1 %v6970_v3  ;;  %v7057_v2 = vld [vmem:[#allocation7 + $0x3c4] ss:$16 sps:$4 sm:$0xff]   ;;  %v7060_v3 = vld [vmem:[#allocation7 + $0x3cc] ss:$16 sps:$4 sm:$0xff]  }
  0x54   :  { %1676 = vmatprep.subr.bf16.mxu0 %v6973_v4  ;;  %1848 = vmatprep.subr.bf16.mxu1 %v6976_v7  ;;  %v7055_v4 = vld [vmem:[#allocation7 + $0x3c0] ss:$16 sps:$4 sm:$0xff]   ;;  %v7066_v7 = vld [vmem:[#allocation7 + $0x3ec] ss:$16 sps:$4 sm:$0xff]  }
  0x56   :  { %1666 = vmatmul.mubr.bf16.vlgmr.msra.gmra.mrb[0].mxu0 %v345_v10  ;;  %1838 = vmatmul.mubr.bf16.vlgmr.msra.gmra.mrb[0].mxu1 %v345_v10  ;;  %v7069_v10 = vld [vmem:[#allocation7 + $0x404] ss:$16 sps:$4 sm:$0xff]  }
  0x57   :  { %1677 = vmatpush1.bf16.msra.mxu0 %v6971_v8  ;;  %1849 = vmatpush1.bf16.msra.mxu1 %v6974_v9  ;;  %v7061_v8 = vld [vmem:[#allocation7 + $0x3e0] ss:$16 sps:$4 sm:$0xff]   ;;  %v7064_v9 = vld [vmem:[#allocation7 + $0x3e8] ss:$16 sps:$4 sm:$0xff]  }
  0x58   :  { %1678 = vmatprep.subr.bf16.mxu0 %v6979_v11  ;;  %1850 = vmatprep.subr.bf16.mxu1 %v6982_v12  ;;  %v331_v11 = vld [vmem:[%s10142_s0 + $0x10] sm:$0xff] }
  0x59   :  { %1708 = vmatprep.mubr.bf16.mxu0 %v348_v37  ;;  %1880 = vmatprep.mubr.bf16.mxu1 %v348_v37  ;;  %v339_v12 = vld [vmem:[%s10142_s0 + $0x50] sm:$0x3]  ;;  %v7621_v37 = vld [vmem:[#allocation7 + $0x4ac] ss:$16 sps:$4 sm:$0xff]  }
  0x5b   :  { %1679 = vmatpush1.bf16.msra.mxu0 %v6977_v13  ;;  %1851 = vmatpush1.bf16.msra.mxu1 %v6980_v14  ;;  %v7072_v13 = vld [vmem:[#allocation7 + $0x40c] ss:$16 sps:$4 sm:$0xff]   ;;  %v7067_v14 = vld [vmem:[#allocation7 + $0x400] ss:$16 sps:$4 sm:$0xff]  }
  0x5c   :  { %1680 = vmatprep.subr.bf16.mxu0 %v6985_v15  ;;  %1852 = vmatprep.subr.bf16.mxu1 %v6988_v16  ;;  %v7070_v15 = vld [vmem:[#allocation7 + $0x408] ss:$16 sps:$4 sm:$0xff]   ;;  %v347_v16 = vpack.c.bf16 %v339_v12, %v331_v11  ;;  %v7739_v12 = vld [vmem:[#allocation7 + $0x5e4] ss:$16 sps:$4 sm:$0xff]  }
  0x5d   :  { %v7735_v11 = vld [vmem:[#allocation7 + $0x5c8] ss:$16 sps:$4 sm:$0xff]   ;;  %10260 = vst [vmem:[#allocation17_spill] sm:$0xff] %v7739_v12 }
  0x5e   :  { %10259 = vst [vmem:[#allocation16_spill] sm:$0xff] %v7735_v11 }
  0x5f   :  { %1681 = vmatpush1.bf16.msra.mxu0 %v6983_v17  ;;  %1853 = vmatpush1.bf16.msra.mxu1 %v6986_v18  ;;  %v7567_v17 = vld [vmem:[#allocation7 + $0x424] ss:$16 sps:$4 sm:$0xff]   ;;  %v7569_v18 = vld [vmem:[#allocation7 + $0x42c] ss:$16 sps:$4 sm:$0xff]  }
  0x60   :  { %1682 = vmatprep.subr.bf16.mxu0 %v6991_v19  ;;  %1854 = vmatprep.subr.bf16.mxu1 %v6994_v20  ;;  %v334_v19 = vld [vmem:[%s10142_s0 + $0x28] sm:$0xff] }
  0x61   :  { %v342_v20 = vld [vmem:[%s10142_s0 + $0x68] sm:$0x3] }
  0x63   :  { %1683 = vmatpush1.bf16.msra.mxu0 %v6989_v21  ;;  %1855 = vmatpush1.bf16.msra.mxu1 %v6992_v22  ;;  %v7577_v21 = vld [vmem:[#allocation7 + $0x420] ss:$16 sps:$4 sm:$0xff]   ;;  %v7579_v22 = vld [vmem:[#allocation7 + $0x428] ss:$16 sps:$4 sm:$0xff]  }
  0x64   :  { %1684 = vmatprep.subr.bf16.mxu0 %v6997_v23  ;;  %1856 = vmatprep.subr.bf16.mxu1 %v7000_v24  ;;  %v350_v23 = vpack.c.bf16 %v342_v20, %v334_v19  ;;  %v7583_v24 = vld [vmem:[#allocation7 + $0x444] ss:$16 sps:$4 sm:$0xff]  }
  0x65   :  { %v341_v19 = vld [vmem:[%s10142_s0 + $0x60] sm:$0x3] }
  0x66   :  { %v7757_v20 = vld [vmem:[#allocation7 + $0x604] ss:$16 sps:$4 sm:$0xff]  }
  0x67   :  { %1685 = vmatpush1.bf16.msra.mxu0 %v6995_v25  ;;  %1857 = vmatpush1.bf16.msra.mxu1 %v6998_v26  ;;  %v7585_v25 = vld [vmem:[#allocation7 + $0x44c] ss:$16 sps:$4 sm:$0xff]   ;;  %v7587_v26 = vld [vmem:[#allocation7 + $0x440] ss:$16 sps:$4 sm:$0xff]   ;;  %10264 = vst [vmem:[#allocation21_spill] sm:$0xff] %v7757_v20 }
  0x68   :  { %1686 = vmatprep.subr.bf16.mxu0 %v7003_v27  ;;  %1858 = vmatprep.subr.bf16.mxu1 %v7006_v28  ;;  %v7589_v27 = vld [vmem:[#allocation7 + $0x448] ss:$16 sps:$4 sm:$0xff]   ;;  %v7593_v28 = vld [vmem:[#allocation7 + $0x464] ss:$16 sps:$4 sm:$0xff]  }
  0x6b   :  { %1687 = vmatpush1.bf16.msra.mxu0 %v7001_v29  ;;  %1859 = vmatpush1.bf16.msra.mxu1 %v7004_v30  ;;  %v7597_v29 = vld [vmem:[#allocation7 + $0x46c] ss:$16 sps:$4 sm:$0xff]   ;;  %v7599_v30 = vld [vmem:[#allocation7 + $0x460] ss:$16 sps:$4 sm:$0xff]  }
  0x6c   :  { %1688 = vmatprep.subr.bf16.mxu0 %v7009_v31  ;;  %1860 = vmatprep.subr.bf16.mxu1 %v7012_v32  ;;  %v7601_v31 = vld [vmem:[#allocation7 + $0x468] ss:$16 sps:$4 sm:$0xff]   ;;  %v7605_v32 = vld [vmem:[#allocation7 + $0x484] ss:$16 sps:$4 sm:$0xff]  }
  0x6f   :  { %1689 = vmatpush1.bf16.msra.mxu0 %v7007_v35  ;;  %1861 = vmatpush1.bf16.msra.mxu1 %v7010_v36  ;;  %v7613_v35 = vld [vmem:[#allocation7 + $0x488] ss:$16 sps:$4 sm:$0xff]   ;;  %v7617_v36 = vld [vmem:[#allocation7 + $0x4a4] ss:$16 sps:$4 sm:$0xff]  }
  0x70   :  { %1690 = vmatprep.subr.bf16.mxu0 %v7015_v38  ;;  %1862 = vmatprep.subr.bf16.mxu1 %v7018_v39  ;;  %v7623_v38 = vld [vmem:[#allocation7 + $0x4a0] ss:$16 sps:$4 sm:$0xff]   ;;  %v7625_v39 = vld [vmem:[#allocation7 + $0x4a8] ss:$16 sps:$4 sm:$0xff]  }
  0x73   :  { %1691 = vmatpush1.bf16.msra.mxu0 %v7013_v40  ;;  %1863 = vmatpush1.bf16.msra.mxu1 %v7016_v41  ;;  %v7629_v40 = vld [vmem:[#allocation7 + $0x4c4] ss:$16 sps:$4 sm:$0xff]   ;;  %v7633_v41 = vld [vmem:[#allocation7 + $0x4cc] ss:$16 sps:$4 sm:$0xff]  }
  0x74   :  { %1692 = vmatprep.subr.bf16.mxu0 %v7021_v42  ;;  %1864 = vmatprep.subr.bf16.mxu1 %v7024_v43  ;;  %v7635_v42 = vld [vmem:[#allocation7 + $0x4c0] ss:$16 sps:$4 sm:$0xff]   ;;  %v7637_v43 = vld [vmem:[#allocation7 + $0x4c8] ss:$16 sps:$4 sm:$0xff]  }
  0x77   :  { %1693 = vmatpush1.bf16.msra.mxu0 %v7019_v44  ;;  %1865 = vmatpush1.bf16.msra.mxu1 %v7022_v45  ;;  %v7641_v44 = vld [vmem:[#allocation7 + $0x4e4] ss:$16 sps:$4 sm:$0xff]   ;;  %v7645_v45 = vld [vmem:[#allocation7 + $0x4ec] ss:$16 sps:$4 sm:$0xff]  }
  0x78   :  { %1694 = vmatprep.subr.bf16.mxu0 %v7027_v46  ;;  %1866 = vmatprep.subr.bf16.mxu1 %v7030_v47  ;;  %v7647_v46 = vld [vmem:[#allocation7 + $0x4e0] ss:$16 sps:$4 sm:$0xff]   ;;  %v7649_v47 = vld [vmem:[#allocation7 + $0x4e8] ss:$16 sps:$4 sm:$0xff]  }
  0x7b   :  { %1695 = vmatpush1.bf16.msra.mxu0 %v7025_v48  ;;  %1867 = vmatpush1.bf16.msra.mxu1 %v7028_v49  ;;  %v7653_v48 = vld [vmem:[#allocation7 + $0x504] ss:$16 sps:$4 sm:$0xff]   ;;  %v7657_v49 = vld [vmem:[#allocation7 + $0x50c] ss:$16 sps:$4 sm:$0xff]  }
  0x7c   :  { %1696 = vmatprep.subr.bf16.mxu0 %v7033_v50  ;;  %1868 = vmatprep.subr.bf16.mxu1 %v7036_v51  ;;  %v7659_v50 = vld [vmem:[#allocation7 + $0x500] ss:$16 sps:$4 sm:$0xff]   ;;  %v7661_v51 = vld [vmem:[#allocation7 + $0x508] ss:$16 sps:$4 sm:$0xff]  }
  0x7f   :  { %1697 = vmatpush1.bf16.msra.mxu0 %v7031_v52  ;;  %1869 = vmatpush1.bf16.msra.mxu1 %v7034_v53  ;;  %v7665_v52 = vld [vmem:[#allocation7 + $0x524] ss:$16 sps:$4 sm:$0xff]   ;;  %v7669_v53 = vld [vmem:[#allocation7 + $0x52c] ss:$16 sps:$4 sm:$0xff]  }
  0x80   :  { %1698 = vmatprep.subr.bf16.mxu0 %v7039_v54  ;;  %1870 = vmatprep.subr.bf16.mxu1 %v7042_v55  ;;  %v7671_v54 = vld [vmem:[#allocation7 + $0x520] ss:$16 sps:$4 sm:$0xff]   ;;  %v7673_v55 = vld [vmem:[#allocation7 + $0x528] ss:$16 sps:$4 sm:$0xff]  }
  0x83   :  { %1699 = vmatpush1.bf16.msra.mxu0 %v7037_v56  ;;  %1871 = vmatpush1.bf16.msra.mxu1 %v7040_v57  ;;  %v7677_v56 = vld [vmem:[#allocation7 + $0x544] ss:$16 sps:$4 sm:$0xff]   ;;  %v7681_v57 = vld [vmem:[#allocation7 + $0x54c] ss:$16 sps:$4 sm:$0xff]  }
  0x84   :  { %1700 = vmatprep.subr.bf16.mxu0 %v7045_v58  ;;  %1872 = vmatprep.subr.bf16.mxu1 %v7048_v59  ;;  %v7683_v58 = vld [vmem:[#allocation7 + $0x540] ss:$16 sps:$4 sm:$0xff]   ;;  %v7685_v59 = vld [vmem:[#allocation7 + $0x548] ss:$16 sps:$4 sm:$0xff]  }
  0x87   :  { %1701 = vmatpush1.bf16.msra.mxu0 %v7043_v60  ;;  %1873 = vmatpush1.bf16.msra.mxu1 %v7046_v61  ;;  %v7689_v60 = vld [vmem:[#allocation7 + $0x564] ss:$16 sps:$4 sm:$0xff]   ;;  %v7693_v61 = vld [vmem:[#allocation7 + $0x56c] ss:$16 sps:$4 sm:$0xff]  }
  0x88   :  { %1702 = vmatprep.subr.bf16.mxu0 %v7051_v62  ;;  %1874 = vmatprep.subr.bf16.mxu1 %v7054_v63  ;;  %v7695_v62 = vld [vmem:[#allocation7 + $0x560] ss:$16 sps:$4 sm:$0xff]   ;;  %v7697_v63 = vld [vmem:[#allocation7 + $0x568] ss:$16 sps:$4 sm:$0xff]  }
  0x8b   :  { %1703 = vmatpush1.bf16.msra.mxu0 %v7049_v0  ;;  %1875 = vmatpush1.bf16.msra.mxu1 %v7052_v1  ;;  %v7701_v0 = vld [vmem:[#allocation7 + $0x584] ss:$16 sps:$4 sm:$0xff]   ;;  %v7705_v1 = vld [vmem:[#allocation7 + $0x58c] ss:$16 sps:$4 sm:$0xff]  }
  0x8c   :  { %1704 = vmatprep.subr.bf16.mxu0 %v7057_v2  ;;  %1876 = vmatprep.subr.bf16.mxu1 %v7060_v3  ;;  %v7709_v2 = vld [vmem:[#allocation7 + $0x580] ss:$16 sps:$4 sm:$0xff]   ;;  %v7711_v3 = vld [vmem:[#allocation7 + $0x588] ss:$16 sps:$4 sm:$0xff]  }
  0x8f   :  { %1705 = vmatpush1.bf16.msra.mxu0 %v7055_v4  ;;  %1877 = vmatpush1.bf16.msra.mxu1 %v7058_v5  ;;  %v7715_v4 = vld [vmem:[#allocation7 + $0x5a4] ss:$16 sps:$4 sm:$0xff]   ;;  %v7717_v5 = vld [vmem:[#allocation7 + $0x5ac] ss:$16 sps:$4 sm:$0xff]  }
  0x90   :  { %1706 = vmatprep.subr.bf16.mxu0 %v7063_v6  ;;  %1878 = vmatprep.subr.bf16.mxu1 %v7066_v7  ;;  %10253 = vst [vmem:[#allocation10_spill] sm:$0xff] %v7717_v5  ;;  %v7721_v6 = vld [vmem:[#allocation7 + $0x5a0] ss:$16 sps:$4 sm:$0xff]   ;;  %v7723_v7 = vld [vmem:[#allocation7 + $0x5a8] ss:$16 sps:$4 sm:$0xff]  }
  0x91   :  { %10254 = vst [vmem:[#allocation11_spill] sm:$0xff] %v7721_v6  ;;  %10255 = vst [vmem:[#allocation12_spill] sm:$0xff] %v7723_v7 }
  0x93   :  { %1707 = vmatpush1.bf16.msra.mxu0 %v7061_v8  ;;  %1879 = vmatpush1.bf16.msra.mxu1 %v7064_v9  ;;  %v7727_v8 = vld [vmem:[#allocation7 + $0x5c4] ss:$16 sps:$4 sm:$0xff]   ;;  %v7729_v9 = vld [vmem:[#allocation7 + $0x5cc] ss:$16 sps:$4 sm:$0xff]  }
  0x94   :  { %1719 = vmatprep.subr.bf16.mxu0 %v7069_v10  ;;  %1891 = vmatprep.subr.bf16.mxu1 %v7072_v13  ;;  %10256 = vst [vmem:[#allocation13_spill] sm:$0xff] %v7727_v8  ;;  %10257 = vst [vmem:[#allocation14_spill] sm:$0xff] %v7729_v9  ;;  %v7733_v10 = vld [vmem:[#allocation7 + $0x5c0] ss:$16 sps:$4 sm:$0xff]   ;;  %v7741_v13 = vld [vmem:[#allocation7 + $0x5ec] ss:$16 sps:$4 sm:$0xff]  }
  0x95   :  { %10258 = vst [vmem:[#allocation15_spill] sm:$0xff] %v7733_v10  ;;  %10261 = vst [vmem:[#allocation18_spill] sm:$0xff] %v7741_v13 }
  0x96   :  { %1709 = vmatmul.mubr.bf16.vlgmr.msra.gmra.mrb[0].mxu0 %v347_v16  ;;  %1881 = vmatmul.mubr.bf16.vlgmr.msra.gmra.mrb[0].mxu1 %v347_v16  ;;  %v333_v16 = vld [vmem:[%s10142_s0 + $0x20] sm:$0xff] }
  0x97   :  { %1720 = vmatpush1.bf16.msra.mxu0 %v7067_v14  ;;  %1892 = vmatpush1.bf16.msra.mxu1 %v7070_v15  ;;  %v7743_v14 = vld [vmem:[#allocation7 + $0x5e0] ss:$16 sps:$4 sm:$0xff]   ;;  %v7747_v15 = vld [vmem:[#allocation7 + $0x5e8] ss:$16 sps:$4 sm:$0xff]  }
  0x98   :  { %1721 = vmatprep.subr.bf16.mxu0 %v7567_v17  ;;  %1893 = vmatprep.subr.bf16.mxu1 %v7569_v18  ;;  %10262 = vst [vmem:[#allocation19_spill] sm:$0xff] %v7743_v14  ;;  %10263 = vst [vmem:[#allocation20_spill] sm:$0xff] %v7747_v15 }
  0x99   :  { %1751 = vmatprep.mubr.bf16.mxu0 %v350_v23  ;;  %1923 = vmatprep.mubr.bf16.mxu1 %v350_v23  ;;  %v7759_v23 = vld [vmem:[#allocation7 + $0x60c] ss:$16 sps:$4 sm:$0xff]  }
  0x9a   :  { %10265 = vst [vmem:[#allocation22_spill] sm:$0xff] %v7759_v23 }
  0x9b   :  { %1722 = vmatpush1.bf16.msra.mxu0 %v7577_v21  ;;  %1894 = vmatpush1.bf16.msra.mxu1 %v7579_v22 }
  0x9c   :  { %1723 = vmatprep.subr.bf16.mxu0 %v7583_v24  ;;  %1895 = vmatprep.subr.bf16.mxu1 %v7585_v25 }
  0x9f   :  { %1724 = vmatpush1.bf16.msra.mxu0 %v7587_v26  ;;  %1896 = vmatpush1.bf16.msra.mxu1 %v7589_v27 }
  0xa0   :  { %1725 = vmatprep.subr.bf16.mxu0 %v7593_v28  ;;  %1897 = vmatprep.subr.bf16.mxu1 %v7597_v29 }
  0xa3   :  { %1726 = vmatpush1.bf16.msra.mxu0 %v7599_v30  ;;  %1898 = vmatpush1.bf16.msra.mxu1 %v7601_v31 }
  0xa4   :  { %1727 = vmatprep.subr.bf16.mxu0 %v7605_v32  ;;  %1899 = vmatprep.subr.bf16.mxu1 %v7609_v33 }
  0xa7   :  { %1728 = vmatpush1.bf16.msra.mxu0 %v7611_v34  ;;  %1900 = vmatpush1.bf16.msra.mxu1 %v7613_v35 }
  0xa8   :  { %1729 = vmatprep.subr.bf16.mxu0 %v7617_v36  ;;  %1901 = vmatprep.subr.bf16.mxu1 %v7621_v37 }
  0xab   :  { %1730 = vmatpush1.bf16.msra.mxu0 %v7623_v38  ;;  %1902 = vmatpush1.bf16.msra.mxu1 %v7625_v39 }
  0xac   :  { %1731 = vmatprep.subr.bf16.mxu0 %v7629_v40  ;;  %1903 = vmatprep.subr.bf16.mxu1 %v7633_v41 }
  0xaf   :  { %1732 = vmatpush1.bf16.msra.mxu0 %v7635_v42  ;;  %1904 = vmatpush1.bf16.msra.mxu1 %v7637_v43 }
  0xb0   :  { %1733 = vmatprep.subr.bf16.mxu0 %v7641_v44  ;;  %1905 = vmatprep.subr.bf16.mxu1 %v7645_v45 }
  0xb3   :  { %1734 = vmatpush1.bf16.msra.mxu0 %v7647_v46  ;;  %1906 = vmatpush1.bf16.msra.mxu1 %v7649_v47 }
  0xb4   :  { %1735 = vmatprep.subr.bf16.mxu0 %v7653_v48  ;;  %1907 = vmatprep.subr.bf16.mxu1 %v7657_v49 }
  0xb7   :  { %1736 = vmatpush1.bf16.msra.mxu0 %v7659_v50  ;;  %1908 = vmatpush1.bf16.msra.mxu1 %v7661_v51 }
  0xb8   :  { %1737 = vmatprep.subr.bf16.mxu0 %v7665_v52  ;;  %1909 = vmatprep.subr.bf16.mxu1 %v7669_v53 }
  0xbb   :  { %1738 = vmatpush1.bf16.msra.mxu0 %v7671_v54  ;;  %1910 = vmatpush1.bf16.msra.mxu1 %v7673_v55 }
  0xbc   :  { %1739 = vmatprep.subr.bf16.mxu0 %v7677_v56  ;;  %1911 = vmatprep.subr.bf16.mxu1 %v7681_v57 }
  0xbf   :  { %1740 = vmatpush1.bf16.msra.mxu0 %v7683_v58  ;;  %1912 = vmatpush1.bf16.msra.mxu1 %v7685_v59 }
  0xc0   :  { %1741 = vmatprep.subr.bf16.mxu0 %v7689_v60  ;;  %1913 = vmatprep.subr.bf16.mxu1 %v7693_v61 }
  0xc3   :  { %1742 = vmatpush1.bf16.msra.mxu0 %v7695_v62  ;;  %1914 = vmatpush1.bf16.msra.mxu1 %v7697_v63 }
  0xc4   :  { %1743 = vmatprep.subr.bf16.mxu0 %v7701_v0  ;;  %1915 = vmatprep.subr.bf16.mxu1 %v7705_v1 }
  0xc7   :  { %1744 = vmatpush1.bf16.msra.mxu0 %v7709_v2  ;;  %1916 = vmatpush1.bf16.msra.mxu1 %v7711_v3 }
  0xc8   :  { %1745 = vmatprep.subr.bf16.mxu0 %v7715_v4  ;;  %1917 = vmatprep.subr.bf16.mxu1 %v7717_v5  ;;  %v7275_v5 = vld [vmem:[#allocation7 + $0x24] ss:$16 sps:$4 sm:$0xff]  }
  0xcb   :  { %1746 = vmatpush1.bf16.msra.mxu0 %v7721_v6  ;;  %1918 = vmatpush1.bf16.msra.mxu1 %v7723_v7  ;;  %v7243_v7 = vld [vmem:[#allocation7 + $0x7a4] ss:$16 sps:$4 sm:$0xff]   ;;  %v7244_v6 = vld [vmem:[#allocation7 + $0x7a8] ss:$16 sps:$4 sm:$0xff]  }
  0xcc   :  { %1747 = vmatprep.subr.bf16.mxu0 %v7727_v8  ;;  %1919 = vmatprep.subr.bf16.mxu1 %v7729_v9  ;;  %v344_v9 = vld [vmem:[%s10142_s0 + $0x78] sm:$0x3] }
  0xcf   :  { %1748 = vmatpush1.bf16.msra.mxu0 %v7733_v10  ;;  %1920 = vmatpush1.bf16.msra.mxu1 %v7735_v11  ;;  %v349_v10 = vpack.c.bf16 %v341_v19, %v333_v16  ;;  %v336_v11 = vld [vmem:[%s10142_s0 + $0x38] sm:$0xff] }
  0xd0   :  { %1749 = vmatprep.subr.bf16.mxu0 %v7739_v12  ;;  %1921 = vmatprep.subr.bf16.mxu1 %v7741_v13  ;;  %v7769_v12 = vld [vmem:[#allocation7 + $0x600] ss:$16 sps:$4 sm:$0xff]   ;;  %v7771_v13 = vld [vmem:[#allocation7 + $0x608] ss:$16 sps:$4 sm:$0xff]   ;;  %v7775_v16 = vld [vmem:[#allocation7 + $0x624] ss:$16 sps:$4 sm:$0xff]   ;;  %v352_v8 = vpack.c.bf16 %v344_v9, %v336_v11 }
  0xd1   :  { %10266 = vst [vmem:[#allocation23_spill] sm:$0xff] %v7769_v12  ;;  %10267 = vst [vmem:[#allocation24_spill] sm:$0xff] %v7771_v13  ;;  %v7777_v19 = vld [vmem:[#allocation7 + $0x62c] ss:$16 sps:$4 sm:$0xff]   ;;  %v7793_v9 = vld [vmem:[#allocation7 + $0x640] ss:$16 sps:$4 sm:$0xff]  }
  0xd2   :  { %10268 = vst [vmem:[#allocation25_spill] sm:$0xff] %v7775_v16  ;;  %10269 = vst [vmem:[#allocation26_spill] sm:$0xff] %v7777_v19  ;;  %v7799_v11 = vld [vmem:[#allocation7 + $0x664] ss:$16 sps:$4 sm:$0xff]  }
  0xd3   :  { %1750 = vmatpush1.bf16.msra.mxu0 %v7743_v14  ;;  %1922 = vmatpush1.bf16.msra.mxu1 %v7747_v15  ;;  %v7781_v15 = vld [vmem:[#allocation7 + $0x620] ss:$16 sps:$4 sm:$0xff]   ;;  %v7783_v14 = vld [vmem:[#allocation7 + $0x628] ss:$16 sps:$4 sm:$0xff]   ;;  %10274 = vst [vmem:[#allocation31_spill] sm:$0xff] %v7793_v9  ;;  %10276 = vst [vmem:[#allocation33_spill] sm:$0xff] %v7799_v11 }
  0xd4   :  { %1762 = vmatprep.subr.bf16.mxu0 %v7757_v20  ;;  %1934 = vmatprep.subr.bf16.mxu1 %v7759_v23  ;;  %10270 = vst [vmem:[#allocation27_spill] sm:$0xff] %v7781_v15  ;;  %10271 = vst [vmem:[#allocation28_spill] sm:$0xff] %v7783_v14  ;;  %v7787_v23 = vld [vmem:[#allocation7 + $0x644] ss:$16 sps:$4 sm:$0xff]   ;;  %v7789_v20 = vld [vmem:[#allocation7 + $0x64c] ss:$16 sps:$4 sm:$0xff]  }
  0xd5   :  { %10272 = vst [vmem:[#allocation29_spill] sm:$0xff] %v7787_v23  ;;  %10273 = vst [vmem:[#allocation30_spill] sm:$0xff] %v7789_v20 }
  0xd6   :  { %1752 = vmatmul.mubr.bf16.vlgmr.msra.gmra.mrb[0].mxu0 %v349_v10  ;;  %1924 = vmatmul.mubr.bf16.vlgmr.msra.gmra.mrb[0].mxu1 %v349_v10  ;;  %v7795_v10 = vld [vmem:[#allocation7 + $0x648] ss:$16 sps:$4 sm:$0xff]  }
  0xd7   :  { %1763 = vmatpush1.bf16.msra.mxu0 %v7769_v12  ;;  %1935 = vmatpush1.bf16.msra.mxu1 %v7771_v13  ;;  %10275 = vst [vmem:[#allocation32_spill] sm:$0xff] %v7795_v10  ;;  %v7237_v13 = vld [vmem:[#allocation7 + $0x784] ss:$16 sps:$4 sm:$0xff]   ;;  %v7240_v12 = vld [vmem:[#allocation7 + $0x78c] ss:$16 sps:$4 sm:$0xff]  }
  0xd8   :  { %1764 = vmatprep.subr.bf16.mxu0 %v7775_v16  ;;  %1936 = vmatprep.subr.bf16.mxu1 %v7777_v19  ;;  %v7801_v19 = vld [vmem:[#allocation7 + $0x66c] ss:$16 sps:$4 sm:$0xff]  }
  0xd9   :  { %1794 = vmatprep.mubr.bf16.mxu0 %v352_v8  ;;  %1966 = vmatprep.mubr.bf16.mxu1 %v352_v8  ;;  %10277 = vst [vmem:[#allocation34_spill] sm:$0xff] %v7801_v19  ;;  %v7805_v8 = vld [vmem:[#allocation7 + $0x660] ss:$16 sps:$4 sm:$0xff]   ;;  %v7234_v16 = vld [vmem:[#allocation7 + $0x76c] ss:$16 sps:$4 sm:$0xff]  }
  0xda   :  { %10278 = vst [vmem:[#allocation35_spill] sm:$0xff] %v7805_v8 }
  0xdb   :  { %1765 = vmatpush1.bf16.msra.mxu0 %v7781_v15  ;;  %1937 = vmatpush1.bf16.msra.mxu1 %v7783_v14  ;;  %v7807_v15 = vld [vmem:[#allocation7 + $0x668] ss:$16 sps:$4 sm:$0xff]   ;;  %v7811_v14 = vld [vmem:[#allocation7 + $0x684] ss:$16 sps:$4 sm:$0xff]  }
  0xdc   :  { %1766 = vmatprep.subr.bf16.mxu0 %v7787_v23  ;;  %1938 = vmatprep.subr.bf16.mxu1 %v7789_v20  ;;  %10279 = vst [vmem:[#allocation36_spill] sm:$0xff] %v7807_v15  ;;  %10280 = vst [vmem:[#allocation37_spill] sm:$0xff] %v7811_v14  ;;  %v7813_v23 = vld [vmem:[#allocation7 + $0x68c] ss:$16 sps:$4 sm:$0xff]   ;;  %v7817_v20 = vld [vmem:[#allocation7 + $0x680] ss:$16 sps:$4 sm:$0xff]  }
  0xdd   :  { %10281 = vst [vmem:[#allocation38_spill] sm:$0xff] %v7813_v23  ;;  %10282 = vst [vmem:[#allocation39_spill] sm:$0xff] %v7817_v20 }
  0xdf   :  { %1767 = vmatpush1.bf16.msra.mxu0 %v7793_v9  ;;  %1939 = vmatpush1.bf16.msra.mxu1 %v7795_v10  ;;  %v7819_v9 = vld [vmem:[#allocation7 + $0x688] ss:$16 sps:$4 sm:$0xff]   ;;  %v7823_v10 = vld [vmem:[#allocation7 + $0x6a4] ss:$16 sps:$4 sm:$0xff]  }
  0xe0   :  { %1768 = vmatprep.subr.bf16.mxu0 %v7799_v11  ;;  %1940 = vmatprep.subr.bf16.mxu1 %v7801_v19  ;;  %10283 = vst [vmem:[#allocation40_spill] sm:$0xff] %v7819_v9  ;;  %10284 = vst [vmem:[#allocation41_spill] sm:$0xff] %v7823_v10  ;;  %v7825_v11 = vld [vmem:[#allocation7 + $0x6ac] ss:$16 sps:$4 sm:$0xff]   ;;  %v7829_v19 = vld [vmem:[#allocation7 + $0x6a0] ss:$16 sps:$4 sm:$0xff]  }
  0xe1   :  { %10285 = vst [vmem:[#allocation42_spill] sm:$0xff] %v7825_v11  ;;  %10286 = vst [vmem:[#allocation43_spill] sm:$0xff] %v7829_v19 }
  0xe3   :  { %1769 = vmatpush1.bf16.msra.mxu0 %v7805_v8  ;;  %1941 = vmatpush1.bf16.msra.mxu1 %v7807_v15  ;;  %v7831_v8 = vld [vmem:[#allocation7 + $0x6a8] ss:$16 sps:$4 sm:$0xff]   ;;  %v7835_v15 = vld [vmem:[#allocation7 + $0x6c4] ss:$16 sps:$4 sm:$0xff]  }
  0xe4   :  { %1770 = vmatprep.subr.bf16.mxu0 %v7811_v14  ;;  %1942 = vmatprep.subr.bf16.mxu1 %v7813_v23  ;;  %10287 = vst [vmem:[#allocation44_spill] sm:$0xff] %v7831_v8  ;;  %10288 = vst [vmem:[#allocation45_spill] sm:$0xff] %v7835_v15  ;;  %v7837_v14 = vld [vmem:[#allocation7 + $0x6cc] ss:$16 sps:$4 sm:$0xff]   ;;  %v7841_v23 = vld [vmem:[#allocation7 + $0x6c0] ss:$16 sps:$4 sm:$0xff]  }
  0xe5   :  { %10289 = vst [vmem:[#allocation46_spill] sm:$0xff] %v7837_v14  ;;  %10290 = vst [vmem:[#allocation47_spill] sm:$0xff] %v7841_v23 }
  0xe7   :  { %1771 = vmatpush1.bf16.msra.mxu0 %v7817_v20  ;;  %1943 = vmatpush1.bf16.msra.mxu1 %v7819_v9  ;;  %v7843_v20 = vld [vmem:[#allocation7 + $0x6c8] ss:$16 sps:$4 sm:$0xff]   ;;  %v7847_v9 = vld [vmem:[#allocation7 + $0x6e4] ss:$16 sps:$4 sm:$0xff]  }
  0xe8   :  { %1772 = vmatprep.subr.bf16.mxu0 %v7823_v10  ;;  %1944 = vmatprep.subr.bf16.mxu1 %v7825_v11  ;;  %10291 = vst [vmem:[#allocation48_spill] sm:$0xff] %v7843_v20  ;;  %10292 = vst [vmem:[#allocation49_spill] sm:$0xff] %v7847_v9  ;;  %v7849_v10 = vld [vmem:[#allocation7 + $0x6ec] ss:$16 sps:$4 sm:$0xff]   ;;  %v7853_v11 = vld [vmem:[#allocation7 + $0x6e0] ss:$16 sps:$4 sm:$0xff]  }
  0xe9   :  { %10293 = vst [vmem:[#allocation50_spill] sm:$0xff] %v7849_v10  ;;  %10294 = vst [vmem:[#allocation51_spill] sm:$0xff] %v7853_v11 }
  0xeb   :  { %1773 = vmatpush1.bf16.msra.mxu0 %v7829_v19  ;;  %1945 = vmatpush1.bf16.msra.mxu1 %v7831_v8  ;;  %v7855_v19 = vld [vmem:[#allocation7 + $0x6e8] ss:$16 sps:$4 sm:$0xff]   ;;  %v7859_v8 = vld [vmem:[#allocation7 + $0x704] ss:$16 sps:$4 sm:$0xff]  }
  0xec   :  { %1774 = vmatprep.subr.bf16.mxu0 %v7835_v15  ;;  %1946 = vmatprep.subr.bf16.mxu1 %v7837_v14  ;;  %10295 = vst [vmem:[#allocation52_spill] sm:$0xff] %v7855_v19  ;;  %10296 = vst [vmem:[#allocation53_spill] sm:$0xff] %v7859_v8  ;;  %v7861_v15 = vld [vmem:[#allocation7 + $0x70c] ss:$16 sps:$4 sm:$0xff]   ;;  %v7865_v14 = vld [vmem:[#allocation7 + $0x700] ss:$16 sps:$4 sm:$0xff]  }
  0xed   :  { %10297 = vst [vmem:[#allocation54_spill] sm:$0xff] %v7861_v15  ;;  %10298 = vst [vmem:[#allocation55_spill] sm:$0xff] %v7865_v14 }
  0xef   :  { %1775 = vmatpush1.bf16.msra.mxu0 %v7841_v23  ;;  %1947 = vmatpush1.bf16.msra.mxu1 %v7843_v20  ;;  %v7867_v23 = vld [vmem:[#allocation7 + $0x708] ss:$16 sps:$4 sm:$0xff]   ;;  %v7871_v20 = vld [vmem:[#allocation7 + $0x724] ss:$16 sps:$4 sm:$0xff]  }
  0xf0   :  { %1776 = vmatprep.subr.bf16.mxu0 %v7847_v9  ;;  %1948 = vmatprep.subr.bf16.mxu1 %v7849_v10  ;;  %10299 = vst [vmem:[#allocation56_spill] sm:$0xff] %v7867_v23  ;;  %10300 = vst [vmem:[#allocation57_spill] sm:$0xff] %v7871_v20  ;;  %v7873_v9 = vld [vmem:[#allocation7 + $0x72c] ss:$16 sps:$4 sm:$0xff]   ;;  %v7877_v10 = vld [vmem:[#allocation7 + $0x720] ss:$16 sps:$4 sm:$0xff]  }
  0xf1   :  { %10301 = vst [vmem:[#allocation58_spill] sm:$0xff] %v7873_v9  ;;  %10302 = vst [vmem:[#allocation59_spill] sm:$0xff] %v7877_v10 }
  0xf3   :  { %1777 = vmatpush1.bf16.msra.mxu0 %v7853_v11  ;;  %1949 = vmatpush1.bf16.msra.mxu1 %v7855_v19  ;;  %v7879_v11 = vld [vmem:[#allocation7 + $0x728] ss:$16 sps:$4 sm:$0xff]   ;;  %v7883_v19 = vld [vmem:[#allocation7 + $0x744] ss:$16 sps:$4 sm:$0xff]  }
  0xf4   :  { %1778 = vmatprep.subr.bf16.mxu0 %v7859_v8  ;;  %1950 = vmatprep.subr.bf16.mxu1 %v7861_v15  ;;  %10303 = vst [vmem:[#allocation60_spill] sm:$0xff] %v7879_v11  ;;  %10304 = vst [vmem:[#allocation61_spill] sm:$0xff] %v7883_v19  ;;  %v7885_v8 = vld [vmem:[#allocation7 + $0x74c] ss:$16 sps:$4 sm:$0xff]   ;;  %v7223_v15 = vld [vmem:[#allocation7 + $0x740] ss:$16 sps:$4 sm:$0xff]  }
  0xf5   :  { %10305 = vst [vmem:[#allocation62_spill] sm:$0xff] %v7885_v8 }
  0xf7   :  { %1779 = vmatpush1.bf16.msra.mxu0 %v7865_v14  ;;  %1951 = vmatpush1.bf16.msra.mxu1 %v7867_v23  ;;  %v7226_v14 = vld [vmem:[#allocation7 + $0x748] ss:$16 sps:$4 sm:$0xff]   ;;  %v7231_v23 = vld [vmem:[#allocation7 + $0x764] ss:$16 sps:$4 sm:$0xff]  }
  0xf8   :  { %1780 = vmatprep.subr.bf16.mxu0 %v7871_v20  ;;  %1952 = vmatprep.subr.bf16.mxu1 %v7873_v9  ;;  %v7229_v20 = vld [vmem:[#allocation7 + $0x760] ss:$16 sps:$4 sm:$0xff]   ;;  %v7232_v9 = vld [vmem:[#allocation7 + $0x768] ss:$16 sps:$4 sm:$0xff]  }
  0xfb   :  { %1781 = vmatpush1.bf16.msra.mxu0 %v7877_v10  ;;  %1953 = vmatpush1.bf16.msra.mxu1 %v7879_v11  ;;  %v7235_v10 = vld [vmem:[#allocation7 + $0x780] ss:$16 sps:$4 sm:$0xff]   ;;  %v7238_v11 = vld [vmem:[#allocation7 + $0x788] ss:$16 sps:$4 sm:$0xff]  }
  0xfc   :  { %1782 = vmatprep.subr.bf16.mxu0 %v7883_v19  ;;  %1954 = vmatprep.subr.bf16.mxu1 %v7885_v8  ;;  %v7246_v19 = vld [vmem:[#allocation7 + $0x7ac] ss:$16 sps:$4 sm:$0xff]   ;;  %v7241_v8 = vld [vmem:[#allocation7 + $0x7a0] ss:$16 sps:$4 sm:$0xff]  }
  0xff   :  { %1783 = vmatpush1.bf16.msra.mxu0 %v7223_v15  ;;  %1955 = vmatpush1.bf16.msra.mxu1 %v7226_v14  ;;  %v7249_v14 = vld [vmem:[#allocation7 + $0x7c4] ss:$16 sps:$4 sm:$0xff]   ;;  %v7252_v15 = vld [vmem:[#allocation7 + $0x7cc] ss:$16 sps:$4 sm:$0xff]  }
 0x100   :  { %1784 = vmatprep.subr.bf16.mxu0 %v7231_v23  ;;  %1956 = vmatprep.subr.bf16.mxu1 %v7234_v16  ;;  %v7247_v23 = vld [vmem:[#allocation7 + $0x7c0] ss:$16 sps:$4 sm:$0xff]   ;;  %v7250_v16 = vld [vmem:[#allocation7 + $0x7c8] ss:$16 sps:$4 sm:$0xff]  }
 0x103   :  { %1785 = vmatpush1.bf16.msra.mxu0 %v7229_v20  ;;  %1957 = vmatpush1.bf16.msra.mxu1 %v7232_v9  ;;  %v7255_v20 = vld [vmem:[#allocation7 + $0x7e4] ss:$16 sps:$4 sm:$0xff]   ;;  %v7258_v9 = vld [vmem:[#allocation7 + $0x7ec] ss:$16 sps:$4 sm:$0xff]  }
 0x104   :  { %1786 = vmatprep.subr.bf16.mxu0 %v7237_v13  ;;  %1958 = vmatprep.subr.bf16.mxu1 %v7240_v12  ;;  %v7253_v13 = vld [vmem:[#allocation7 + $0x7e0] ss:$16 sps:$4 sm:$0xff]   ;;  %v7894_v12 = vld [vmem:[%s10143_s1] sm:$0x77] }
 0x107   :  { %1787 = vmatpush1.bf16.msra.mxu0 %v7235_v10  ;;  %1959 = vmatpush1.bf16.msra.mxu1 %v7238_v11  ;;  %v2003_v10 = vcombine.high %v7894_v12, %v7894_v12 }
 0x108   :  { %1788 = vmatprep.subr.bf16.mxu0 %v7243_v7  ;;  %1960 = vmatprep.subr.bf16.mxu1 %v7246_v19  ;;  %v7256_v7 = vld [vmem:[#allocation7 + $0x7e8] ss:$16 sps:$4 sm:$0xff]  }
 0x109   :  { %v335_v19 = vld [vmem:[%s10142_s0 + $0x30] sm:$0xff] }
 0x10b   :  { %1789 = vmatpush1.bf16.msra.mxu0 %v7241_v8  ;;  %1961 = vmatpush1.bf16.msra.mxu1 %v7244_v6  ;;  %v343_v6 = vld [vmem:[%s10142_s0 + $0x70] sm:$0x3] }
 0x10c   :  { %1790 = vmatprep.subr.bf16.mxu0 %v7249_v14  ;;  %1962 = vmatprep.subr.bf16.mxu1 %v7252_v15  ;;  %v351_v11 = vpack.c.bf16 %v343_v6, %v335_v19  ;;  %v7271_v8 = vld [vmem:[#allocation7 + $0x4] ss:$16 sps:$4 sm:$0xff]   ;;  %v7272_v14 = vld [vmem:[#allocation7 + $0xc] ss:$16 sps:$4 sm:$0xff]   ;;  %v2012_v15 = vpack.c.bf16 %v2003_v10, %v2003_v10  ;;  %v7281_v6 = vld [vmem:[#allocation7 + $0x40] ss:$16 sps:$4 sm:$0xff]  }
 0x10d   :  { %v7280_v19 = vld [vmem:[#allocation7 + $0x4c] ss:$16 sps:$4 sm:$0xff]   ;;  %v7282_v10 = vld [vmem:[#allocation7 + $0x48] ss:$16 sps:$4 sm:$0xff]  }
 0x10f   :  { %1791 = vmatpush1.bf16.msra.mxu0 %v7247_v23  ;;  %1963 = vmatpush1.bf16.msra.mxu1 %v7250_v16  ;;  %v7273_v23 = vld [vmem:[#allocation7] ss:$16 sps:$4 sm:$0xff]   ;;  %v7274_v16 = vld [vmem:[#allocation7 + $0x8] ss:$16 sps:$4 sm:$0xff]  }
 0x110   :  { %1792 = vmatprep.subr.bf16.mxu0 %v7255_v20  ;;  %1964 = vmatprep.subr.bf16.mxu1 %v7258_v9  ;;  %v7276_v20 = vld [vmem:[#allocation7 + $0x2c] ss:$16 sps:$4 sm:$0xff]   ;;  %v7277_v9 = vld [vmem:[#allocation7 + $0x20] ss:$16 sps:$4 sm:$0xff]  }
 0x113   :  { %1793 = vmatpush1.bf16.msra.mxu0 %v7253_v13  ;;  %1965 = vmatpush1.bf16.msra.mxu1 %v7256_v7  ;;  %v7278_v13 = vld [vmem:[#allocation7 + $0x28] ss:$16 sps:$4 sm:$0xff]   ;;  %v7279_v7 = vld [vmem:[#allocation7 + $0x44] ss:$16 sps:$4 sm:$0xff]  }
 0x114   :  { %2019 = vmatprep.subr.bf16.mxu0 %v7271_v8  ;;  %2183 = vmatprep.subr.bf16.mxu1 %v7272_v14  ;;  %v7284_v8 = vld [vmem:[#allocation7 + $0x6c] ss:$16 sps:$4 sm:$0xff]   ;;  %v7286_v14 = vld [vmem:[#allocation7 + $0x68] ss:$16 sps:$4 sm:$0xff]  }
 0x116   :  { %1795 = vmatmul.mubr.bf16.vlgmr.msra.gmra.mrb[0].mxu0 %v351_v11  ;;  %1967 = vmatmul.mubr.bf16.vlgmr.msra.gmra.mrb[0].mxu1 %v351_v11  ;;  %v7283_v11 = vld [vmem:[#allocation7 + $0x64] ss:$16 sps:$4 sm:$0xff]  }
 0x117   :  { %2020 = vmatpush1.bf16.msra.mxu0 %v7273_v23  ;;  %2184 = vmatpush1.bf16.msra.mxu1 %v7274_v16  ;;  %v7288_v23 = vld [vmem:[#allocation7 + $0x8c] ss:$16 sps:$4 sm:$0xff]   ;;  %v7289_v16 = vld [vmem:[#allocation7 + $0x80] ss:$16 sps:$4 sm:$0xff]  }
 0x118   :  { %2021 = vmatprep.subr.bf16.mxu0 %v7275_v5  ;;  %2185 = vmatprep.subr.bf16.mxu1 %v7276_v20  ;;  %v7285_v5 = vld [vmem:[#allocation7 + $0x60] ss:$16 sps:$4 sm:$0xff]   ;;  %v7290_v20 = vld [vmem:[#allocation7 + $0x88] ss:$16 sps:$4 sm:$0xff]  }
 0x119   :  { %2051 = vmatprep.mubr.bf16.mxu0 %v2012_v15  ;;  %2215 = vmatprep.mubr.bf16.mxu1 %v2012_v15  ;;  %v7287_v15 = vld [vmem:[#allocation7 + $0x84] ss:$16 sps:$4 sm:$0xff]  }
 0x11b   :  { %2022 = vmatpush1.bf16.msra.mxu0 %v7277_v9  ;;  %2186 = vmatpush1.bf16.msra.mxu1 %v7278_v13  ;;  %v7291_v9 = vld [vmem:[#allocation7 + $0xa4] ss:$16 sps:$4 sm:$0xff]   ;;  %v7292_v13 = vld [vmem:[#allocation7 + $0xac] ss:$16 sps:$4 sm:$0xff]  }
 0x11c   :  { %2023 = vmatprep.subr.bf16.mxu0 %v7279_v7  ;;  %2187 = vmatprep.subr.bf16.mxu1 %v7280_v19  ;;  %v7293_v7 = vld [vmem:[#allocation7 + $0xa0] ss:$16 sps:$4 sm:$0xff]   ;;  %v7294_v19 = vld [vmem:[#allocation7 + $0xa8] ss:$16 sps:$4 sm:$0xff]  }
 0x11f   :  { %2024 = vmatpush1.bf16.msra.mxu0 %v7281_v6  ;;  %2188 = vmatpush1.bf16.msra.mxu1 %v7282_v10  ;;  %v7295_v6 = vld [vmem:[#allocation7 + $0xc4] ss:$16 sps:$4 sm:$0xff]   ;;  %v7296_v10 = vld [vmem:[#allocation7 + $0xcc] ss:$16 sps:$4 sm:$0xff]  }
 0x120   :  { %2025 = vmatprep.subr.bf16.mxu0 %v7283_v11  ;;  %2189 = vmatprep.subr.bf16.mxu1 %v7284_v8  ;;  %v7297_v11 = vld [vmem:[#allocation7 + $0xc0] ss:$16 sps:$4 sm:$0xff]   ;;  %v7298_v8 = vld [vmem:[#allocation7 + $0xc8] ss:$16 sps:$4 sm:$0xff]  }
 0x123   :  { %2026 = vmatpush1.bf16.msra.mxu0 %v7285_v5  ;;  %2190 = vmatpush1.bf16.msra.mxu1 %v7286_v14  ;;  %v7299_v5 = vld [vmem:[#allocation7 + $0xe4] ss:$16 sps:$4 sm:$0xff]   ;;  %v7300_v14 = vld [vmem:[#allocation7 + $0xec] ss:$16 sps:$4 sm:$0xff]  }
 0x124   :  { %2027 = vmatprep.subr.bf16.mxu0 %v7287_v15  ;;  %2191 = vmatprep.subr.bf16.mxu1 %v7288_v23  ;;  %v7301_v15 = vld [vmem:[#allocation7 + $0xe0] ss:$16 sps:$4 sm:$0xff]   ;;  %v7302_v23 = vld [vmem:[#allocation7 + $0xe8] ss:$16 sps:$4 sm:$0xff]  }
 0x127   :  { %2028 = vmatpush1.bf16.msra.mxu0 %v7289_v16  ;;  %2192 = vmatpush1.bf16.msra.mxu1 %v7290_v20  ;;  %v7303_v16 = vld [vmem:[#allocation7 + $0x104] ss:$16 sps:$4 sm:$0xff]   ;;  %v7304_v20 = vld [vmem:[#allocation7 + $0x10c] ss:$16 sps:$4 sm:$0xff]  }
 0x128   :  { %2029 = vmatprep.subr.bf16.mxu0 %v7291_v9  ;;  %2193 = vmatprep.subr.bf16.mxu1 %v7292_v13  ;;  %v7305_v9 = vld [vmem:[#allocation7 + $0x100] ss:$16 sps:$4 sm:$0xff]   ;;  %v7306_v13 = vld [vmem:[#allocation7 + $0x108] ss:$16 sps:$4 sm:$0xff]  }
 0x12b   :  { %2030 = vmatpush1.bf16.msra.mxu0 %v7293_v7  ;;  %2194 = vmatpush1.bf16.msra.mxu1 %v7294_v19  ;;  %v7307_v7 = vld [vmem:[#allocation7 + $0x124] ss:$16 sps:$4 sm:$0xff]   ;;  %v7308_v19 = vld [vmem:[#allocation7 + $0x12c] ss:$16 sps:$4 sm:$0xff]  }
 0x12c   :  { %2031 = vmatprep.subr.bf16.mxu0 %v7295_v6  ;;  %2195 = vmatprep.subr.bf16.mxu1 %v7296_v10  ;;  %v7309_v6 = vld [vmem:[#allocation7 + $0x120] ss:$16 sps:$4 sm:$0xff]   ;;  %v7310_v10 = vld [vmem:[#allocation7 + $0x128] ss:$16 sps:$4 sm:$0xff]  }
 0x12f   :  { %2032 = vmatpush1.bf16.msra.mxu0 %v7297_v11  ;;  %2196 = vmatpush1.bf16.msra.mxu1 %v7298_v8  ;;  %v7311_v11 = vld [vmem:[#allocation7 + $0x144] ss:$16 sps:$4 sm:$0xff]   ;;  %v7312_v8 = vld [vmem:[#allocation7 + $0x14c] ss:$16 sps:$4 sm:$0xff]  }
 0x130   :  { %2033 = vmatprep.subr.bf16.mxu0 %v7299_v5  ;;  %2197 = vmatprep.subr.bf16.mxu1 %v7300_v14  ;;  %v7313_v5 = vld [vmem:[#allocation7 + $0x140] ss:$16 sps:$4 sm:$0xff]   ;;  %v7314_v14 = vld [vmem:[#allocation7 + $0x148] ss:$16 sps:$4 sm:$0xff]  }
 0x133   :  { %2034 = vmatpush1.bf16.msra.mxu0 %v7301_v15  ;;  %2198 = vmatpush1.bf16.msra.mxu1 %v7302_v23  ;;  %v7315_v15 = vld [vmem:[#allocation7 + $0x164] ss:$16 sps:$4 sm:$0xff]   ;;  %v7316_v23 = vld [vmem:[#allocation7 + $0x16c] ss:$16 sps:$4 sm:$0xff]  }
 0x134   :  { %2035 = vmatprep.subr.bf16.mxu0 %v7303_v16  ;;  %2199 = vmatprep.subr.bf16.mxu1 %v7304_v20  ;;  %v7317_v16 = vld [vmem:[#allocation7 + $0x160] ss:$16 sps:$4 sm:$0xff]   ;;  %v7318_v20 = vld [vmem:[#allocation7 + $0x168] ss:$16 sps:$4 sm:$0xff]  }
 0x137   :  { %2036 = vmatpush1.bf16.msra.mxu0 %v7305_v9  ;;  %2200 = vmatpush1.bf16.msra.mxu1 %v7306_v13  ;;  %v7319_v9 = vld [vmem:[#allocation7 + $0x184] ss:$16 sps:$4 sm:$0xff]   ;;  %v7320_v13 = vld [vmem:[#allocation7 + $0x18c] ss:$16 sps:$4 sm:$0xff]  }
 0x138   :  { %2037 = vmatprep.subr.bf16.mxu0 %v7307_v7  ;;  %2201 = vmatprep.subr.bf16.mxu1 %v7308_v19  ;;  %v7321_v7 = vld [vmem:[#allocation7 + $0x180] ss:$16 sps:$4 sm:$0xff]   ;;  %v7322_v19 = vld [vmem:[#allocation7 + $0x188] ss:$16 sps:$4 sm:$0xff]  }
 0x13b   :  { %2038 = vmatpush1.bf16.msra.mxu0 %v7309_v6  ;;  %2202 = vmatpush1.bf16.msra.mxu1 %v7310_v10  ;;  %v7323_v6 = vld [vmem:[#allocation7 + $0x1a4] ss:$16 sps:$4 sm:$0xff]   ;;  %v7324_v10 = vld [vmem:[#allocation7 + $0x1ac] ss:$16 sps:$4 sm:$0xff]  }
 0x13c   :  { %2039 = vmatprep.subr.bf16.mxu0 %v7311_v11  ;;  %2203 = vmatprep.subr.bf16.mxu1 %v7312_v8  ;;  %v7325_v11 = vld [vmem:[#allocation7 + $0x1a0] ss:$16 sps:$4 sm:$0xff]   ;;  %v7326_v8 = vld [vmem:[#allocation7 + $0x1a8] ss:$16 sps:$4 sm:$0xff]  }
 0x13f   :  { %2040 = vmatpush1.bf16.msra.mxu0 %v7313_v5  ;;  %2204 = vmatpush1.bf16.msra.mxu1 %v7314_v14  ;;  %v7327_v5 = vld [vmem:[#allocation7 + $0x1c4] ss:$16 sps:$4 sm:$0xff]   ;;  %v7328_v14 = vld [vmem:[#allocation7 + $0x1cc] ss:$16 sps:$4 sm:$0xff]  }
 0x140   :  { %2041 = vmatprep.subr.bf16.mxu0 %v7315_v15  ;;  %2205 = vmatprep.subr.bf16.mxu1 %v7316_v23  ;;  %v7907_v15 = vld [vmem:[%s10143_s1 + $0x8] sm:$0x77] }
 0x141   :  { %v7329_v23 = vld [vmem:[#allocation7 + $0x1c0] ss:$16 sps:$4 sm:$0xff]  }
 0x143   :  { %2042 = vmatpush1.bf16.msra.mxu0 %v7317_v16  ;;  %2206 = vmatpush1.bf16.msra.mxu1 %v7318_v20  ;;  %v7330_v16 = vld [vmem:[#allocation7 + $0x1c8] ss:$16 sps:$4 sm:$0xff]   ;;  %v7331_v20 = vld [vmem:[#allocation7 + $0x1e4] ss:$16 sps:$4 sm:$0xff]  }
 0x144   :  { %2043 = vmatprep.subr.bf16.mxu0 %v7319_v9  ;;  %2207 = vmatprep.subr.bf16.mxu1 %v7320_v13  ;;  %v7332_v9 = vld [vmem:[#allocation7 + $0x1ec] ss:$16 sps:$4 sm:$0xff]   ;;  %v2004_v13 = vcombine.high %v7907_v15, %v7907_v15 }
 0x147   :  { %2044 = vmatpush1.bf16.msra.mxu0 %v7321_v7  ;;  %2208 = vmatpush1.bf16.msra.mxu1 %v7322_v19  ;;  %v2011_v7 = vpack.c.bf16 %v7894_v12, %v7894_v12  ;;  %v7333_v19 = vld [vmem:[#allocation7 + $0x1e0] ss:$16 sps:$4 sm:$0xff]  }
 0x148   :  { %2045 = vmatprep.subr.bf16.mxu0 %v7323_v6  ;;  %2209 = vmatprep.subr.bf16.mxu1 %v7324_v10  ;;  %v7334_v6 = vld [vmem:[#allocation7 + $0x1e8] ss:$16 sps:$4 sm:$0xff]   ;;  %v7335_v10 = vld [vmem:[#allocation7 + $0x204] ss:$16 sps:$4 sm:$0xff]   ;;  %v7341_v12 = vld [vmem:[#allocation7 + $0x220] ss:$16 sps:$4 sm:$0xff]  }
 0x14b   :  { %2046 = vmatpush1.bf16.msra.mxu0 %v7325_v11  ;;  %2210 = vmatpush1.bf16.msra.mxu1 %v7326_v8  ;;  %v7336_v11 = vld [vmem:[#allocation7 + $0x20c] ss:$16 sps:$4 sm:$0xff]   ;;  %v2014_v8 = vpack.c.bf16 %v2004_v13, %v2004_v13  ;;  %v7345_v13 = vld [vmem:[#allocation7 + $0x240] ss:$16 sps:$4 sm:$0xff]  }
 0x14c   :  { %2047 = vmatprep.subr.bf16.mxu0 %v7327_v5  ;;  %2211 = vmatprep.subr.bf16.mxu1 %v7328_v14  ;;  %v7337_v5 = vld [vmem:[#allocation7 + $0x200] ss:$16 sps:$4 sm:$0xff]   ;;  %v7338_v14 = vld [vmem:[#allocation7 + $0x208] ss:$16 sps:$4 sm:$0xff]  }
 0x14f   :  { %2048 = vmatpush1.bf16.msra.mxu0 %v7329_v23  ;;  %2212 = vmatpush1.bf16.msra.mxu1 %v7330_v16  ;;  %v7339_v23 = vld [vmem:[#allocation7 + $0x224] ss:$16 sps:$4 sm:$0xff]   ;;  %v7340_v16 = vld [vmem:[#allocation7 + $0x22c] ss:$16 sps:$4 sm:$0xff]  }
 0x150   :  { %2049 = vmatprep.subr.bf16.mxu0 %v7331_v20  ;;  %2213 = vmatprep.subr.bf16.mxu1 %v7332_v9  ;;  %v7342_v20 = vld [vmem:[#allocation7 + $0x228] ss:$16 sps:$4 sm:$0xff]   ;;  %v7343_v9 = vld [vmem:[#allocation7 + $0x244] ss:$16 sps:$4 sm:$0xff]  }
 0x153   :  { %2050 = vmatpush1.bf16.msra.mxu0 %v7333_v19  ;;  %2214 = vmatpush1.bf16.msra.mxu1 %v7334_v6  ;;  %v7344_v19 = vld [vmem:[#allocation7 + $0x24c] ss:$16 sps:$4 sm:$0xff]   ;;  %v7347_v6 = vld [vmem:[#allocation7 + $0x264] ss:$16 sps:$4 sm:$0xff]  }
 0x154   :  { %2060 = vmatprep.subr.bf16.mxu0 %v7335_v10  ;;  %2224 = vmatprep.subr.bf16.mxu1 %v7336_v11  ;;  %v7348_v10 = vld [vmem:[#allocation7 + $0x26c] ss:$16 sps:$4 sm:$0xff]   ;;  %v7349_v11 = vld [vmem:[#allocation7 + $0x260] ss:$16 sps:$4 sm:$0xff]  }
 0x156   :  { %2052 = vmatmul.mubr.bf16.vlgmr.msra.gmra.mrb[4].mxu0 %v2011_v7  ;;  %2216 = vmatmul.mubr.bf16.vlgmr.msra.gmra.mrb[4].mxu1 %v2011_v7  ;;  %v7346_v7 = vld [vmem:[#allocation7 + $0x248] ss:$16 sps:$4 sm:$0xff]  }
 0x157   :  { %2061 = vmatpush1.bf16.msra.mxu0 %v7337_v5  ;;  %2225 = vmatpush1.bf16.msra.mxu1 %v7338_v14  ;;  %v7350_v5 = vld [vmem:[#allocation7 + $0x268] ss:$16 sps:$4 sm:$0xff]   ;;  %v7352_v14 = vld [vmem:[#allocation7 + $0x28c] ss:$16 sps:$4 sm:$0xff]  }
 0x158   :  { %2062 = vmatprep.subr.bf16.mxu0 %v7339_v23  ;;  %2226 = vmatprep.subr.bf16.mxu1 %v7340_v16  ;;  %v7467_v23 = vmov 0.0   ;;  %v7353_v16 = vld [vmem:[#allocation7 + $0x280] ss:$16 sps:$4 sm:$0xff]  }
 0x159   :  { %2092 = vmatprep.mubr.bf16.mxu0 %v2014_v8  ;;  %2256 = vmatprep.mubr.bf16.mxu1 %v2014_v8  ;;  %v7351_v8 = vld [vmem:[#allocation7 + $0x284] ss:$16 sps:$4 sm:$0xff]   ;;  %59 = vst [vmem:[#allocation2 + $0x20] sm:$0x3] %v7467_v23  ;;  %60 = vst [vmem:[#allocation2 + $0x28] sm:$0x3] %v7467_v23 }
 0x15a   :  { %61 = vst [vmem:[#allocation2 + $0x30] sm:$0x3] %v7467_v23  ;;  %62 = vst [vmem:[#allocation2 + $0x38] sm:$0x3] %v7467_v23 }
 0x15b   :  { %2063 = vmatpush1.bf16.msra.mxu0 %v7341_v12  ;;  %2227 = vmatpush1.bf16.msra.mxu1 %v7342_v20  ;;  %63 = vst [vmem:[#allocation3] sm:$0x77] %v7467_v23  ;;  %64 = vst [vmem:[#allocation3 + $0x8] sm:$0x77] %v7467_v23  ;;  %v7354_v12 = vld [vmem:[#allocation7 + $0x288] ss:$16 sps:$4 sm:$0xff]  }
 0x15c   :  { %2064 = vmatprep.subr.bf16.mxu0 %v7343_v9  ;;  %2228 = vmatprep.subr.bf16.mxu1 %v7344_v19  ;;  %2453 = vst [vmem:[#allocation4] sm:$0xe0] %v7467_v23  ;;  %2454 = vst [vmem:[#allocation4 + $0x8] sm:$0xe0] %v7467_v23  ;;  %v7355_v20 = vld [vmem:[#allocation7 + $0x2a4] ss:$16 sps:$4 sm:$0xff]  }
 0x15d   :  { %2455 = vst [vmem:[#allocation4 + $0x10] sm:$0xe0] %v7467_v23  ;;  %2456 = vst [vmem:[#allocation4 + $0x18] sm:$0xe0] %v7467_v23  ;;  %v7356_v9 = vld [vmem:[#allocation7 + $0x2ac] ss:$16 sps:$4 sm:$0xff]  }
 0x15e   :  { %2457 = vst [vmem:[#allocation4 + $0x20] sm:$0xe0] %v7467_v23  ;;  %2458 = vst [vmem:[#allocation4 + $0x28] sm:$0xe0] %v7467_v23  ;;  %v7357_v19 = vld [vmem:[#allocation7 + $0x2a0] ss:$16 sps:$4 sm:$0xff]  }
 0x15f   :  { %2065 = vmatpush1.bf16.msra.mxu0 %v7345_v13  ;;  %2229 = vmatpush1.bf16.msra.mxu1 %v7346_v7  ;;  %2459 = vst [vmem:[#allocation4 + $0x30] sm:$0xe0] %v7467_v23  ;;  %2460 = vst [vmem:[#allocation4 + $0x38] sm:$0xe0] %v7467_v23  ;;  %v7358_v13 = vld [vmem:[#allocation7 + $0x2a8] ss:$16 sps:$4 sm:$0xff]  }
 0x160   :  { %2066 = vmatprep.subr.bf16.mxu0 %v7347_v6  ;;  %2230 = vmatprep.subr.bf16.mxu1 %v7348_v10  ;;  %v7359_v7 = vld [vmem:[#allocation7 + $0x2c4] ss:$16 sps:$4 sm:$0xff]   ;;  %v7360_v6 = vld [vmem:[#allocation7 + $0x2cc] ss:$16 sps:$4 sm:$0xff]   ;;  %v7361_v10 = vld [vmem:[#allocation7 + $0x2c0] ss:$16 sps:$4 sm:$0xff]  }
 0x163   :  { %2067 = vmatpush1.bf16.msra.mxu0 %v7349_v11  ;;  %2231 = vmatpush1.bf16.msra.mxu1 %v7350_v5  ;;  %v7362_v11 = vld [vmem:[#allocation7 + $0x2c8] ss:$16 sps:$4 sm:$0xff]   ;;  %v7363_v5 = vld [vmem:[#allocation7 + $0x2e4] ss:$16 sps:$4 sm:$0xff]  }
 0x164   :  { %2068 = vmatprep.subr.bf16.mxu0 %v7351_v8  ;;  %2232 = vmatprep.subr.bf16.mxu1 %v7352_v14  ;;  %v7364_v8 = vld [vmem:[#allocation7 + $0x2ec] ss:$16 sps:$4 sm:$0xff]   ;;  %v7365_v14 = vld [vmem:[#allocation7 + $0x2e0] ss:$16 sps:$4 sm:$0xff]  }
 0x167   :  { %2069 = vmatpush1.bf16.msra.mxu0 %v7353_v16  ;;  %2233 = vmatpush1.bf16.msra.mxu1 %v7354_v12  ;;  %v7366_v16 = vld [vmem:[#allocation7 + $0x2e8] ss:$16 sps:$4 sm:$0xff]   ;;  %v7367_v12 = vld [vmem:[#allocation7 + $0x304] ss:$16 sps:$4 sm:$0xff]  }
 0x168   :  { %2070 = vmatprep.subr.bf16.mxu0 %v7355_v20  ;;  %2234 = vmatprep.subr.bf16.mxu1 %v7356_v9  ;;  %v7368_v20 = vld [vmem:[#allocation7 + $0x30c] ss:$16 sps:$4 sm:$0xff]   ;;  %v7369_v9 = vld [vmem:[#allocation7 + $0x300] ss:$16 sps:$4 sm:$0xff]  }
 0x16b   :  { %2071 = vmatpush1.bf16.msra.mxu0 %v7357_v19  ;;  %2235 = vmatpush1.bf16.msra.mxu1 %v7358_v13  ;;  %v7370_v19 = vld [vmem:[#allocation7 + $0x308] ss:$16 sps:$4 sm:$0xff]   ;;  %v7371_v13 = vld [vmem:[#allocation7 + $0x324] ss:$16 sps:$4 sm:$0xff]  }
 0x16c   :  { %2072 = vmatprep.subr.bf16.mxu0 %v7359_v7  ;;  %2236 = vmatprep.subr.bf16.mxu1 %v7360_v6  ;;  %v7372_v7 = vld [vmem:[#allocation7 + $0x32c] ss:$16 sps:$4 sm:$0xff]   ;;  %v7373_v6 = vld [vmem:[#allocation7 + $0x320] ss:$16 sps:$4 sm:$0xff]  }
 0x16f   :  { %2073 = vmatpush1.bf16.msra.mxu0 %v7361_v10  ;;  %2237 = vmatpush1.bf16.msra.mxu1 %v7362_v11  ;;  %v7374_v10 = vld [vmem:[#allocation7 + $0x328] ss:$16 sps:$4 sm:$0xff]   ;;  %v7375_v11 = vld [vmem:[#allocation7 + $0x344] ss:$16 sps:$4 sm:$0xff]  }
 0x170   :  { %2074 = vmatprep.subr.bf16.mxu0 %v7363_v5  ;;  %2238 = vmatprep.subr.bf16.mxu1 %v7364_v8  ;;  %v7376_v5 = vld [vmem:[#allocation7 + $0x34c] ss:$16 sps:$4 sm:$0xff]   ;;  %v7377_v8 = vld [vmem:[#allocation7 + $0x340] ss:$16 sps:$4 sm:$0xff]  }
 0x173   :  { %2075 = vmatpush1.bf16.msra.mxu0 %v7365_v14  ;;  %2239 = vmatpush1.bf16.msra.mxu1 %v7366_v16  ;;  %v7378_v14 = vld [vmem:[#allocation7 + $0x348] ss:$16 sps:$4 sm:$0xff]   ;;  %v7379_v16 = vld [vmem:[#allocation7 + $0x364] ss:$16 sps:$4 sm:$0xff]  }
 0x174   :  { %2076 = vmatprep.subr.bf16.mxu0 %v7367_v12  ;;  %2240 = vmatprep.subr.bf16.mxu1 %v7368_v20  ;;  %v7380_v12 = vld [vmem:[#allocation7 + $0x36c] ss:$16 sps:$4 sm:$0xff]   ;;  %v7381_v20 = vld [vmem:[#allocation7 + $0x360] ss:$16 sps:$4 sm:$0xff]  }
 0x177   :  { %2077 = vmatpush1.bf16.msra.mxu0 %v7369_v9  ;;  %2241 = vmatpush1.bf16.msra.mxu1 %v7370_v19  ;;  %v7382_v9 = vld [vmem:[#allocation7 + $0x368] ss:$16 sps:$4 sm:$0xff]   ;;  %v7383_v19 = vld [vmem:[#allocation7 + $0x384] ss:$16 sps:$4 sm:$0xff]  }
 0x178   :  { %2078 = vmatprep.subr.bf16.mxu0 %v7371_v13  ;;  %2242 = vmatprep.subr.bf16.mxu1 %v7372_v7  ;;  %v7384_v13 = vld [vmem:[#allocation7 + $0x38c] ss:$16 sps:$4 sm:$0xff]   ;;  %v7385_v7 = vld [vmem:[#allocation7 + $0x380] ss:$16 sps:$4 sm:$0xff]  }
 0x17b   :  { %2079 = vmatpush1.bf16.msra.mxu0 %v7373_v6  ;;  %2243 = vmatpush1.bf16.msra.mxu1 %v7374_v10  ;;  %v7386_v6 = vld [vmem:[#allocation7 + $0x388] ss:$16 sps:$4 sm:$0xff]   ;;  %v7387_v10 = vld [vmem:[#allocation7 + $0x3a4] ss:$16 sps:$4 sm:$0xff]  }
 0x17c   :  { %2080 = vmatprep.subr.bf16.mxu0 %v7375_v11  ;;  %2244 = vmatprep.subr.bf16.mxu1 %v7376_v5  ;;  %v7388_v11 = vld [vmem:[#allocation7 + $0x3ac] ss:$16 sps:$4 sm:$0xff]   ;;  %v7389_v5 = vld [vmem:[#allocation7 + $0x3a0] ss:$16 sps:$4 sm:$0xff]  }
 0x17f   :  { %2081 = vmatpush1.bf16.msra.mxu0 %v7377_v8  ;;  %2245 = vmatpush1.bf16.msra.mxu1 %v7378_v14  ;;  %v7390_v8 = vld [vmem:[#allocation7 + $0x3a8] ss:$16 sps:$4 sm:$0xff]   ;;  %v7391_v14 = vld [vmem:[#allocation7 + $0x3c4] ss:$16 sps:$4 sm:$0xff]  }
 0x180   :  { %2082 = vmatprep.subr.bf16.mxu0 %v7379_v16  ;;  %2246 = vmatprep.subr.bf16.mxu1 %v7380_v12  ;;  %v7392_v16 = vld [vmem:[#allocation7 + $0x3cc] ss:$16 sps:$4 sm:$0xff]  }
 0x181   :  { %v7930_v12 = vld [vmem:[%s10143_s1 + $0x10] sm:$0x77] }
 0x183   :  { %2083 = vmatpush1.bf16.msra.mxu0 %v7381_v20  ;;  %2247 = vmatpush1.bf16.msra.mxu1 %v7382_v9  ;;  %v7393_v20 = vld [vmem:[#allocation7 + $0x3c0] ss:$16 sps:$4 sm:$0xff]   ;;  %v7394_v9 = vld [vmem:[#allocation7 + $0x3c8] ss:$16 sps:$4 sm:$0xff]  }
 0x184   :  { %2084 = vmatprep.subr.bf16.mxu0 %v7383_v19  ;;  %2248 = vmatprep.subr.bf16.mxu1 %v7384_v13  ;;  %v7395_v19 = vld [vmem:[#allocation7 + $0x3e4] ss:$16 sps:$4 sm:$0xff]   ;;  %v7396_v13 = vld [vmem:[#allocation7 + $0x3ec] ss:$16 sps:$4 sm:$0xff]  }
 0x187   :  { %2085 = vmatpush1.bf16.msra.mxu0 %v7385_v7  ;;  %2249 = vmatpush1.bf16.msra.mxu1 %v7386_v6  ;;  %v2005_v7 = vcombine.high %v7930_v12, %v7930_v12  ;;  %v2013_v6 = vpack.c.bf16 %v7907_v15, %v7907_v15  ;;  %v10324_v15 = vld [vmem:[#allocation28_spill] sm:$0xff] }
 0x188   :  { %2086 = vmatprep.subr.bf16.mxu0 %v7387_v10  ;;  %2250 = vmatprep.subr.bf16.mxu1 %v7388_v11  ;;  %v7397_v10 = vld [vmem:[#allocation7 + $0x3e0] ss:$16 sps:$4 sm:$0xff]   ;;  %v7398_v11 = vld [vmem:[#allocation7 + $0x3e8] ss:$16 sps:$4 sm:$0xff]  }
 0x18b   :  { %2087 = vmatpush1.bf16.msra.mxu0 %v7389_v5  ;;  %2251 = vmatpush1.bf16.msra.mxu1 %v7390_v8  ;;  %v7399_v5 = vld [vmem:[#allocation7 + $0x404] ss:$16 sps:$4 sm:$0xff]   ;;  %v7400_v8 = vld [vmem:[#allocation7 + $0x40c] ss:$16 sps:$4 sm:$0xff]  }
 0x18c   :  { %2088 = vmatprep.subr.bf16.mxu0 %v7391_v14  ;;  %2252 = vmatprep.subr.bf16.mxu1 %v7392_v16  ;;  %v2016_v14 = vpack.c.bf16 %v2005_v7, %v2005_v7  ;;  %v7401_v16 = vld [vmem:[#allocation7 + $0x400] ss:$16 sps:$4 sm:$0xff]   ;;  %v10327_v7 = vld [vmem:[#allocation31_spill] sm:$0xff] }
 0x18f   :  { %2089 = vmatpush1.bf16.msra.mxu0 %v7393_v20  ;;  %2253 = vmatpush1.bf16.msra.mxu1 %v7394_v9  ;;  %v7402_v20 = vld [vmem:[#allocation7 + $0x408] ss:$16 sps:$4 sm:$0xff]  }
 0x190   :  { %2090 = vmatprep.subr.bf16.mxu0 %v7395_v19  ;;  %2254 = vmatprep.subr.bf16.mxu1 %v7396_v13  ;;  %v3964_v9 = vld [vmem:[%s10149_s7] sm:$0xff]  ;;  %v10325_v19 = vld [vmem:[#allocation29_spill] sm:$0xff] }
 0x191   :  { %v10326_v13 = vld [vmem:[#allocation30_spill] sm:$0xff] }
 0x193   :  { %2091 = vmatpush1.bf16.msra.mxu0 %v7397_v10  ;;  %2255 = vmatpush1.bf16.msra.mxu1 %v7398_v11  ;;  %v2534_v10 = vld [vmem:[%s10147_s5 + $0xd8] sm:$0xff]  ;;  %v3966_v11 = vld [vmem:[%s10149_s7 + $0x10] sm:$0xff] }
 0x194   :  { %2101 = vmatprep.subr.bf16.mxu0 %v7399_v5  ;;  %2265 = vmatprep.subr.bf16.mxu1 %v7400_v8  ;;  %v10329_v5 = vld [vmem:[#allocation33_spill] sm:$0xff]  ;;  %v10330_v8 = vld [vmem:[#allocation34_spill] sm:$0xff] }
 0x196   :  { %2093 = vmatmul.mubr.bf16.vlgmr.msra.gmra.mrb[4].mxu0 %v2013_v6  ;;  %2257 = vmatmul.mubr.bf16.vlgmr.msra.gmra.mrb[4].mxu1 %v2013_v6  ;;  %v10328_v6 = vld [vmem:[#allocation32_spill] sm:$0xff] }
 0x197   :  { %2102 = vmatpush1.bf16.msra.mxu0 %v7401_v16  ;;  %2266 = vmatpush1.bf16.msra.mxu1 %v7402_v20  ;;  %v10332_v16 = vld [vmem:[#allocation36_spill] sm:$0xff] }
 0x198   :  { %2103 = vmatprep.subr.bf16.mxu0 %v7567_v17  ;;  %2267 = vmatprep.subr.bf16.mxu1 %v7569_v18  ;;  %v7468_v17 = vmov 0   ;;  %v2507_v18 = vld [vmem:[%s10147_s5] sm:$0xff]  ;;  %v3965_v20 = vld [vmem:[%s10149_s7 + $0x8] sm:$0xff] }
 0x199   :  { %2133 = vmatprep.mubr.bf16.mxu0 %v2016_v14  ;;  %2297 = vmatprep.mubr.bf16.mxu1 %v2016_v14  ;;  %v10331_v14 = vld [vmem:[#allocation35_spill] sm:$0xff] }
 0x19a   :  { %6873 = vset.pattern.permute.xlu0 %v7468_v17  ;;  %6874 = vset.pattern.permute.xlu1 %v7468_v17  ;;  %v5210_v17 = vld [vmem:[%s10150_s8] sm:$0xff] }
 0x19b   :  { %2104 = vmatpush1.bf16.msra.mxu0 %v7577_v21  ;;  %2268 = vmatpush1.bf16.msra.mxu1 %v7579_v22  ;;  %v2508_v21 = vld [vmem:[%s10147_s5 + $0x8] sm:$0xff]  ;;  %v2509_v22 = vld [vmem:[%s10147_s5 + $0x10] sm:$0xff] }
 0x19c   :  { %2105 = vmatprep.subr.bf16.mxu0 %v7583_v24  ;;  %2269 = vmatprep.subr.bf16.mxu1 %v7585_v25  ;;  %v2511_v24 = vld [vmem:[%s10147_s5 + $0x20] sm:$0xff]  ;;  %v2510_v25 = vld [vmem:[%s10147_s5 + $0x18] sm:$0xff] }
 0x19d   :  { %2537 = vperm.xlu0 %6873, %v2507_v18   ;;  %2547 = vperm.xlu1 %6874, %v2509_v22   ;;  %v10333_v18 = vld [vmem:[#allocation37_spill] sm:$0xff]  ;;  %v10206_v22 = vlaneseq }
 0x19f   :  { %2106 = vmatpush1.bf16.msra.mxu0 %v7587_v26  ;;  %2270 = vmatpush1.bf16.msra.mxu1 %v7589_v27  ;;  %v2513_v26 = vld [vmem:[%s10147_s5 + $0x30] sm:$0xff]  ;;  %v2512_v27 = vld [vmem:[%s10147_s5 + $0x28] sm:$0xff] }
 0x1a0   :  { %2107 = vmatprep.subr.bf16.mxu0 %v7593_v28  ;;  %2271 = vmatprep.subr.bf16.mxu1 %v7597_v29  ;;  %v2515_v28 = vld [vmem:[%s10147_s5 + $0x40] sm:$0xff]  ;;  %v2514_v29 = vld [vmem:[%s10147_s5 + $0x38] sm:$0xff] }
 0x1a1   :  { %2542 = vperm.xlu0 %6873, %v2508_v21   ;;  %2552 = vperm.xlu1 %6874, %v2510_v25   ;;  %v10334_v21 = vld [vmem:[#allocation38_spill] sm:$0xff]  ;;  %v10336_v25 = vld [vmem:[#allocation40_spill] sm:$0xff] }
 0x1a3   :  { %2108 = vmatpush1.bf16.msra.mxu0 %v7599_v30  ;;  %2272 = vmatpush1.bf16.msra.mxu1 %v7601_v31  ;;  %v2517_v30 = vld [vmem:[%s10147_s5 + $0x50] sm:$0xff]  ;;  %v2516_v31 = vld [vmem:[%s10147_s5 + $0x48] sm:$0xff] }
 0x1a4   :  { %2109 = vmatprep.subr.bf16.mxu0 %v7605_v32  ;;  %2273 = vmatprep.subr.bf16.mxu1 %v7609_v33  ;;  %v2519_v32 = vld [vmem:[%s10147_s5 + $0x60] sm:$0xff]  ;;  %v2518_v33 = vld [vmem:[%s10147_s5 + $0x58] sm:$0xff] }
 0x1a5   :  { %2557 = vperm.xlu0 %6873, %v2511_v24   ;;  %2562 = vperm.xlu1 %6874, %v2512_v27   ;;  %v10335_v24 = vld [vmem:[#allocation39_spill] sm:$0xff] }
 0x1a6   :  { %v3968_v27 = vld [vmem:[%s10149_s7 + $0x20] sm:$0xff] }
 0x1a7   :  { %2110 = vmatpush1.bf16.msra.mxu0 %v7611_v34  ;;  %2274 = vmatpush1.bf16.msra.mxu1 %v7613_v35  ;;  %v2521_v34 = vld [vmem:[%s10147_s5 + $0x70] sm:$0xff]  ;;  %v2520_v35 = vld [vmem:[%s10147_s5 + $0x68] sm:$0xff] }
 0x1a8   :  { %2111 = vmatprep.subr.bf16.mxu0 %v7617_v36  ;;  %2275 = vmatprep.subr.bf16.mxu1 %v7621_v37  ;;  %v2523_v36 = vld [vmem:[%s10147_s5 + $0x80] sm:$0xff]  ;;  %v2522_v37 = vld [vmem:[%s10147_s5 + $0x78] sm:$0xff] }
 0x1a9   :  { %2567 = vperm.xlu0 %6873, %v2513_v26   ;;  %2572 = vperm.xlu1 %6874, %v2514_v29   ;;  %v3967_v26 = vld [vmem:[%s10149_s7 + $0x18] sm:$0xff] }
 0x1aa   :  { %v10337_v29 = vld [vmem:[#allocation41_spill] sm:$0xff] }
 0x1ab   :  { %2112 = vmatpush1.bf16.msra.mxu0 %v7623_v38  ;;  %2276 = vmatpush1.bf16.msra.mxu1 %v7625_v39  ;;  %v2525_v38 = vld [vmem:[%s10147_s5 + $0x90] sm:$0xff]  ;;  %v10306_v39 = vld [vmem:[#allocation10_spill] sm:$0xff] }
 0x1ac   :  { %2113 = vmatprep.subr.bf16.mxu0 %v7629_v40  ;;  %2277 = vmatprep.subr.bf16.mxu1 %v7633_v41  ;;  %v2524_v40 = vld [vmem:[%s10147_s5 + $0x88] sm:$0xff]  ;;  %v2527_v41 = vld [vmem:[%s10147_s5 + $0xa0] sm:$0xff] }
 0x1ad   :  { %2577 = vperm.xlu0 %6873, %v2515_v28   ;;  %2582 = vperm.xlu1 %6874, %v2516_v31   ;;  %v8128_v28 = vshrl.u32 %v10206_v22, 7 }
 0x1af   :  { %2114 = vmatpush1.bf16.msra.mxu0 %v7635_v42  ;;  %2278 = vmatpush1.bf16.msra.mxu1 %v7637_v43  ;;  %v10307_v42 = vld [vmem:[#allocation11_spill] sm:$0xff]  ;;  %v10308_v43 = vld [vmem:[#allocation12_spill] sm:$0xff] }
 0x1b0   :  { %2115 = vmatprep.subr.bf16.mxu0 %v7641_v44  ;;  %2279 = vmatprep.subr.bf16.mxu1 %v7645_v45  ;;  %v10309_v44 = vld [vmem:[#allocation13_spill] sm:$0xff]  ;;  %v10310_v45 = vld [vmem:[#allocation14_spill] sm:$0xff] }
 0x1b1   :  { %2587 = vperm.xlu0 %6873, %v2517_v30   ;;  %2592 = vperm.xlu1 %6874, %v2518_v33   ;;  %v10338_v30 = vld [vmem:[#allocation42_spill] sm:$0xff] }
 0x1b2   :  { %v325_v33 = vld [vmem:[#allocation2 + $0x20] sm:$0x3] }
 0x1b3   :  { %2116 = vmatpush1.bf16.msra.mxu0 %v7647_v46  ;;  %2280 = vmatpush1.bf16.msra.mxu1 %v7649_v47  ;;  %v8053_v46 = vld [vmem:[%s10143_s1 + $0x18] sm:$0x77] }
 0x1b4   :  { %2117 = vmatprep.subr.bf16.mxu0 %v7653_v48  ;;  %2281 = vmatprep.subr.bf16.mxu1 %v7657_v49  ;;  %v2526_v47 = vld [vmem:[%s10147_s5 + $0x98] sm:$0xff]  ;;  %v2529_v48 = vld [vmem:[%s10147_s5 + $0xb0] sm:$0xff]  ;;  %v10311_v49 = vld [vmem:[#allocation15_spill] sm:$0xff] }
 0x1b5   :  { %2597 = vperm.xlu0 %6873, %v2519_v32   ;;  %2602 = vperm.xlu1 %6874, %v2520_v35  }
 0x1b7   :  { %2118 = vmatpush1.bf16.msra.mxu0 %v7659_v50  ;;  %2282 = vmatpush1.bf16.msra.mxu1 %v7661_v51  ;;  %v10312_v50 = vld [vmem:[#allocation16_spill] sm:$0xff]  ;;  %v10313_v51 = vld [vmem:[#allocation17_spill] sm:$0xff] }
 0x1b8   :  { %2119 = vmatprep.subr.bf16.mxu0 %v7665_v52  ;;  %2283 = vmatprep.subr.bf16.mxu1 %v7669_v53  ;;  %v10314_v52 = vld [vmem:[#allocation18_spill] sm:$0xff]  ;;  %v2006_v53 = vcombine.high %v8053_v46, %v8053_v46 }
 0x1b9   :  { %2607 = vperm.xlu0 %6873, %v2521_v34   ;;  %2612 = vperm.xlu1 %6874, %v2522_v37   ;;  %v327_v34 = vld [vmem:[#allocation2 + $0x30] sm:$0x3]  ;;  %v326_v37 = vld [vmem:[#allocation2 + $0x28] sm:$0x3] }
 0x1bb   :  { %2120 = vmatpush1.bf16.msra.mxu0 %v7671_v54  ;;  %2284 = vmatpush1.bf16.msra.mxu1 %v7673_v55  ;;  %v2015_v54 = vpack.c.bf16 %v7930_v12, %v7930_v12  ;;  %v2528_v55 = vld [vmem:[%s10147_s5 + $0xa8] sm:$0xff] }
 0x1bc   :  { %2121 = vmatprep.subr.bf16.mxu0 %v7677_v56  ;;  %2285 = vmatprep.subr.bf16.mxu1 %v7681_v57  ;;  %v2531_v56 = vld [vmem:[%s10147_s5 + $0xc0] sm:$0xff]  ;;  %v2532_v12 = vld [vmem:[%s10147_s5 + $0xc8] sm:$0xff] }
 0x1bd   :  { %2617 = vperm.xlu0 %6873, %v2523_v36   ;;  %2622 = vperm.xlu1 %6874, %v2524_v40   ;;  %v10315_v57 = vld [vmem:[#allocation19_spill] sm:$0xff] }
 0x1bf   :  { %2122 = vmatpush1.bf16.msra.mxu0 %v7683_v58  ;;  %2286 = vmatpush1.bf16.msra.mxu1 %v7685_v59  ;;  %v10316_v58 = vld [vmem:[#allocation20_spill] sm:$0xff]  ;;  %v10317_v59 = vld [vmem:[#allocation21_spill] sm:$0xff] }
 0x1c0   :  { %2123 = vmatprep.subr.bf16.mxu0 %v7689_v60  ;;  %2287 = vmatprep.subr.bf16.mxu1 %v7693_v61  ;;  %v10318_v60 = vld [vmem:[#allocation22_spill] sm:$0xff]  ;;  %v2018_v61 = vpack.c.bf16 %v2006_v53, %v2006_v53 }
 0x1c1   :  { %2627 = vperm.xlu0 %6873, %v2525_v38   ;;  %2632 = vperm.xlu1 %6874, %v2526_v47   ;;  %v328_v38 = vld [vmem:[#allocation2 + $0x38] sm:$0x3]  ;;  %v2378_v47 = vsub.s32 2, %v8128_v28 }
 0x1c2   :  { %v10342_v53 = vld [vmem:[#allocation46_spill] sm:$0xff] }
 0x1c3   :  { %2124 = vmatpush1.bf16.msra.mxu0 %v7695_v62  ;;  %2288 = vmatpush1.bf16.msra.mxu1 %v7697_v63  ;;  %v10319_v62 = vld [vmem:[#allocation23_spill] sm:$0xff]  ;;  %v10320_v63 = vld [vmem:[#allocation24_spill] sm:$0xff] }
 0x1c4   :  { %2125 = vmatprep.subr.bf16.mxu0 %v7701_v0  ;;  %2289 = vmatprep.subr.bf16.mxu1 %v7705_v1  ;;  %v2530_v0 = vld [vmem:[%s10147_s5 + $0xb8] sm:$0xff]  ;;  %v2533_v1 = vld [vmem:[%s10147_s5 + $0xd0] sm:$0xff] }
 0x1c5   :  { %2637 = vperm.xlu0 %6873, %v2527_v41   ;;  %2642 = vperm.xlu1 %6874, %v2528_v55   ;;  %v10339_v41 = vld [vmem:[#allocation43_spill] sm:$0xff]  ;;  %v2374_v55 = vsub.s32 1, %v8128_v28 }
 0x1c7   :  { %2126 = vmatpush1.bf16.msra.mxu0 %v7709_v2  ;;  %2290 = vmatpush1.bf16.msra.mxu1 %v7711_v3  ;;  %v10321_v2 = vld [vmem:[#allocation25_spill] sm:$0xff]  ;;  %v10322_v3 = vld [vmem:[#allocation26_spill] sm:$0xff] }
 0x1c8   :  { %2127 = vmatprep.subr.bf16.mxu0 %v7715_v4  ;;  %2291 = vmatprep.subr.bf16.mxu1 %v10306_v39  ;;  %v10323_v4 = vld [vmem:[#allocation27_spill] sm:$0xff] }
 0x1c9   :  { %2647 = vperm.xlu0 %6873, %v2529_v48   ;;  %2652 = vperm.xlu1 %6874, %v2530_v0   ;;  %v10345_v0 = vld [vmem:[#allocation49_spill] sm:$0xff] }
 0x1cb   :  { %2128 = vmatpush1.bf16.msra.mxu0 %v10307_v42  ;;  %2292 = vmatpush1.bf16.msra.mxu1 %v10308_v43  ;;  %v10340_v42 = vld [vmem:[#allocation44_spill] sm:$0xff] }
 0x1cc   :  { %2129 = vmatprep.subr.bf16.mxu0 %v10309_v44  ;;  %2293 = vmatprep.subr.bf16.mxu1 %v10310_v45  ;;  %v5211_v43 = vld [vmem:[%s10150_s8 + $0x8] sm:$0xff]  ;;  %v10207_v45 = vsub.s32 0, %v8128_v28 }
 0x1cd   :  { %2657 = vperm.xlu0 %6873, %v2531_v56   ;;  %2662 = vperm.xlu1 %6874, %v2532_v12   ;;  %v3969_v44 = vld [vmem:[%s10149_s7 + $0x28] sm:$0xff]  ;;  %v2382_v56 = vsub.s32 3, %v8128_v28  ;;  %v3971_v12 = vld [vmem:[%s10149_s7 + $0x38] sm:$0xff] }
 0x1cf   :  { %2130 = vmatpush1.bf16.msra.mxu0 %v10311_v49  ;;  %2294 = vmatpush1.bf16.msra.mxu1 %v10312_v50 }
 0x1d0   :  { %2131 = vmatprep.subr.bf16.mxu0 %v10313_v51  ;;  %2295 = vmatprep.subr.bf16.mxu1 %v10314_v52  ;;  %v10341_v52 = vld [vmem:[#allocation45_spill] sm:$0xff] }
 0x1d1   :  { %2667 = vperm.xlu0 %6873, %v2533_v1   ;;  %2672 = vperm.xlu1 %6874, %v2534_v10   ;;  %v10346_v1 = vld [vmem:[#allocation50_spill] sm:$0xff] }
 0x1d3   :  { %2132 = vmatpush1.bf16.msra.mxu0 %v10315_v57  ;;  %2296 = vmatpush1.bf16.msra.mxu1 %v10316_v58 }
 0x1d4   :  { %2142 = vmatprep.subr.bf16.mxu0 %v10317_v59  ;;  %2306 = vmatprep.subr.bf16.mxu1 %v10318_v60  ;;  %v10343_v59 = vld [vmem:[#allocation47_spill] sm:$0xff]  ;;  %v10344_v60 = vld [vmem:[#allocation48_spill] sm:$0xff] }
 0x1d5   :  { %3990 = vperm.xlu0 %6873, %v3964_v9   ;;  %3995 = vperm.xlu1 %6874, %v3965_v20  }
 0x1d6   :  { %2134 = vmatmul.mubr.bf16.vlgmr.msra.gmra.mrb[4].mxu0 %v2015_v54  ;;  %2298 = vmatmul.mubr.bf16.vlgmr.msra.gmra.mrb[4].mxu1 %v2015_v54  ;;  %v2362_v54 = vld [vmem:[%s10145_s3] sm:$0xf] }
 0x1d7   :  { %2143 = vmatpush1.bf16.msra.mxu0 %v10319_v62  ;;  %2307 = vmatpush1.bf16.msra.mxu1 %v10320_v63  ;;  %v3970_v62 = vld [vmem:[%s10149_s7 + $0x30] sm:$0xff]  ;;  %v8159_v63 = vrot.slane %v2362_v54, %v10207_v45 }
 0x1d8   :  { %2144 = vmatprep.subr.bf16.mxu0 %v10321_v2  ;;  %2308 = vmatprep.subr.bf16.mxu1 %v10322_v3  ;;  %v8163_v2 = vrot.slane %v2362_v54, %v2378_v47  ;;  %v8165_v3 = vrot.slane %v2362_v54, %v2374_v55 }
 0x1d9   :  { %2174 = vmatprep.mubr.bf16.mxu0 %v2018_v61  ;;  %2338 = vmatprep.mubr.bf16.mxu1 %v2018_v61  ;;  %v5212_v61 = vld [vmem:[%s10150_s8 + $0x10] sm:$0xff] }
 0x1da   :  { %4000 = vperm.xlu0 %6873, %v3966_v11   ;;  %4005 = vperm.xlu1 %6874, %v3967_v26  }
 0x1db   :  { %2145 = vmatpush1.bf16.msra.mxu0 %v10323_v4  ;;  %2309 = vmatpush1.bf16.msra.mxu1 %v10324_v15  ;;  %v8167_v4 = vrot.slane %v2362_v54, %v2382_v56  ;;  %v5213_v15 = vld [vmem:[%s10150_s8 + $0x18] sm:$0xff] }
 0x1dc   :  { %2146 = vmatprep.subr.bf16.mxu0 %v10325_v19  ;;  %2310 = vmatprep.subr.bf16.mxu1 %v10326_v13 }
 0x1de   :  { %5236 = vperm.xlu0 %6873, %v5210_v17   ;;  %5241 = vperm.xlu1 %6874, %v5211_v43  }
 0x1df   :  { %2147 = vmatpush1.bf16.msra.mxu0 %v10327_v7  ;;  %2311 = vmatpush1.bf16.msra.mxu1 %v10328_v6  ;;  %v10347_v7 = vld [vmem:[#allocation51_spill] sm:$0xff]  ;;  %v10348_v6 = vld [vmem:[#allocation52_spill] sm:$0xff] }
 0x1e0   :  { %2148 = vmatprep.subr.bf16.mxu0 %v10329_v5  ;;  %2312 = vmatprep.subr.bf16.mxu1 %v10330_v8 }
 0x1e2   :  { %4010 = vperm.xlu0 %6873, %v3968_v27   ;;  %5246 = vperm.xlu1 %6874, %v5212_v61   ;;  %v10356_v61 = vld [vmem:[#allocation60_spill] sm:$0xff] }
 0x1e3   :  { %2149 = vmatpush1.bf16.msra.mxu0 %v10331_v14  ;;  %2313 = vmatpush1.bf16.msra.mxu1 %v10332_v16  ;;  %v10349_v14 = vld [vmem:[#allocation53_spill] sm:$0xff]  ;;  %v10350_v16 = vld [vmem:[#allocation54_spill] sm:$0xff] }
 0x1e4   :  { %2150 = vmatprep.subr.bf16.mxu0 %v10333_v18  ;;  %2314 = vmatprep.subr.bf16.mxu1 %v10334_v21 }
 0x1e6   :  { %4015 = vperm.xlu0 %6873, %v3969_v44   ;;  %5251 = vperm.xlu1 %6874, %v5213_v15  }
 0x1e7   :  { %2151 = vmatpush1.bf16.msra.mxu0 %v10335_v24  ;;  %2315 = vmatpush1.bf16.msra.mxu1 %v10336_v25 }
 0x1e8   :  { %2152 = vmatprep.subr.bf16.mxu0 %v10337_v29  ;;  %2316 = vmatprep.subr.bf16.mxu1 %v10338_v30 }
 0x1e9   :  { %v1796_v31 = vpop.f32.mrb[0].mxu0  ;;  %v1968_v32 = vpop.f32.mrb[0].mxu1 }
 0x1ea   :  { %v1798_v35 = vpop.f32.mrb[1].mxu0  ;;  %v1970_v36 = vpop.f32.mrb[1].mxu1  ;;  %1985 = vst [vmem:[#allocation2] sm:$0xff] %v1796_v31  ;;  %1987 = vst [vmem:[#allocation2 + $0x10] sm:$0xff] %v1968_v32  ;;  %4020 = vperm.xlu0 %6873, %v3970_v62  }
 0x1eb   :  { %v1800_v39 = vpop.f32.mrb[2].mxu0  ;;  %v1972_v40 = vpop.f32.mrb[2].mxu1  ;;  %2153 = vmatpush1.bf16.msra.mxu0 %v10339_v41  ;;  %2317 = vmatpush1.bf16.msra.mxu1 %v10340_v42  ;;  %1986 = vst [vmem:[#allocation2 + $0x8] sm:$0xff] %v1798_v35  ;;  %1988 = vst [vmem:[#allocation2 + $0x18] sm:$0xff] %v1970_v36  ;;  %v5214_v42 = vld [vmem:[%s10150_s8 + $0x20] sm:$0xff] }
 0x1ec   :  { %v1981_v48 = vadd.f32 %v1800_v39, %v325_v33  ;;  %v1983_v49 = vadd.f32 %v1972_v40, %v327_v34  ;;  %v1802_v50 = vpop.f32.mrb[3].mxu0  ;;  %v1974_v51 = vpop.f32.mrb[3].mxu1  ;;  %2154 = vmatprep.subr.bf16.mxu0 %v10341_v52  ;;  %2318 = vmatprep.subr.bf16.mxu1 %v10342_v53  ;;  %v10351_v39 = vld [vmem:[#allocation55_spill] sm:$0xff]  ;;  %v10352_v40 = vld [vmem:[#allocation56_spill] sm:$0xff] }
 0x1ed   :  { %v1982_v57 = vadd.f32 %v1802_v50, %v326_v37  ;;  %v1984_v58 = vadd.f32 %v1974_v51, %v328_v38  ;;  %v10354_v50 = vld [vmem:[#allocation58_spill] sm:$0xff]  ;;  %5256 = vperm.xlu1 %6874, %v5214_v42   ;;  %v7418_v42 = vld [vmem:[#allocation7 + $0x7cc] ss:$16 sps:$4 sm:$0xff]  }
 0x1ee   :  { %1989 = vst [vmem:[#allocation2 + $0x20] sm:$0x3] %v1981_v48  ;;  %1991 = vst [vmem:[#allocation2 + $0x30] sm:$0x3] %v1983_v49  ;;  %4025 = vperm.xlu0 %6873, %v3971_v12   ;;  %v10353_v49 = vld [vmem:[#allocation57_spill] sm:$0xff]  ;;  %v3972_v51 = vld [vmem:[%s10149_s7 + $0x40] sm:$0xff] }
 0x1ef   :  { %1990 = vst [vmem:[#allocation2 + $0x28] sm:$0x3] %v1982_v57  ;;  %1992 = vst [vmem:[#allocation2 + $0x38] sm:$0x3] %v1984_v58  ;;  %2155 = vmatpush1.bf16.msra.mxu0 %v10343_v59  ;;  %2319 = vmatpush1.bf16.msra.mxu1 %v10344_v60  ;;  %v10355_v60 = vld [vmem:[#allocation59_spill] sm:$0xff] }
 0x1f0   :  { %2156 = vmatprep.subr.bf16.mxu0 %v10345_v0  ;;  %2320 = vmatprep.subr.bf16.mxu1 %v10346_v1  ;;  %v5215_v12 = vld [vmem:[%s10150_s8 + $0x28] sm:$0xff] }
 0x1f1   :  { %v2363_v9 = vld [vmem:[#allocation2] sm:$0x1f]  ;;  %v2400_v19 = vld [vmem:[#allocation2] sm:$0xe0]  ;;  %v2365_v13 = vld [vmem:[#allocation2 + $0x10] sm:$0x1f]  ;;  %5261 = vperm.xlu1 %6874, %v5215_v12  }
 0x1f2   :  { %v2408_v10 = vadd.f32 %v2400_v19, %v8159_v63  ;;  %v2402_v11 = vld [vmem:[#allocation2 + $0x10] sm:$0xe0]  ;;  %v2401_v5 = vld [vmem:[#allocation2 + $0x8] sm:$0xe0]  ;;  %v2403_v8 = vld [vmem:[#allocation2 + $0x18] sm:$0xe0]  ;;  %v2388_v20 = vadd.f32 %v8159_v63, %v2363_v9  ;;  %v2390_v27 = vadd.f32 %v8163_v2, %v2365_v13  ;;  %4030 = vperm.xlu0 %6873, %v3972_v51   ;;  %v2017_v51 = vpack.c.bf16 %v8053_v46, %v8053_v46 }
 0x1f3   :  { %2157 = vmatpush1.bf16.msra.mxu0 %v10347_v7  ;;  %2321 = vmatpush1.bf16.msra.mxu1 %v10348_v6  ;;  %v2410_v17 = vadd.f32 %v2402_v11, %v8163_v2  ;;  %v2409_v18 = vadd.f32 %v2401_v5, %v8165_v3  ;;  %v2411_v21 = vadd.f32 %v2403_v8, %v8167_v4  ;;  %v2364_v26 = vld [vmem:[#allocation2 + $0x8] sm:$0x1f]  ;;  %v2366_v41 = vld [vmem:[#allocation2 + $0x18] sm:$0x1f]  ;;  %v3980_v12 = vld [vmem:[%s10149_s7 + $0x80] sm:$0xff] }
 0x1f4   :  { %2158 = vmatprep.subr.bf16.mxu0 %v10349_v14  ;;  %2322 = vmatprep.subr.bf16.mxu1 %v10350_v16  ;;  %v2416_v29 = vmax.f32 %v2408_v10, 0.0  ;;  %v2389_v34 = vadd.f32 %v8165_v3, %v2364_v26  ;;  %v2392_v55 = vmax.f32 %v2388_v20, 0.0  ;;  %v2391_v59 = vadd.f32 %v8167_v4, %v2366_v41  ;;  %v3973_v9 = vld [vmem:[%s10149_s7 + $0x48] sm:$0xff]  ;;  %v10357_v19 = vld [vmem:[#allocation61_spill] sm:$0xff]  ;;  %v10358_v13 = vld [vmem:[#allocation62_spill] sm:$0xff] }
 0x1f5   :  { %v2404_v24 = vld [vmem:[#allocation2 + $0x20] sm:$0x3]  ;;  %v2406_v25 = vld [vmem:[#allocation2 + $0x30] sm:$0x3]  ;;  %v2418_v35 = vmax.f32 %v2410_v17, 0.0  ;;  %v2417_v36 = vmax.f32 %v2409_v18, 0.0 }
 0x1f6   :  { %v2412_v30 = vadd.f32 %v2404_v24, %v8159_v63  ;;  %v2414_v31 = vadd.f32 %v2406_v25, %v8163_v2  ;;  %v2405_v32 = vld [vmem:[#allocation2 + $0x28] sm:$0x3]  ;;  %v2407_v33 = vld [vmem:[#allocation2 + $0x38] sm:$0x3]  ;;  %v2419_v37 = vmax.f32 %v2411_v21, 0.0  ;;  %v2433_v43 = vrot.slane %v2416_v29, 5  ;;  %4035 = vperm.xlu0 %6873, %v3973_v9  }
 0x1f7   :  { %v2413_v38 = vadd.f32 %v2405_v32, %v8165_v3  ;;  %2159 = vmatpush1.bf16.msra.mxu0 %v10351_v39  ;;  %2323 = vmatpush1.bf16.msra.mxu1 %v10352_v40  ;;  %v2415_v48 = vadd.f32 %v2407_v33, %v8167_v4  ;;  %v2439_v52 = vrot.slane %v2418_v35, 5  ;;  %v2393_v54 = vmax.f32 %v2389_v34, 0.0  ;;  %2396 = vst [vmem:[#allocation4] sm:$0x1f] %v2392_v55  ;;  %v7403_v14 = vld [vmem:[#allocation7 + $0x740] ss:$16 sps:$4 sm:$0xff]  }
 0x1f8   :  { %v2420_v44 = vmax.f32 %v2412_v30, 0.0  ;;  %v2422_v47 = vmax.f32 %v2414_v31, 0.0  ;;  %2160 = vmatprep.subr.bf16.mxu0 %v10353_v49  ;;  %2324 = vmatprep.subr.bf16.mxu1 %v10354_v50  ;;  %v2436_v62 = vrot.slane %v2417_v36, 5  ;;  %v2394_v1 = vmax.f32 %v2390_v27, 0.0  ;;  %v7404_v16 = vld [vmem:[#allocation7 + $0x748] ss:$16 sps:$4 sm:$0xff]  }
 0x1f9   :  { %v2421_v53 = vmax.f32 %v2413_v38, 0.0  ;;  %v2423_v58 = vmax.f32 %v2415_v48, 0.0  ;;  %2397 = vst [vmem:[#allocation4 + $0x8] sm:$0x1f] %v2393_v54  ;;  %v2442_v15 = vrot.slane %v2419_v37, 5  ;;  %v2395_v7 = vmax.f32 %v2391_v59, 0.0 }
 0x1fa   :  { %v2434_v56 = vrot.slane %v2420_v44, 5  ;;  %v2440_v57 = vrot.slane %v2422_v47, 5  ;;  %2398 = vst [vmem:[#allocation4 + $0x10] sm:$0x1f] %v2394_v1  ;;  %v5216_v20 = vld [vmem:[%s10150_s8 + $0x30] sm:$0xff]  ;;  %v5217_v26 = vld [vmem:[%s10150_s8 + $0x38] sm:$0xff] }
 0x1fb   :  { %2161 = vmatpush1.bf16.msra.mxu0 %v10355_v60  ;;  %2325 = vmatpush1.bf16.msra.mxu1 %v10356_v61  ;;  %v2437_v0 = vrot.slane %v2421_v53, 5  ;;  %v2443_v10 = vrot.slane %v2423_v58, 5  ;;  %2399 = vst [vmem:[#allocation4 + $0x18] sm:$0x1f] %v2395_v7  ;;  %v3974_v17 = vld [vmem:[%s10149_s7 + $0x50] sm:$0xff]  ;;  %v3975_v27 = vld [vmem:[%s10149_s7 + $0x58] sm:$0xff] }
 0x1fc   :  { %2162 = vmatprep.subr.bf16.mxu0 %v10357_v19  ;;  %2326 = vmatprep.subr.bf16.mxu1 %v10358_v13  ;;  %v2435_v6 = vsel %vm2432_vm0, %v2433_v43, %v2434_v56  ;;  %v2441_v11 = vsel %vm2432_vm0, %v2439_v52, %v2440_v57  ;;  %v7405_v18 = vld [vmem:[#allocation7 + $0x764] ss:$16 sps:$4 sm:$0xff]   ;;  %v7406_v21 = vld [vmem:[#allocation7 + $0x76c] ss:$16 sps:$4 sm:$0xff]   ;;  %v7407_v24 = vld [vmem:[#allocation7 + $0x760] ss:$16 sps:$4 sm:$0xff]  }
 0x1fd   :  { %v2438_v5 = vsel %vm2432_vm0, %v2436_v62, %v2437_v0  ;;  %2449 = vst [vmem:[#allocation4 + $0x20] sm:$0x1f] %v2435_v6  ;;  %2451 = vst [vmem:[#allocation4 + $0x30] sm:$0x1f] %v2441_v11  ;;  %v2444_v8 = vsel %vm2432_vm0, %v2442_v15, %v2443_v10  ;;  %5266 = vperm.xlu1 %6874, %v5216_v20   ;;  %4040 = vperm.xlu0 %6873, %v3974_v17   ;;  %v7408_v25 = vld [vmem:[#allocation7 + $0x768] ss:$16 sps:$4 sm:$0xff]  }
 0x1fe   :  { %2450 = vst [vmem:[#allocation4 + $0x28] sm:$0x1f] %v2438_v5  ;;  %2452 = vst [vmem:[#allocation4 + $0x38] sm:$0x1f] %v2444_v8  ;;  %v7409_v29 = vld [vmem:[#allocation7 + $0x784] ss:$16 sps:$4 sm:$0xff]  }
 0x1ff   :  { %2163 = vmatpush1.bf16.msra.mxu0 %v7403_v14  ;;  %2327 = vmatpush1.bf16.msra.mxu1 %v7404_v16  ;;  %v7410_v30 = vld [vmem:[#allocation7 + $0x78c] ss:$16 sps:$4 sm:$0xff]   ;;  %v7411_v31 = vld [vmem:[#allocation7 + $0x780] ss:$16 sps:$4 sm:$0xff]   ;;  %v7412_v32 = vld [vmem:[#allocation7 + $0x788] ss:$16 sps:$4 sm:$0xff]  }
 0x200   :  { %2164 = vmatprep.subr.bf16.mxu0 %v7405_v18  ;;  %2328 = vmatprep.subr.bf16.mxu1 %v7406_v21  ;;  %v5218_v33 = vld [vmem:[%s10150_s8 + $0x40] sm:$0xff]  ;;  %v7415_v37 = vld [vmem:[#allocation7 + $0x7a0] ss:$16 sps:$4 sm:$0xff]   ;;  %v5220_v47 = vld [vmem:[%s10150_s8 + $0x50] sm:$0xff] }
 0x201   :  { %5271 = vperm.xlu1 %6874, %v5217_v26   ;;  %4045 = vperm.xlu0 %6873, %v3975_v27   ;;  %v3976_v34 = vld [vmem:[%s10149_s7 + $0x60] sm:$0xff]  ;;  %v5219_v39 = vld [vmem:[%s10150_s8 + $0x48] sm:$0xff]  ;;  %v3978_v48 = vld [vmem:[%s10149_s7 + $0x70] sm:$0xff] }
 0x202   :  { %v7413_v35 = vld [vmem:[#allocation7 + $0x7a4] ss:$16 sps:$4 sm:$0xff]   ;;  %v7414_v36 = vld [vmem:[#allocation7 + $0x7ac] ss:$16 sps:$4 sm:$0xff]   ;;  %v7416_v38 = vld [vmem:[#allocation7 + $0x7a8] ss:$16 sps:$4 sm:$0xff]  }
 0x203   :  { %2165 = vmatpush1.bf16.msra.mxu0 %v7407_v24  ;;  %2329 = vmatpush1.bf16.msra.mxu1 %v7408_v25  ;;  %v3977_v40 = vld [vmem:[%s10149_s7 + $0x68] sm:$0xff]  ;;  %v7420_v44 = vld [vmem:[#allocation7 + $0x7c8] ss:$16 sps:$4 sm:$0xff]   ;;  %v2500_v54 = vld [vmem:[#allocation4 + $0x8] sm:$0xff] }
 0x204   :  { %2166 = vmatprep.subr.bf16.mxu0 %v7409_v29  ;;  %2330 = vmatprep.subr.bf16.mxu1 %v7410_v30  ;;  %v7417_v41 = vld [vmem:[#allocation7 + $0x7c4] ss:$16 sps:$4 sm:$0xff]   ;;  %v7419_v43 = vld [vmem:[#allocation7 + $0x7c0] ss:$16 sps:$4 sm:$0xff]   ;;  %v7422_v50 = vld [vmem:[#allocation7 + $0x7ec] ss:$16 sps:$4 sm:$0xff]  }
 0x205   :  { %5276 = vperm.xlu1 %6874, %v5218_v33   ;;  %4050 = vperm.xlu0 %6873, %v3976_v34   ;;  %v7421_v49 = vld [vmem:[#allocation7 + $0x7e4] ss:$16 sps:$4 sm:$0xff]   ;;  %v7423_v52 = vld [vmem:[#allocation7 + $0x7e0] ss:$16 sps:$4 sm:$0xff]   ;;  %v7424_v53 = vld [vmem:[#allocation7 + $0x7e8] ss:$16 sps:$4 sm:$0xff]  }
 0x206   :  { %v2499_v55 = vld [vmem:[#allocation4] sm:$0xff]  ;;  %v2502_v56 = vld [vmem:[#allocation4 + $0x18] sm:$0xff]  ;;  %v2504_v57 = vld [vmem:[#allocation4 + $0x28] sm:$0xff] }
 0x207   :  { %2167 = vmatpush1.bf16.msra.mxu0 %v7411_v31  ;;  %2331 = vmatpush1.bf16.msra.mxu1 %v7412_v32  ;;  %v5221_v46 = vld [vmem:[%s10150_s8 + $0x58] sm:$0xff]  ;;  %v8258_v59 = vld [vmem:[%s10146_s4] sm:$0xff]  ;;  %v2503_v62 = vld [vmem:[#allocation4 + $0x20] sm:$0xff] }
 0x208   :  { %2168 = vmatprep.subr.bf16.mxu0 %v7413_v35  ;;  %2332 = vmatprep.subr.bf16.mxu1 %v7414_v36  ;;  %v3979_v58 = vld [vmem:[%s10149_s7 + $0x78] sm:$0xff]  ;;  %v2501_v61 = vld [vmem:[#allocation4 + $0x10] sm:$0xff]  ;;  %v2506_v1 = vld [vmem:[#allocation4 + $0x38] sm:$0xff] }
 0x209   :  { %5281 = vperm.xlu1 %6874, %v5219_v39   ;;  %4055 = vperm.xlu0 %6873, %v3977_v40   ;;  %v8263_v60 = vld [vmem:[%s10146_s4 + $0xd8] sm:$0xff]  ;;  %v5222_v0 = vld [vmem:[%s10150_s8 + $0x60] sm:$0xff]  ;;  %v8275_v15 = vld [vmem:[%s10146_s4 + $0x8] sm:$0xff] }
 0x20a   :  { %v2505_v9 = vld [vmem:[#allocation4 + $0x30] sm:$0xff]  ;;  %v5223_v19 = vld [vmem:[%s10150_s8 + $0x68] sm:$0xff]  ;;  %v8293_v13 = vld [vmem:[%s10146_s4 + $0x10] sm:$0xff] }
 0x20b   :  { %2169 = vmatpush1.bf16.msra.mxu0 %v7415_v37  ;;  %2333 = vmatpush1.bf16.msra.mxu1 %v7416_v38  ;;  %v3981_v7 = vld [vmem:[%s10149_s7 + $0x88] sm:$0xff]  ;;  %v5224_v6 = vld [vmem:[%s10150_s8 + $0x70] sm:$0xff]  ;;  %v8311_v10 = vld [vmem:[%s10146_s4 + $0x18] sm:$0xff] }
 0x20c   :  { %2170 = vmatprep.subr.bf16.mxu0 %v7417_v41  ;;  %2334 = vmatprep.subr.bf16.mxu1 %v7418_v42  ;;  %v3982_v11 = vld [vmem:[%s10149_s7 + $0x90] sm:$0xff]  ;;  %v5225_v5 = vld [vmem:[%s10150_s8 + $0x78] sm:$0xff]  ;;  %v8328_v8 = vld [vmem:[%s10146_s4 + $0x20] sm:$0xff] }
 0x20d   :  { %5286 = vperm.xlu1 %6874, %v5220_v47   ;;  %4060 = vperm.xlu0 %6873, %v3978_v48   ;;  %v3983_v14 = vld [vmem:[%s10149_s7 + $0x98] sm:$0xff]  ;;  %v5226_v16 = vld [vmem:[%s10150_s8 + $0x80] sm:$0xff]  ;;  %v8345_v20 = vld [vmem:[%s10146_s4 + $0x28] sm:$0xff] }
 0x20e   :  { %v3984_v17 = vld [vmem:[%s10149_s7 + $0xa0] sm:$0xff]  ;;  %v5227_v18 = vld [vmem:[%s10150_s8 + $0x88] sm:$0xff]  ;;  %v8362_v21 = vld [vmem:[%s10146_s4 + $0x30] sm:$0xff] }
 0x20f   :  { %2171 = vmatpush1.bf16.msra.mxu0 %v7419_v43  ;;  %2335 = vmatpush1.bf16.msra.mxu1 %v7420_v44  ;;  %v3985_v24 = vld [vmem:[%s10149_s7 + $0xa8] sm:$0xff]  ;;  %v5228_v25 = vld [vmem:[%s10150_s8 + $0x90] sm:$0xff]  ;;  %v8379_v26 = vld [vmem:[%s10146_s4 + $0x38] sm:$0xff] }
 0x210   :  { %2172 = vmatprep.subr.bf16.mxu0 %v7421_v49  ;;  %2336 = vmatprep.subr.bf16.mxu1 %v7422_v50  ;;  %v3986_v27 = vld [vmem:[%s10149_s7 + $0xb0] sm:$0xff]  ;;  %v5229_v29 = vld [vmem:[%s10150_s8 + $0x98] sm:$0xff]  ;;  %v8396_v30 = vld [vmem:[%s10146_s4 + $0x40] sm:$0xff] }
 0x211   :  { %5291 = vperm.xlu1 %6874, %v5221_v46   ;;  %4065 = vperm.xlu0 %6873, %v3979_v58   ;;  %v3987_v31 = vld [vmem:[%s10149_s7 + $0xb8] sm:$0xff]  ;;  %v5230_v32 = vld [vmem:[%s10150_s8 + $0xa0] sm:$0xff]  ;;  %v8413_v33 = vld [vmem:[%s10146_s4 + $0x48] sm:$0xff] }
 0x212   :  { %v5232_v34 = vld [vmem:[%s10150_s8 + $0xb0] sm:$0xff]  ;;  %v5231_v35 = vld [vmem:[%s10150_s8 + $0xa8] sm:$0xff]  ;;  %v5209_v37 = vld [vmem:[#allocation6] sm:$0x1] }
 0x213   :  { %2173 = vmatpush1.bf16.msra.mxu0 %v7423_v52  ;;  %2337 = vmatpush1.bf16.msra.mxu1 %v7424_v53  ;;  %v8430_v36 = vld [vmem:[%s10146_s4 + $0x50] sm:$0xff]  ;;  %v5233_v38 = vld [vmem:[%s10150_s8 + $0xb8] sm:$0xff]  ;;  %v8455_v40 = vld [vmem:[%s10146_s4 + $0x60] sm:$0xff] }
 0x214   :  { %2760 = vmatprep.subr.mxu0 %v2500_v54  ;;  %6812 = vmatprep.subr.mxu1 %v2500_v54  ;;  %v8444_v39 = vld [vmem:[%s10146_s4 + $0x58] sm:$0xff]  ;;  %v8466_v41 = vld [vmem:[%s10146_s4 + $0x68] sm:$0xff]  ;;  %v8477_v42 = vld [vmem:[%s10146_s4 + $0x70] sm:$0xff] }
 0x215   :  { %5296 = vperm.xlu1 %6874, %v5222_v0   ;;  %4070 = vperm.xlu0 %6873, %v3980_v12   ;;  %v8488_v43 = vld [vmem:[%s10146_s4 + $0x78] sm:$0xff]  ;;  %v8499_v44 = vld [vmem:[%s10146_s4 + $0x80] sm:$0xff]  ;;  %v8510_v47 = vld [vmem:[%s10146_s4 + $0x88] sm:$0xff] }
 0x216   :  { %2175 = vmatmul.mubr.bf16.vlgmr.msra.gmra.mrb[4].mxu0 %v2017_v51  ;;  %2339 = vmatmul.mubr.bf16.vlgmr.msra.gmra.mrb[4].mxu1 %v2017_v51  ;;  %v8521_v48 = vld [vmem:[%s10146_s4 + $0x90] sm:$0xff]  ;;  %v8532_v49 = vld [vmem:[%s10146_s4 + $0x98] sm:$0xff]  ;;  %v8543_v50 = vld [vmem:[%s10146_s4 + $0xa0] sm:$0xff] }
 0x217   :  { %2761 = vmatpush1.msra.mxu0 %v2499_v55  ;;  %6813 = vmatpush1.msra.mxu1 %v2499_v55  ;;  %v8554_v51 = vld [vmem:[%s10146_s4 + $0xa8] sm:$0xff]  ;;  %v8565_v52 = vld [vmem:[%s10146_s4 + $0xb0] sm:$0xff]  ;;  %v8576_v53 = vld [vmem:[%s10146_s4 + $0xb8] sm:$0xff] }
 0x218   :  { %2993 = vmatprep.subr.mxu1 %v2502_v56  ;;  %3226 = vmatprep.subr.mxu0 %v2504_v57  ;;  %v8587_v54 = vld [vmem:[%s10146_s4 + $0xc0] sm:$0xff]  ;;  %v8598_v55 = vld [vmem:[%s10146_s4 + $0xc8] sm:$0xff]  ;;  %v8609_v56 = vld [vmem:[%s10146_s4 + $0xd0] sm:$0xff] }
 0x219   :  { %2824 = vmatprep.mubr.f32.mxu0 %v7467_v23  ;;  %2986 = vmatprep.mubr.f32.mxu1 %v7467_v23  ;;  %v1993_v58 = vld [vmem:[#allocation3] sm:$0x77] }
 0x21a   :  { %5301 = vperm.xlu1 %6874, %v5223_v19   ;;  %4075 = vperm.xlu0 %6873, %v3981_v7  }
 0x21e   :  { %6380 = vmatmul.mubr.msk.f32.vlgmr.msra.gmra.mrb[8].mxu0 %vm2675_vm1, %v8258_v59  ;;  %6407 = vmatmul.mubr.msk.f32.vlgmr.msra.gmra.mrb[8].mxu1 %vm2675_vm1, %v8263_v60 }
 0x21f   :  { %2994 = vmatpush1.msra.mxu1 %v2501_v61  ;;  %3227 = vmatpush1.msra.mxu0 %v2503_v62  ;;  %v1994_v61 = vld [vmem:[#allocation3 + $0x8] sm:$0x77] }
 0x220   :  { %3459 = vmatprep.subr.mxu1 %v2506_v1  ;;  %2830 = vmatprep.mubr.f32.mxu0 %v7467_v23 }
 0x221   :  { %3057 = vmatprep.mubr.f32.mxu1 %v7467_v23  ;;  %5306 = vperm.xlu1 %6874, %v5224_v6   ;;  %v8767_v6 = vpop.permute.xlu0 %2537 }
 0x222   :  { %6381 = vmatmul.mubr.msk.f32.gmra.mrb[10].mxu0 %vm2675_vm1, %v8275_v15  ;;  %6408 = vmatmul.mubr.msk.f32.vlgmr.msra.gmra.mrb[10].mxu1 %vm2675_vm1, %v8258_v59 }
 0x223   :  { %3460 = vmatpush1.msra.mxu1 %v2505_v9  ;;  %2836 = vmatprep.mubr.f32.mxu0 %v7467_v23 }
 0x224   :  { %3063 = vmatprep.mubr.f32.mxu1 %v7467_v23  ;;  %4080 = vperm.xlu0 %6873, %v3982_v11  }
 0x225   :  { %5311 = vperm.xlu1 %6874, %v5225_v5  }
 0x226   :  { %6382 = vmatmul.mubr.msk.f32.gmra.mrb[12].mxu0 %vm2675_vm1, %v8293_v13  ;;  %6409 = vmatmul.mubr.msk.f32.gmra.mrb[12].mxu1 %vm2675_vm1, %v8275_v15 }
 0x227   :  { %2842 = vmatprep.mubr.f32.mxu0 %v7467_v23  ;;  %3069 = vmatprep.mubr.f32.mxu1 %v7467_v23 }
 0x228   :  { %4085 = vperm.xlu0 %6873, %v3983_v14  }
 0x229   :  { %5316 = vperm.xlu1 %6874, %v5226_v16  }
 0x22a   :  { %6383 = vmatmul.mubr.msk.f32.gmra.mrb[14].mxu0 %vm2675_vm1, %v8311_v10  ;;  %6410 = vmatmul.mubr.msk.f32.gmra.mrb[14].mxu1 %vm2675_vm1, %v8293_v13 }
 0x22b   :  { %2848 = vmatprep.mubr.f32.mxu0 %v7467_v23  ;;  %3075 = vmatprep.mubr.f32.mxu1 %v7467_v23 }
 0x22c   :  { %4090 = vperm.xlu0 %6873, %v3984_v17   ;;  %v2463_v17 = vcombine.low %v8159_v63, %v8165_v3 }
 0x22d   :  { %5321 = vperm.xlu1 %6874, %v5227_v18   ;;  %v2464_v18 = vcombine.low %v8163_v2, %v8167_v4 }
 0x22e   :  { %6384 = vmatmul.mubr.msk.f32.gmra.mrb[16].mxu0 %vm2675_vm1, %v8328_v8  ;;  %6411 = vmatmul.mubr.msk.f32.gmra.mrb[16].mxu1 %vm2675_vm1, %v8311_v10 }
 0x22f   :  { %2854 = vmatprep.mubr.f32.mxu0 %v7467_v23  ;;  %3081 = vmatprep.mubr.f32.mxu1 %v7467_v23 }
 0x230   :  { %4095 = vperm.xlu0 %6873, %v3985_v24  }
 0x231   :  { %5326 = vperm.xlu1 %6874, %v5228_v25  }
 0x232   :  { %6385 = vmatmul.mubr.msk.f32.gmra.mrb[18].mxu0 %vm2675_vm1, %v8345_v20  ;;  %6412 = vmatmul.mubr.msk.f32.gmra.mrb[18].mxu1 %vm2675_vm1, %v8328_v8 }
 0x233   :  { %2860 = vmatprep.mubr.f32.mxu0 %v7467_v23  ;;  %3087 = vmatprep.mubr.f32.mxu1 %v7467_v23 }
 0x234   :  { %4100 = vperm.xlu0 %6873, %v3986_v27   ;;  %v3917_v27 = vld [vmem:[%s10148_s6 + $0x8] sm:$0xff] }
 0x235   :  { %5331 = vperm.xlu1 %6874, %v5229_v29  }
 0x236   :  { %6386 = vmatmul.mubr.msk.f32.gmra.mrb[20].mxu0 %vm2675_vm1, %v8362_v21  ;;  %6413 = vmatmul.mubr.msk.f32.gmra.mrb[20].mxu1 %vm2675_vm1, %v8345_v20 }
 0x237   :  { %2866 = vmatprep.mubr.f32.mxu0 %v7467_v23  ;;  %3093 = vmatprep.mubr.f32.mxu1 %v7467_v23 }
 0x238   :  { %4105 = vperm.xlu0 %6873, %v3987_v31  }
 0x239   :  { %5336 = vperm.xlu1 %6874, %v5230_v32  }
 0x23a   :  { %6387 = vmatmul.mubr.msk.f32.gmra.mrb[22].mxu0 %vm2675_vm1, %v8379_v26  ;;  %6414 = vmatmul.mubr.msk.f32.gmra.mrb[22].mxu1 %vm2675_vm1, %v8362_v21 }
 0x23b   :  { %2872 = vmatprep.mubr.f32.mxu0 %v7467_v23  ;;  %3099 = vmatprep.mubr.f32.mxu1 %v7467_v23 }
 0x23c   :  { %5346 = vperm.xlu0 %6873, %v5232_v34  }
 0x23d   :  { %5341 = vperm.xlu1 %6874, %v5231_v35  }
 0x23e   :  { %6388 = vmatmul.mubr.msk.f32.gmra.mrb[24].mxu0 %vm2675_vm1, %v8396_v30  ;;  %6415 = vmatmul.mubr.msk.f32.gmra.mrb[24].mxu1 %vm2675_vm1, %v8379_v26 }
 0x23f   :  { %2878 = vmatprep.mubr.f32.mxu0 %v7467_v23  ;;  %3105 = vmatprep.mubr.f32.mxu1 %v7467_v23 }
 0x240   :  { %5780 = vperm.xlu0 %6873, %v5209_v37  }
 0x241   :  { %5351 = vperm.xlu1 %6874, %v5233_v38  }
 0x242   :  { %6389 = vmatmul.mubr.msk.f32.gmra.mrb[26].mxu0 %vm2675_vm1, %v8413_v33  ;;  %6416 = vmatmul.mubr.msk.f32.gmra.mrb[26].mxu1 %vm2675_vm1, %v8396_v30 }
 0x243   :  { %2884 = vmatprep.mubr.f32.mxu0 %v7467_v23  ;;  %3111 = vmatprep.mubr.f32.mxu1 %v7467_v23 }
 0x246   :  { %6390 = vmatmul.mubr.msk.f32.gmra.mrb[28].mxu0 %vm2675_vm1, %v8430_v36  ;;  %6417 = vmatmul.mubr.msk.f32.gmra.mrb[28].mxu1 %vm2675_vm1, %v8413_v33 }
 0x247   :  { %2890 = vmatprep.mubr.f32.mxu0 %v7467_v23  ;;  %3117 = vmatprep.mubr.f32.mxu1 %v7467_v23 }
 0x24a   :  { %6391 = vmatmul.mubr.msk.f32.gmra.mrb[30].mxu0 %vm2675_vm1, %v8444_v39  ;;  %6418 = vmatmul.mubr.msk.f32.gmra.mrb[30].mxu1 %vm2675_vm1, %v8430_v36 }
 0x24b   :  { %2896 = vmatprep.mubr.f32.mxu0 %v7467_v23  ;;  %3123 = vmatprep.mubr.f32.mxu1 %v7467_v23 }
 0x24e   :  { %6392 = vmatmul.mubr.msk.f32.gmra.mrb[32].mxu0 %vm2675_vm1, %v8455_v40  ;;  %6419 = vmatmul.mubr.msk.f32.gmra.mrb[32].mxu1 %vm2675_vm1, %v8444_v39 }
 0x24f   :  { %2902 = vmatprep.mubr.f32.mxu0 %v7467_v23  ;;  %3129 = vmatprep.mubr.f32.mxu1 %v7467_v23 }
 0x252   :  { %6393 = vmatmul.mubr.msk.f32.gmra.mrb[34].mxu0 %vm2675_vm1, %v8466_v41  ;;  %6420 = vmatmul.mubr.msk.f32.gmra.mrb[34].mxu1 %vm2675_vm1, %v8455_v40 }
 0x253   :  { %2908 = vmatprep.mubr.f32.mxu0 %v7467_v23  ;;  %3135 = vmatprep.mubr.f32.mxu1 %v7467_v23 }
 0x256   :  { %6394 = vmatmul.mubr.msk.f32.gmra.mrb[36].mxu0 %vm2675_vm1, %v8477_v42  ;;  %6421 = vmatmul.mubr.msk.f32.gmra.mrb[36].mxu1 %vm2675_vm1, %v8466_v41 }
 0x257   :  { %2914 = vmatprep.mubr.f32.mxu0 %v7467_v23  ;;  %3141 = vmatprep.mubr.f32.mxu1 %v7467_v23 }
 0x25a   :  { %6395 = vmatmul.mubr.msk.f32.gmra.mrb[38].mxu0 %vm2675_vm1, %v8488_v43  ;;  %6422 = vmatmul.mubr.msk.f32.gmra.mrb[38].mxu1 %vm2675_vm1, %v8477_v42 }
 0x25b   :  { %2920 = vmatprep.mubr.f32.mxu0 %v7467_v23  ;;  %3147 = vmatprep.mubr.f32.mxu1 %v7467_v23 }
 0x25e   :  { %6396 = vmatmul.mubr.msk.f32.gmra.mrb[40].mxu0 %vm2675_vm1, %v8499_v44  ;;  %6423 = vmatmul.mubr.msk.f32.gmra.mrb[40].mxu1 %vm2675_vm1, %v8488_v43 }
 0x25f   :  { %2926 = vmatprep.mubr.f32.mxu0 %v7467_v23  ;;  %3153 = vmatprep.mubr.f32.mxu1 %v7467_v23 }
 0x262   :  { %6397 = vmatmul.mubr.msk.f32.gmra.mrb[42].mxu0 %vm2675_vm1, %v8510_v47  ;;  %6424 = vmatmul.mubr.msk.f32.gmra.mrb[42].mxu1 %vm2675_vm1, %v8499_v44 }
 0x263   :  { %2932 = vmatprep.mubr.f32.mxu0 %v7467_v23  ;;  %3159 = vmatprep.mubr.f32.mxu1 %v7467_v23 }
 0x266   :  { %6398 = vmatmul.mubr.msk.f32.gmra.mrb[44].mxu0 %vm2675_vm1, %v8521_v48  ;;  %6425 = vmatmul.mubr.msk.f32.gmra.mrb[44].mxu1 %vm2675_vm1, %v8510_v47 }
 0x267   :  { %2938 = vmatprep.mubr.f32.mxu0 %v7467_v23  ;;  %3165 = vmatprep.mubr.f32.mxu1 %v7467_v23 }
 0x26a   :  { %6399 = vmatmul.mubr.msk.f32.gmra.mrb[46].mxu0 %vm2675_vm1, %v8532_v49  ;;  %6426 = vmatmul.mubr.msk.f32.gmra.mrb[46].mxu1 %vm2675_vm1, %v8521_v48 }
 0x26b   :  { %2944 = vmatprep.mubr.f32.mxu0 %v7467_v23  ;;  %3171 = vmatprep.mubr.f32.mxu1 %v7467_v23 }
 0x26e   :  { %6400 = vmatmul.mubr.msk.f32.gmra.mrb[48].mxu0 %vm2675_vm1, %v8543_v50  ;;  %6427 = vmatmul.mubr.msk.f32.gmra.mrb[48].mxu1 %vm2675_vm1, %v8532_v49 }
 0x26f   :  { %2950 = vmatprep.mubr.f32.mxu0 %v7467_v23  ;;  %3177 = vmatprep.mubr.f32.mxu1 %v7467_v23 }
 0x272   :  { %6401 = vmatmul.mubr.msk.f32.gmra.mrb[50].mxu0 %vm2675_vm1, %v8554_v51  ;;  %6428 = vmatmul.mubr.msk.f32.gmra.mrb[50].mxu1 %vm2675_vm1, %v8543_v50 }
 0x273   :  { %2956 = vmatprep.mubr.f32.mxu0 %v7467_v23  ;;  %3183 = vmatprep.mubr.f32.mxu1 %v7467_v23 }
 0x276   :  { %6402 = vmatmul.mubr.msk.f32.gmra.mrb[52].mxu0 %vm2675_vm1, %v8565_v52  ;;  %6429 = vmatmul.mubr.msk.f32.gmra.mrb[52].mxu1 %vm2675_vm1, %v8554_v51 }
 0x277   :  { %2962 = vmatprep.mubr.f32.mxu0 %v7467_v23  ;;  %3189 = vmatprep.mubr.f32.mxu1 %v7467_v23 }
 0x27a   :  { %6403 = vmatmul.mubr.msk.f32.gmra.mrb[54].mxu0 %vm2675_vm1, %v8576_v53  ;;  %6430 = vmatmul.mubr.msk.f32.gmra.mrb[54].mxu1 %vm2675_vm1, %v8565_v52 }
 0x27b   :  { %2968 = vmatprep.mubr.f32.mxu0 %v7467_v23  ;;  %3195 = vmatprep.mubr.f32.mxu1 %v7467_v23 }
 0x27e   :  { %6404 = vmatmul.mubr.msk.f32.gmra.mrb[56].mxu0 %vm2675_vm1, %v8587_v54  ;;  %6431 = vmatmul.mubr.msk.f32.gmra.mrb[56].mxu1 %vm2675_vm1, %v8576_v53 }
 0x27f   :  { %2974 = vmatprep.mubr.f32.mxu0 %v7467_v23  ;;  %3201 = vmatprep.mubr.f32.mxu1 %v7467_v23 }
 0x282   :  { %6405 = vmatmul.mubr.msk.f32.gmra.mrb[58].mxu0 %vm2675_vm1, %v8598_v55  ;;  %6432 = vmatmul.mubr.msk.f32.gmra.mrb[58].mxu1 %vm2675_vm1, %v8587_v54 }
 0x283   :  { %2980 = vmatprep.mubr.f32.mxu0 %v7467_v23  ;;  %3207 = vmatprep.mubr.f32.mxu1 %v7467_v23 }
 0x286   :  { %6406 = vmatmul.mubr.msk.f32.gmra.mrb[60].mxu0 %vm2675_vm1, %v8609_v56  ;;  %6433 = vmatmul.mubr.msk.f32.gmra.mrb[60].mxu1 %vm2675_vm1, %v8598_v55 }
 0x287   :  { %3213 = vmatprep.mubr.f32.mxu1 %v7467_v23  ;;  %3290 = vmatprep.mubr.f32.mxu0 %v7467_v23 }
 0x28a   :  { %6434 = vmatmul.mubr.msk.f32.gmra.mrb[62].mxu1 %vm2675_vm1, %v8609_v56  ;;  %6436 = vmatmul.mubr.msk.f32.vlgmr.msra.gmra.mrb[62].mxu0 %vm2675_vm1, %v8258_v59 }
 0x28b   :  { %3219 = vmatprep.mubr.f32.mxu1 %v7467_v23  ;;  %3296 = vmatprep.mubr.f32.mxu0 %v7467_v23 }
 0x28e   :  { %6435 = vmatmul.mubr.msk.f32.gmra.mrb[64].mxu1 %vm2675_vm1, %v8263_v60  ;;  %6437 = vmatmul.mubr.msk.f32.gmra.mrb[64].mxu0 %vm2675_vm1, %v8275_v15 }
 0x28f   :  { %3302 = vmatprep.mubr.f32.mxu0 %v7467_v23  ;;  %3523 = vmatprep.mubr.f32.mxu1 %v7467_v23 }
 0x292   :  { %6438 = vmatmul.mubr.msk.f32.gmra.mrb[66].mxu0 %vm2675_vm1, %v8293_v13  ;;  %6464 = vmatmul.mubr.msk.f32.vlgmr.msra.gmra.mrb[66].mxu1 %vm2675_vm1, %v8258_v59 }
 0x293   :  { %3308 = vmatprep.mubr.f32.mxu0 %v7467_v23  ;;  %3529 = vmatprep.mubr.f32.mxu1 %v7467_v23 }
 0x296   :  { %6439 = vmatmul.mubr.msk.f32.gmra.mrb[68].mxu0 %vm2675_vm1, %v8311_v10  ;;  %6465 = vmatmul.mubr.msk.f32.gmra.mrb[68].mxu1 %vm2675_vm1, %v8275_v15 }
 0x297   :  { %3314 = vmatprep.mubr.f32.mxu0 %v7467_v23  ;;  %3535 = vmatprep.mubr.f32.mxu1 %v7467_v23 }
 0x29a   :  { %6440 = vmatmul.mubr.msk.f32.gmra.mrb[70].mxu0 %vm2675_vm1, %v8328_v8  ;;  %6466 = vmatmul.mubr.msk.f32.gmra.mrb[70].mxu1 %vm2675_vm1, %v8293_v13 }
 0x29b   :  { %3320 = vmatprep.mubr.f32.mxu0 %v7467_v23  ;;  %3541 = vmatprep.mubr.f32.mxu1 %v7467_v23 }
 0x29e   :  { %6441 = vmatmul.mubr.msk.f32.gmra.mrb[72].mxu0 %vm2675_vm1, %v8345_v20  ;;  %6467 = vmatmul.mubr.msk.f32.gmra.mrb[72].mxu1 %vm2675_vm1, %v8311_v10  ;;  %v8775_v10 = vpop.permute.xlu1 %2547 }
 0x29f   :  { %3326 = vmatprep.mubr.f32.mxu0 %v7467_v23  ;;  %3547 = vmatprep.mubr.f32.mxu1 %v7467_v23 }
 0x2a2   :  { %6442 = vmatmul.mubr.msk.f32.gmra.mrb[74].mxu0 %vm2675_vm1, %v8362_v21  ;;  %6468 = vmatmul.mubr.msk.f32.gmra.mrb[74].mxu1 %vm2675_vm1, %v8328_v8  ;;  %v8805_v34 = vpop.permute.xlu1 %2552 }
 0x2a3   :  { %3332 = vmatprep.mubr.f32.mxu0 %v7467_v23  ;;  %3553 = vmatprep.mubr.f32.mxu1 %v7467_v23 }
 0x2a6   :  { %6443 = vmatmul.mubr.msk.f32.gmra.mrb[76].mxu0 %vm2675_vm1, %v8379_v26  ;;  %6469 = vmatmul.mubr.msk.f32.gmra.mrb[76].mxu1 %vm2675_vm1, %v8345_v20 }
 0x2a7   :  { %3338 = vmatprep.mubr.f32.mxu0 %v7467_v23  ;;  %3559 = vmatprep.mubr.f32.mxu1 %v7467_v23 }
 0x2aa   :  { %6444 = vmatmul.mubr.msk.f32.gmra.mrb[78].mxu0 %vm2675_vm1, %v8396_v30  ;;  %6470 = vmatmul.mubr.msk.f32.gmra.mrb[78].mxu1 %vm2675_vm1, %v8362_v21  ;;  %v8793_v21 = vpop.permute.xlu0 %2542 }
 0x2ab   :  { %3344 = vmatprep.mubr.f32.mxu0 %v7467_v23  ;;  %3565 = vmatprep.mubr.f32.mxu1 %v7467_v23 }
 0x2ae   :  { %6445 = vmatmul.mubr.msk.f32.gmra.mrb[80].mxu0 %vm2675_vm1, %v8413_v33  ;;  %6471 = vmatmul.mubr.msk.f32.gmra.mrb[80].mxu1 %vm2675_vm1, %v8379_v26 }
 0x2af   :  { %3350 = vmatprep.mubr.f32.mxu0 %v7467_v23  ;;  %3571 = vmatprep.mubr.f32.mxu1 %v7467_v23 }
 0x2b2   :  { %6446 = vmatmul.mubr.msk.f32.gmra.mrb[82].mxu0 %vm2675_vm1, %v8430_v36  ;;  %6472 = vmatmul.mubr.msk.f32.gmra.mrb[82].mxu1 %vm2675_vm1, %v8396_v30 }
 0x2b3   :  { %3356 = vmatprep.mubr.f32.mxu0 %v7467_v23  ;;  %3577 = vmatprep.mubr.f32.mxu1 %v7467_v23 }
 0x2b6   :  { %6447 = vmatmul.mubr.msk.f32.gmra.mrb[84].mxu0 %vm2675_vm1, %v8444_v39  ;;  %6473 = vmatmul.mubr.msk.f32.gmra.mrb[84].mxu1 %vm2675_vm1, %v8413_v33 }
 0x2b7   :  { %3362 = vmatprep.mubr.f32.mxu0 %v7467_v23  ;;  %3583 = vmatprep.mubr.f32.mxu1 %v7467_v23 }
 0x2ba   :  { %6448 = vmatmul.mubr.msk.f32.gmra.mrb[86].mxu0 %vm2675_vm1, %v8455_v40  ;;  %6474 = vmatmul.mubr.msk.f32.gmra.mrb[86].mxu1 %vm2675_vm1, %v8430_v36 }
 0x2bb   :  { %3368 = vmatprep.mubr.f32.mxu0 %v7467_v23  ;;  %3589 = vmatprep.mubr.f32.mxu1 %v7467_v23 }
 0x2be   :  { %6449 = vmatmul.mubr.msk.f32.gmra.mrb[88].mxu0 %vm2675_vm1, %v8466_v41  ;;  %6475 = vmatmul.mubr.msk.f32.gmra.mrb[88].mxu1 %vm2675_vm1, %v8444_v39 }
 0x2bf   :  { %3374 = vmatprep.mubr.f32.mxu0 %v7467_v23  ;;  %3595 = vmatprep.mubr.f32.mxu1 %v7467_v23 }
 0x2c2   :  { %6450 = vmatmul.mubr.msk.f32.gmra.mrb[90].mxu0 %vm2675_vm1, %v8477_v42  ;;  %6476 = vmatmul.mubr.msk.f32.gmra.mrb[90].mxu1 %vm2675_vm1, %v8455_v40 }
 0x2c3   :  { %3380 = vmatprep.mubr.f32.mxu0 %v7467_v23  ;;  %3601 = vmatprep.mubr.f32.mxu1 %v7467_v23 }
 0x2c6   :  { %6451 = vmatmul.mubr.msk.f32.gmra.mrb[92].mxu0 %vm2675_vm1, %v8488_v43  ;;  %6477 = vmatmul.mubr.msk.f32.gmra.mrb[92].mxu1 %vm2675_vm1, %v8466_v41 }
 0x2c7   :  { %3386 = vmatprep.mubr.f32.mxu0 %v7467_v23  ;;  %3607 = vmatprep.mubr.f32.mxu1 %v7467_v23 }
 0x2ca   :  { %6452 = vmatmul.mubr.msk.f32.gmra.mrb[94].mxu0 %vm2675_vm1, %v8499_v44  ;;  %6478 = vmatmul.mubr.msk.f32.gmra.mrb[94].mxu1 %vm2675_vm1, %v8477_v42 }
 0x2cb   :  { %3392 = vmatprep.mubr.f32.mxu0 %v7467_v23  ;;  %3613 = vmatprep.mubr.f32.mxu1 %v7467_v23 }
 0x2ce   :  { %6453 = vmatmul.mubr.msk.f32.gmra.mrb[96].mxu0 %vm2675_vm1, %v8510_v47  ;;  %6479 = vmatmul.mubr.msk.f32.gmra.mrb[96].mxu1 %vm2675_vm1, %v8488_v43 }
 0x2cf   :  { %3398 = vmatprep.mubr.f32.mxu0 %v7467_v23  ;;  %3619 = vmatprep.mubr.f32.mxu1 %v7467_v23 }
 0x2d2   :  { %6454 = vmatmul.mubr.msk.f32.gmra.mrb[98].mxu0 %vm2675_vm1, %v8521_v48  ;;  %6480 = vmatmul.mubr.msk.f32.gmra.mrb[98].mxu1 %vm2675_vm1, %v8499_v44 }
 0x2d3   :  { %3404 = vmatprep.mubr.f32.mxu0 %v7467_v23  ;;  %3625 = vmatprep.mubr.f32.mxu1 %v7467_v23 }
 0x2d6   :  { %6455 = vmatmul.mubr.msk.f32.gmra.mrb[100].mxu0 %vm2675_vm1, %v8532_v49  ;;  %6481 = vmatmul.mubr.msk.f32.gmra.mrb[100].mxu1 %vm2675_vm1, %v8510_v47 }
 0x2d7   :  { %3410 = vmatprep.mubr.f32.mxu0 %v7467_v23  ;;  %3631 = vmatprep.mubr.f32.mxu1 %v7467_v23 }
 0x2da   :  { %6456 = vmatmul.mubr.msk.f32.gmra.mrb[102].mxu0 %vm2675_vm1, %v8543_v50  ;;  %6482 = vmatmul.mubr.msk.f32.gmra.mrb[102].mxu1 %vm2675_vm1, %v8521_v48 }
 0x2db   :  { %3416 = vmatprep.mubr.f32.mxu0 %v7467_v23  ;;  %3637 = vmatprep.mubr.f32.mxu1 %v7467_v23 }
 0x2de   :  { %6457 = vmatmul.mubr.msk.f32.gmra.mrb[104].mxu0 %vm2675_vm1, %v8554_v51  ;;  %6483 = vmatmul.mubr.msk.f32.gmra.mrb[104].mxu1 %vm2675_vm1, %v8532_v49 }
 0x2df   :  { %3422 = vmatprep.mubr.f32.mxu0 %v7467_v23  ;;  %3643 = vmatprep.mubr.f32.mxu1 %v7467_v23 }
 0x2e2   :  { %6458 = vmatmul.mubr.msk.f32.gmra.mrb[106].mxu0 %vm2675_vm1, %v8565_v52  ;;  %6484 = vmatmul.mubr.msk.f32.gmra.mrb[106].mxu1 %vm2675_vm1, %v8543_v50 }
 0x2e3   :  { %3428 = vmatprep.mubr.f32.mxu0 %v7467_v23  ;;  %3649 = vmatprep.mubr.f32.mxu1 %v7467_v23 }
 0x2e6   :  { %6459 = vmatmul.mubr.msk.f32.gmra.mrb[108].mxu0 %vm2675_vm1, %v8576_v53  ;;  %6485 = vmatmul.mubr.msk.f32.gmra.mrb[108].mxu1 %vm2675_vm1, %v8554_v51 }
 0x2e7   :  { %3434 = vmatprep.mubr.f32.mxu0 %v7467_v23  ;;  %3655 = vmatprep.mubr.f32.mxu1 %v7467_v23 }
 0x2e9   :  { %v2176_v57 = vpop.f32.mrb[4].mxu0  ;;  %v2340_v46 = vpop.f32.mrb[4].mxu1 }
 0x2ea   :  { %v2178_v59 = vpop.f32.mrb[5].mxu0  ;;  %v2342_v62 = vpop.f32.mrb[5].mxu1  ;;  %6460 = vmatmul.mubr.msk.f32.gmra.mrb[110].mxu0 %vm2675_vm1, %v8587_v54  ;;  %6486 = vmatmul.mubr.msk.f32.gmra.mrb[110].mxu1 %vm2675_vm1, %v8565_v52 }
 0x2eb   :  { %v2351_v0 = vcombine.low %v2176_v57, %v2178_v59  ;;  %v2352_v1 = vcombine.low %v2340_v46, %v2342_v62  ;;  %v2180_v15 = vpop.f32.mrb[6].mxu0  ;;  %v2344_v12 = vpop.f32.mrb[6].mxu1  ;;  %3440 = vmatprep.mubr.f32.mxu0 %v7467_v23  ;;  %3661 = vmatprep.mubr.f32.mxu1 %v7467_v23 }
 0x2ec   :  { %v2181_v9 = vpop.f32.mrb[7].mxu0  ;;  %v2345_v19 = vpop.f32.mrb[7].mxu1 }
 0x2ed   :  { %v2355_v13 = vadd.f32 %v2351_v0, %v1993_v58  ;;  %v2356_v7 = vadd.f32 %v2352_v1, %v1994_v61 }
 0x2ee   :  { %6461 = vmatmul.mubr.msk.f32.gmra.mrb[112].mxu0 %vm2675_vm1, %v8598_v55  ;;  %6487 = vmatmul.mubr.msk.f32.gmra.mrb[112].mxu1 %vm2675_vm1, %v8576_v53 }
 0x2ef   :  { %2357 = vst [vmem:[#allocation3] sm:$0x77] %v2355_v13  ;;  %2358 = vst [vmem:[#allocation3 + $0x8] sm:$0x77] %v2356_v7  ;;  %3446 = vmatprep.mubr.f32.mxu0 %v7467_v23  ;;  %3667 = vmatprep.mubr.f32.mxu1 %v7467_v23  ;;  %v8831_v7 = vpop.permute.xlu0 %2557 }
 0x2f1   :  { %v8777_v11 = vpop.f32.mrb[8].mxu1  ;;  %v2826_v5 = vpop.f32.mrb[8].mxu0 }
 0x2f2   :  { %v8779_v8 = vpop.f32.mrb[9].mxu1  ;;  %6462 = vmatmul.mubr.msk.f32.gmra.mrb[114].mxu0 %vm2675_vm1, %v8609_v56  ;;  %6488 = vmatmul.mubr.msk.f32.gmra.mrb[114].mxu1 %vm2675_vm1, %v8587_v54  ;;  %v2827_v14 = vadd.f32 %v2826_v5, %v8767_v6  ;;  %v2828_v16 = vpop.f32.mrb[9].mxu0 }
 0x2f3   :  { %3452 = vmatprep.mubr.f32.mxu0 %v7467_v23  ;;  %3673 = vmatprep.mubr.f32.mxu1 %v7467_v23  ;;  %v2829_v20 = vadd.f32 %v2828_v16, %v8767_v6  ;;  %v8833_v5 = vpop.permute.xlu1 %2562 }
 0x2f4   :  { %v3692_v24 = vmax.f32 %v2827_v14, 0.0 }
 0x2f5   :  { %v3059_v25 = vpop.f32.mrb[10].mxu1  ;;  %v2832_v26 = vpop.f32.mrb[10].mxu0  ;;  %v3693_v30 = vmax.f32 %v2829_v20, 0.0 }
 0x2f6   :  { %v3061_v29 = vpop.f32.mrb[11].mxu1  ;;  %6463 = vmatmul.mubr.msk.f32.gmra.mrb[116].mxu0 %vm2675_vm1, %v8263_v60  ;;  %6489 = vmatmul.mubr.msk.f32.gmra.mrb[116].mxu1 %vm2675_vm1, %v8598_v55  ;;  %v2833_v63 = vadd.f32 %v2832_v26, %v8793_v21  ;;  %v2834_v2 = vpop.f32.mrb[11].mxu0  ;;  %v2461_v3 = vld [vmem:[#allocation3] sm:$0x77]  ;;  %v2462_v4 = vld [vmem:[#allocation3 + $0x8] sm:$0x77]  ;;  %v3060_v35 = vadd.f32 %v3059_v25, %v8767_v6 }
 0x2f7   :  { %v2835_v31 = vadd.f32 %v2834_v2, %v8793_v21  ;;  %3679 = vmatprep.mubr.f32.mxu1 %v7467_v23  ;;  %v2467_v32 = vadd.f32 %v2463_v17, %v2461_v3  ;;  %v2468_v33 = vadd.f32 %v2464_v18, %v2462_v4  ;;  %6492 = vmatprep.mubr.msk.f32.mxu0 %vm4108_vm2, %v3917_v27 }
 0x2f8   :  { %v3700_v36 = vmax.f32 %v2833_v63, 0.0  ;;  %v3062_v37 = vadd.f32 %v3061_v29, %v8767_v6  ;;  %v3694_v54 = vmax.f32 %v3060_v35, 0.0 }
 0x2f9   :  { %v3701_v38 = vmax.f32 %v2835_v31, 0.0  ;;  %v3065_v39 = vpop.f32.mrb[12].mxu1  ;;  %v2838_v40 = vpop.f32.mrb[12].mxu0  ;;  %v8810_v41 = vmax.f32 %v2467_v32, 0.0  ;;  %v8812_v42 = vmax.f32 %v2468_v33, 0.0 }
 0x2fa   :  { %v6590_v43 = vpack.c.bf16 %v3700_v36, %v3692_v24  ;;  %v3066_v44 = vadd.f32 %v3065_v39, %v8793_v21  ;;  %v3067_v47 = vpop.f32.mrb[13].mxu1  ;;  %6490 = vmatmul.mubr.msk.f32.gmra.mrb[118].mxu1 %vm2675_vm1, %v8609_v56  ;;  %v2839_v48 = vadd.f32 %v2838_v40, %v8775_v10  ;;  %v2840_v49 = vpop.f32.mrb[13].mxu0  ;;  %v3695_v46 = vmax.f32 %v3062_v37, 0.0 }
 0x2fb   :  { %10359 = vst [vmem:[#allocation10_spill] sm:$0xff] %v8812_v42  ;;  %v6588_v50 = vpack.c.bf16 %v3701_v38, %v3693_v30  ;;  %v3068_v51 = vadd.f32 %v3067_v47, %v8793_v21  ;;  %3685 = vmatprep.mubr.f32.mxu1 %v7467_v23  ;;  %v2841_v52 = vadd.f32 %v2840_v49, %v8775_v10 }
 0x2fc   :  { %v5861_v53 = vmul.f32 %v8810_v41, %v8810_v41  ;;  %v3702_v55 = vmax.f32 %v3066_v44, 0.0  ;;  %v5862_v57 = vmul.f32 %v8812_v42, %v8812_v42  ;;  %v3708_v0 = vmax.f32 %v2839_v48, 0.0 }
 0x2fd   :  { %v3703_v56 = vmax.f32 %v3068_v51, 0.0  ;;  %v3071_v58 = vpop.f32.mrb[14].mxu1  ;;  %v2844_v59 = vpop.f32.mrb[14].mxu0  ;;  %6589 = vmatprep.subr.bf16.mxu0 %v6588_v50  ;;  %v3709_v9 = vmax.f32 %v2841_v52, 0.0 }
 0x2fe   :  { %v5865_v61 = vcombine.high %v5861_v53, %v5861_v53  ;;  %v6646_v62 = vpack.c.bf16 %v3702_v55, %v3694_v54  ;;  %v3073_v1 = vpop.f32.mrb[15].mxu1  ;;  %6491 = vmatmul.mubr.msk.f32.gmra.mrb[120].mxu1 %vm2675_vm1, %v8263_v60  ;;  %v2845_v23 = vadd.f32 %v2844_v59, %v8805_v34  ;;  %v2846_v15 = vpop.f32.mrb[15].mxu0  ;;  %6591 = vmatpush1.bf16.msra.mxu0 %v6590_v43  ;;  %v5869_v13 = vsel %vm2432_vm0, %v5861_v53, 0.0 }
 0x2ff   :  { %v6644_v12 = vpack.c.bf16 %v3703_v56, %v3695_v46  ;;  %v2847_v19 = vadd.f32 %v2846_v15, %v8805_v34  ;;  %6516 = vmatprep.mubr.msk.f32.mxu1 %vm4108_vm2, %v3917_v27  ;;  %v3072_v14 = vadd.f32 %v3071_v58, %v8775_v10  ;;  %v5866_v60 = vcombine.high %v5862_v57, %v5862_v57  ;;  %v8846_v55 = vpop.permute.xlu0 %2567 }
 0x300   :  { %v3716_v16 = vmax.f32 %v2845_v23, 0.0  ;;  %v5870_v20 = vsel %vm2432_vm0, %v5865_v61, 0.0  ;;  %v3074_v17 = vadd.f32 %v3073_v1, %v8775_v10  ;;  %v5872_v3 = vsel %vm2432_vm0, %v5862_v57, 0.0  ;;  %v8848_v57 = vpop.permute.xlu1 %2572 }
 0x301   :  { %v3717_v18 = vmax.f32 %v2847_v19, 0.0  ;;  %v3077_v24 = vpop.f32.mrb[16].mxu1  ;;  %6645 = vmatprep.subr.bf16.mxu1 %v6644_v12  ;;  %v2850_v25 = vpop.f32.mrb[16].mxu0  ;;  %v5871_v26 = vadd.f32 %v5870_v20, %v5869_v13  ;;  %v3710_v35 = vmax.f32 %v3072_v14, 0.0  ;;  %v5874_v37 = vsel %vm2432_vm0, %v5866_v60, 0.0 }
 0x302   :  { %v6594_v29 = vpack.c.bf16 %v3716_v16, %v3708_v0  ;;  %v3078_v27 = vadd.f32 %v3077_v24, %v8805_v34  ;;  %v3079_v63 = vpop.f32.mrb[17].mxu1  ;;  %6647 = vmatpush1.bf16.msra.mxu1 %v6646_v62  ;;  %v2851_v2 = vadd.f32 %v2850_v25, %v8831_v7  ;;  %v2852_v4 = vpop.f32.mrb[17].mxu0  ;;  %v3711_v38 = vmax.f32 %v3074_v17, 0.0 }
 0x303   :  { %v6592_v30 = vpack.c.bf16 %v3717_v18, %v3709_v9  ;;  %v3080_v31 = vadd.f32 %v3079_v63, %v8805_v34  ;;  %v5873_v32 = vadd.f32 %v5872_v3, %v5871_v26  ;;  %v2853_v33 = vadd.f32 %v2852_v4, %v8831_v7  ;;  %v8858_v4 = vpop.permute.xlu0 %2577 }
 0x304   :  { %v3718_v36 = vmax.f32 %v3078_v27, 0.0  ;;  %v3724_v48 = vmax.f32 %v2851_v2, 0.0 }
 0x305   :  { %v3719_v39 = vmax.f32 %v3080_v31, 0.0  ;;  %v3083_v40 = vpop.f32.mrb[18].mxu1  ;;  %v5875_v43 = vadd.f32 %v5874_v37, %v5873_v32  ;;  %v2856_v44 = vpop.f32.mrb[18].mxu0  ;;  %6593 = vmatprep.subr.bf16.mxu0 %v6592_v30  ;;  %v3725_v53 = vmax.f32 %v2853_v33, 0.0 }
 0x306   :  { %v6650_v47 = vpack.c.bf16 %v3718_v36, %v3710_v35  ;;  %v3085_v49 = vpop.f32.mrb[19].mxu1  ;;  %v2857_v50 = vadd.f32 %v2856_v44, %v8833_v5  ;;  %v2858_v51 = vpop.f32.mrb[19].mxu0  ;;  %6595 = vmatpush1.bf16.msra.mxu0 %v6594_v29  ;;  %v3084_v46 = vadd.f32 %v3083_v40, %v8831_v7 }
 0x307   :  { %v6648_v52 = vpack.c.bf16 %v3719_v39, %v3711_v38  ;;  %5876 = vadd.xlane.f32.xlu0 %v5875_v43  ;;  %v2859_v54 = vadd.f32 %v2858_v51, %v8833_v5  ;;  %v3086_v58 = vadd.f32 %v3085_v49, %v8831_v7  ;;  %v8860_v30 = vpop.permute.xlu1 %2582 }
 0x308   :  { %v3732_v56 = vmax.f32 %v2857_v50, 0.0  ;;  %v3726_v14 = vmax.f32 %v3084_v46, 0.0 }
 0x309   :  { %v3733_v59 = vmax.f32 %v2859_v54, 0.0  ;;  %v3089_v61 = vpop.f32.mrb[20].mxu1  ;;  %6649 = vmatprep.subr.bf16.mxu1 %v6648_v52  ;;  %v2862_v62 = vpop.f32.mrb[20].mxu0  ;;  %v3727_v60 = vmax.f32 %v3086_v58, 0.0 }
 0x30a   :  { %v6598_v0 = vpack.c.bf16 %v3732_v56, %v3724_v48  ;;  %v3090_v1 = vadd.f32 %v3089_v61, %v8833_v5  ;;  %v3091_v23 = vpop.f32.mrb[21].mxu1  ;;  %6651 = vmatpush1.bf16.msra.mxu1 %v6650_v47  ;;  %v2863_v15 = vadd.f32 %v2862_v62, %v8846_v55  ;;  %v2864_v12 = vpop.f32.mrb[21].mxu0 }
 0x30b   :  { %v6596_v9 = vpack.c.bf16 %v3733_v59, %v3725_v53  ;;  %v3092_v19 = vadd.f32 %v3091_v23, %v8833_v5  ;;  %v2865_v13 = vadd.f32 %v2864_v12, %v8846_v55  ;;  %v8872_v12 = vpop.permute.xlu1 %2592 }
 0x30c   :  { %v3734_v16 = vmax.f32 %v3090_v1, 0.0  ;;  %v3740_v25 = vmax.f32 %v2863_v15, 0.0  ;;  %v8870_v15 = vpop.permute.xlu0 %2587 }
 0x30d   :  { %v3735_v20 = vmax.f32 %v3092_v19, 0.0  ;;  %v3095_v17 = vpop.f32.mrb[22].mxu1  ;;  %v2868_v18 = vpop.f32.mrb[22].mxu0  ;;  %6597 = vmatprep.subr.bf16.mxu0 %v6596_v9  ;;  %v3741_v2 = vmax.f32 %v2865_v13, 0.0 }
 0x30e   :  { %v6654_v24 = vpack.c.bf16 %v3734_v16, %v3726_v14  ;;  %v3097_v26 = vpop.f32.mrb[23].mxu1  ;;  %v2869_v29 = vadd.f32 %v2868_v18, %v8848_v57  ;;  %v2870_v27 = vpop.f32.mrb[23].mxu0  ;;  %6599 = vmatpush1.bf16.msra.mxu0 %v6598_v0  ;;  %v3096_v31 = vadd.f32 %v3095_v17, %v8846_v55 }
 0x30f   :  { %v6652_v63 = vpack.c.bf16 %v3735_v20, %v3727_v60  ;;  %v2871_v3 = vadd.f32 %v2870_v27, %v8848_v57  ;;  %v3098_v33 = vadd.f32 %v3097_v26, %v8846_v55 }
 0x310   :  { %v3748_v32 = vmax.f32 %v2869_v29, 0.0  ;;  %v3742_v50 = vmax.f32 %v3096_v31, 0.0 }
 0x311   :  { %v3749_v35 = vmax.f32 %v2871_v3, 0.0  ;;  %v3101_v36 = vpop.f32.mrb[24].mxu1  ;;  %6653 = vmatprep.subr.bf16.mxu1 %v6652_v63  ;;  %v2874_v37 = vpop.f32.mrb[24].mxu0  ;;  %v3743_v52 = vmax.f32 %v3098_v33, 0.0 }
 0x312   :  { %v6602_v38 = vpack.c.bf16 %v3748_v32, %v3740_v25  ;;  %v3102_v39 = vadd.f32 %v3101_v36, %v8848_v57  ;;  %v3103_v40 = vpop.f32.mrb[25].mxu1  ;;  %6655 = vmatpush1.bf16.msra.mxu1 %v6654_v24  ;;  %v2875_v43 = vadd.f32 %v2874_v37, %v8858_v4  ;;  %v2876_v44 = vpop.f32.mrb[25].mxu0 }
 0x313   :  { %v6600_v47 = vpack.c.bf16 %v3749_v35, %v3741_v2  ;;  %v3104_v48 = vadd.f32 %v3103_v40, %v8848_v57  ;;  %v2877_v49 = vadd.f32 %v2876_v44, %v8858_v4 }
 0x314   :  { %v3750_v51 = vmax.f32 %v3102_v39, 0.0  ;;  %v3756_v58 = vmax.f32 %v2875_v43, 0.0 }
 0x315   :  { %v3751_v53 = vmax.f32 %v3104_v48, 0.0  ;;  %v3107_v54 = vpop.f32.mrb[26].mxu1  ;;  %v2880_v46 = vpop.f32.mrb[26].mxu0  ;;  %6601 = vmatprep.subr.bf16.mxu0 %v6600_v47  ;;  %v3757_v1 = vmax.f32 %v2877_v49, 0.0 }
 0x316   :  { %v6658_v56 = vpack.c.bf16 %v3750_v51, %v3742_v50  ;;  %v3109_v59 = vpop.f32.mrb[27].mxu1  ;;  %v2881_v61 = vadd.f32 %v2880_v46, %v8860_v30  ;;  %v2882_v62 = vpop.f32.mrb[27].mxu0  ;;  %6603 = vmatpush1.bf16.msra.mxu0 %v6602_v38  ;;  %v3108_v9 = vadd.f32 %v3107_v54, %v8858_v4 }
 0x317   :  { %v6656_v0 = vpack.c.bf16 %v3751_v53, %v3743_v52  ;;  %v2883_v23 = vadd.f32 %v2882_v62, %v8860_v30  ;;  %v3110_v13 = vadd.f32 %v3109_v59, %v8858_v4  ;;  %v8882_v47 = vpop.permute.xlu0 %2597  ;;  %v8884_v48 = vpop.permute.xlu1 %2602 }
 0x318   :  { %v3764_v19 = vmax.f32 %v2881_v61, 0.0  ;;  %v3758_v63 = vmax.f32 %v3108_v9, 0.0 }
 0x319   :  { %v3765_v14 = vmax.f32 %v2883_v23, 0.0  ;;  %v3113_v16 = vpop.f32.mrb[28].mxu1  ;;  %6657 = vmatprep.subr.bf16.mxu1 %v6656_v0  ;;  %v2886_v60 = vpop.f32.mrb[28].mxu0  ;;  %v3759_v3 = vmax.f32 %v3110_v13, 0.0 }
 0x31a   :  { %v6606_v20 = vpack.c.bf16 %v3764_v19, %v3756_v58  ;;  %v3114_v17 = vadd.f32 %v3113_v16, %v8860_v30  ;;  %v3115_v18 = vpop.f32.mrb[29].mxu1  ;;  %6659 = vmatpush1.bf16.msra.mxu1 %v6658_v56  ;;  %v2887_v24 = vadd.f32 %v2886_v60, %v8870_v15  ;;  %v2888_v25 = vpop.f32.mrb[29].mxu0 }
 0x31b   :  { %v6604_v26 = vpack.c.bf16 %v3765_v14, %v3757_v1  ;;  %v3116_v29 = vadd.f32 %v3115_v18, %v8860_v30  ;;  %v2889_v27 = vadd.f32 %v2888_v25, %v8870_v15 }
 0x31c   :  { %v3766_v2 = vmax.f32 %v3114_v17, 0.0  ;;  %v3772_v36 = vmax.f32 %v2887_v24, 0.0 }
 0x31d   :  { %v3767_v31 = vmax.f32 %v3116_v29, 0.0  ;;  %v3119_v32 = vpop.f32.mrb[30].mxu1  ;;  %v2892_v33 = vpop.f32.mrb[30].mxu0  ;;  %6605 = vmatprep.subr.bf16.mxu0 %v6604_v26  ;;  %v3773_v43 = vmax.f32 %v2889_v27, 0.0 }
 0x31e   :  { %v6662_v35 = vpack.c.bf16 %v3766_v2, %v3758_v63  ;;  %v3121_v37 = vpop.f32.mrb[31].mxu1  ;;  %v2893_v38 = vadd.f32 %v2892_v33, %v8872_v12  ;;  %v2894_v39 = vpop.f32.mrb[31].mxu0  ;;  %6607 = vmatpush1.bf16.msra.mxu0 %v6606_v20  ;;  %v3120_v49 = vadd.f32 %v3119_v32, %v8870_v15 }
 0x31f   :  { %v6660_v40 = vpack.c.bf16 %v3767_v31, %v3759_v3  ;;  %v2895_v44 = vadd.f32 %v2894_v39, %v8872_v12  ;;  %v3122_v51 = vadd.f32 %v3121_v37, %v8870_v15  ;;  %v8894_v27 = vpop.permute.xlu0 %2607  ;;  %v8896_v63 = vpop.permute.xlu1 %2612 }
 0x320   :  { %v3780_v50 = vmax.f32 %v2893_v38, 0.0  ;;  %v3774_v23 = vmax.f32 %v3120_v49, 0.0 }
 0x321   :  { %v3781_v52 = vmax.f32 %v2895_v44, 0.0  ;;  %v3125_v53 = vpop.f32.mrb[32].mxu1  ;;  %6661 = vmatprep.subr.bf16.mxu1 %v6660_v40  ;;  %v2898_v54 = vpop.f32.mrb[32].mxu0  ;;  %v3775_v19 = vmax.f32 %v3122_v51, 0.0 }
 0x322   :  { %v6610_v46 = vpack.c.bf16 %v3780_v50, %v3772_v36  ;;  %v3126_v56 = vadd.f32 %v3125_v53, %v8872_v12  ;;  %v3127_v58 = vpop.f32.mrb[33].mxu1  ;;  %6663 = vmatpush1.bf16.msra.mxu1 %v6662_v35  ;;  %v2899_v59 = vadd.f32 %v2898_v54, %v8882_v47  ;;  %v2900_v61 = vpop.f32.mrb[33].mxu0 }
 0x323   :  { %v6608_v62 = vpack.c.bf16 %v3781_v52, %v3773_v43  ;;  %v3128_v0 = vadd.f32 %v3127_v58, %v8872_v12  ;;  %v2901_v1 = vadd.f32 %v2900_v61, %v8882_v47 }
 0x324   :  { %v3782_v9 = vmax.f32 %v3126_v56, 0.0  ;;  %v3788_v20 = vmax.f32 %v2899_v59, 0.0 }
 0x325   :  { %v3783_v13 = vmax.f32 %v3128_v0, 0.0  ;;  %v3131_v14 = vpop.f32.mrb[34].mxu1  ;;  %v2904_v16 = vpop.f32.mrb[34].mxu0  ;;  %6609 = vmatprep.subr.bf16.mxu0 %v6608_v62  ;;  %v3789_v26 = vmax.f32 %v2901_v1, 0.0 }
 0x326   :  { %v6666_v60 = vpack.c.bf16 %v3782_v9, %v3774_v23  ;;  %v3133_v17 = vpop.f32.mrb[35].mxu1  ;;  %v2905_v18 = vadd.f32 %v2904_v16, %v8884_v48  ;;  %v2906_v24 = vpop.f32.mrb[35].mxu0  ;;  %6611 = vmatpush1.bf16.msra.mxu0 %v6610_v46  ;;  %v3132_v2 = vadd.f32 %v3131_v14, %v8882_v47 }
 0x327   :  { %v6664_v25 = vpack.c.bf16 %v3783_v13, %v3775_v19  ;;  %v2907_v29 = vadd.f32 %v2906_v24, %v8884_v48  ;;  %v3134_v31 = vadd.f32 %v3133_v17, %v8882_v47  ;;  %v8906_v9 = vpop.permute.xlu0 %2617  ;;  %v8908_v19 = vpop.permute.xlu1 %2622 }
 0x328   :  { %v3796_v3 = vmax.f32 %v2905_v18, 0.0  ;;  %v3790_v50 = vmax.f32 %v3132_v2, 0.0 }
 0x329   :  { %v3797_v32 = vmax.f32 %v2907_v29, 0.0  ;;  %v3137_v33 = vpop.f32.mrb[36].mxu1  ;;  %6665 = vmatprep.subr.bf16.mxu1 %v6664_v25  ;;  %v2910_v35 = vpop.f32.mrb[36].mxu0  ;;  %v3791_v52 = vmax.f32 %v3134_v31, 0.0 }
 0x32a   :  { %v6614_v36 = vpack.c.bf16 %v3796_v3, %v3788_v20  ;;  %v3138_v37 = vadd.f32 %v3137_v33, %v8884_v48  ;;  %v3139_v38 = vpop.f32.mrb[37].mxu1  ;;  %6667 = vmatpush1.bf16.msra.mxu1 %v6666_v60  ;;  %v2911_v39 = vadd.f32 %v2910_v35, %v8894_v27  ;;  %v2912_v40 = vpop.f32.mrb[37].mxu0 }
 0x32b   :  { %v6612_v43 = vpack.c.bf16 %v3797_v32, %v3789_v26  ;;  %v3140_v44 = vadd.f32 %v3139_v38, %v8884_v48  ;;  %v2913_v49 = vadd.f32 %v2912_v40, %v8894_v27 }
 0x32c   :  { %v3798_v51 = vmax.f32 %v3138_v37, 0.0  ;;  %v3804_v58 = vmax.f32 %v2911_v39, 0.0 }
 0x32d   :  { %v3799_v53 = vmax.f32 %v3140_v44, 0.0  ;;  %v3143_v54 = vpop.f32.mrb[38].mxu1  ;;  %v2916_v46 = vpop.f32.mrb[38].mxu0  ;;  %6613 = vmatprep.subr.bf16.mxu0 %v6612_v43  ;;  %v3805_v1 = vmax.f32 %v2913_v49, 0.0 }
 0x32e   :  { %v6670_v56 = vpack.c.bf16 %v3798_v51, %v3790_v50  ;;  %v3145_v59 = vpop.f32.mrb[39].mxu1  ;;  %v2917_v61 = vadd.f32 %v2916_v46, %v8896_v63  ;;  %v2918_v62 = vpop.f32.mrb[39].mxu0  ;;  %6615 = vmatpush1.bf16.msra.mxu0 %v6614_v36  ;;  %v3144_v13 = vadd.f32 %v3143_v54, %v8894_v27 }
 0x32f   :  { %v6668_v0 = vpack.c.bf16 %v3799_v53, %v3791_v52  ;;  %v2919_v23 = vadd.f32 %v2918_v62, %v8896_v63  ;;  %v3146_v16 = vadd.f32 %v3145_v59, %v8894_v27  ;;  %v8918_v53 = vpop.permute.xlu0 %2627  ;;  %v8920_v54 = vpop.permute.xlu1 %2632 }
 0x330   :  { %v3812_v14 = vmax.f32 %v2917_v61, 0.0  ;;  %v3806_v32 = vmax.f32 %v3144_v13, 0.0 }
 0x331   :  { %v3813_v60 = vmax.f32 %v2919_v23, 0.0  ;;  %v3149_v20 = vpop.f32.mrb[40].mxu1  ;;  %6669 = vmatprep.subr.bf16.mxu1 %v6668_v0  ;;  %v2922_v17 = vpop.f32.mrb[40].mxu0  ;;  %v3807_v35 = vmax.f32 %v3146_v16, 0.0 }
 0x332   :  { %v6618_v18 = vpack.c.bf16 %v3812_v14, %v3804_v58  ;;  %v3150_v24 = vadd.f32 %v3149_v20, %v8896_v63  ;;  %v3151_v25 = vpop.f32.mrb[41].mxu1  ;;  %6671 = vmatpush1.bf16.msra.mxu1 %v6670_v56  ;;  %v2923_v26 = vadd.f32 %v2922_v17, %v8906_v9  ;;  %v2924_v29 = vpop.f32.mrb[41].mxu0 }
 0x333   :  { %v6616_v2 = vpack.c.bf16 %v3813_v60, %v3805_v1  ;;  %v3152_v3 = vadd.f32 %v3151_v25, %v8896_v63  ;;  %v2925_v31 = vadd.f32 %v2924_v29, %v8906_v9 }
 0x334   :  { %v3814_v33 = vmax.f32 %v3150_v24, 0.0  ;;  %v3820_v40 = vmax.f32 %v2923_v26, 0.0 }
 0x335   :  { %v3815_v36 = vmax.f32 %v3152_v3, 0.0  ;;  %v3155_v37 = vpop.f32.mrb[42].mxu1  ;;  %v2928_v38 = vpop.f32.mrb[42].mxu0  ;;  %6617 = vmatprep.subr.bf16.mxu0 %v6616_v2  ;;  %v3821_v51 = vmax.f32 %v2925_v31, 0.0 }
 0x336   :  { %v6674_v39 = vpack.c.bf16 %v3814_v33, %v3806_v32  ;;  %v3157_v43 = vpop.f32.mrb[43].mxu1  ;;  %v2929_v44 = vadd.f32 %v2928_v38, %v8908_v19  ;;  %v2930_v49 = vpop.f32.mrb[43].mxu0  ;;  %6619 = vmatpush1.bf16.msra.mxu0 %v6618_v18  ;;  %v3156_v46 = vadd.f32 %v3155_v37, %v8906_v9 }
 0x337   :  { %v6672_v50 = vpack.c.bf16 %v3815_v36, %v3807_v35  ;;  %v2931_v52 = vadd.f32 %v2930_v49, %v8908_v19  ;;  %v3158_v58 = vadd.f32 %v3157_v43, %v8906_v9  ;;  %v8930_v36 = vpop.permute.xlu0 %2637  ;;  %v8932_v37 = vpop.permute.xlu1 %2642 }
 0x338   :  { %v3828_v56 = vmax.f32 %v2929_v44, 0.0  ;;  %v3822_v60 = vmax.f32 %v3156_v46, 0.0 }
 0x339   :  { %v3829_v59 = vmax.f32 %v2931_v52, 0.0  ;;  %v2934_v61 = vpop.f32.mrb[44].mxu0  ;;  %v3161_v62 = vpop.f32.mrb[44].mxu1  ;;  %6673 = vmatprep.subr.bf16.mxu1 %v6672_v50  ;;  %v3823_v18 = vmax.f32 %v3158_v58, 0.0 }
 0x33a   :  { %v6622_v0 = vpack.c.bf16 %v3828_v56, %v3820_v40  ;;  %v3162_v1 = vadd.f32 %v3161_v62, %v8908_v19  ;;  %v2936_v23 = vpop.f32.mrb[45].mxu0  ;;  %v3163_v13 = vpop.f32.mrb[45].mxu1  ;;  %6675 = vmatpush1.bf16.msra.mxu1 %v6674_v39  ;;  %v2935_v20 = vadd.f32 %v2934_v61, %v8918_v53 }
 0x33b   :  { %v6620_v14 = vpack.c.bf16 %v3829_v59, %v3821_v51  ;;  %v3164_v16 = vadd.f32 %v3163_v13, %v8908_v19  ;;  %v2937_v24 = vadd.f32 %v2936_v23, %v8918_v53 }
 0x33c   :  { %v3830_v17 = vmax.f32 %v3162_v1, 0.0  ;;  %v3836_v38 = vmax.f32 %v2935_v20, 0.0 }
 0x33d   :  { %v3831_v25 = vmax.f32 %v3164_v16, 0.0  ;;  %v2940_v26 = vpop.f32.mrb[46].mxu0  ;;  %v3167_v29 = vpop.f32.mrb[46].mxu1  ;;  %6621 = vmatprep.subr.bf16.mxu0 %v6620_v14  ;;  %v3837_v43 = vmax.f32 %v2937_v24, 0.0 }
 0x33e   :  { %v6678_v2 = vpack.c.bf16 %v3830_v17, %v3822_v60  ;;  %v2941_v3 = vadd.f32 %v2940_v26, %v8920_v54  ;;  %v2942_v31 = vpop.f32.mrb[47].mxu0  ;;  %v3169_v32 = vpop.f32.mrb[47].mxu1  ;;  %6623 = vmatpush1.bf16.msra.mxu0 %v6622_v0  ;;  %v3168_v40 = vadd.f32 %v3167_v29, %v8918_v53 }
 0x33f   :  { %v6676_v33 = vpack.c.bf16 %v3831_v25, %v3823_v18  ;;  %v2943_v35 = vadd.f32 %v2942_v31, %v8920_v54  ;;  %v3170_v49 = vadd.f32 %v3169_v32, %v8918_v53  ;;  %v8942_v29 = vpop.permute.xlu0 %2647 }
 0x340   :  { %v3844_v39 = vmax.f32 %v2941_v3, 0.0  ;;  %v3838_v62 = vmax.f32 %v3168_v40, 0.0 }
 0x341   :  { %v3845_v44 = vmax.f32 %v2943_v35, 0.0  ;;  %v2946_v50 = vpop.f32.mrb[48].mxu0  ;;  %v3173_v51 = vpop.f32.mrb[48].mxu1  ;;  %6677 = vmatprep.subr.bf16.mxu1 %v6676_v33  ;;  %v3839_v23 = vmax.f32 %v3170_v49, 0.0 }
 0x342   :  { %v6626_v52 = vpack.c.bf16 %v3844_v39, %v3836_v38  ;;  %v3174_v46 = vadd.f32 %v3173_v51, %v8920_v54  ;;  %v2948_v56 = vpop.f32.mrb[49].mxu0  ;;  %v3175_v58 = vpop.f32.mrb[49].mxu1  ;;  %6679 = vmatpush1.bf16.msra.mxu1 %v6678_v2  ;;  %v2947_v0 = vadd.f32 %v2946_v50, %v8930_v36 }
 0x343   :  { %v6624_v59 = vpack.c.bf16 %v3845_v44, %v3837_v43  ;;  %v3176_v61 = vadd.f32 %v3175_v58, %v8920_v54  ;;  %v2949_v13 = vadd.f32 %v2948_v56, %v8930_v36  ;;  %v8944_v2 = vpop.permute.xlu1 %2652 }
 0x344   :  { %v3846_v1 = vmax.f32 %v3174_v46, 0.0  ;;  %v3852_v3 = vmax.f32 %v2947_v0, 0.0 }
 0x345   :  { %v3847_v14 = vmax.f32 %v3176_v61, 0.0  ;;  %v2952_v16 = vpop.f32.mrb[50].mxu0  ;;  %v3179_v60 = vpop.f32.mrb[50].mxu1  ;;  %6625 = vmatprep.subr.bf16.mxu0 %v6624_v59  ;;  %v3853_v33 = vmax.f32 %v2949_v13, 0.0 }
 0x346   :  { %v6682_v20 = vpack.c.bf16 %v3846_v1, %v3838_v62  ;;  %v2953_v17 = vadd.f32 %v2952_v16, %v8932_v37  ;;  %v2954_v18 = vpop.f32.mrb[51].mxu0  ;;  %v3181_v24 = vpop.f32.mrb[51].mxu1  ;;  %6627 = vmatpush1.bf16.msra.mxu0 %v6626_v52  ;;  %v3180_v32 = vadd.f32 %v3179_v60, %v8930_v36 }
 0x347   :  { %v6680_v25 = vpack.c.bf16 %v3847_v14, %v3839_v23  ;;  %v2955_v26 = vadd.f32 %v2954_v18, %v8932_v37  ;;  %v3182_v38 = vadd.f32 %v3181_v24, %v8930_v36  ;;  %v8956_v18 = vpop.permute.xlu1 %2662 }
 0x348   :  { %v3860_v31 = vmax.f32 %v2953_v17, 0.0  ;;  %v3854_v46 = vmax.f32 %v3180_v32, 0.0  ;;  %v8954_v17 = vpop.permute.xlu0 %2657 }
 0x349   :  { %v3861_v35 = vmax.f32 %v2955_v26, 0.0  ;;  %v2958_v39 = vpop.f32.mrb[52].mxu0  ;;  %v3185_v40 = vpop.f32.mrb[52].mxu1  ;;  %6681 = vmatprep.subr.bf16.mxu1 %v6680_v25  ;;  %v3855_v59 = vmax.f32 %v3182_v38, 0.0 }
 0x34a   :  { %v6630_v43 = vpack.c.bf16 %v3860_v31, %v3852_v3  ;;  %v3186_v44 = vadd.f32 %v3185_v40, %v8932_v37  ;;  %v2960_v49 = vpop.f32.mrb[53].mxu0  ;;  %v3187_v50 = vpop.f32.mrb[53].mxu1  ;;  %6683 = vmatpush1.bf16.msra.mxu1 %v6682_v20  ;;  %v2959_v56 = vadd.f32 %v2958_v39, %v8942_v29 }
 0x34b   :  { %v6628_v51 = vpack.c.bf16 %v3861_v35, %v3853_v33  ;;  %v3188_v52 = vadd.f32 %v3187_v50, %v8932_v37  ;;  %v2961_v61 = vadd.f32 %v2960_v49, %v8942_v29 }
 0x34c   :  { %v3862_v58 = vmax.f32 %v3186_v44, 0.0  ;;  %v3868_v24 = vmax.f32 %v2959_v56, 0.0 }
 0x34d   :  { %v3863_v62 = vmax.f32 %v3188_v52, 0.0  ;;  %v2964_v0 = vpop.f32.mrb[54].mxu0  ;;  %v3191_v1 = vpop.f32.mrb[54].mxu1  ;;  %6629 = vmatprep.subr.bf16.mxu0 %v6628_v51  ;;  %v3869_v3 = vmax.f32 %v2961_v61, 0.0 }
 0x34e   :  { %v6686_v23 = vpack.c.bf16 %v3862_v58, %v3854_v46  ;;  %v2965_v13 = vadd.f32 %v2964_v0, %v8944_v2  ;;  %v2966_v14 = vpop.f32.mrb[55].mxu0  ;;  %v3193_v16 = vpop.f32.mrb[55].mxu1  ;;  %6631 = vmatpush1.bf16.msra.mxu0 %v6630_v43  ;;  %v3192_v26 = vadd.f32 %v3191_v1, %v8942_v29 }
 0x34f   :  { %v6684_v60 = vpack.c.bf16 %v3863_v62, %v3855_v59  ;;  %v2967_v20 = vadd.f32 %v2966_v14, %v8944_v2  ;;  %v3194_v32 = vadd.f32 %v3193_v16, %v8942_v29 }
 0x350   :  { %v3876_v25 = vmax.f32 %v2965_v13, 0.0  ;;  %v3870_v50 = vmax.f32 %v3192_v26, 0.0 }
 0x351   :  { %v3877_v31 = vmax.f32 %v2967_v20, 0.0  ;;  %v2970_v33 = vpop.f32.mrb[56].mxu0  ;;  %v3197_v35 = vpop.f32.mrb[56].mxu1  ;;  %6685 = vmatprep.subr.bf16.mxu1 %v6684_v60  ;;  %v3871_v46 = vmax.f32 %v3194_v32, 0.0 }
 0x352   :  { %v6634_v38 = vpack.c.bf16 %v3876_v25, %v3868_v24  ;;  %v3198_v39 = vadd.f32 %v3197_v35, %v8944_v2  ;;  %v2972_v40 = vpop.f32.mrb[57].mxu0  ;;  %v3199_v43 = vpop.f32.mrb[57].mxu1  ;;  %6687 = vmatpush1.bf16.msra.mxu1 %v6686_v23  ;;  %v2971_v51 = vadd.f32 %v2970_v33, %v8954_v17 }
 0x353   :  { %v6632_v44 = vpack.c.bf16 %v3877_v31, %v3869_v3  ;;  %v3200_v49 = vadd.f32 %v3199_v43, %v8944_v2  ;;  %v2973_v56 = vadd.f32 %v2972_v40, %v8954_v17  ;;  %v8965_v23 = vpop.permute.xlu1 %2672  ;;  %v8968_v60 = vpop.permute.xlu0 %2667 }
 0x354   :  { %v3878_v52 = vmax.f32 %v3198_v39, 0.0  ;;  %v2989_v20 = vadd.f32 %v8777_v11, %v8965_v23  ;;  %v3884_v24 = vmax.f32 %v2971_v51, 0.0  ;;  %v2991_v3 = vadd.f32 %v8779_v8, %v8965_v23 }
 0x355   :  { %v3879_v58 = vmax.f32 %v3200_v49, 0.0  ;;  %v2976_v59 = vpop.f32.mrb[58].mxu0  ;;  %v3203_v61 = vpop.f32.mrb[58].mxu1  ;;  %6633 = vmatprep.subr.bf16.mxu0 %v6632_v44  ;;  %v3885_v31 = vmax.f32 %v2973_v56, 0.0 }
 0x356   :  { %v6690_v62 = vpack.c.bf16 %v3878_v52, %v3870_v50  ;;  %v2977_v0 = vadd.f32 %v2976_v59, %v8956_v18  ;;  %v2978_v1 = vpop.f32.mrb[59].mxu0  ;;  %v3205_v13 = vpop.f32.mrb[59].mxu1  ;;  %6635 = vmatpush1.bf16.msra.mxu0 %v6634_v38  ;;  %v3204_v26 = vadd.f32 %v3203_v61, %v8954_v17  ;;  %v3908_v51 = vmax.f32 %v2989_v20, 0.0 }
 0x357   :  { %v6688_v14 = vpack.c.bf16 %v3879_v58, %v3871_v46  ;;  %v2979_v16 = vadd.f32 %v2978_v1, %v8956_v18  ;;  %v3206_v33 = vadd.f32 %v3205_v13, %v8954_v17  ;;  %v3909_v58 = vmax.f32 %v2991_v3, 0.0 }
 0x358   :  { %v3892_v25 = vmax.f32 %v2977_v0, 0.0  ;;  %v3886_v52 = vmax.f32 %v3204_v26, 0.0 }
 0x359   :  { %v3893_v32 = vmax.f32 %v2979_v16, 0.0  ;;  %v2982_v35 = vpop.f32.mrb[60].mxu0  ;;  %v3209_v38 = vpop.f32.mrb[60].mxu1  ;;  %6689 = vmatprep.subr.bf16.mxu1 %v6688_v14  ;;  %v3887_v59 = vmax.f32 %v3206_v33, 0.0 }
 0x35a   :  { %v6638_v39 = vpack.c.bf16 %v3892_v25, %v3884_v24  ;;  %v2983_v40 = vadd.f32 %v2982_v35, %v8968_v60  ;;  %v3210_v43 = vadd.f32 %v3209_v38, %v8956_v18  ;;  %v2984_v11 = vpop.f32.mrb[61].mxu0  ;;  %v3211_v44 = vpop.f32.mrb[61].mxu1  ;;  %6691 = vmatpush1.bf16.msra.mxu1 %v6690_v62 }
 0x35b   :  { %v6636_v49 = vpack.c.bf16 %v3893_v32, %v3885_v31  ;;  %v2985_v50 = vadd.f32 %v2984_v11, %v8968_v60  ;;  %v3212_v8 = vadd.f32 %v3211_v44, %v8956_v18  ;;  %v3916_v11 = vld [vmem:[%s10148_s6] sm:$0xff] }
 0x35c   :  { %v3900_v46 = vmax.f32 %v2983_v40, 0.0  ;;  %v3894_v56 = vmax.f32 %v3210_v43, 0.0 }
 0x35d   :  { %v3901_v61 = vmax.f32 %v2985_v50, 0.0  ;;  %v3895_v0 = vmax.f32 %v3212_v8, 0.0  ;;  %v3215_v1 = vpop.f32.mrb[62].mxu1  ;;  %v3292_v13 = vpop.f32.mrb[62].mxu0  ;;  %6637 = vmatprep.subr.bf16.mxu0 %v6636_v49  ;;  %v3919_v50 = vld [vmem:[%s10148_s6 + $0x18] sm:$0xff] }
 0x35e   :  { %v6642_v14 = vpack.c.bf16 %v3908_v51, %v3900_v46  ;;  %v6694_v16 = vpack.c.bf16 %v3894_v56, %v3886_v52  ;;  %v3217_v24 = vpop.f32.mrb[63].mxu1  ;;  %v3294_v62 = vpop.f32.mrb[63].mxu0  ;;  %6639 = vmatpush1.bf16.msra.mxu0 %v6638_v39  ;;  %v3216_v32 = vadd.f32 %v3215_v1, %v8968_v60  ;;  %v3293_v20 = vadd.f32 %v3292_v13, %v8767_v6 }
 0x35f   :  { %v6640_v25 = vpack.c.bf16 %v3909_v58, %v3901_v61  ;;  %v6692_v31 = vpack.c.bf16 %v3895_v0, %v3887_v59  ;;  %v3218_v26 = vadd.f32 %v3217_v24, %v8968_v60  ;;  %v3295_v3 = vadd.f32 %v3294_v62, %v8767_v6  ;;  %v3918_v62 = vld [vmem:[%s10148_s6 + $0x10] sm:$0xff] }
 0x360   :  { %v3902_v8 = vmax.f32 %v3216_v32, 0.0  ;;  %v3696_v51 = vmax.f32 %v3293_v20, 0.0  ;;  %v8998_v32 = vpop.permute.xlu0 %3990 }
 0x361   :  { %v3221_v33 = vpop.f32.mrb[64].mxu1  ;;  %v3298_v35 = vpop.f32.mrb[64].mxu0  ;;  %6641 = vmatprep.subr.bf16.mxu0 %v6640_v25  ;;  %6693 = vmatprep.subr.bf16.mxu1 %v6692_v31  ;;  %v3903_v56 = vmax.f32 %v3218_v26, 0.0  ;;  %v3697_v58 = vmax.f32 %v3295_v3, 0.0  ;;  %10360 = vst [vmem:[#allocation11_spill] sm:$0xff] %v8998_v32  ;;  %v9005_v3 = vld [vmem:[%s10148_s6 + $0x28] sm:$0xff] }
 0x362   :  { %v3222_v38 = vadd.f32 %v3221_v33, %v8965_v23  ;;  %v3299_v40 = vadd.f32 %v3298_v35, %v8793_v21  ;;  %v3223_v43 = vpop.f32.mrb[65].mxu1  ;;  %v3300_v39 = vpop.f32.mrb[65].mxu0  ;;  %6643 = vmatpush1.bf16.msra.mxu0 %v6642_v14  ;;  %6695 = vmatpush1.bf16.msra.mxu1 %v6694_v16 }
 0x363   :  { %v3224_v44 = vadd.f32 %v3223_v43, %v8965_v23  ;;  %v3301_v49 = vadd.f32 %v3300_v39, %v8793_v21 }
 0x364   :  { %v3910_v52 = vmax.f32 %v3222_v38, 0.0  ;;  %v3704_v46 = vmax.f32 %v3299_v40, 0.0 }
 0x365   :  { %v3911_v59 = vmax.f32 %v3224_v44, 0.0  ;;  %v3705_v61 = vmax.f32 %v3301_v49, 0.0  ;;  %v3304_v0 = vpop.f32.mrb[66].mxu0  ;;  %v3525_v1 = vpop.f32.mrb[66].mxu1  ;;  %4246 = vmatmul.mubr.f32.vlgmr.msra.gmra.mrb[118].mxu0 %v3916_v11 }
 0x366   :  { %v6698_v13 = vpack.c.bf16 %v3910_v52, %v3902_v8  ;;  %v6702_v14 = vpack.c.bf16 %v3704_v46, %v3696_v51  ;;  %v3306_v16 = vpop.f32.mrb[67].mxu0  ;;  %v3527_v24 = vpop.f32.mrb[67].mxu1  ;;  %6493 = vmatprep.mubr.msk.f32.mxu0 %vm4108_vm2, %v3919_v50  ;;  %v3305_v20 = vadd.f32 %v3304_v0, %v8775_v10  ;;  %v3526_v26 = vadd.f32 %v3525_v1, %v8767_v6  ;;  %v3920_v8 = vld [vmem:[%s10148_s6 + $0x20] sm:$0xff]  ;;  %v9021_v52 = vld [vmem:[%s10148_s6 + $0x38] sm:$0xff] }
 0x367   :  { %v6696_v25 = vpack.c.bf16 %v3911_v59, %v3903_v56  ;;  %v6700_v31 = vpack.c.bf16 %v3705_v61, %v3697_v58  ;;  %v3307_v33 = vadd.f32 %v3306_v16, %v8775_v10  ;;  %v3528_v35 = vadd.f32 %v3527_v24, %v8767_v6 }
 0x368   :  { %v3712_v46 = vmax.f32 %v3305_v20, 0.0  ;;  %v3698_v56 = vmax.f32 %v3526_v26, 0.0  ;;  %v3922_v20 = vld [vmem:[%s10148_s6 + $0x30] sm:$0xff] }
 0x369   :  { %v3310_v38 = vpop.f32.mrb[68].mxu0  ;;  %v3531_v40 = vpop.f32.mrb[68].mxu1  ;;  %4252 = vmatmul.mubr.f32.gmra.mrb[120].mxu0 %v3918_v62  ;;  %6697 = vmatprep.subr.bf16.mxu1 %v6696_v25  ;;  %v3713_v61 = vmax.f32 %v3307_v33, 0.0  ;;  %v3699_v0 = vmax.f32 %v3528_v35, 0.0 }
 0x36a   :  { %v3311_v43 = vadd.f32 %v3310_v38, %v8805_v34  ;;  %v3532_v39 = vadd.f32 %v3531_v40, %v8793_v21  ;;  %6701 = vmatprep.subr.bf16.mxu0 %v6700_v31  ;;  %v3312_v44 = vpop.f32.mrb[69].mxu0  ;;  %v3533_v49 = vpop.f32.mrb[69].mxu1  ;;  %6699 = vmatpush1.bf16.msra.mxu1 %v6698_v13 }
 0x36b   :  { %v3313_v51 = vadd.f32 %v3312_v44, %v8805_v34  ;;  %v3534_v6 = vadd.f32 %v3533_v49, %v8793_v21  ;;  %6703 = vmatpush1.bf16.msra.mxu0 %v6702_v14  ;;  %6494 = vmatprep.mubr.msk.f32.mxu0 %vm4108_vm2, %v9005_v3  ;;  %v9029_v35 = vpop.permute.xlu0 %4000  ;;  %v9038_v49 = vld [vmem:[%s10148_s6 + $0x48] sm:$0xff] }
 0x36c   :  { %v3720_v58 = vmax.f32 %v3311_v43, 0.0  ;;  %v3706_v59 = vmax.f32 %v3532_v39, 0.0  ;;  %10361 = vst [vmem:[#allocation12_spill] sm:$0xff] %v9029_v35 }
 0x36d   :  { %v3721_v1 = vmax.f32 %v3313_v51, 0.0  ;;  %v3707_v13 = vmax.f32 %v3534_v6, 0.0  ;;  %v3316_v16 = vpop.f32.mrb[70].mxu0  ;;  %v3537_v24 = vpop.f32.mrb[70].mxu1  ;;  %4258 = vmatmul.mubr.f32.gmra.mrb[122].mxu0 %v3920_v8  ;;  %4455 = vmatmul.mubr.f32.vlgmr.msra.gmra.mrb[122].mxu1 %v3916_v11 }
 0x36e   :  { %v6706_v21 = vpack.c.bf16 %v3720_v58, %v3712_v46  ;;  %v6758_v14 = vpack.c.bf16 %v3706_v59, %v3698_v56  ;;  %v3318_v25 = vpop.f32.mrb[71].mxu0  ;;  %v3539_v31 = vpop.f32.mrb[71].mxu1  ;;  %6495 = vmatprep.mubr.msk.f32.mxu0 %vm4108_vm2, %v9021_v52  ;;  %6517 = vmatprep.mubr.msk.f32.mxu1 %vm4108_vm2, %v3919_v50  ;;  %v3317_v38 = vadd.f32 %v3316_v16, %v8831_v7  ;;  %v9052_v58 = vld [vmem:[%s10148_s6 + $0x58] sm:$0xff] }
 0x36f   :  { %v6704_v26 = vpack.c.bf16 %v3721_v1, %v3713_v61  ;;  %v6756_v33 = vpack.c.bf16 %v3707_v13, %v3699_v0  ;;  %v3538_v11 = vadd.f32 %v3537_v24, %v8775_v10  ;;  %v3319_v40 = vadd.f32 %v3318_v25, %v8831_v7 }
 0x370   :  { %v3540_v43 = vadd.f32 %v3539_v31, %v8775_v10  ;;  %v9045_v10 = vld [vmem:[%s10148_s6 + $0x40] sm:$0xff]  ;;  %v3728_v59 = vmax.f32 %v3317_v38, 0.0 }
 0x371   :  { %v3322_v39 = vpop.f32.mrb[72].mxu0  ;;  %v3543_v44 = vpop.f32.mrb[72].mxu1  ;;  %4264 = vmatmul.mubr.f32.gmra.mrb[124].mxu0 %v3922_v20  ;;  %4461 = vmatmul.mubr.f32.gmra.mrb[124].mxu1 %v3918_v62  ;;  %v3714_v61 = vmax.f32 %v3538_v11, 0.0  ;;  %v3729_v13 = vmax.f32 %v3319_v40, 0.0 }
 0x372   :  { %v3323_v50 = vadd.f32 %v3322_v39, %v8833_v5  ;;  %v3544_v51 = vadd.f32 %v3543_v44, %v8805_v34  ;;  %6705 = vmatprep.subr.bf16.mxu0 %v6704_v26  ;;  %6757 = vmatprep.subr.bf16.mxu1 %v6756_v33  ;;  %v3324_v6 = vpop.f32.mrb[73].mxu0  ;;  %v3545_v46 = vpop.f32.mrb[73].mxu1  ;;  %v3715_v16 = vmax.f32 %v3540_v43, 0.0 }
 0x373   :  { %v3325_v62 = vadd.f32 %v3324_v6, %v8833_v5  ;;  %v3546_v56 = vadd.f32 %v3545_v46, %v8805_v34  ;;  %6707 = vmatpush1.bf16.msra.mxu0 %v6706_v21  ;;  %6759 = vmatpush1.bf16.msra.mxu1 %v6758_v14  ;;  %v9066_v40 = vpop.permute.xlu0 %5236  ;;  %v9075_v6 = vld [vmem:[%s10148_s6 + $0x68] sm:$0xff] }
 0x374   :  { %v3736_v0 = vmax.f32 %v3323_v50, 0.0  ;;  %v3722_v1 = vmax.f32 %v3544_v51, 0.0  ;;  %6496 = vmatprep.mubr.msk.f32.mxu0 %vm4108_vm2, %v9038_v49  ;;  %6518 = vmatprep.mubr.msk.f32.mxu1 %vm4108_vm2, %v9005_v3  ;;  %v3926_v3 = vld [vmem:[%s10148_s6 + $0x50] sm:$0xff]  ;;  %10362 = vst [vmem:[#allocation13_spill] sm:$0xff] %v9066_v40 }
 0x375   :  { %v3737_v34 = vmax.f32 %v3325_v62, 0.0  ;;  %v3723_v24 = vmax.f32 %v3546_v56, 0.0  ;;  %v3328_v21 = vpop.f32.mrb[74].mxu0  ;;  %v3549_v14 = vpop.f32.mrb[74].mxu1  ;;  %4270 = vmatmul.mubr.f32.gmra.mrb[126].mxu0 %v9045_v10  ;;  %4467 = vmatmul.mubr.f32.gmra.mrb[126].mxu1 %v3920_v8 }
 0x376   :  { %v6710_v25 = vpack.c.bf16 %v3736_v0, %v3728_v59  ;;  %v6762_v31 = vpack.c.bf16 %v3722_v1, %v3714_v61  ;;  %v3330_v26 = vpop.f32.mrb[75].mxu0  ;;  %v3551_v33 = vpop.f32.mrb[75].mxu1  ;;  %6497 = vmatprep.mubr.msk.f32.mxu0 %vm4108_vm2, %v9052_v58  ;;  %6519 = vmatprep.mubr.msk.f32.mxu1 %vm4108_vm2, %v9021_v52  ;;  %v3329_v8 = vadd.f32 %v3328_v21, %v8846_v55  ;;  %v9089_v61 = vld [vmem:[%s10148_s6 + $0x78] sm:$0xff] }
 0x377   :  { %v6708_v38 = vpack.c.bf16 %v3737_v34, %v3729_v13  ;;  %v6760_v11 = vpack.c.bf16 %v3723_v24, %v3715_v16  ;;  %v3550_v43 = vadd.f32 %v3549_v14, %v8831_v7  ;;  %v3331_v39 = vadd.f32 %v3330_v26, %v8846_v55 }
 0x378   :  { %v3552_v44 = vadd.f32 %v3551_v33, %v8831_v7  ;;  %v9082_v7 = vld [vmem:[%s10148_s6 + $0x60] sm:$0xff]  ;;  %v3744_v0 = vmax.f32 %v3329_v8, 0.0 }
 0x379   :  { %v3334_v50 = vpop.f32.mrb[76].mxu0  ;;  %v3555_v51 = vpop.f32.mrb[76].mxu1  ;;  %4276 = vmatmul.mubr.f32.gmra.mrb[128].mxu0 %v3926_v3  ;;  %4473 = vmatmul.mubr.f32.gmra.mrb[128].mxu1 %v3922_v20  ;;  %v3730_v1 = vmax.f32 %v3550_v43, 0.0  ;;  %v3745_v34 = vmax.f32 %v3331_v39, 0.0 }
 0x37a   :  { %v3335_v52 = vadd.f32 %v3334_v50, %v8848_v57  ;;  %v3556_v46 = vadd.f32 %v3555_v51, %v8833_v5  ;;  %6709 = vmatprep.subr.bf16.mxu0 %v6708_v38  ;;  %6761 = vmatprep.subr.bf16.mxu1 %v6760_v11  ;;  %v3336_v62 = vpop.f32.mrb[77].mxu0  ;;  %v3557_v56 = vpop.f32.mrb[77].mxu1  ;;  %v3731_v24 = vmax.f32 %v3552_v44, 0.0 }
 0x37b   :  { %v3337_v20 = vadd.f32 %v3336_v62, %v8848_v57  ;;  %v3558_v59 = vadd.f32 %v3557_v56, %v8833_v5  ;;  %6711 = vmatpush1.bf16.msra.mxu0 %v6710_v25  ;;  %6763 = vmatpush1.bf16.msra.mxu1 %v6762_v31  ;;  %v9106_v43 = vpop.permute.xlu0 %4010 }
 0x37c   :  { %v3752_v13 = vmax.f32 %v3335_v52, 0.0  ;;  %v3738_v16 = vmax.f32 %v3556_v46, 0.0  ;;  %6498 = vmatprep.mubr.msk.f32.mxu0 %vm4108_vm2, %v9075_v6  ;;  %6520 = vmatprep.mubr.msk.f32.mxu1 %vm4108_vm2, %v9038_v49  ;;  %v9102_v49 = vld [vmem:[%s10148_s6 + $0x70] sm:$0xff]  ;;  %10363 = vst [vmem:[#allocation14_spill] sm:$0xff] %v9106_v43  ;;  %v9116_v46 = vld [vmem:[%s10148_s6 + $0x88] sm:$0xff] }
 0x37d   :  { %v3753_v5 = vmax.f32 %v3337_v20, 0.0  ;;  %v3739_v21 = vmax.f32 %v3558_v59, 0.0  ;;  %v3340_v14 = vpop.f32.mrb[78].mxu0  ;;  %v3561_v25 = vpop.f32.mrb[78].mxu1  ;;  %4282 = vmatmul.mubr.f32.gmra.mrb[130].mxu0 %v9082_v7  ;;  %4479 = vmatmul.mubr.f32.gmra.mrb[130].mxu1 %v9045_v10 }
 0x37e   :  { %v6714_v31 = vpack.c.bf16 %v3752_v13, %v3744_v0  ;;  %v6766_v26 = vpack.c.bf16 %v3738_v16, %v3730_v1  ;;  %v3342_v33 = vpop.f32.mrb[79].mxu0  ;;  %v3563_v38 = vpop.f32.mrb[79].mxu1  ;;  %6499 = vmatprep.mubr.msk.f32.mxu0 %vm4108_vm2, %v9089_v61  ;;  %6521 = vmatprep.mubr.msk.f32.mxu1 %vm4108_vm2, %v9052_v58  ;;  %v3341_v10 = vadd.f32 %v3340_v14, %v8858_v4  ;;  %v9130_v0 = vld [vmem:[%s10148_s6 + $0x98] sm:$0xff] }
 0x37f   :  { %v6712_v11 = vpack.c.bf16 %v3753_v5, %v3745_v34  ;;  %v6764_v8 = vpack.c.bf16 %v3739_v21, %v3731_v24  ;;  %v3562_v39 = vadd.f32 %v3561_v25, %v8846_v55  ;;  %v3343_v44 = vadd.f32 %v3342_v33, %v8858_v4 }
 0x380   :  { %v3564_v50 = vadd.f32 %v3563_v38, %v8846_v55  ;;  %v9123_v55 = vld [vmem:[%s10148_s6 + $0x80] sm:$0xff]  ;;  %v3760_v1 = vmax.f32 %v3341_v10, 0.0 }
 0x381   :  { %v3346_v51 = vpop.f32.mrb[80].mxu0  ;;  %v3567_v52 = vpop.f32.mrb[80].mxu1  ;;  %4288 = vmatmul.mubr.f32.gmra.mrb[132].mxu0 %v9102_v49  ;;  %4485 = vmatmul.mubr.f32.gmra.mrb[132].mxu1 %v3926_v3  ;;  %v3746_v13 = vmax.f32 %v3562_v39, 0.0  ;;  %v3761_v24 = vmax.f32 %v3343_v44, 0.0 }
 0x382   :  { %v3347_v58 = vadd.f32 %v3346_v51, %v8860_v30  ;;  %v3568_v62 = vadd.f32 %v3567_v52, %v8848_v57  ;;  %6713 = vmatprep.subr.bf16.mxu0 %v6712_v11  ;;  %6765 = vmatprep.subr.bf16.mxu1 %v6764_v8  ;;  %v3348_v56 = vpop.f32.mrb[81].mxu0  ;;  %v3569_v20 = vpop.f32.mrb[81].mxu1  ;;  %v3747_v5 = vmax.f32 %v3564_v50, 0.0  ;;  %v9143_v11 = vld [vmem:[%s10148_s6 + $0x90] sm:$0xff] }
 0x383   :  { %v3349_v3 = vadd.f32 %v3348_v56, %v8860_v30  ;;  %v3570_v59 = vadd.f32 %v3569_v20, %v8848_v57  ;;  %6715 = vmatpush1.bf16.msra.mxu0 %v6714_v31  ;;  %6767 = vmatpush1.bf16.msra.mxu1 %v6766_v26  ;;  %v9147_v39 = vpop.permute.xlu0 %4015  ;;  %v9158_v56 = vld [vmem:[%s10148_s6 + $0xa8] sm:$0xff] }
 0x384   :  { %v3768_v16 = vmax.f32 %v3347_v58, 0.0  ;;  %v3754_v34 = vmax.f32 %v3568_v62, 0.0  ;;  %6500 = vmatprep.mubr.msk.f32.mxu0 %vm4108_vm2, %v9116_v46  ;;  %6522 = vmatprep.mubr.msk.f32.mxu1 %vm4108_vm2, %v9075_v6  ;;  %10364 = vst [vmem:[#allocation15_spill] sm:$0xff] %v9147_v39 }
 0x385   :  { %v3769_v57 = vmax.f32 %v3349_v3, 0.0  ;;  %v3755_v21 = vmax.f32 %v3570_v59, 0.0  ;;  %v3352_v14 = vpop.f32.mrb[82].mxu0  ;;  %v3573_v25 = vpop.f32.mrb[82].mxu1  ;;  %4294 = vmatmul.mubr.f32.gmra.mrb[134].mxu0 %v9123_v55  ;;  %4491 = vmatmul.mubr.f32.gmra.mrb[134].mxu1 %v9082_v7 }
 0x386   :  { %v6718_v31 = vpack.c.bf16 %v3768_v16, %v3760_v1  ;;  %v6770_v26 = vpack.c.bf16 %v3754_v34, %v3746_v13  ;;  %v3354_v33 = vpop.f32.mrb[83].mxu0  ;;  %v3575_v38 = vpop.f32.mrb[83].mxu1  ;;  %6501 = vmatprep.mubr.msk.f32.mxu0 %vm4108_vm2, %v9130_v0  ;;  %6523 = vmatprep.mubr.msk.f32.mxu1 %vm4108_vm2, %v9089_v61  ;;  %v3353_v44 = vadd.f32 %v3352_v14, %v8870_v15  ;;  %v9172_v34 = vld [vmem:[%s10148_s6 + $0xb8] sm:$0xff] }
 0x387   :  { %v6716_v8 = vpack.c.bf16 %v3769_v57, %v3761_v24  ;;  %v6768_v10 = vpack.c.bf16 %v3755_v21, %v3747_v5  ;;  %v3574_v50 = vadd.f32 %v3573_v25, %v8858_v4  ;;  %v3355_v51 = vadd.f32 %v3354_v33, %v8870_v15 }
 0x388   :  { %v3576_v52 = vadd.f32 %v3575_v38, %v8858_v4  ;;  %v9165_v4 = vld [vmem:[%s10148_s6 + $0xa0] sm:$0xff]  ;;  %v3776_v24 = vmax.f32 %v3353_v44, 0.0 }
 0x389   :  { %v3358_v58 = vpop.f32.mrb[84].mxu0  ;;  %v3579_v62 = vpop.f32.mrb[84].mxu1  ;;  %4300 = vmatmul.mubr.f32.gmra.mrb[136].mxu0 %v9143_v11  ;;  %4497 = vmatmul.mubr.f32.gmra.mrb[136].mxu1 %v9102_v49  ;;  %v3762_v5 = vmax.f32 %v3574_v50, 0.0  ;;  %v3777_v14 = vmax.f32 %v3355_v51, 0.0  ;;  %v9185_v50 = vld [vmem:[%s10148_s6 + $0xb0] sm:$0xff] }
 0x38a   :  { %v3359_v20 = vadd.f32 %v3358_v58, %v8872_v12  ;;  %v3580_v3 = vadd.f32 %v3579_v62, %v8860_v30  ;;  %6717 = vmatprep.subr.bf16.mxu0 %v6716_v8  ;;  %6769 = vmatprep.subr.bf16.mxu1 %v6768_v10  ;;  %v3360_v59 = vpop.f32.mrb[85].mxu0  ;;  %v3581_v1 = vpop.f32.mrb[85].mxu1  ;;  %v3763_v25 = vmax.f32 %v3576_v52, 0.0 }
 0x38b   :  { %v3361_v13 = vadd.f32 %v3360_v59, %v8872_v12  ;;  %v3582_v16 = vadd.f32 %v3581_v1, %v8860_v30  ;;  %6719 = vmatpush1.bf16.msra.mxu0 %v6718_v31  ;;  %6771 = vmatpush1.bf16.msra.mxu1 %v6770_v26  ;;  %v9189_v58 = vpop.permute.xlu0 %4020 }
 0x38c   :  { %v3784_v57 = vmax.f32 %v3359_v20, 0.0  ;;  %v3770_v21 = vmax.f32 %v3580_v3, 0.0  ;;  %6502 = vmatprep.mubr.msk.f32.mxu0 %vm4108_vm2, %v9158_v56  ;;  %6524 = vmatprep.mubr.msk.f32.mxu1 %vm4108_vm2, %v9116_v46  ;;  %10365 = vst [vmem:[#allocation16_spill] sm:$0xff] %v9189_v58 }
 0x38d   :  { %v3785_v30 = vmax.f32 %v3361_v13, 0.0  ;;  %v3771_v31 = vmax.f32 %v3582_v16, 0.0  ;;  %v3364_v26 = vpop.f32.mrb[86].mxu0  ;;  %v3585_v33 = vpop.f32.mrb[86].mxu1  ;;  %4306 = vmatmul.mubr.f32.gmra.mrb[138].mxu0 %v9165_v4  ;;  %4503 = vmatmul.mubr.f32.gmra.mrb[138].mxu1 %v9123_v55  ;;  %v9200_v16 = vld [vmem:[%s10148_s6 + $0xc8] sm:$0xff] }
 0x38e   :  { %v6722_v38 = vpack.c.bf16 %v3784_v57, %v3776_v24  ;;  %v6774_v8 = vpack.c.bf16 %v3770_v21, %v3762_v5  ;;  %v3366_v10 = vpop.f32.mrb[87].mxu0  ;;  %v3587_v44 = vpop.f32.mrb[87].mxu1  ;;  %6503 = vmatprep.mubr.msk.f32.mxu0 %vm4108_vm2, %v9172_v34  ;;  %6525 = vmatprep.mubr.msk.f32.mxu1 %vm4108_vm2, %v9130_v0  ;;  %v3365_v62 = vadd.f32 %v3364_v26, %v8882_v47 }
 0x38f   :  { %v6720_v51 = vpack.c.bf16 %v3785_v30, %v3777_v14  ;;  %v6772_v52 = vpack.c.bf16 %v3771_v31, %v3763_v25  ;;  %v3586_v20 = vadd.f32 %v3585_v33, %v8870_v15  ;;  %v3367_v3 = vadd.f32 %v3366_v10, %v8882_v47  ;;  %v9214_v30 = vld [vmem:[%s10148_s6 + $0xd8] sm:$0xff] }
 0x390   :  { %v3588_v59 = vadd.f32 %v3587_v44, %v8870_v15  ;;  %v9207_v15 = vld [vmem:[%s10148_s6 + $0xc0] sm:$0xff]  ;;  %v3792_v31 = vmax.f32 %v3365_v62, 0.0 }
 0x391   :  { %v3370_v1 = vpop.f32.mrb[88].mxu0  ;;  %v3591_v13 = vpop.f32.mrb[88].mxu1  ;;  %4312 = vmatmul.mubr.f32.gmra.mrb[140].mxu0 %v9185_v50  ;;  %4509 = vmatmul.mubr.f32.gmra.mrb[140].mxu1 %v9143_v11  ;;  %v3778_v26 = vmax.f32 %v3586_v20, 0.0  ;;  %v3793_v44 = vmax.f32 %v3367_v3, 0.0  ;;  %v9227_v3 = vld [vmem:[%s10148_s6 + $0xd0] sm:$0xff] }
 0x392   :  { %v3371_v24 = vadd.f32 %v3370_v1, %v8884_v48  ;;  %v3592_v5 = vadd.f32 %v3591_v13, %v8872_v12  ;;  %6721 = vmatprep.subr.bf16.mxu0 %v6720_v51  ;;  %6773 = vmatprep.subr.bf16.mxu1 %v6772_v52  ;;  %v3372_v57 = vpop.f32.mrb[89].mxu0  ;;  %v3593_v21 = vpop.f32.mrb[89].mxu1  ;;  %v3779_v51 = vmax.f32 %v3588_v59, 0.0 }
 0x393   :  { %v3373_v14 = vadd.f32 %v3372_v57, %v8884_v48  ;;  %v3594_v25 = vadd.f32 %v3593_v21, %v8872_v12  ;;  %6723 = vmatpush1.bf16.msra.mxu0 %v6722_v38  ;;  %6775 = vmatpush1.bf16.msra.mxu1 %v6774_v8 }
 0x394   :  { %v3800_v33 = vmax.f32 %v3371_v24, 0.0  ;;  %v3786_v10 = vmax.f32 %v3592_v5, 0.0  ;;  %6504 = vmatprep.mubr.msk.f32.mxu0 %vm4108_vm2, %v9200_v16  ;;  %6526 = vmatprep.mubr.msk.f32.mxu1 %vm4108_vm2, %v9158_v56  ;;  %v9231_v5 = vpop.permute.xlu0 %4025 }
 0x395   :  { %v3801_v12 = vmax.f32 %v3373_v14, 0.0  ;;  %v3787_v38 = vmax.f32 %v3594_v25, 0.0  ;;  %v3376_v8 = vpop.f32.mrb[90].mxu0  ;;  %v3597_v52 = vpop.f32.mrb[90].mxu1  ;;  %4318 = vmatmul.mubr.f32.gmra.mrb[142].mxu0 %v9207_v15  ;;  %4515 = vmatmul.mubr.f32.gmra.mrb[142].mxu1 %v9165_v4  ;;  %10366 = vst [vmem:[#allocation17_spill] sm:$0xff] %v9231_v5 }
 0x396   :  { %v6726_v62 = vpack.c.bf16 %v3800_v33, %v3792_v31  ;;  %v6778_v20 = vpack.c.bf16 %v3786_v10, %v3778_v26  ;;  %v3378_v1 = vpop.f32.mrb[91].mxu0  ;;  %v3599_v13 = vpop.f32.mrb[91].mxu1  ;;  %6505 = vmatprep.mubr.msk.f32.mxu0 %vm4108_vm2, %v9214_v30  ;;  %6527 = vmatprep.mubr.msk.f32.mxu1 %vm4108_vm2, %v9172_v34  ;;  %v3377_v57 = vadd.f32 %v3376_v8, %v8894_v27  ;;  %v9242_v33 = vld [vmem:[%s10148_s6 + $0xe8] sm:$0xff] }
 0x397   :  { %v6724_v59 = vpack.c.bf16 %v3801_v12, %v3793_v44  ;;  %v6776_v24 = vpack.c.bf16 %v3787_v38, %v3779_v51  ;;  %v3598_v21 = vadd.f32 %v3597_v52, %v8882_v47  ;;  %v3379_v14 = vadd.f32 %v3378_v1, %v8894_v27  ;;  %v9256_v52 = vld [vmem:[%s10148_s6 + $0xf8] sm:$0xff] }
 0x398   :  { %v3600_v25 = vadd.f32 %v3599_v13, %v8882_v47  ;;  %v9249_v47 = vld [vmem:[%s10148_s6 + $0xe0] sm:$0xff]  ;;  %v3808_v1 = vmax.f32 %v3377_v57, 0.0 }
 0x399   :  { %v3382_v31 = vpop.f32.mrb[92].mxu0  ;;  %v3603_v26 = vpop.f32.mrb[92].mxu1  ;;  %4324 = vmatmul.mubr.f32.gmra.mrb[144].mxu0 %v9227_v3  ;;  %4521 = vmatmul.mubr.f32.gmra.mrb[144].mxu1 %v9185_v50  ;;  %v3794_v13 = vmax.f32 %v3598_v21, 0.0 }
 0x39a   :  { %v3383_v10 = vadd.f32 %v3382_v31, %v8896_v63  ;;  %v3604_v44 = vadd.f32 %v3603_v26, %v8884_v48  ;;  %6725 = vmatprep.subr.bf16.mxu0 %v6724_v59  ;;  %6777 = vmatprep.subr.bf16.mxu1 %v6776_v24  ;;  %v3384_v51 = vpop.f32.mrb[93].mxu0  ;;  %v3605_v12 = vpop.f32.mrb[93].mxu1  ;;  %v3809_v31 = vmax.f32 %v3379_v14, 0.0  ;;  %v3795_v26 = vmax.f32 %v3600_v25, 0.0  ;;  %v9269_v14 = vld [vmem:[%s10148_s6 + $0xf0] sm:$0xff] }
 0x39b   :  { %v3385_v38 = vadd.f32 %v3384_v51, %v8896_v63  ;;  %v3606_v8 = vadd.f32 %v3605_v12, %v8884_v48  ;;  %6727 = vmatpush1.bf16.msra.mxu0 %v6726_v62  ;;  %6779 = vmatpush1.bf16.msra.mxu1 %v6778_v20 }
 0x39c   :  { %v3816_v59 = vmax.f32 %v3383_v10, 0.0  ;;  %v3802_v24 = vmax.f32 %v3604_v44, 0.0  ;;  %6506 = vmatprep.mubr.msk.f32.mxu0 %vm4108_vm2, %v9242_v33  ;;  %6528 = vmatprep.mubr.msk.f32.mxu1 %vm4108_vm2, %v9200_v16 }
 0x39d   :  { %v3817_v48 = vmax.f32 %v3385_v38, 0.0  ;;  %v3803_v62 = vmax.f32 %v3606_v8, 0.0  ;;  %v3388_v20 = vpop.f32.mrb[94].mxu0  ;;  %v3609_v51 = vpop.f32.mrb[94].mxu1  ;;  %4330 = vmatmul.mubr.f32.gmra.mrb[146].mxu0 %v9249_v47  ;;  %4527 = vmatmul.mubr.f32.gmra.mrb[146].mxu1 %v9207_v15 }
 0x39e   :  { %v6730_v57 = vpack.c.bf16 %v3816_v59, %v3808_v1  ;;  %v6782_v21 = vpack.c.bf16 %v3802_v24, %v3794_v13  ;;  %v3390_v10 = vpop.f32.mrb[95].mxu0  ;;  %v3611_v44 = vpop.f32.mrb[95].mxu1  ;;  %6507 = vmatprep.mubr.msk.f32.mxu0 %vm4108_vm2, %v9256_v52  ;;  %6529 = vmatprep.mubr.msk.f32.mxu1 %vm4108_vm2, %v9214_v30  ;;  %v3389_v8 = vadd.f32 %v3388_v20, %v8906_v9 }
 0x39f   :  { %v6728_v25 = vpack.c.bf16 %v3817_v48, %v3809_v31  ;;  %v6780_v12 = vpack.c.bf16 %v3803_v62, %v3795_v26  ;;  %v9273_v38 = vpop.permute.xlu0 %4030  ;;  %v3610_v1 = vadd.f32 %v3609_v51, %v8894_v27  ;;  %v3391_v13 = vadd.f32 %v3390_v10, %v8906_v9  ;;  %v9284_v31 = vld [vmem:[%s10148_s6 + $0x108] sm:$0xff] }
 0x3a0   :  { %10367 = vst [vmem:[#allocation18_spill] sm:$0xff] %v9273_v38  ;;  %v3612_v59 = vadd.f32 %v3611_v44, %v8894_v27  ;;  %v9291_v27 = vld [vmem:[%s10148_s6 + $0x100] sm:$0xff]  ;;  %v9298_v44 = vld [vmem:[%s10148_s6 + $0x118] sm:$0xff] }
 0x3a1   :  { %v3394_v24 = vpop.f32.mrb[96].mxu0  ;;  %v3615_v22 = vpop.f32.mrb[96].mxu1  ;;  %4336 = vmatmul.mubr.f32.gmra.mrb[148].mxu0 %v9269_v14  ;;  %4533 = vmatmul.mubr.f32.gmra.mrb[148].mxu1 %v9227_v3 }
 0x3a2   :  { %v3395_v26 = vadd.f32 %v3394_v24, %v8908_v19  ;;  %v3616_v48 = vadd.f32 %v3615_v22, %v8896_v63  ;;  %6729 = vmatprep.subr.bf16.mxu0 %v6728_v25  ;;  %6781 = vmatprep.subr.bf16.mxu1 %v6780_v12  ;;  %v3396_v62 = vpop.f32.mrb[97].mxu0  ;;  %v3617_v20 = vpop.f32.mrb[97].mxu1  ;;  %v3824_v22 = vmax.f32 %v3389_v8, 0.0  ;;  %v3810_v25 = vmax.f32 %v3610_v1, 0.0 }
 0x3a3   :  { %v3397_v51 = vadd.f32 %v3396_v62, %v8908_v19  ;;  %v3618_v10 = vadd.f32 %v3617_v20, %v8896_v63  ;;  %6731 = vmatpush1.bf16.msra.mxu0 %v6730_v57  ;;  %6783 = vmatpush1.bf16.msra.mxu1 %v6782_v21  ;;  %v3825_v62 = vmax.f32 %v3391_v13, 0.0  ;;  %v3811_v45 = vmax.f32 %v3612_v59, 0.0  ;;  %v9311_v13 = vld [vmem:[%s10148_s6 + $0x110] sm:$0xff] }
 0x3a4   :  { %v3832_v12 = vmax.f32 %v3395_v26, 0.0  ;;  %v3818_v24 = vmax.f32 %v3616_v48, 0.0  ;;  %6508 = vmatprep.mubr.msk.f32.mxu0 %vm4108_vm2, %v9284_v31  ;;  %6530 = vmatprep.mubr.msk.f32.mxu1 %vm4108_vm2, %v9242_v33 }
 0x3a5   :  { %v3833_v63 = vmax.f32 %v3397_v51, 0.0  ;;  %v3819_v57 = vmax.f32 %v3618_v10, 0.0  ;;  %v3400_v21 = vpop.f32.mrb[98].mxu0  ;;  %v3621_v20 = vpop.f32.mrb[98].mxu1  ;;  %4342 = vmatmul.mubr.f32.gmra.mrb[150].mxu0 %v9291_v27  ;;  %4539 = vmatmul.mubr.f32.gmra.mrb[150].mxu1 %v9249_v47 }
 0x3a6   :  { %v6734_v8 = vpack.c.bf16 %v3832_v12, %v3824_v22  ;;  %v6786_v1 = vpack.c.bf16 %v3818_v24, %v3810_v25  ;;  %v3402_v26 = vpop.f32.mrb[99].mxu0  ;;  %v3623_v48 = vpop.f32.mrb[99].mxu1  ;;  %6509 = vmatprep.mubr.msk.f32.mxu0 %vm4108_vm2, %v9298_v44  ;;  %6531 = vmatprep.mubr.msk.f32.mxu1 %vm4108_vm2, %v9256_v52  ;;  %v3401_v22 = vadd.f32 %v3400_v21, %v8918_v53 }
 0x3a7   :  { %v6732_v59 = vpack.c.bf16 %v3833_v63, %v3825_v62  ;;  %v6784_v51 = vpack.c.bf16 %v3819_v57, %v3811_v45  ;;  %v9315_v10 = vpop.permute.xlu0 %4035  ;;  %v3622_v25 = vadd.f32 %v3621_v20, %v8906_v9  ;;  %v3403_v12 = vadd.f32 %v3402_v26, %v8918_v53  ;;  %v9326_v45 = vld [vmem:[%s10148_s6 + $0x128] sm:$0xff] }
 0x3a8   :  { %10368 = vst [vmem:[#allocation19_spill] sm:$0xff] %v9315_v10  ;;  %v3624_v24 = vadd.f32 %v3623_v48, %v8906_v9  ;;  %v9333_v9 = vld [vmem:[%s10148_s6 + $0x120] sm:$0xff] }
 0x3a9   :  { %v3406_v42 = vpop.f32.mrb[100].mxu0  ;;  %v3627_v38 = vpop.f32.mrb[100].mxu1  ;;  %4348 = vmatmul.mubr.f32.gmra.mrb[152].mxu0 %v9311_v13  ;;  %4545 = vmatmul.mubr.f32.gmra.mrb[152].mxu1 %v9269_v14  ;;  %v3826_v48 = vmax.f32 %v3622_v25, 0.0 }
 0x3aa   :  { %v3407_v62 = vadd.f32 %v3406_v42, %v8920_v54  ;;  %v3628_v63 = vadd.f32 %v3627_v38, %v8908_v19  ;;  %6733 = vmatprep.subr.bf16.mxu0 %v6732_v59  ;;  %6785 = vmatprep.subr.bf16.mxu1 %v6784_v51  ;;  %v3408_v57 = vpop.f32.mrb[101].mxu0  ;;  %v3629_v21 = vpop.f32.mrb[101].mxu1  ;;  %v9340_v42 = vld [vmem:[%s10148_s6 + $0x138] sm:$0xff]  ;;  %v3840_v38 = vmax.f32 %v3401_v22, 0.0  ;;  %v3827_v10 = vmax.f32 %v3624_v24, 0.0 }
 0x3ab   :  { %v3409_v20 = vadd.f32 %v3408_v57, %v8920_v54  ;;  %v3630_v26 = vadd.f32 %v3629_v21, %v8908_v19  ;;  %6735 = vmatpush1.bf16.msra.mxu0 %v6734_v8  ;;  %6787 = vmatpush1.bf16.msra.mxu1 %v6786_v1  ;;  %v3841_v57 = vmax.f32 %v3403_v12, 0.0  ;;  %v9353_v12 = vld [vmem:[%s10148_s6 + $0x130] sm:$0xff] }
 0x3ac   :  { %v3848_v59 = vmax.f32 %v3407_v62, 0.0  ;;  %v3834_v51 = vmax.f32 %v3628_v63, 0.0  ;;  %6510 = vmatprep.mubr.msk.f32.mxu0 %vm4108_vm2, %v9326_v45  ;;  %6532 = vmatprep.mubr.msk.f32.mxu1 %vm4108_vm2, %v9284_v31 }
 0x3ad   :  { %v3849_v19 = vmax.f32 %v3409_v20, 0.0  ;;  %v3835_v8 = vmax.f32 %v3630_v26, 0.0  ;;  %v3412_v1 = vpop.f32.mrb[102].mxu0  ;;  %v3633_v21 = vpop.f32.mrb[102].mxu1  ;;  %4354 = vmatmul.mubr.f32.gmra.mrb[154].mxu0 %v9333_v9  ;;  %4551 = vmatmul.mubr.f32.gmra.mrb[154].mxu1 %v9291_v27 }
 0x3ae   :  { %v6738_v22 = vpack.c.bf16 %v3848_v59, %v3840_v38  ;;  %v6790_v25 = vpack.c.bf16 %v3834_v51, %v3826_v48  ;;  %v3414_v62 = vpop.f32.mrb[103].mxu0  ;;  %v3635_v63 = vpop.f32.mrb[103].mxu1  ;;  %6511 = vmatprep.mubr.msk.f32.mxu0 %vm4108_vm2, %v9340_v42  ;;  %6533 = vmatprep.mubr.msk.f32.mxu1 %vm4108_vm2, %v9298_v44  ;;  %v3413_v38 = vadd.f32 %v3412_v1, %v8930_v36 }
 0x3af   :  { %v6736_v24 = vpack.c.bf16 %v3849_v19, %v3841_v57  ;;  %v6788_v20 = vpack.c.bf16 %v3835_v8, %v3827_v10  ;;  %v9357_v26 = vpop.permute.xlu0 %4040  ;;  %v3634_v48 = vadd.f32 %v3633_v21, %v8918_v53  ;;  %v3415_v59 = vadd.f32 %v3414_v62, %v8930_v36  ;;  %v9368_v10 = vld [vmem:[%s10148_s6 + $0x148] sm:$0xff] }
 0x3b0   :  { %10369 = vst [vmem:[#allocation20_spill] sm:$0xff] %v9357_v26  ;;  %v3636_v51 = vadd.f32 %v3635_v63, %v8918_v53  ;;  %v9375_v53 = vld [vmem:[%s10148_s6 + $0x140] sm:$0xff] }
 0x3b1   :  { %v3418_v5 = vpop.f32.mrb[104].mxu0  ;;  %v3639_v58 = vpop.f32.mrb[104].mxu1  ;;  %4360 = vmatmul.mubr.f32.gmra.mrb[156].mxu0 %v9353_v12  ;;  %4557 = vmatmul.mubr.f32.gmra.mrb[156].mxu1 %v9311_v13  ;;  %v3842_v63 = vmax.f32 %v3634_v48, 0.0 }
 0x3b2   :  { %v3419_v57 = vadd.f32 %v3418_v5, %v8932_v37  ;;  %v3640_v19 = vadd.f32 %v3639_v58, %v8920_v54  ;;  %6737 = vmatprep.subr.bf16.mxu0 %v6736_v24  ;;  %6789 = vmatprep.subr.bf16.mxu1 %v6788_v20  ;;  %v3420_v8 = vpop.f32.mrb[105].mxu0  ;;  %v3641_v1 = vpop.f32.mrb[105].mxu1  ;;  %v9382_v5 = vld [vmem:[%s10148_s6 + $0x158] sm:$0xff]  ;;  %v3856_v58 = vmax.f32 %v3413_v38, 0.0  ;;  %v3843_v26 = vmax.f32 %v3636_v51, 0.0 }
 0x3b3   :  { %v3421_v21 = vadd.f32 %v3420_v8, %v8932_v37  ;;  %v3642_v62 = vadd.f32 %v3641_v1, %v8920_v54  ;;  %6739 = vmatpush1.bf16.msra.mxu0 %v6738_v22  ;;  %6791 = vmatpush1.bf16.msra.mxu1 %v6790_v25  ;;  %v3857_v8 = vmax.f32 %v3415_v59, 0.0  ;;  %v9395_v59 = vld [vmem:[%s10148_s6 + $0x150] sm:$0xff] }
 0x3b4   :  { %v3864_v24 = vmax.f32 %v3419_v57, 0.0  ;;  %v3850_v20 = vmax.f32 %v3640_v19, 0.0  ;;  %6512 = vmatprep.mubr.msk.f32.mxu0 %vm4108_vm2, %v9368_v10  ;;  %6534 = vmatprep.mubr.msk.f32.mxu1 %vm4108_vm2, %v9326_v45 }
 0x3b5   :  { %v3865_v54 = vmax.f32 %v3421_v21, 0.0  ;;  %v3851_v22 = vmax.f32 %v3642_v62, 0.0  ;;  %v3424_v25 = vpop.f32.mrb[106].mxu0  ;;  %v3645_v1 = vpop.f32.mrb[106].mxu1  ;;  %4366 = vmatmul.mubr.f32.gmra.mrb[158].mxu0 %v9375_v53  ;;  %4563 = vmatmul.mubr.f32.gmra.mrb[158].mxu1 %v9333_v9 }
 0x3b6   :  { %v6742_v38 = vpack.c.bf16 %v3864_v24, %v3856_v58  ;;  %v6794_v48 = vpack.c.bf16 %v3850_v20, %v3842_v63  ;;  %v3426_v57 = vpop.f32.mrb[107].mxu0  ;;  %v3647_v19 = vpop.f32.mrb[107].mxu1  ;;  %6513 = vmatprep.mubr.msk.f32.mxu0 %vm4108_vm2, %v9382_v5  ;;  %6535 = vmatprep.mubr.msk.f32.mxu1 %vm4108_vm2, %v9340_v42  ;;  %v3425_v58 = vadd.f32 %v3424_v25, %v8942_v29 }
 0x3b7   :  { %v6740_v51 = vpack.c.bf16 %v3865_v54, %v3857_v8  ;;  %v6792_v21 = vpack.c.bf16 %v3851_v22, %v3843_v26  ;;  %v9399_v62 = vpop.permute.xlu0 %4045  ;;  %v3646_v63 = vadd.f32 %v3645_v1, %v8930_v36  ;;  %v3427_v24 = vadd.f32 %v3426_v57, %v8942_v29  ;;  %v9410_v26 = vld [vmem:[%s10148_s6 + $0x168] sm:$0xff] }
 0x3b8   :  { %10370 = vst [vmem:[#allocation21_spill] sm:$0xff] %v9399_v62  ;;  %v3648_v20 = vadd.f32 %v3647_v19, %v8930_v36  ;;  %v9417_v36 = vld [vmem:[%s10148_s6 + $0x160] sm:$0xff] }
 0x3b9   :  { %v3430_v39 = vpop.f32.mrb[108].mxu0  ;;  %v3651_v43 = vpop.f32.mrb[108].mxu1  ;;  %4372 = vmatmul.mubr.f32.gmra.mrb[160].mxu0 %v9395_v59  ;;  %4569 = vmatmul.mubr.f32.gmra.mrb[160].mxu1 %v9353_v12  ;;  %10371 = vst [vmem:[#allocation22_spill] sm:$0xff] %v9417_v36  ;;  %v3858_v19 = vmax.f32 %v3646_v63, 0.0 }
 0x3ba   :  { %v3431_v8 = vadd.f32 %v3430_v39, %v8944_v2  ;;  %v3652_v54 = vadd.f32 %v3651_v43, %v8932_v37  ;;  %6741 = vmatprep.subr.bf16.mxu0 %v6740_v51  ;;  %6793 = vmatprep.subr.bf16.mxu1 %v6792_v21  ;;  %v3432_v22 = vpop.f32.mrb[109].mxu0  ;;  %v3653_v25 = vpop.f32.mrb[109].mxu1  ;;  %v9424_v39 = vld [vmem:[%s10148_s6 + $0x178] sm:$0xff]  ;;  %v3872_v43 = vmax.f32 %v3425_v58, 0.0  ;;  %v3859_v62 = vmax.f32 %v3648_v20, 0.0 }
 0x3bb   :  { %v3433_v1 = vadd.f32 %v3432_v22, %v8944_v2  ;;  %v3654_v57 = vadd.f32 %v3653_v25, %v8932_v37  ;;  %6743 = vmatpush1.bf16.msra.mxu0 %v6742_v38  ;;  %6795 = vmatpush1.bf16.msra.mxu1 %v6794_v48  ;;  %10372 = vst [vmem:[#allocation23_spill] sm:$0xff] %v9424_v39  ;;  %v3873_v22 = vmax.f32 %v3427_v24, 0.0  ;;  %v9437_v24 = vld [vmem:[%s10148_s6 + $0x170] sm:$0xff] }
 0x3bc   :  { %v3880_v51 = vmax.f32 %v3431_v8, 0.0  ;;  %v3866_v21 = vmax.f32 %v3652_v54, 0.0  ;;  %6514 = vmatprep.mubr.msk.f32.mxu0 %vm4108_vm2, %v9410_v26  ;;  %6536 = vmatprep.mubr.msk.f32.mxu1 %vm4108_vm2, %v9368_v10  ;;  %10373 = vst [vmem:[#allocation24_spill] sm:$0xff] %v9437_v24 }
 0x3bd   :  { %v3881_v37 = vmax.f32 %v3433_v1, 0.0  ;;  %v3867_v38 = vmax.f32 %v3654_v57, 0.0  ;;  %v3436_v48 = vpop.f32.mrb[110].mxu0  ;;  %v3657_v25 = vpop.f32.mrb[110].mxu1  ;;  %4378 = vmatmul.mubr.f32.gmra.mrb[162].mxu0 %v9417_v36  ;;  %4575 = vmatmul.mubr.f32.gmra.mrb[162].mxu1 %v9375_v53 }
 0x3be   :  { %v6746_v58 = vpack.c.bf16 %v3880_v51, %v3872_v43  ;;  %v6798_v63 = vpack.c.bf16 %v3866_v21, %v3858_v19  ;;  %v3438_v8 = vpop.f32.mrb[111].mxu0  ;;  %v3659_v54 = vpop.f32.mrb[111].mxu1  ;;  %6515 = vmatprep.mubr.msk.f32.mxu0 %vm4108_vm2, %v9424_v39  ;;  %6537 = vmatprep.mubr.msk.f32.mxu1 %vm4108_vm2, %v9382_v5  ;;  %v3437_v43 = vadd.f32 %v3436_v48, %v8954_v17 }
 0x3bf   :  { %v6744_v20 = vpack.c.bf16 %v3881_v37, %v3873_v22  ;;  %v6796_v1 = vpack.c.bf16 %v3867_v38, %v3859_v62  ;;  %v9441_v57 = vpop.permute.xlu0 %4050  ;;  %v3658_v19 = vadd.f32 %v3657_v25, %v8942_v29  ;;  %v3439_v51 = vadd.f32 %v3438_v8, %v8954_v17 }
 0x3c0   :  { %10374 = vst [vmem:[#allocation25_spill] sm:$0xff] %v9441_v57  ;;  %v3660_v21 = vadd.f32 %v3659_v54, %v8942_v29  ;;  %v3888_v29 = vmax.f32 %v3437_v43, 0.0 }
 0x3c1   :  { %v3442_v35 = vpop.f32.mrb[112].mxu0  ;;  %v3663_v40 = vpop.f32.mrb[112].mxu1  ;;  %4384 = vmatmul.mubr.f32.gmra.mrb[164].mxu0 %v9437_v24  ;;  %4581 = vmatmul.mubr.f32.gmra.mrb[164].mxu1 %v9395_v59  ;;  %v3874_v8 = vmax.f32 %v3658_v19, 0.0 }
 0x3c2   :  { %v3443_v62 = vadd.f32 %v3442_v35, %v8956_v18  ;;  %v3664_v22 = vadd.f32 %v3663_v40, %v8944_v2  ;;  %6745 = vmatprep.subr.bf16.mxu0 %v6744_v20  ;;  %6797 = vmatprep.subr.bf16.mxu1 %v6796_v1  ;;  %v3444_v37 = vpop.f32.mrb[113].mxu0  ;;  %v3665_v38 = vpop.f32.mrb[113].mxu1  ;;  %v7425_v35 = vld [vmem:[%s10148_s6 + $0x8] sm:$0xff]  ;;  %v3889_v40 = vmax.f32 %v3439_v51, 0.0  ;;  %v3875_v20 = vmax.f32 %v3660_v21, 0.0 }
 0x3c3   :  { %v3445_v48 = vadd.f32 %v3444_v37, %v8956_v18  ;;  %v3666_v25 = vadd.f32 %v3665_v38, %v8944_v2  ;;  %6747 = vmatpush1.bf16.msra.mxu0 %v6746_v58  ;;  %6799 = vmatpush1.bf16.msra.mxu1 %v6798_v63  ;;  %v9462_v32 = vpop.permute.xlu0 %4055 }
 0x3c4   :  { %v3896_v54 = vmax.f32 %v3443_v62, 0.0  ;;  %v3882_v57 = vmax.f32 %v3664_v22, 0.0  ;;  %6538 = vmatprep.mubr.msk.f32.mxu1 %vm4108_vm2, %v9410_v26  ;;  %6540 = vmatprep.mubr.msk.f32.mxu0 %vm4108_vm2, %v7425_v35  ;;  %10375 = vst [vmem:[#allocation26_spill] sm:$0xff] %v9462_v32 }
 0x3c5   :  { %v3897_v1 = vmax.f32 %v3445_v48, 0.0  ;;  %v3883_v37 = vmax.f32 %v3666_v25, 0.0  ;;  %v3448_v2 = vpop.f32.mrb[114].mxu0  ;;  %v3669_v58 = vpop.f32.mrb[114].mxu1  ;;  %4587 = vmatmul.mubr.f32.gmra.mrb[166].mxu1 %v9417_v36 }
 0x3c6   :  { %v6750_v63 = vpack.c.bf16 %v3896_v54, %v3888_v29  ;;  %v6802_v43 = vpack.c.bf16 %v3882_v57, %v3874_v8  ;;  %v3450_v19 = vpop.f32.mrb[115].mxu0  ;;  %v3671_v62 = vpop.f32.mrb[115].mxu1  ;;  %6539 = vmatprep.mubr.msk.f32.mxu1 %vm4108_vm2, %v9424_v39  ;;  %v3449_v51 = vadd.f32 %v3448_v2, %v8968_v60  ;;  %v3670_v21 = vadd.f32 %v3669_v58, %v8954_v17 }
 0x3c7   :  { %v6748_v22 = vpack.c.bf16 %v3897_v1, %v3889_v40  ;;  %v6800_v38 = vpack.c.bf16 %v3883_v37, %v3875_v20  ;;  %v3451_v48 = vadd.f32 %v3450_v19, %v8968_v60  ;;  %v3672_v25 = vadd.f32 %v3671_v62, %v8954_v17 }
 0x3c8   :  { %v3904_v17 = vmax.f32 %v3449_v51, 0.0  ;;  %v3890_v37 = vmax.f32 %v3670_v21, 0.0 }
 0x3c9   :  { %v3454_v36 = vpop.f32.mrb[116].mxu0  ;;  %v3675_v29 = vpop.f32.mrb[116].mxu1  ;;  %4593 = vmatmul.mubr.f32.gmra.mrb[168].mxu1 %v9437_v24  ;;  %6749 = vmatprep.subr.bf16.mxu0 %v6748_v22  ;;  %v3905_v19 = vmax.f32 %v3451_v48, 0.0  ;;  %v3891_v62 = vmax.f32 %v3672_v25, 0.0 }
 0x3ca   :  { %v3455_v57 = vadd.f32 %v3454_v36, %v8965_v23  ;;  %v3676_v8 = vadd.f32 %v3675_v29, %v8956_v18  ;;  %6801 = vmatprep.subr.bf16.mxu1 %v6800_v38  ;;  %v3456_v54 = vpop.f32.mrb[117].mxu0  ;;  %v3677_v40 = vpop.f32.mrb[117].mxu1  ;;  %6751 = vmatpush1.bf16.msra.mxu0 %v6750_v63 }
 0x3cb   :  { %v3457_v20 = vadd.f32 %v3456_v54, %v8965_v23  ;;  %v3678_v1 = vadd.f32 %v3677_v40, %v8956_v18  ;;  %6803 = vmatpush1.bf16.msra.mxu1 %v6802_v43  ;;  %6564 = vmatprep.mubr.msk.f32.mxu1 %vm4108_vm2, %v7425_v35  ;;  %v9474_v38 = vpop.permute.xlu0 %4060 }
 0x3cc   :  { %v3912_v2 = vmax.f32 %v3455_v57, 0.0  ;;  %v3898_v58 = vmax.f32 %v3676_v8, 0.0 }
 0x3cd   :  { %v3913_v36 = vmax.f32 %v3457_v20, 0.0  ;;  %v3899_v22 = vmax.f32 %v3678_v1, 0.0  ;;  %v3681_v29 = vpop.f32.mrb[118].mxu1 }
 0x3ce   :  { %v6754_v32 = vpack.c.bf16 %v3912_v2, %v3904_v17  ;;  %v6806_v63 = vpack.c.bf16 %v3898_v58, %v3890_v37  ;;  %v3683_v24 = vpop.f32.mrb[119].mxu1  ;;  %v3682_v18 = vadd.f32 %v3681_v29, %v8968_v60  ;;  %v7429_v17 = vld [vmem:[%s10148_s6 + $0x28] sm:$0xff]  ;;  %v7430_v37 = vld [vmem:[%s10148_s6 + $0x20] sm:$0xff]  ;;  %v7431_v2 = vld [vmem:[%s10148_s6 + $0x38] sm:$0xff] }
 0x3cf   :  { %v6752_v54 = vpack.c.bf16 %v3913_v36, %v3905_v19  ;;  %v6804_v39 = vpack.c.bf16 %v3899_v22, %v3891_v62  ;;  %v3684_v35 = vadd.f32 %v3683_v24, %v8968_v60  ;;  %v9480_v25 = vpop.permute.xlu0 %4065  ;;  %v7426_v60 = vld [vmem:[%s10148_s6] sm:$0xff]  ;;  %v7432_v19 = vld [vmem:[%s10148_s6 + $0x30] sm:$0xff]  ;;  %v7433_v62 = vld [vmem:[%s10148_s6 + $0x48] sm:$0xff] }
 0x3d0   :  { %10376 = vst [vmem:[#allocation27_spill] sm:$0xff] %v9480_v25  ;;  %v3906_v57 = vmax.f32 %v3682_v18, 0.0  ;;  %v7434_v36 = vld [vmem:[%s10148_s6 + $0x40] sm:$0xff]  ;;  %v7435_v29 = vld [vmem:[%s10148_s6 + $0x58] sm:$0xff] }
 0x3d1   :  { %v3687_v43 = vpop.f32.mrb[120].mxu1  ;;  %6753 = vmatprep.subr.bf16.mxu0 %v6752_v54  ;;  %6805 = vmatprep.subr.bf16.mxu1 %v6804_v39  ;;  %v3907_v40 = vmax.f32 %v3684_v35, 0.0  ;;  %v7427_v39 = vld [vmem:[%s10148_s6 + $0x18] sm:$0xff]  ;;  %v9557_v35 = vpop.permute.xlu1 %3995 }
 0x3d2   :  { %v3688_v51 = vadd.f32 %v3687_v43, %v8965_v23  ;;  %v3689_v21 = vpop.f32.mrb[121].mxu1  ;;  %6755 = vmatpush1.bf16.msra.mxu0 %v6754_v32  ;;  %6807 = vmatpush1.bf16.msra.mxu1 %v6806_v63  ;;  %v7436_v63 = vld [vmem:[%s10148_s6 + $0x50] sm:$0xff] }
 0x3d3   :  { %v3690_v48 = vadd.f32 %v3689_v21, %v8965_v23  ;;  %v7428_v23 = vld [vmem:[%s10148_s6 + $0x10] sm:$0xff]  ;;  %v9492_v1 = vpop.permute.xlu0 %4070 }
 0x3d4   :  { %v3914_v8 = vmax.f32 %v3688_v51, 0.0 }
 0x3d5   :  { %v3915_v20 = vmax.f32 %v3690_v48, 0.0  ;;  %4664 = vmatmul.mubr.f32.vlgmr.msra.gmra.mrb[166].mxu0 %v7426_v60  ;;  %v9567_v51 = vpop.permute.xlu1 %4005 }
 0x3d6   :  { %v6810_v24 = vpack.c.bf16 %v3914_v8, %v3906_v57  ;;  %6541 = vmatprep.mubr.msk.f32.mxu0 %vm4108_vm2, %v7427_v39 }
 0x3d7   :  { %v6808_v32 = vpack.c.bf16 %v3915_v20, %v3907_v40  ;;  %v9506_v58 = vpop.permute.xlu0 %4075 }
 0x3d8   :  { %10377 = vst [vmem:[#allocation28_spill] sm:$0xff] %v9506_v58 }
 0x3d9   :  { %4670 = vmatmul.mubr.f32.gmra.mrb[168].mxu0 %v7428_v23  ;;  %6809 = vmatprep.subr.bf16.mxu1 %v6808_v32 }
 0x3da   :  { %6811 = vmatpush1.bf16.msra.mxu1 %v6810_v24  ;;  %6542 = vmatprep.mubr.msk.f32.mxu0 %vm4108_vm2, %v7429_v17 }
 0x3db   :  { %v9519_v22 = vpop.permute.xlu0 %4080 }
 0x3dd   :  { %4676 = vmatmul.mubr.f32.gmra.mrb[170].mxu0 %v7430_v37  ;;  %4873 = vmatmul.mubr.f32.vlgmr.msra.gmra.mrb[170].mxu1 %v7426_v60 }
 0x3de   :  { %6543 = vmatprep.mubr.msk.f32.mxu0 %vm4108_vm2, %v7431_v2  ;;  %6565 = vmatprep.mubr.msk.f32.mxu1 %vm4108_vm2, %v7427_v39 }
 0x3df   :  { %v9532_v54 = vpop.permute.xlu0 %4085 }
 0x3e0   :  { %10378 = vst [vmem:[#allocation29_spill] sm:$0xff] %v9532_v54 }
 0x3e1   :  { %4682 = vmatmul.mubr.f32.gmra.mrb[172].mxu0 %v7432_v19  ;;  %4879 = vmatmul.mubr.f32.gmra.mrb[172].mxu1 %v7428_v23 }
 0x3e2   :  { %6544 = vmatprep.mubr.msk.f32.mxu0 %vm4108_vm2, %v7433_v62  ;;  %6566 = vmatprep.mubr.msk.f32.mxu1 %vm4108_vm2, %v7429_v17 }
 0x3e3   :  { %v9539_v18 = vpop.permute.xlu0 %4090 }
 0x3e5   :  { %4688 = vmatmul.mubr.f32.gmra.mrb[174].mxu0 %v7434_v36  ;;  %4885 = vmatmul.mubr.f32.gmra.mrb[174].mxu1 %v7430_v37  ;;  %v10391_v37 = vld [vmem:[#allocation13_spill] sm:$0xff] }
 0x3e6   :  { %6545 = vmatprep.mubr.msk.f32.mxu0 %vm4108_vm2, %v7435_v29  ;;  %6567 = vmatprep.mubr.msk.f32.mxu1 %vm4108_vm2, %v7431_v2 }
 0x3e7   :  { %v9559_v43 = vpop.permute.xlu0 %4095 }
 0x3e9   :  { %4694 = vmatmul.mubr.f32.gmra.mrb[176].mxu0 %v7436_v63  ;;  %4891 = vmatmul.mubr.f32.gmra.mrb[176].mxu1 %v7432_v19 }
 0x3ea   :  { %6546 = vmatprep.mubr.msk.f32.mxu0 %vm4108_vm2, %v9075_v6  ;;  %6568 = vmatprep.mubr.msk.f32.mxu1 %vm4108_vm2, %v7433_v62  ;;  %v7437_v6 = vld [vmem:[%s10148_s6 + $0x68] sm:$0xff] }
 0x3eb   :  { %v9571_v21 = vpop.permute.xlu0 %4100  ;;  %v10392_v62 = vld [vmem:[#allocation12_spill] sm:$0xff] }
 0x3ed   :  { %4700 = vmatmul.mubr.f32.gmra.mrb[178].mxu0 %v9082_v7  ;;  %4897 = vmatmul.mubr.f32.gmra.mrb[178].mxu1 %v7434_v36  ;;  %v7438_v7 = vld [vmem:[%s10148_s6 + $0x60] sm:$0xff] }
 0x3ee   :  { %6547 = vmatprep.mubr.msk.f32.mxu0 %vm4108_vm2, %v9089_v61  ;;  %6569 = vmatprep.mubr.msk.f32.mxu1 %vm4108_vm2, %v7435_v29  ;;  %v7439_v61 = vld [vmem:[%s10148_s6 + $0x78] sm:$0xff] }
 0x3f1   :  { %4706 = vmatmul.mubr.f32.gmra.mrb[180].mxu0 %v9102_v49  ;;  %4903 = vmatmul.mubr.f32.gmra.mrb[180].mxu1 %v7436_v63 }
 0x3f2   :  { %6548 = vmatprep.mubr.msk.f32.mxu0 %vm4108_vm2, %v9116_v46  ;;  %6570 = vmatprep.mubr.msk.f32.mxu1 %vm4108_vm2, %v7437_v6 }
 0x3f5   :  { %4712 = vmatmul.mubr.f32.gmra.mrb[182].mxu0 %v9123_v55  ;;  %4909 = vmatmul.mubr.f32.gmra.mrb[182].mxu1 %v7438_v7 }
 0x3f6   :  { %6549 = vmatprep.mubr.msk.f32.mxu0 %vm4108_vm2, %v9130_v0  ;;  %6571 = vmatprep.mubr.msk.f32.mxu1 %vm4108_vm2, %v7439_v61 }
 0x3f9   :  { %4718 = vmatmul.mubr.f32.gmra.mrb[184].mxu0 %v9143_v11  ;;  %4915 = vmatmul.mubr.f32.gmra.mrb[184].mxu1 %v9102_v49  ;;  %v9583_v49 = vpop.permute.xlu1 %5241 }
 0x3fa   :  { %6550 = vmatprep.mubr.msk.f32.mxu0 %vm4108_vm2, %v9158_v56  ;;  %6572 = vmatprep.mubr.msk.f32.mxu1 %vm4108_vm2, %v9116_v46  ;;  %v9585_v46 = vpop.permute.xlu0 %4105 }
 0x3fd   :  { %4724 = vmatmul.mubr.f32.gmra.mrb[186].mxu0 %v9165_v4  ;;  %4921 = vmatmul.mubr.f32.gmra.mrb[186].mxu1 %v9123_v55  ;;  %v9593_v55 = vpop.permute.xlu1 %5246 }
 0x3fe   :  { %6551 = vmatprep.mubr.msk.f32.mxu0 %vm4108_vm2, %v9172_v34  ;;  %6573 = vmatprep.mubr.msk.f32.mxu1 %vm4108_vm2, %v9130_v0  ;;  %v9597_v0 = vpop.permute.xlu0 %5346 }
 0x3ff   :  { %10379 = vst [vmem:[#allocation30_spill] sm:$0xff] %v9597_v0 }
 0x401   :  { %4730 = vmatmul.mubr.f32.gmra.mrb[188].mxu0 %v9185_v50  ;;  %4927 = vmatmul.mubr.f32.gmra.mrb[188].mxu1 %v9143_v11  ;;  %v9609_v11 = vpop.permute.xlu1 %5251 }
 0x402   :  { %6552 = vmatprep.mubr.msk.f32.mxu0 %vm4108_vm2, %v9200_v16  ;;  %6574 = vmatprep.mubr.msk.f32.mxu1 %vm4108_vm2, %v9158_v56  ;;  %v9611_v56 = vpop.permute.xlu0 %5780 }
 0x405   :  { %4736 = vmatmul.mubr.f32.gmra.mrb[190].mxu0 %v9207_v15  ;;  %4933 = vmatmul.mubr.f32.gmra.mrb[190].mxu1 %v9165_v4 }
 0x406   :  { %6553 = vmatprep.mubr.msk.f32.mxu0 %vm4108_vm2, %v9214_v30  ;;  %6575 = vmatprep.mubr.msk.f32.mxu1 %vm4108_vm2, %v9172_v34  ;;  %v5877_v4 = vpop.xlane.xlu0 %5876  ;;  %v9619_v34 = vpop.permute.xlu1 %5256 }
 0x409   :  { %4742 = vmatmul.mubr.f32.gmra.mrb[192].mxu0 %v9227_v3  ;;  %4939 = vmatmul.mubr.f32.gmra.mrb[192].mxu1 %v9185_v50  ;;  %v5878_v50 = vmax.f32 %v5877_v4, 1e-16 }
 0x40a   :  { %6554 = vmatprep.mubr.msk.f32.mxu0 %vm4108_vm2, %v9242_v33  ;;  %6576 = vmatprep.mubr.msk.f32.mxu1 %vm4108_vm2, %v9200_v16  ;;  %v9633_v16 = vpop.permute.xlu1 %5261 }
 0x40b   :  { %10380 = vst [vmem:[#allocation31_spill] sm:$0xff] %v9633_v16  ;;  %7263 = vrsqrt.f32 %v5878_v50 }
 0x40d   :  { %4748 = vmatmul.mubr.f32.gmra.mrb[194].mxu0 %v9249_v47  ;;  %4945 = vmatmul.mubr.f32.gmra.mrb[194].mxu1 %v9207_v15  ;;  %v7469_v15 = vmov 839922192  }
 0x40e   :  { %6555 = vmatprep.mubr.msk.f32.mxu0 %vm4108_vm2, %v9256_v52  ;;  %6577 = vmatprep.mubr.msk.f32.mxu1 %vm4108_vm2, %v9214_v30  ;;  %v5917_v30 = vunpack.c.l.s4 %v7469_v15 }
 0x411   :  { %4754 = vmatmul.mubr.f32.gmra.mrb[196].mxu0 %v9269_v14  ;;  %4951 = vmatmul.mubr.f32.gmra.mrb[196].mxu1 %v9227_v3  ;;  %v5918_v3 = vunpack.c.0.s8 %v5917_v30 }
 0x412   :  { %6556 = vmatprep.mubr.msk.f32.mxu0 %vm4108_vm2, %v9284_v31  ;;  %6578 = vmatprep.mubr.msk.f32.mxu1 %vm4108_vm2, %v9242_v33  ;;  %v9641_v33 = vpop.permute.xlu1 %5266 }
 0x413   :  { %10381 = vst [vmem:[#allocation32_spill] sm:$0xff] %v9641_v33 }
 0x415   :  { %4760 = vmatmul.mubr.f32.gmra.mrb[198].mxu0 %v9291_v27  ;;  %4957 = vmatmul.mubr.f32.gmra.mrb[198].mxu1 %v9249_v47  ;;  %v5921_v47 = vsub.s32 %v5918_v3, %v8128_v28 }
 0x416   :  { %6557 = vmatprep.mubr.msk.f32.mxu0 %vm4108_vm2, %v9298_v44  ;;  %6579 = vmatprep.mubr.msk.f32.mxu1 %vm4108_vm2, %v9256_v52  ;;  %v7264_v52 = vpop.eup %7263 }
 0x419   :  { %4766 = vmatmul.mubr.f32.gmra.mrb[200].mxu0 %v9311_v13  ;;  %4963 = vmatmul.mubr.f32.gmra.mrb[200].mxu1 %v9269_v14  ;;  %v9656_v14 = vpop.permute.xlu1 %5271 }
 0x41a   :  { %6558 = vmatprep.mubr.msk.f32.mxu0 %vm4108_vm2, %v9326_v45  ;;  %6580 = vmatprep.mubr.msk.f32.mxu1 %vm4108_vm2, %v9284_v31  ;;  %10382 = vst [vmem:[#allocation33_spill] sm:$0xff] %v9656_v14  ;;  %v9658_v31 = vrot.slane %v7264_v52, %v5921_v47 }
 0x41c   :  { %10383 = vst [vmem:[#allocation34_spill] sm:$0xff] %v9658_v31 }
 0x41d   :  { %4772 = vmatmul.mubr.f32.gmra.mrb[202].mxu0 %v9333_v9  ;;  %4969 = vmatmul.mubr.f32.gmra.mrb[202].mxu1 %v9291_v27  ;;  %v9668_v27 = vmul.f32 %v9658_v31, %v8810_v41 }
 0x41e   :  { %6559 = vmatprep.mubr.msk.f32.mxu0 %vm4108_vm2, %v9340_v42  ;;  %6581 = vmatprep.mubr.msk.f32.mxu1 %vm4108_vm2, %v9298_v44  ;;  %v9670_v44 = vpop.permute.xlu1 %5276 }
 0x41f   :  { %10384 = vst [vmem:[#allocation35_spill] sm:$0xff] %v9668_v27  ;;  %10385 = vst [vmem:[#allocation36_spill] sm:$0xff] %v9670_v44 }
 0x421   :  { %4778 = vmatmul.mubr.f32.gmra.mrb[204].mxu0 %v9353_v12  ;;  %4975 = vmatmul.mubr.f32.gmra.mrb[204].mxu1 %v9311_v13  ;;  %v10386_v13 = vld [vmem:[#allocation22_spill] sm:$0xff] }
 0x422   :  { %6560 = vmatprep.mubr.msk.f32.mxu0 %vm4108_vm2, %v9368_v10  ;;  %6582 = vmatprep.mubr.msk.f32.mxu1 %vm4108_vm2, %v9326_v45  ;;  %v10387_v45 = vld [vmem:[#allocation23_spill] sm:$0xff]  ;;  %v9684_v41 = vpop.permute.xlu1 %5281 }
 0x423   :  { %10389 = vst [vmem:[#allocation37_spill] sm:$0xff] %v9684_v41 }
 0x425   :  { %4784 = vmatmul.mubr.f32.gmra.mrb[206].mxu0 %v9375_v53  ;;  %4981 = vmatmul.mubr.f32.gmra.mrb[206].mxu1 %v9333_v9  ;;  %v5938_v9 = vcombine.high %v9668_v27, %v9668_v27 }
 0x426   :  { %6561 = vmatprep.mubr.msk.f32.mxu0 %vm4108_vm2, %v9382_v5  ;;  %6583 = vmatprep.mubr.msk.f32.mxu1 %vm4108_vm2, %v9340_v42  ;;  %v10388_v42 = vld [vmem:[#allocation24_spill] sm:$0xff] }
 0x429   :  { %4790 = vmatmul.mubr.f32.gmra.mrb[208].mxu0 %v9395_v59  ;;  %4987 = vmatmul.mubr.f32.gmra.mrb[208].mxu1 %v9353_v12 }
 0x42a   :  { %6562 = vmatprep.mubr.msk.f32.mxu0 %vm4108_vm2, %v9410_v26  ;;  %6584 = vmatprep.mubr.msk.f32.mxu1 %vm4108_vm2, %v9368_v10  ;;  %v9689_v10 = vpop.permute.xlu1 %5286 }
 0x42d   :  { %4796 = vmatmul.mubr.f32.gmra.mrb[210].mxu0 %v10386_v13  ;;  %4993 = vmatmul.mubr.f32.gmra.mrb[210].mxu1 %v9375_v53  ;;  %v10390_v53 = vld [vmem:[#allocation11_spill] sm:$0xff] }
 0x42e   :  { %6563 = vmatprep.mubr.msk.f32.mxu0 %vm4108_vm2, %v10387_v45  ;;  %6585 = vmatprep.mubr.msk.f32.mxu1 %vm4108_vm2, %v9382_v5  ;;  %v9696_v24 = vpop.permute.xlu1 %5291 }
 0x431   :  { %4802 = vmatmul.mubr.f32.gmra.mrb[212].mxu0 %v10388_v42  ;;  %4999 = vmatmul.mubr.f32.gmra.mrb[212].mxu1 %v9395_v59 }
 0x432   :  { %6028 = vmatprep.mubr.f32.mxu0 %v5938_v9  ;;  %6586 = vmatprep.mubr.msk.f32.mxu1 %vm4108_vm2, %v9410_v26 }
 0x435   :  { %5005 = vmatmul.mubr.f32.gmra.mrb[214].mxu1 %v10386_v13 }
 0x436   :  { %6587 = vmatprep.mubr.msk.f32.mxu1 %vm4108_vm2, %v10387_v45 }
 0x438   :  { %v4247_v12 = vpop.f32.mrb[118].mxu0 }
 0x439   :  { %v4248_v5 = vadd.f32 %v4247_v12, %v10390_v53  ;;  %v4249_v48 = vpop.f32.mrb[119].mxu0  ;;  %5011 = vmatmul.mubr.f32.gmra.mrb[216].mxu1 %v10388_v42 }
 0x43a   :  { %v4250_v59 = vadd.f32 %v4249_v48, %v10390_v53 }
 0x43b   :  { %v5017_v8 = vmax.f32 %v4248_v5, 0.0 }
 0x43c   :  { %v4253_v57 = vpop.f32.mrb[120].mxu0  ;;  %v5018_v20 = vmax.f32 %v4250_v59, 0.0 }
 0x43d   :  { %v4254_v26 = vadd.f32 %v4253_v57, %v9557_v35  ;;  %v4255_v40 = vpop.f32.mrb[121].mxu0  ;;  %v5354_v2 = vmul.f32 %v10391_v37, %v5017_v8 }
 0x43e   :  { %v4256_v60 = vadd.f32 %v4255_v40, %v9557_v35  ;;  %v5355_v7 = vmul.f32 %v10391_v37, %v5018_v20  ;;  %v9712_v40 = vpop.permute.xlu1 %5296 }
 0x43f   :  { %v5025_v39 = vmax.f32 %v4254_v26, 0.0 }
 0x440   :  { %v5026_v32 = vmax.f32 %v4256_v60, 0.0  ;;  %v4259_v23 = vpop.f32.mrb[122].mxu0  ;;  %v4456_v17 = vpop.f32.mrb[122].mxu1 }
 0x441   :  { %v5362_v19 = vmul.f32 %v9583_v49, %v5025_v39  ;;  %v4260_v36 = vadd.f32 %v4259_v23, %v10392_v62  ;;  %v4457_v29 = vadd.f32 %v4456_v17, %v10390_v53  ;;  %v4261_v63 = vpop.f32.mrb[123].mxu0  ;;  %v4458_v6 = vpop.f32.mrb[123].mxu1 }
 0x442   :  { %v5363_v61 = vmul.f32 %v9583_v49, %v5026_v32  ;;  %v4262_v4 = vadd.f32 %v4261_v63, %v10392_v62  ;;  %v4459_v50 = vadd.f32 %v4458_v6, %v10390_v53 }
 0x443   :  { %v5546_v15 = vadd.f32 %v5362_v19, %v5354_v2  ;;  %v5033_v30 = vmax.f32 %v4260_v36, 0.0  ;;  %v5019_v3 = vmax.f32 %v4457_v29, 0.0 }
 0x444   :  { %v5575_v47 = vadd.f32 %v5363_v61, %v5355_v7  ;;  %v5034_v52 = vmax.f32 %v4262_v4, 0.0  ;;  %v5020_v13 = vmax.f32 %v4459_v50, 0.0  ;;  %v4265_v45 = vpop.f32.mrb[124].mxu0  ;;  %v4462_v9 = vpop.f32.mrb[124].mxu1  ;;  %v10393_v7 = vld [vmem:[#allocation14_spill] sm:$0xff] }
 0x445   :  { %v5370_v42 = vmul.f32 %v9593_v55, %v5033_v30  ;;  %v4266_v12 = vadd.f32 %v4265_v45, %v9567_v51  ;;  %v4463_v5 = vadd.f32 %v4462_v9, %v9557_v35  ;;  %v4267_v48 = vpop.f32.mrb[125].mxu0  ;;  %v4464_v59 = vpop.f32.mrb[125].mxu1  ;;  %v5356_v60 = vmul.f32 %v10391_v37, %v5019_v3 }
 0x446   :  { %v5371_v57 = vmul.f32 %v9593_v55, %v5034_v52  ;;  %v4268_v8 = vadd.f32 %v4267_v48, %v9567_v51  ;;  %v4465_v26 = vadd.f32 %v4464_v59, %v9557_v35  ;;  %v5357_v17 = vmul.f32 %v10391_v37, %v5020_v13 }
 0x447   :  { %v5547_v20 = vadd.f32 %v5546_v15, %v5370_v42  ;;  %v5041_v39 = vmax.f32 %v4266_v12, 0.0  ;;  %v5027_v32 = vmax.f32 %v4463_v5, 0.0 }
 0x448   :  { %v5576_v23 = vadd.f32 %v5575_v47, %v5371_v57  ;;  %v5042_v2 = vmax.f32 %v4268_v8, 0.0  ;;  %v5028_v19 = vmax.f32 %v4465_v26, 0.0  ;;  %v4271_v36 = vpop.f32.mrb[126].mxu0  ;;  %v4468_v29 = vpop.f32.mrb[126].mxu1 }
 0x449   :  { %v5378_v63 = vmul.f32 %v9609_v11, %v5041_v39  ;;  %v5364_v6 = vmul.f32 %v9583_v49, %v5027_v32  ;;  %v4272_v61 = vadd.f32 %v4271_v36, %v10393_v7  ;;  %v4469_v4 = vadd.f32 %v4468_v29, %v10392_v62  ;;  %v4273_v50 = vpop.f32.mrb[127].mxu0  ;;  %v4470_v15 = vpop.f32.mrb[127].mxu1  ;;  %v10394_v32 = vld [vmem:[#allocation15_spill] sm:$0xff] }
 0x44a   :  { %v5379_v30 = vmul.f32 %v9609_v11, %v5042_v2  ;;  %v5365_v3 = vmul.f32 %v9583_v49, %v5028_v19  ;;  %v4274_v47 = vadd.f32 %v4273_v50, %v10393_v7  ;;  %v4471_v52 = vadd.f32 %v4470_v15, %v10392_v62 }
 0x44b   :  { %v5548_v13 = vadd.f32 %v5547_v20, %v5378_v63  ;;  %v5604_v45 = vadd.f32 %v5364_v6, %v5356_v60  ;;  %v5049_v9 = vmax.f32 %v4272_v61, 0.0  ;;  %v5035_v42 = vmax.f32 %v4469_v4, 0.0  ;;  %v9732_v63 = vpop.permute.xlu1 %5301 }
 0x44c   :  { %v5577_v12 = vadd.f32 %v5576_v23, %v5379_v30  ;;  %v5633_v5 = vadd.f32 %v5365_v3, %v5357_v17  ;;  %v5050_v48 = vmax.f32 %v4274_v47, 0.0  ;;  %v5036_v59 = vmax.f32 %v4471_v52, 0.0  ;;  %v4277_v57 = vpop.f32.mrb[128].mxu0  ;;  %v4474_v8 = vpop.f32.mrb[128].mxu1 }
 0x44d   :  { %v5386_v26 = vmul.f32 %v9619_v34, %v5049_v9  ;;  %v5372_v39 = vmul.f32 %v9593_v55, %v5035_v42  ;;  %v4278_v2 = vadd.f32 %v4277_v57, %v10394_v32  ;;  %v4475_v19 = vadd.f32 %v4474_v8, %v9567_v51  ;;  %v4279_v36 = vpop.f32.mrb[129].mxu0  ;;  %v4476_v29 = vpop.f32.mrb[129].mxu1 }
 0x44e   :  { %v5387_v20 = vmul.f32 %v9619_v34, %v5050_v48  ;;  %v5373_v60 = vmul.f32 %v9593_v55, %v5036_v59  ;;  %v4280_v23 = vadd.f32 %v4279_v36, %v10394_v32  ;;  %v4477_v17 = vadd.f32 %v4476_v29, %v9567_v51  ;;  %v10395_v59 = vld [vmem:[#allocation16_spill] sm:$0xff] }
 0x44f   :  { %v5549_v6 = vadd.f32 %v5548_v13, %v5386_v26  ;;  %v5605_v61 = vadd.f32 %v5604_v45, %v5372_v39  ;;  %v5057_v4 = vmax.f32 %v4278_v2, 0.0  ;;  %v5043_v50 = vmax.f32 %v4475_v19, 0.0 }
 0x450   :  { %v5578_v15 = vadd.f32 %v5577_v12, %v5387_v20  ;;  %v5634_v30 = vadd.f32 %v5633_v5, %v5373_v60  ;;  %v5058_v3 = vmax.f32 %v4280_v23, 0.0  ;;  %v5044_v47 = vmax.f32 %v4477_v17, 0.0  ;;  %v4283_v52 = vpop.f32.mrb[130].mxu0  ;;  %v4480_v9 = vpop.f32.mrb[130].mxu1 }
 0x451   :  { %v5394_v42 = vmul.f32 %v9633_v16, %v5057_v4  ;;  %v5380_v48 = vmul.f32 %v9609_v11, %v5043_v50  ;;  %v4284_v57 = vadd.f32 %v4283_v52, %v10395_v59  ;;  %v4481_v8 = vadd.f32 %v4480_v9, %v10393_v7  ;;  %v4285_v36 = vpop.f32.mrb[131].mxu0  ;;  %v4482_v29 = vpop.f32.mrb[131].mxu1  ;;  %v10396_v9 = vld [vmem:[#allocation17_spill] sm:$0xff] }
 0x452   :  { %v5395_v13 = vmul.f32 %v9633_v16, %v5058_v3  ;;  %v5381_v45 = vmul.f32 %v9609_v11, %v5044_v47  ;;  %v4286_v12 = vadd.f32 %v4285_v36, %v10395_v59  ;;  %v4483_v5 = vadd.f32 %v4482_v29, %v10393_v7 }
 0x453   :  { %v5550_v26 = vadd.f32 %v5549_v6, %v5394_v42  ;;  %v5606_v39 = vadd.f32 %v5605_v61, %v5380_v48  ;;  %v5065_v2 = vmax.f32 %v4284_v57, 0.0  ;;  %v5051_v19 = vmax.f32 %v4481_v8, 0.0  ;;  %v9750_v42 = vpop.permute.xlu1 %5306 }
 0x454   :  { %v5579_v20 = vadd.f32 %v5578_v15, %v5395_v13  ;;  %v5635_v60 = vadd.f32 %v5634_v30, %v5381_v45  ;;  %v5066_v23 = vmax.f32 %v4286_v12, 0.0  ;;  %v5052_v17 = vmax.f32 %v4483_v5, 0.0  ;;  %v4289_v4 = vpop.f32.mrb[132].mxu0  ;;  %v4486_v50 = vpop.f32.mrb[132].mxu1 }
 0x455   :  { %v5402_v52 = vmul.f32 %v9641_v33, %v5065_v2  ;;  %v5388_v3 = vmul.f32 %v9619_v34, %v5051_v19  ;;  %v4290_v47 = vadd.f32 %v4289_v4, %v10396_v9  ;;  %v4487_v36 = vadd.f32 %v4486_v50, %v10394_v32  ;;  %v4291_v27 = vpop.f32.mrb[133].mxu0  ;;  %v4488_v29 = vpop.f32.mrb[133].mxu1  ;;  %v10397_v50 = vld [vmem:[#allocation18_spill] sm:$0xff] }
 0x456   :  { %v5403_v6 = vmul.f32 %v9641_v33, %v5066_v23  ;;  %v5389_v61 = vmul.f32 %v9619_v34, %v5052_v17  ;;  %v4292_v15 = vadd.f32 %v4291_v27, %v10396_v9  ;;  %v4489_v30 = vadd.f32 %v4488_v29, %v10394_v32 }
 0x457   :  { %v5551_v48 = vadd.f32 %v5550_v26, %v5402_v52  ;;  %v5607_v57 = vadd.f32 %v5606_v39, %v5388_v3  ;;  %v5073_v8 = vmax.f32 %v4290_v47, 0.0  ;;  %v5059_v13 = vmax.f32 %v4487_v36, 0.0 }
 0x458   :  { %v5580_v45 = vadd.f32 %v5579_v20, %v5403_v6  ;;  %v5636_v12 = vadd.f32 %v5635_v60, %v5389_v61  ;;  %v5074_v5 = vmax.f32 %v4292_v15, 0.0  ;;  %v5060_v2 = vmax.f32 %v4489_v30, 0.0  ;;  %v4295_v19 = vpop.f32.mrb[134].mxu0  ;;  %v4492_v4 = vpop.f32.mrb[134].mxu1 }
 0x459   :  { %v5410_v23 = vmul.f32 %v9656_v14, %v5073_v8  ;;  %v5396_v17 = vmul.f32 %v9633_v16, %v5059_v13  ;;  %v4296_v27 = vadd.f32 %v4295_v19, %v10397_v50  ;;  %v4493_v29 = vadd.f32 %v4492_v4, %v10395_v59  ;;  %v4297_v31 = vpop.f32.mrb[135].mxu0  ;;  %v4494_v32 = vpop.f32.mrb[135].mxu1  ;;  %v10398_v4 = vld [vmem:[#allocation19_spill] sm:$0xff] }
 0x45a   :  { %v5411_v26 = vmul.f32 %v9656_v14, %v5074_v5  ;;  %v5397_v39 = vmul.f32 %v9633_v16, %v5060_v2  ;;  %v4298_v20 = vadd.f32 %v4297_v31, %v10397_v50  ;;  %v4495_v60 = vadd.f32 %v4494_v32, %v10395_v59 }
 0x45b   :  { %v5552_v52 = vadd.f32 %v5551_v48, %v5410_v23  ;;  %v5608_v3 = vadd.f32 %v5607_v57, %v5396_v17  ;;  %v5081_v47 = vmax.f32 %v4296_v27, 0.0  ;;  %v5067_v36 = vmax.f32 %v4493_v29, 0.0  ;;  %v9768_v23 = vpop.permute.xlu1 %5311 }
 0x45c   :  { %v5581_v6 = vadd.f32 %v5580_v45, %v5411_v26  ;;  %v5637_v61 = vadd.f32 %v5636_v12, %v5397_v39  ;;  %v5082_v15 = vmax.f32 %v4298_v20, 0.0  ;;  %v5068_v30 = vmax.f32 %v4495_v60, 0.0  ;;  %v4301_v8 = vpop.f32.mrb[136].mxu0  ;;  %v4498_v13 = vpop.f32.mrb[136].mxu1 }
 0x45d   :  { %v5418_v19 = vmul.f32 %v9670_v44, %v5081_v47  ;;  %v5404_v5 = vmul.f32 %v9641_v33, %v5067_v36  ;;  %v4302_v2 = vadd.f32 %v4301_v8, %v10398_v4  ;;  %v4499_v31 = vadd.f32 %v4498_v13, %v10396_v9  ;;  %v4303_v16 = vpop.f32.mrb[137].mxu0  ;;  %v4500_v32 = vpop.f32.mrb[137].mxu1  ;;  %v10399_v13 = vld [vmem:[#allocation20_spill] sm:$0xff] }
 0x45e   :  { %v5419_v48 = vmul.f32 %v9670_v44, %v5082_v15  ;;  %v5405_v57 = vmul.f32 %v9641_v33, %v5068_v30  ;;  %v4304_v45 = vadd.f32 %v4303_v16, %v10398_v4  ;;  %v4501_v12 = vadd.f32 %v4500_v32, %v10396_v9 }
 0x45f   :  { %v5553_v17 = vadd.f32 %v5552_v52, %v5418_v19  ;;  %v5609_v27 = vadd.f32 %v5608_v3, %v5404_v5  ;;  %v5089_v29 = vmax.f32 %v4302_v2, 0.0  ;;  %v5075_v26 = vmax.f32 %v4499_v31, 0.0 }
 0x460   :  { %v5582_v39 = vadd.f32 %v5581_v6, %v5419_v48  ;;  %v5638_v20 = vadd.f32 %v5637_v61, %v5405_v57  ;;  %v5090_v60 = vmax.f32 %v4304_v45, 0.0  ;;  %v5076_v47 = vmax.f32 %v4501_v12, 0.0  ;;  %v4307_v36 = vpop.f32.mrb[138].mxu0  ;;  %v4504_v8 = vpop.f32.mrb[138].mxu1 }
 0x461   :  { %v5426_v15 = vmul.f32 %v9684_v41, %v5089_v29  ;;  %v5412_v30 = vmul.f32 %v9656_v14, %v5075_v26  ;;  %v4308_v16 = vadd.f32 %v4307_v36, %v10399_v13  ;;  %v4505_v32 = vadd.f32 %v4504_v8, %v10397_v50  ;;  %v4309_v9 = vpop.f32.mrb[139].mxu0  ;;  %v4506_v33 = vpop.f32.mrb[139].mxu1  ;;  %v10400_v8 = vld [vmem:[#allocation21_spill] sm:$0xff] }
 0x462   :  { %v5427_v52 = vmul.f32 %v9684_v41, %v5090_v60  ;;  %v5413_v3 = vmul.f32 %v9656_v14, %v5076_v47  ;;  %v4310_v6 = vadd.f32 %v4309_v9, %v10399_v13  ;;  %v4507_v61 = vadd.f32 %v4506_v33, %v10397_v50 }
 0x463   :  { %v5554_v19 = vadd.f32 %v5553_v17, %v5426_v15  ;;  %v5610_v5 = vadd.f32 %v5609_v27, %v5412_v30  ;;  %v5097_v2 = vmax.f32 %v4308_v16, 0.0  ;;  %v5083_v31 = vmax.f32 %v4505_v32, 0.0  ;;  %v9786_v15 = vpop.permute.xlu1 %5316 }
 0x464   :  { %v5583_v48 = vadd.f32 %v5582_v39, %v5427_v52  ;;  %v5639_v57 = vadd.f32 %v5638_v20, %v5413_v3  ;;  %v5098_v45 = vmax.f32 %v4310_v6, 0.0  ;;  %v5084_v12 = vmax.f32 %v4507_v61, 0.0  ;;  %v4313_v29 = vpop.f32.mrb[140].mxu0  ;;  %v4510_v26 = vpop.f32.mrb[140].mxu1 }
 0x465   :  { %v5434_v36 = vmul.f32 %v9689_v10, %v5097_v2  ;;  %v5420_v60 = vmul.f32 %v9670_v44, %v5083_v31  ;;  %v4314_v47 = vadd.f32 %v4313_v29, %v10400_v8  ;;  %v4511_v9 = vadd.f32 %v4510_v26, %v10398_v4  ;;  %v4315_v14 = vpop.f32.mrb[141].mxu0  ;;  %v4512_v33 = vpop.f32.mrb[141].mxu1  ;;  %v10401_v26 = vld [vmem:[#allocation25_spill] sm:$0xff] }
 0x466   :  { %v5435_v17 = vmul.f32 %v9689_v10, %v5098_v45  ;;  %v5421_v27 = vmul.f32 %v9670_v44, %v5084_v12  ;;  %v4316_v39 = vadd.f32 %v4315_v14, %v10400_v8  ;;  %v4513_v20 = vadd.f32 %v4512_v33, %v10398_v4 }
 0x467   :  { %v5555_v30 = vadd.f32 %v5554_v19, %v5434_v36  ;;  %v5611_v16 = vadd.f32 %v5610_v5, %v5420_v60  ;;  %v5105_v32 = vmax.f32 %v4314_v47, 0.0  ;;  %v5091_v52 = vmax.f32 %v4511_v9, 0.0 }
 0x468   :  { %v5584_v3 = vadd.f32 %v5583_v48, %v5435_v17  ;;  %v5640_v6 = vadd.f32 %v5639_v57, %v5421_v27  ;;  %v5106_v61 = vmax.f32 %v4316_v39, 0.0  ;;  %v5092_v2 = vmax.f32 %v4513_v20, 0.0  ;;  %v4319_v31 = vpop.f32.mrb[142].mxu0  ;;  %v4516_v29 = vpop.f32.mrb[142].mxu1 }
 0x469   :  { %v5442_v45 = vmul.f32 %v9696_v24, %v5105_v32  ;;  %v5428_v12 = vmul.f32 %v9684_v41, %v5091_v52  ;;  %v4320_v14 = vadd.f32 %v4319_v31, %v10401_v26  ;;  %v4517_v33 = vadd.f32 %v4516_v29, %v10399_v13  ;;  %v4321_v4 = vpop.f32.mrb[143].mxu0  ;;  %v4518_v44 = vpop.f32.mrb[143].mxu1  ;;  %v10402_v29 = vld [vmem:[#allocation26_spill] sm:$0xff] }
 0x46a   :  { %v5443_v19 = vmul.f32 %v9696_v24, %v5106_v61  ;;  %v5429_v5 = vmul.f32 %v9684_v41, %v5092_v2  ;;  %v4322_v48 = vadd.f32 %v4321_v4, %v10401_v26  ;;  %v4519_v57 = vadd.f32 %v4518_v44, %v10399_v13 }
 0x46b   :  { %v5556_v36 = vadd.f32 %v5555_v30, %v5442_v45  ;;  %v5612_v60 = vadd.f32 %v5611_v16, %v5428_v12  ;;  %v5113_v47 = vmax.f32 %v4320_v14, 0.0  ;;  %v5099_v9 = vmax.f32 %v4517_v33, 0.0  ;;  %v9804_v45 = vpop.permute.xlu1 %5321 }
 0x46c   :  { %v5585_v17 = vadd.f32 %v5584_v3, %v5443_v19  ;;  %v5641_v27 = vadd.f32 %v5640_v6, %v5429_v5  ;;  %v5114_v39 = vmax.f32 %v4322_v48, 0.0  ;;  %v5100_v20 = vmax.f32 %v4519_v57, 0.0  ;;  %v4325_v32 = vpop.f32.mrb[144].mxu0  ;;  %v4522_v52 = vpop.f32.mrb[144].mxu1 }
 0x46d   :  { %v5450_v31 = vmul.f32 %v9712_v40, %v5113_v47  ;;  %v5436_v61 = vmul.f32 %v9689_v10, %v5099_v9  ;;  %v4326_v2 = vadd.f32 %v4325_v32, %v10402_v29  ;;  %v4523_v4 = vadd.f32 %v4522_v52, %v10400_v8  ;;  %v4327_v41 = vpop.f32.mrb[145].mxu0  ;;  %v4524_v44 = vpop.f32.mrb[145].mxu1 }
 0x46e   :  { %v5451_v30 = vmul.f32 %v9712_v40, %v5114_v39  ;;  %v5437_v16 = vmul.f32 %v9689_v10, %v5100_v20  ;;  %v4328_v3 = vadd.f32 %v4327_v41, %v10402_v29  ;;  %v4525_v6 = vadd.f32 %v4524_v44, %v10400_v8 }
 0x46f   :  { %v5557_v12 = vadd.f32 %v5556_v36, %v5450_v31  ;;  %v5613_v14 = vadd.f32 %v5612_v60, %v5436_v61  ;;  %v5121_v33 = vmax.f32 %v4326_v2, 0.0  ;;  %v5107_v19 = vmax.f32 %v4523_v4, 0.0 }
 0x470   :  { %v5586_v5 = vadd.f32 %v5585_v17, %v5451_v30  ;;  %v5642_v48 = vadd.f32 %v5641_v27, %v5437_v16  ;;  %v5122_v57 = vmax.f32 %v4328_v3, 0.0  ;;  %v5108_v47 = vmax.f32 %v4525_v6, 0.0  ;;  %v4331_v9 = vpop.f32.mrb[146].mxu0  ;;  %v4528_v32 = vpop.f32.mrb[146].mxu1 }
 0x471   :  { %v5458_v39 = vmul.f32 %v9732_v63, %v5121_v33  ;;  %v5444_v20 = vmul.f32 %v9696_v24, %v5107_v19  ;;  %v4332_v41 = vadd.f32 %v4331_v9, %v9474_v38  ;;  %v4529_v52 = vadd.f32 %v4528_v32, %v10401_v26  ;;  %v4333_v44 = vpop.f32.mrb[147].mxu0  ;;  %v4530_v8 = vpop.f32.mrb[147].mxu1 }
 0x472   :  { %v5459_v36 = vmul.f32 %v9732_v63, %v5122_v57  ;;  %v5445_v60 = vmul.f32 %v9696_v24, %v5108_v47  ;;  %v4334_v17 = vadd.f32 %v4333_v44, %v9474_v38  ;;  %v4531_v27 = vadd.f32 %v4530_v8, %v10401_v26 }
 0x473   :  { %v5558_v31 = vadd.f32 %v5557_v12, %v5458_v39  ;;  %v5614_v61 = vadd.f32 %v5613_v14, %v5444_v20  ;;  %v5129_v2 = vmax.f32 %v4332_v41, 0.0  ;;  %v5115_v4 = vmax.f32 %v4529_v52, 0.0  ;;  %v9822_v39 = vpop.permute.xlu1 %5326 }
 0x474   :  { %v5587_v30 = vadd.f32 %v5586_v5, %v5459_v36  ;;  %v5643_v16 = vadd.f32 %v5642_v48, %v5445_v60  ;;  %v5130_v3 = vmax.f32 %v4334_v17, 0.0  ;;  %v5116_v6 = vmax.f32 %v4531_v27, 0.0  ;;  %v4337_v33 = vpop.f32.mrb[148].mxu0  ;;  %v4534_v19 = vpop.f32.mrb[148].mxu1 }
 0x475   :  { %v5466_v9 = vmul.f32 %v9750_v42, %v5129_v2  ;;  %v5452_v57 = vmul.f32 %v9712_v40, %v5115_v4  ;;  %v4338_v47 = vadd.f32 %v4337_v33, %v9480_v25  ;;  %v4535_v32 = vadd.f32 %v4534_v19, %v10402_v29  ;;  %v4339_v44 = vpop.f32.mrb[149].mxu0  ;;  %v4536_v8 = vpop.f32.mrb[149].mxu1 }
 0x476   :  { %v5467_v12 = vmul.f32 %v9750_v42, %v5130_v3  ;;  %v5453_v14 = vmul.f32 %v9712_v40, %v5116_v6  ;;  %v4340_v5 = vadd.f32 %v4339_v44, %v9480_v25  ;;  %v4537_v48 = vadd.f32 %v4536_v8, %v10402_v29 }
 0x477   :  { %v5559_v20 = vadd.f32 %v5558_v31, %v5466_v9  ;;  %v5615_v41 = vadd.f32 %v5614_v61, %v5452_v57  ;;  %v5137_v52 = vmax.f32 %v4338_v47, 0.0  ;;  %v5123_v36 = vmax.f32 %v4535_v32, 0.0 }
 0x478   :  { %v5588_v60 = vadd.f32 %v5587_v30, %v5467_v12  ;;  %v5644_v17 = vadd.f32 %v5643_v16, %v5453_v14  ;;  %v5138_v27 = vmax.f32 %v4340_v5, 0.0  ;;  %v5124_v2 = vmax.f32 %v4537_v48, 0.0  ;;  %v4343_v4 = vpop.f32.mrb[150].mxu0  ;;  %v4540_v33 = vpop.f32.mrb[150].mxu1 }
 0x479   :  { %v5474_v3 = vmul.f32 %v9768_v23, %v5137_v52  ;;  %v5460_v6 = vmul.f32 %v9732_v63, %v5123_v36  ;;  %v4344_v19 = vadd.f32 %v4343_v4, %v9492_v1  ;;  %v4541_v44 = vadd.f32 %v4540_v33, %v9474_v38  ;;  %v4345_v8 = vpop.f32.mrb[151].mxu0  ;;  %v4542_v29 = vpop.f32.mrb[151].mxu1 }
 0x47a   :  { %v5475_v31 = vmul.f32 %v9768_v23, %v5138_v27  ;;  %v5461_v61 = vmul.f32 %v9732_v63, %v5124_v2  ;;  %v4346_v30 = vadd.f32 %v4345_v8, %v9492_v1  ;;  %v4543_v16 = vadd.f32 %v4542_v29, %v9474_v38 }
 0x47b   :  { %v5560_v9 = vadd.f32 %v5559_v20, %v5474_v3  ;;  %v5616_v57 = vadd.f32 %v5615_v41, %v5460_v6  ;;  %v5145_v47 = vmax.f32 %v4344_v19, 0.0  ;;  %v5131_v32 = vmax.f32 %v4541_v44, 0.0  ;;  %v9840_v3 = vpop.permute.xlu1 %5331 }
 0x47c   :  { %v5589_v12 = vadd.f32 %v5588_v60, %v5475_v31  ;;  %v5645_v14 = vadd.f32 %v5644_v17, %v5461_v61  ;;  %v5146_v5 = vmax.f32 %v4346_v30, 0.0  ;;  %v5132_v48 = vmax.f32 %v4543_v16, 0.0  ;;  %v4349_v52 = vpop.f32.mrb[152].mxu0  ;;  %v4546_v36 = vpop.f32.mrb[152].mxu1 }
 0x47d   :  { %v5482_v4 = vmul.f32 %v9786_v15, %v5145_v47  ;;  %v5468_v27 = vmul.f32 %v9750_v42, %v5131_v32  ;;  %v4350_v2 = vadd.f32 %v4349_v52, %v9506_v58  ;;  %v4547_v33 = vadd.f32 %v4546_v36, %v9480_v25  ;;  %v4351_v8 = vpop.f32.mrb[153].mxu0  ;;  %v4548_v29 = vpop.f32.mrb[153].mxu1 }
 0x47e   :  { %v5483_v20 = vmul.f32 %v9786_v15, %v5146_v5  ;;  %v5469_v41 = vmul.f32 %v9750_v42, %v5132_v48  ;;  %v4352_v60 = vadd.f32 %v4351_v8, %v9506_v58  ;;  %v4549_v17 = vadd.f32 %v4548_v29, %v9480_v25 }
 0x47f   :  { %v5561_v6 = vadd.f32 %v5560_v9, %v5482_v4  ;;  %v5617_v19 = vadd.f32 %v5616_v57, %v5468_v27  ;;  %v5153_v44 = vmax.f32 %v4350_v2, 0.0  ;;  %v5139_v31 = vmax.f32 %v4547_v33, 0.0 }
 0x480   :  { %v5590_v61 = vadd.f32 %v5589_v12, %v5483_v20  ;;  %v5646_v30 = vadd.f32 %v5645_v14, %v5469_v41  ;;  %v5154_v16 = vmax.f32 %v4352_v60, 0.0  ;;  %v5140_v47 = vmax.f32 %v4549_v17, 0.0  ;;  %v4355_v32 = vpop.f32.mrb[154].mxu0  ;;  %v4552_v52 = vpop.f32.mrb[154].mxu1 }
 0x481   :  { %v5490_v5 = vmul.f32 %v9804_v45, %v5153_v44  ;;  %v5476_v48 = vmul.f32 %v9768_v23, %v5139_v31  ;;  %v4356_v36 = vadd.f32 %v4355_v32, %v9519_v22  ;;  %v4553_v8 = vadd.f32 %v4552_v52, %v9492_v1  ;;  %v4357_v29 = vpop.f32.mrb[155].mxu0  ;;  %v4554_v25 = vpop.f32.mrb[155].mxu1 }
 0x482   :  { %v5491_v9 = vmul.f32 %v9804_v45, %v5154_v16  ;;  %v5477_v57 = vmul.f32 %v9768_v23, %v5140_v47  ;;  %v4358_v12 = vadd.f32 %v4357_v29, %v9519_v22  ;;  %v4555_v14 = vadd.f32 %v4554_v25, %v9492_v1 }
 0x483   :  { %v5562_v4 = vadd.f32 %v5561_v6, %v5490_v5  ;;  %v5618_v27 = vadd.f32 %v5617_v19, %v5476_v48  ;;  %v5161_v2 = vmax.f32 %v4356_v36, 0.0  ;;  %v5147_v33 = vmax.f32 %v4553_v8, 0.0  ;;  %v9858_v5 = vpop.permute.xlu1 %5336 }
 0x484   :  { %v5591_v20 = vadd.f32 %v5590_v61, %v5491_v9  ;;  %v5647_v41 = vadd.f32 %v5646_v30, %v5477_v57  ;;  %v5162_v60 = vmax.f32 %v4358_v12, 0.0  ;;  %v5148_v17 = vmax.f32 %v4555_v14, 0.0  ;;  %v4361_v44 = vpop.f32.mrb[156].mxu0  ;;  %v4558_v31 = vpop.f32.mrb[156].mxu1 }
 0x485   :  { %v5498_v32 = vmul.f32 %v9822_v39, %v5161_v2  ;;  %v5484_v16 = vmul.f32 %v9786_v15, %v5147_v33  ;;  %v4362_v47 = vadd.f32 %v4361_v44, %v9532_v54  ;;  %v4559_v52 = vadd.f32 %v4558_v31, %v9506_v58  ;;  %v4363_v29 = vpop.f32.mrb[157].mxu0  ;;  %v4560_v25 = vpop.f32.mrb[157].mxu1 }
 0x486   :  { %v5499_v6 = vmul.f32 %v9822_v39, %v5162_v60  ;;  %v5485_v19 = vmul.f32 %v9786_v15, %v5148_v17  ;;  %v4364_v61 = vadd.f32 %v4363_v29, %v9532_v54  ;;  %v4561_v30 = vadd.f32 %v4560_v25, %v9506_v58 }
 0x487   :  { %v5563_v48 = vadd.f32 %v5562_v4, %v5498_v32  ;;  %v5619_v36 = vadd.f32 %v5618_v27, %v5484_v16  ;;  %v5169_v8 = vmax.f32 %v4362_v47, 0.0  ;;  %v5155_v9 = vmax.f32 %v4559_v52, 0.0 }
 0x488   :  { %v5592_v57 = vadd.f32 %v5591_v20, %v5499_v6  ;;  %v5648_v12 = vadd.f32 %v5647_v41, %v5485_v19  ;;  %v5170_v14 = vmax.f32 %v4364_v61, 0.0  ;;  %v5156_v2 = vmax.f32 %v4561_v30, 0.0  ;;  %v4367_v33 = vpop.f32.mrb[158].mxu0  ;;  %v4564_v44 = vpop.f32.mrb[158].mxu1 }
 0x489   :  { %v5506_v60 = vmul.f32 %v9840_v3, %v5169_v8  ;;  %v5492_v17 = vmul.f32 %v9804_v45, %v5155_v9  ;;  %v4368_v31 = vadd.f32 %v4367_v33, %v9539_v18  ;;  %v4565_v29 = vadd.f32 %v4564_v44, %v9519_v22  ;;  %v4369_v25 = vpop.f32.mrb[159].mxu0  ;;  %v4566_v58 = vpop.f32.mrb[159].mxu1 }
 0x48a   :  { %v5507_v4 = vmul.f32 %v9840_v3, %v5170_v14  ;;  %v5493_v27 = vmul.f32 %v9804_v45, %v5156_v2  ;;  %v4370_v20 = vadd.f32 %v4369_v25, %v9539_v18  ;;  %v4567_v41 = vadd.f32 %v4566_v58, %v9519_v22 }
 0x48b   :  { %v5564_v32 = vadd.f32 %v5563_v48, %v5506_v60  ;;  %v5620_v16 = vadd.f32 %v5619_v36, %v5492_v17  ;;  %v5177_v47 = vmax.f32 %v4368_v31, 0.0  ;;  %v5163_v52 = vmax.f32 %v4565_v29, 0.0  ;;  %v9876_v60 = vpop.permute.xlu1 %5341 }
 0x48c   :  { %v5593_v6 = vadd.f32 %v5592_v57, %v5507_v4  ;;  %v5649_v19 = vadd.f32 %v5648_v12, %v5493_v27  ;;  %v5178_v61 = vmax.f32 %v4370_v20, 0.0  ;;  %v5164_v30 = vmax.f32 %v4567_v41, 0.0  ;;  %v4373_v8 = vpop.f32.mrb[160].mxu0  ;;  %v4570_v9 = vpop.f32.mrb[160].mxu1 }
 0x48d   :  { %v5514_v33 = vmul.f32 %v9858_v5, %v5177_v47  ;;  %v5500_v14 = vmul.f32 %v9822_v39, %v5163_v52  ;;  %v4374_v2 = vadd.f32 %v4373_v8, %v9559_v43  ;;  %v4571_v44 = vadd.f32 %v4570_v9, %v9532_v54  ;;  %v4375_v25 = vpop.f32.mrb[161].mxu0  ;;  %v4572_v58 = vpop.f32.mrb[161].mxu1 }
 0x48e   :  { %v5515_v48 = vmul.f32 %v9858_v5, %v5178_v61  ;;  %v5501_v36 = vmul.f32 %v9822_v39, %v5164_v30  ;;  %v4376_v57 = vadd.f32 %v4375_v25, %v9559_v43  ;;  %v4573_v12 = vadd.f32 %v4572_v58, %v9532_v54 }
 0x48f   :  { %v5565_v17 = vadd.f32 %v5564_v32, %v5514_v33  ;;  %v5621_v31 = vadd.f32 %v5620_v16, %v5500_v14  ;;  %v5185_v29 = vmax.f32 %v4374_v2, 0.0  ;;  %v5171_v4 = vmax.f32 %v4571_v44, 0.0 }
 0x490   :  { %v5594_v27 = vadd.f32 %v5593_v6, %v5515_v48  ;;  %v5650_v20 = vadd.f32 %v5649_v19, %v5501_v36  ;;  %v5186_v41 = vmax.f32 %v4376_v57, 0.0  ;;  %v5172_v47 = vmax.f32 %v4573_v12, 0.0  ;;  %v4379_v52 = vpop.f32.mrb[162].mxu0  ;;  %v4576_v8 = vpop.f32.mrb[162].mxu1 }
 0x491   :  { %v5522_v61 = vmul.f32 %v9876_v60, %v5185_v29  ;;  %v5508_v30 = vmul.f32 %v9840_v3, %v5171_v4  ;;  %v4380_v9 = vadd.f32 %v4379_v52, %v9571_v21  ;;  %v4577_v25 = vadd.f32 %v4576_v8, %v9539_v18  ;;  %v4381_v58 = vpop.f32.mrb[163].mxu0  ;;  %v4578_v54 = vpop.f32.mrb[163].mxu1 }
 0x492   :  { %v5523_v32 = vmul.f32 %v9876_v60, %v5186_v41  ;;  %v5509_v16 = vmul.f32 %v9840_v3, %v5172_v47  ;;  %v4382_v6 = vadd.f32 %v4381_v58, %v9571_v21  ;;  %v4579_v19 = vadd.f32 %v4578_v54, %v9539_v18 }
 0x493   :  { %v5566_v33 = vadd.f32 %v5565_v17, %v5522_v61  ;;  %v5622_v14 = vadd.f32 %v5621_v31, %v5508_v30  ;;  %v5193_v2 = vmax.f32 %v4380_v9, 0.0  ;;  %v5179_v44 = vmax.f32 %v4577_v25, 0.0 }
 0x494   :  { %v5595_v48 = vadd.f32 %v5594_v27, %v5523_v32  ;;  %v5651_v36 = vadd.f32 %v5650_v20, %v5509_v16  ;;  %v5194_v57 = vmax.f32 %v4382_v6, 0.0  ;;  %v5180_v12 = vmax.f32 %v4579_v19, 0.0  ;;  %v4385_v29 = vpop.f32.mrb[164].mxu0  ;;  %v4582_v4 = vpop.f32.mrb[164].mxu1 }
 0x495   :  { %v5530_v52 = vmul.f32 %v9597_v0, %v5193_v2  ;;  %v5516_v41 = vmul.f32 %v9858_v5, %v5179_v44  ;;  %v4386_v47 = vadd.f32 %v4385_v29, %v9585_v46  ;;  %v4583_v8 = vadd.f32 %v4582_v4, %v9559_v43  ;;  %v4387_v58 = vpop.f32.mrb[165].mxu0  ;;  %v4584_v54 = vpop.f32.mrb[165].mxu1 }
 0x496   :  { %v5531_v17 = vmul.f32 %v9597_v0, %v5194_v57  ;;  %v5517_v31 = vmul.f32 %v9858_v5, %v5180_v12  ;;  %v4388_v27 = vadd.f32 %v4387_v58, %v9585_v46  ;;  %v4585_v20 = vadd.f32 %v4584_v54, %v9559_v43  ;;  %v9894_v32 = vpop.permute.xlu1 %5351 }
 0x497   :  { %v5567_v61 = vadd.f32 %v5566_v33, %v5530_v52  ;;  %v5623_v30 = vadd.f32 %v5622_v14, %v5516_v41  ;;  %v5201_v9 = vmax.f32 %v4386_v47, 0.0  ;;  %v5187_v25 = vmax.f32 %v4583_v8, 0.0 }
 0x498   :  { %v5596_v16 = vadd.f32 %v5595_v48, %v5531_v17  ;;  %v5652_v6 = vadd.f32 %v5651_v36, %v5517_v31  ;;  %v5202_v19 = vmax.f32 %v4388_v27, 0.0  ;;  %v5188_v2 = vmax.f32 %v4585_v20, 0.0  ;;  %v4588_v44 = vpop.f32.mrb[166].mxu1 }
 0x499   :  { %v5538_v29 = vmul.f32 %v9894_v32, %v5201_v9  ;;  %v5524_v57 = vmul.f32 %v9876_v60, %v5187_v25  ;;  %v4589_v12 = vadd.f32 %v4588_v44, %v9571_v21  ;;  %v4590_v4 = vpop.f32.mrb[167].mxu1 }
 0x49a   :  { %v5539_v58 = vmul.f32 %v9894_v32, %v5202_v19  ;;  %v5525_v33 = vmul.f32 %v9876_v60, %v5188_v2  ;;  %v4591_v14 = vadd.f32 %v4590_v4, %v9571_v21 }
 0x49b   :  { %v5568_v52 = vadd.f32 %v5567_v61, %v5538_v29  ;;  %v5624_v41 = vadd.f32 %v5623_v30, %v5524_v57  ;;  %v5195_v48 = vmax.f32 %v4589_v12, 0.0 }
 0x49c   :  { %v5597_v36 = vadd.f32 %v5596_v16, %v5539_v58  ;;  %v5653_v47 = vadd.f32 %v5652_v6, %v5525_v33  ;;  %v5196_v8 = vmax.f32 %v4591_v14, 0.0  ;;  %v4594_v54 = vpop.f32.mrb[168].mxu1 }
 0x49d   :  { %v5569_v17 = vrot.slane %v5568_v52, 4  ;;  %v5532_v31 = vmul.f32 %v9597_v0, %v5195_v48  ;;  %v4595_v27 = vadd.f32 %v4594_v54, %v9585_v46  ;;  %v4596_v20 = vpop.f32.mrb[169].mxu1 }
 0x49e   :  { %v5598_v9 = vrot.slane %v5597_v36, 4  ;;  %v5533_v25 = vmul.f32 %v9597_v0, %v5196_v8  ;;  %v4597_v19 = vadd.f32 %v4596_v20, %v9585_v46 }
 0x49f   :  { %v5570_v2 = vadd.f32 %v5569_v17, %v5568_v52  ;;  %v5625_v44 = vadd.f32 %v5624_v41, %v5532_v31  ;;  %v5203_v61 = vmax.f32 %v4595_v27, 0.0  ;;  %v10403_v52 = vsub.s32 0, %v8128_v28 }
 0x4a0   :  { %v5599_v30 = vadd.f32 %v5598_v9, %v5597_v36  ;;  %v5654_v29 = vadd.f32 %v5653_v47, %v5533_v25  ;;  %v5204_v16 = vmax.f32 %v4597_v19, 0.0  ;;  %v7470_v47 = vmov 1966171168  }
 0x4a1   :  { %v5571_v6 = vrot.slane %v5570_v2, 2  ;;  %v5540_v57 = vmul.f32 %v9894_v32, %v5203_v61  ;;  %v9911_v41 = vrot.slane %v9611_v56, %v10403_v52  ;;  %v5802_v17 = vunpack.c.l.s4 %v7470_v47 }
 0x4a2   :  { %v5600_v12 = vrot.slane %v5599_v30, 2  ;;  %v5541_v4 = vmul.f32 %v9894_v32, %v5204_v16 }
 0x4a3   :  { %v5572_v58 = vadd.f32 %v5571_v6, %v5570_v2  ;;  %v5626_v33 = vadd.f32 %v5625_v44, %v5540_v57  ;;  %v5803_v56 = vunpack.c.0.s8 %v5802_v17 }
 0x4a4   :  { %v5601_v14 = vadd.f32 %v5600_v12, %v5599_v30  ;;  %v5655_v48 = vadd.f32 %v5654_v29, %v5541_v4 }
 0x4a5   :  { %v5573_v54 = vrot.slane %v5572_v58, 1  ;;  %v5627_v8 = vrot.slane %v5626_v33, 4 }
 0x4a6   :  { %v5602_v0 = vrot.slane %v5601_v14, 1  ;;  %v5656_v20 = vrot.slane %v5655_v48, 4 }
 0x4a7   :  { %v5574_v36 = vadd.f32 %v5573_v54, %v5572_v58  ;;  %v5628_v31 = vadd.f32 %v5627_v8, %v5626_v33 }
 0x4a8   :  { %v5603_v27 = vadd.f32 %v5602_v0, %v5601_v14  ;;  %v5657_v9 = vadd.f32 %v5656_v20, %v5655_v48  ;;  %v4665_v25 = vpop.f32.mrb[166].mxu0  ;;  %v9920_v20 = vsub.s32 %v5803_v56, %v8128_v28 }
 0x4a9   :  { %v5787_v19 = vadd.f32 %v9911_v41, %v5574_v36  ;;  %v5629_v2 = vrot.slane %v5628_v31, 2  ;;  %v4666_v44 = vadd.f32 %v4665_v25, %v10390_v53  ;;  %v4667_v61 = vpop.f32.mrb[167].mxu0 }
 0x4aa   :  { %v5788_v30 = vadd.f32 %v9911_v41, %v5603_v27  ;;  %v5658_v29 = vrot.slane %v5657_v9, 2  ;;  %v4668_v16 = vadd.f32 %v4667_v61, %v10390_v53 }
 0x4ab   :  { %v5630_v6 = vadd.f32 %v5629_v2, %v5628_v31  ;;  %v5021_v4 = vmax.f32 %v4666_v44, 0.0 }
 0x4ac   :  { %v5799_v57 = vcombine.low %v5787_v19, %v5788_v30  ;;  %v5659_v12 = vadd.f32 %v5658_v29, %v5657_v9  ;;  %v5022_v58 = vmax.f32 %v4668_v16, 0.0  ;;  %v4671_v0 = vpop.f32.mrb[168].mxu0 }
 0x4ad   :  { %v5631_v33 = vrot.slane %v5630_v6, 1  ;;  %v4672_v14 = vadd.f32 %v4671_v0, %v9557_v35  ;;  %v4673_v48 = vpop.f32.mrb[169].mxu0  ;;  %v5358_v17 = vmul.f32 %v10391_v37, %v5021_v4  ;;  %v10404_v4 = vlaneseq }
 0x4ae   :  { %v5660_v54 = vrot.slane %v5659_v12, 1  ;;  %v4674_v8 = vadd.f32 %v4673_v48, %v9557_v35  ;;  %v5359_v31 = vmul.f32 %v10391_v37, %v5022_v58 }
 0x4af   :  { %v5632_v52 = vadd.f32 %v5631_v33, %v5630_v6  ;;  %v5029_v36 = vmax.f32 %v4672_v14, 0.0  ;;  %vm9933_vm3 = vcmp.lt.s32.totalorder %v10404_v4, 512 }
 0x4b0   :  { %v5661_v47 = vadd.f32 %v5660_v54, %v5659_v12  ;;  %v5030_v27 = vmax.f32 %v4674_v8, 0.0  ;;  %v4677_v9 = vpop.f32.mrb[170].mxu0  ;;  %v4874_v25 = vpop.f32.mrb[170].mxu1 }
 0x4b1   :  { %v5789_v19 = vadd.f32 %v9911_v41, %v5632_v52  ;;  %v5366_v2 = vmul.f32 %v9583_v49, %v5029_v36  ;;  %v4678_v44 = vadd.f32 %v4677_v9, %v10392_v62  ;;  %v4875_v61 = vadd.f32 %v4874_v25, %v10390_v53  ;;  %v4679_v30 = vpop.f32.mrb[171].mxu0  ;;  %v4876_v29 = vpop.f32.mrb[171].mxu1 }
 0x4b2   :  { %v5790_v16 = vadd.f32 %v9911_v41, %v5661_v47  ;;  %v5367_v56 = vmul.f32 %v9583_v49, %v5030_v27  ;;  %v4680_v6 = vadd.f32 %v4679_v30, %v10392_v62  ;;  %v4877_v12 = vadd.f32 %v4876_v29, %v10390_v53 }
 0x4b3   :  { %v5662_v0 = vadd.f32 %v5366_v2, %v5358_v17  ;;  %v5037_v33 = vmax.f32 %v4678_v44, 0.0  ;;  %v5023_v14 = vmax.f32 %v4875_v61, 0.0  ;;  %v5807_v27 = vrot.slane %v5799_v57, %v9920_v20 }
 0x4b4   :  { %v5800_v48 = vcombine.low %v5789_v19, %v5790_v16  ;;  %v5691_v54 = vadd.f32 %v5367_v56, %v5359_v31  ;;  %v5038_v8 = vmax.f32 %v4680_v6, 0.0  ;;  %v5024_v52 = vmax.f32 %v4877_v12, 0.0  ;;  %v4683_v36 = vpop.f32.mrb[172].mxu0  ;;  %v4880_v47 = vpop.f32.mrb[172].mxu1 }
 0x4b5   :  { %v5374_v9 = vmul.f32 %v9593_v55, %v5037_v33  ;;  %v4684_v53 = vadd.f32 %v4683_v36, %v9567_v51  ;;  %v4881_v25 = vadd.f32 %v4880_v47, %v9557_v35  ;;  %v4685_v30 = vpop.f32.mrb[173].mxu0  ;;  %v4882_v29 = vpop.f32.mrb[173].mxu1  ;;  %v5360_v2 = vmul.f32 %v10391_v37, %v5023_v14 }
 0x4b6   :  { %v5814_v17 = vrot.slane %v5800_v48, %v9920_v20  ;;  %v5375_v31 = vmul.f32 %v9593_v55, %v5038_v8  ;;  %v4686_v19 = vadd.f32 %v4685_v30, %v9567_v51  ;;  %v4883_v57 = vadd.f32 %v4882_v29, %v9557_v35 }
 0x4b7   :  { %v5663_v44 = vadd.f32 %v5662_v0, %v5374_v9  ;;  %v5045_v61 = vmax.f32 %v4684_v53, 0.0  ;;  %v5031_v16 = vmax.f32 %v4881_v25, 0.0  ;;  %v5361_v12 = vmul.f32 %v10391_v37, %v5024_v52 }
 0x4b8   :  { %v5815_v56 = vcombine.low %v5807_v27, %v5814_v17  ;;  %v5692_v6 = vadd.f32 %v5691_v54, %v5375_v31  ;;  %v5046_v4 = vmax.f32 %v4686_v19, 0.0  ;;  %v4689_v33 = vpop.f32.mrb[174].mxu0  ;;  %v4886_v36 = vpop.f32.mrb[174].mxu1  ;;  %v5032_v47 = vmax.f32 %v4883_v57, 0.0 }
 0x4b9   :  { %v5382_v48 = vmul.f32 %v9609_v11, %v5045_v61  ;;  %v5368_v14 = vmul.f32 %v9583_v49, %v5031_v16  ;;  %v4690_v8 = vadd.f32 %v4689_v33, %v10393_v7  ;;  %v4691_v30 = vpop.f32.mrb[175].mxu0  ;;  %v4888_v0 = vpop.f32.mrb[175].mxu1  ;;  %v4887_v54 = vadd.f32 %v4886_v36, %v10392_v62 }
 0x4ba   :  { %v5822_v9 = vrot.slane %v5815_v56, %v9920_v20  ;;  %v5383_v35 = vmul.f32 %v9609_v11, %v5046_v4  ;;  %v4692_v37 = vadd.f32 %v4691_v30, %v10393_v7  ;;  %v5369_v53 = vmul.f32 %v9583_v49, %v5032_v47  ;;  %v10407_v4 = vld [vmem:[#allocation15_spill] sm:$0xff] }
 0x4bb   :  { %v5664_v52 = vadd.f32 %v5663_v44, %v5382_v48  ;;  %v5720_v27 = vadd.f32 %v5368_v14, %v5360_v2  ;;  %v5053_v25 = vmax.f32 %v4690_v8, 0.0  ;;  %v5039_v17 = vmax.f32 %v4887_v54, 0.0 }
 0x4bc   :  { %5828 = vst.msk [vmem:[#allocation5] ss:$2 sm:$0xf] %vm9933_vm3, %v5822_v9  ;;  %v5693_v29 = vadd.f32 %v5692_v6, %v5383_v35  ;;  %v5054_v31 = vmax.f32 %v4692_v37, 0.0  ;;  %v4889_v19 = vadd.f32 %v4888_v0, %v10392_v62  ;;  %v4695_v61 = vpop.f32.mrb[176].mxu0  ;;  %v4892_v16 = vpop.f32.mrb[176].mxu1  ;;  %v5749_v57 = vadd.f32 %v5369_v53, %v5361_v12 }
 0x4bd   :  { %v5390_v56 = vmul.f32 %v9619_v34, %v5053_v25  ;;  %v4696_v33 = vadd.f32 %v4695_v61, %v10407_v4  ;;  %v4893_v2 = vadd.f32 %v4892_v16, %v9567_v51  ;;  %v4697_v44 = vpop.f32.mrb[177].mxu0  ;;  %v4894_v49 = vpop.f32.mrb[177].mxu1  ;;  %v5376_v36 = vmul.f32 %v9593_v55, %v5039_v17  ;;  %v10408_v53 = vld [vmem:[#allocation31_spill] sm:$0xff] }
 0x4be   :  { %v5391_v48 = vmul.f32 %v9619_v34, %v5054_v31  ;;  %v5040_v6 = vmax.f32 %v4889_v19, 0.0  ;;  %v4698_v14 = vadd.f32 %v4697_v44, %v10407_v4  ;;  %v4895_v12 = vadd.f32 %v4894_v49, %v9567_v51 }
 0x4bf   :  { %v5665_v47 = vadd.f32 %v5664_v52, %v5390_v56  ;;  %v5061_v62 = vmax.f32 %v4696_v33, 0.0  ;;  %v5047_v8 = vmax.f32 %v4893_v2, 0.0  ;;  %v5721_v30 = vadd.f32 %v5720_v27, %v5376_v36 }
 0x4c0   :  { %v5694_v0 = vadd.f32 %v5693_v29, %v5391_v48  ;;  %v5377_v9 = vmul.f32 %v9593_v55, %v5040_v6  ;;  %v5062_v35 = vmax.f32 %v4698_v14, 0.0  ;;  %v4701_v54 = vpop.f32.mrb[178].mxu0  ;;  %v4898_v37 = vpop.f32.mrb[178].mxu1  ;;  %v5048_v31 = vmax.f32 %v4895_v12, 0.0  ;;  %v10410_v12 = vld [vmem:[#allocation17_spill] sm:$0xff] }
 0x4c1   :  { %v5398_v25 = vmul.f32 %v10408_v53, %v5061_v62  ;;  %v5384_v17 = vmul.f32 %v9609_v11, %v5047_v8  ;;  %v4702_v19 = vadd.f32 %v4701_v54, %v10395_v59  ;;  %v4703_v61 = vpop.f32.mrb[179].mxu0  ;;  %v4900_v52 = vpop.f32.mrb[179].mxu1  ;;  %v4899_v51 = vadd.f32 %v4898_v37, %v10393_v7 }
 0x4c2   :  { %v5750_v16 = vadd.f32 %v5749_v57, %v5377_v9  ;;  %v5399_v56 = vmul.f32 %v10408_v53, %v5062_v35  ;;  %v4704_v27 = vadd.f32 %v4703_v61, %v10395_v59  ;;  %v5385_v33 = vmul.f32 %v9609_v11, %v5048_v31  ;;  %v10409_v57 = vld [vmem:[#allocation32_spill] sm:$0xff] }
 0x4c3   :  { %v5666_v55 = vadd.f32 %v5665_v47, %v5398_v25  ;;  %v5722_v29 = vadd.f32 %v5721_v30, %v5384_v17  ;;  %v5069_v2 = vmax.f32 %v4702_v19, 0.0  ;;  %v5055_v49 = vmax.f32 %v4899_v51, 0.0 }
 0x4c4   :  { %v5695_v44 = vadd.f32 %v5694_v0, %v5399_v56  ;;  %v5070_v36 = vmax.f32 %v4704_v27, 0.0  ;;  %v4901_v48 = vadd.f32 %v4900_v52, %v10393_v7  ;;  %v4707_v6 = vpop.f32.mrb[180].mxu0  ;;  %v4904_v14 = vpop.f32.mrb[180].mxu1  ;;  %v5751_v62 = vadd.f32 %v5750_v16, %v5385_v33  ;;  %v10411_v27 = vld [vmem:[#allocation33_spill] sm:$0xff] }
 0x4c5   :  { %v5406_v8 = vmul.f32 %v10409_v57, %v5069_v2  ;;  %v4708_v9 = vadd.f32 %v4707_v6, %v10410_v12  ;;  %v4905_v35 = vadd.f32 %v4904_v14, %v10407_v4  ;;  %v4709_v54 = vpop.f32.mrb[181].mxu0  ;;  %v4906_v47 = vpop.f32.mrb[181].mxu1  ;;  %v5392_v30 = vmul.f32 %v9619_v34, %v5055_v49 }
 0x4c6   :  { %v5407_v11 = vmul.f32 %v10409_v57, %v5070_v36  ;;  %v5056_v0 = vmax.f32 %v4901_v48, 0.0  ;;  %v4710_v37 = vadd.f32 %v4709_v54, %v10410_v12  ;;  %v4907_v31 = vadd.f32 %v4906_v47, %v10407_v4 }
 0x4c7   :  { %v5667_v25 = vadd.f32 %v5666_v55, %v5406_v8  ;;  %v5077_v7 = vmax.f32 %v4708_v9, 0.0  ;;  %v5063_v17 = vmax.f32 %v4905_v35, 0.0  ;;  %v5723_v19 = vadd.f32 %v5722_v29, %v5392_v30 }
 0x4c8   :  { %v5696_v61 = vadd.f32 %v5695_v44, %v5407_v11  ;;  %v5393_v52 = vmul.f32 %v9619_v34, %v5056_v0  ;;  %v5078_v16 = vmax.f32 %v4710_v37, 0.0  ;;  %v4713_v56 = vpop.f32.mrb[182].mxu0  ;;  %v4910_v51 = vpop.f32.mrb[182].mxu1  ;;  %v5064_v49 = vmax.f32 %v4907_v31, 0.0 }
 0x4c9   :  { %v5414_v33 = vmul.f32 %v10411_v27, %v5077_v7  ;;  %v5400_v2 = vmul.f32 %v10408_v53, %v5063_v17  ;;  %v4714_v36 = vadd.f32 %v4713_v56, %v10397_v50  ;;  %v4715_v48 = vpop.f32.mrb[183].mxu0  ;;  %v4912_v55 = vpop.f32.mrb[183].mxu1  ;;  %v4911_v4 = vadd.f32 %v4910_v51, %v10395_v59  ;;  %v10413_v17 = vld [vmem:[#allocation19_spill] sm:$0xff] }
 0x4ca   :  { %v5752_v6 = vadd.f32 %v5751_v62, %v5393_v52  ;;  %v5415_v14 = vmul.f32 %v10411_v27, %v5078_v16  ;;  %v4716_v29 = vadd.f32 %v4715_v48, %v10397_v50  ;;  %v5401_v8 = vmul.f32 %v10408_v53, %v5064_v49  ;;  %v10412_v62 = vld [vmem:[#allocation36_spill] sm:$0xff] }
 0x4cb   :  { %v5668_v34 = vadd.f32 %v5667_v25, %v5414_v33  ;;  %v5724_v44 = vadd.f32 %v5723_v19, %v5400_v2  ;;  %v5085_v9 = vmax.f32 %v4714_v36, 0.0  ;;  %v5071_v54 = vmax.f32 %v4911_v4, 0.0  ;;  %v10414_v4 = vld [vmem:[#allocation37_spill] sm:$0xff] }
 0x4cc   :  { %v5697_v35 = vadd.f32 %v5696_v61, %v5415_v14  ;;  %v5086_v47 = vmax.f32 %v4716_v29, 0.0  ;;  %v4913_v30 = vadd.f32 %v4912_v55, %v10395_v59  ;;  %v4719_v11 = vpop.f32.mrb[184].mxu0  ;;  %v4916_v0 = vpop.f32.mrb[184].mxu1  ;;  %v5753_v37 = vadd.f32 %v5752_v6, %v5401_v8 }
 0x4cd   :  { %v5422_v7 = vmul.f32 %v10412_v62, %v5085_v9  ;;  %v4720_v31 = vadd.f32 %v4719_v11, %v10413_v17  ;;  %v4917_v52 = vadd.f32 %v4916_v0, %v10410_v12  ;;  %v4721_v16 = vpop.f32.mrb[185].mxu0  ;;  %v4918_v25 = vpop.f32.mrb[185].mxu1  ;;  %v5408_v19 = vmul.f32 %v10409_v57, %v5071_v54 }
 0x4ce   :  { %v5423_v53 = vmul.f32 %v10412_v62, %v5086_v47  ;;  %v5072_v61 = vmax.f32 %v4913_v30, 0.0  ;;  %v4722_v56 = vadd.f32 %v4721_v16, %v10413_v17  ;;  %v4919_v2 = vadd.f32 %v4918_v25, %v10410_v12 }
 0x4cf   :  { %v5669_v51 = vadd.f32 %v5668_v34, %v5422_v7  ;;  %v5093_v59 = vmax.f32 %v4720_v31, 0.0  ;;  %v5079_v33 = vmax.f32 %v4917_v52, 0.0  ;;  %v5725_v49 = vadd.f32 %v5724_v44, %v5408_v19 }
 0x4d0   :  { %v5698_v36 = vadd.f32 %v5697_v35, %v5423_v53  ;;  %v5409_v48 = vmul.f32 %v10409_v57, %v5072_v61  ;;  %v5094_v55 = vmax.f32 %v4722_v56, 0.0  ;;  %v4725_v6 = vpop.f32.mrb[186].mxu0  ;;  %v4922_v14 = vpop.f32.mrb[186].mxu1  ;;  %v5080_v9 = vmax.f32 %v4919_v2, 0.0  ;;  %v10415_v56 = vld [vmem:[#allocation21_spill] sm:$0xff] }
 0x4d1   :  { %v5430_v29 = vmul.f32 %v10414_v4, %v5093_v59  ;;  %v5416_v8 = vmul.f32 %v10411_v27, %v5079_v33  ;;  %v4726_v54 = vadd.f32 %v4725_v6, %v10399_v13  ;;  %v4727_v47 = vpop.f32.mrb[187].mxu0  ;;  %v4924_v34 = vpop.f32.mrb[187].mxu1  ;;  %v4923_v12 = vadd.f32 %v4922_v14, %v10397_v50 }
 0x4d2   :  { %v5754_v30 = vadd.f32 %v5753_v37, %v5409_v48  ;;  %v5431_v11 = vmul.f32 %v10414_v4, %v5094_v55  ;;  %v4728_v44 = vadd.f32 %v4727_v47, %v10399_v13  ;;  %v5417_v0 = vmul.f32 %v10411_v27, %v5080_v9 }
 0x4d3   :  { %v5670_v57 = vadd.f32 %v5669_v51, %v5430_v29  ;;  %v5726_v35 = vadd.f32 %v5725_v49, %v5416_v8  ;;  %v5101_v7 = vmax.f32 %v4726_v54, 0.0  ;;  %v5087_v52 = vmax.f32 %v4923_v12, 0.0 }
 0x4d4   :  { %v5699_v31 = vadd.f32 %v5698_v36, %v5431_v11  ;;  %v5102_v16 = vmax.f32 %v4728_v44, 0.0  ;;  %v4925_v25 = vadd.f32 %v4924_v34, %v10397_v50  ;;  %v4731_v19 = vpop.f32.mrb[188].mxu0  ;;  %v4928_v53 = vpop.f32.mrb[188].mxu1  ;;  %v5755_v61 = vadd.f32 %v5754_v30, %v5417_v0 }
 0x4d5   :  { %v5438_v37 = vmul.f32 %v9689_v10, %v5101_v7  ;;  %v4732_v59 = vadd.f32 %v4731_v19, %v10415_v56  ;;  %v4929_v33 = vadd.f32 %v4928_v53, %v10413_v17  ;;  %v4733_v2 = vpop.f32.mrb[189].mxu0  ;;  %v4930_v51 = vpop.f32.mrb[189].mxu1  ;;  %v5424_v49 = vmul.f32 %v10412_v62, %v5087_v52 }
 0x4d6   :  { %v5439_v27 = vmul.f32 %v9689_v10, %v5102_v16  ;;  %v5088_v36 = vmax.f32 %v4925_v25, 0.0  ;;  %v4734_v48 = vadd.f32 %v4733_v2, %v10415_v56  ;;  %v4931_v14 = vadd.f32 %v4930_v51, %v10413_v17 }
 0x4d7   :  { %v5671_v55 = vadd.f32 %v5670_v57, %v5438_v37  ;;  %v5109_v50 = vmax.f32 %v4732_v59, 0.0  ;;  %v5095_v6 = vmax.f32 %v4929_v33, 0.0  ;;  %v5727_v29 = vadd.f32 %v5726_v35, %v5424_v49  ;;  %v10416_v49 = vld [vmem:[#allocation26_spill] sm:$0xff] }
 0x4d8   :  { %v5700_v8 = vadd.f32 %v5699_v31, %v5439_v27  ;;  %v5425_v9 = vmul.f32 %v10412_v62, %v5088_v36  ;;  %v5110_v54 = vmax.f32 %v4734_v48, 0.0  ;;  %v4737_v47 = vpop.f32.mrb[190].mxu0  ;;  %v4934_v34 = vpop.f32.mrb[190].mxu1  ;;  %v5096_v12 = vmax.f32 %v4931_v14, 0.0 }
 0x4d9   :  { %v5446_v30 = vmul.f32 %v9696_v24, %v5109_v50  ;;  %v5432_v11 = vmul.f32 %v10414_v4, %v5095_v6  ;;  %v4738_v44 = vadd.f32 %v4737_v47, %v10401_v26  ;;  %v4739_v0 = vpop.f32.mrb[191].mxu0  ;;  %v4936_v57 = vpop.f32.mrb[191].mxu1  ;;  %v4935_v17 = vadd.f32 %v4934_v34, %v10399_v13 }
 0x4da   :  { %v5756_v7 = vadd.f32 %v5755_v61, %v5425_v9  ;;  %v5447_v52 = vmul.f32 %v9696_v24, %v5110_v54  ;;  %v4740_v35 = vadd.f32 %v4739_v0, %v10401_v26  ;;  %v5433_v16 = vmul.f32 %v10414_v4, %v5096_v12 }
 0x4db   :  { %v5672_v62 = vadd.f32 %v5671_v55, %v5446_v30  ;;  %v5728_v31 = vadd.f32 %v5727_v29, %v5432_v11  ;;  %v5117_v25 = vmax.f32 %v4738_v44, 0.0  ;;  %v5103_v53 = vmax.f32 %v4935_v17, 0.0 }
 0x4dc   :  { %v5701_v19 = vadd.f32 %v5700_v8, %v5447_v52  ;;  %v5118_v37 = vmax.f32 %v4740_v35, 0.0  ;;  %v4937_v59 = vadd.f32 %v4936_v57, %v10399_v13  ;;  %v4743_v33 = vpop.f32.mrb[192].mxu0  ;;  %v4940_v2 = vpop.f32.mrb[192].mxu1  ;;  %v5757_v51 = vadd.f32 %v5756_v7, %v5433_v16 }
 0x4dd   :  { %v5454_v61 = vmul.f32 %v9712_v40, %v5117_v25  ;;  %v4744_v27 = vadd.f32 %v4743_v33, %v10416_v49  ;;  %v4941_v36 = vadd.f32 %v4940_v2, %v10415_v56  ;;  %v4745_v48 = vpop.f32.mrb[193].mxu0  ;;  %v4942_v55 = vpop.f32.mrb[193].mxu1  ;;  %v5440_v50 = vmul.f32 %v9689_v10, %v5103_v53 }
 0x4de   :  { %v5455_v4 = vmul.f32 %v9712_v40, %v5118_v37  ;;  %v5104_v6 = vmax.f32 %v4937_v59, 0.0  ;;  %v4746_v14 = vadd.f32 %v4745_v48, %v10416_v49  ;;  %v4943_v9 = vadd.f32 %v4942_v55, %v10415_v56 }
 0x4df   :  { %v5673_v29 = vadd.f32 %v5672_v62, %v5454_v61  ;;  %v5125_v13 = vmax.f32 %v4744_v27, 0.0  ;;  %v5111_v8 = vmax.f32 %v4941_v36, 0.0  ;;  %v5729_v54 = vadd.f32 %v5728_v31, %v5440_v50  ;;  %v10417_v36 = vld [vmem:[#allocation27_spill] sm:$0xff] }
 0x4e0   :  { %v5702_v47 = vadd.f32 %v5701_v19, %v5455_v4  ;;  %v5441_v34 = vmul.f32 %v9689_v10, %v5104_v6  ;;  %v5126_v30 = vmax.f32 %v4746_v14, 0.0  ;;  %v4749_v11 = vpop.f32.mrb[194].mxu0  ;;  %v4946_v12 = vpop.f32.mrb[194].mxu1  ;;  %v5112_v57 = vmax.f32 %v4943_v9, 0.0 }
 0x4e1   :  { %v5462_v44 = vmul.f32 %v9732_v63, %v5125_v13  ;;  %v5448_v0 = vmul.f32 %v9696_v24, %v5111_v8  ;;  %v4750_v7 = vadd.f32 %v4749_v11, %v9474_v38  ;;  %v4751_v52 = vpop.f32.mrb[195].mxu0  ;;  %v4948_v17 = vpop.f32.mrb[195].mxu1  ;;  %v4947_v56 = vadd.f32 %v4946_v12, %v10401_v26 }
 0x4e2   :  { %v5758_v35 = vadd.f32 %v5757_v51, %v5441_v34  ;;  %v5463_v62 = vmul.f32 %v9732_v63, %v5126_v30  ;;  %v4752_v31 = vadd.f32 %v4751_v52, %v9474_v38  ;;  %v5449_v25 = vmul.f32 %v9696_v24, %v5112_v57 }
 0x4e3   :  { %v5674_v10 = vadd.f32 %v5673_v29, %v5462_v44  ;;  %v5730_v16 = vadd.f32 %v5729_v54, %v5448_v0  ;;  %v5133_v19 = vmax.f32 %v4750_v7, 0.0  ;;  %v5119_v37 = vmax.f32 %v4947_v56, 0.0 }
 0x4e4   :  { %v5703_v53 = vadd.f32 %v5702_v47, %v5463_v62  ;;  %v5134_v59 = vmax.f32 %v4752_v31, 0.0  ;;  %v4949_v33 = vadd.f32 %v4948_v17, %v10401_v26  ;;  %v4755_v2 = vpop.f32.mrb[196].mxu0  ;;  %v4952_v61 = vpop.f32.mrb[196].mxu1  ;;  %v5759_v27 = vadd.f32 %v5758_v35, %v5449_v25 }
 0x4e5   :  { %v5470_v51 = vmul.f32 %v9750_v42, %v5133_v19  ;;  %v4756_v48 = vadd.f32 %v4755_v2, %v10417_v36  ;;  %v4953_v55 = vadd.f32 %v4952_v61, %v10416_v49  ;;  %v4757_v50 = vpop.f32.mrb[197].mxu0  ;;  %v4954_v4 = vpop.f32.mrb[197].mxu1  ;;  %v5456_v6 = vmul.f32 %v9712_v40, %v5119_v37 }
 0x4e6   :  { %v5471_v24 = vmul.f32 %v9750_v42, %v5134_v59  ;;  %v5120_v14 = vmax.f32 %v4949_v33, 0.0  ;;  %v4758_v29 = vadd.f32 %v4757_v50, %v10417_v36  ;;  %v4955_v9 = vadd.f32 %v4954_v4, %v10416_v49 }
 0x4e7   :  { %v5675_v13 = vadd.f32 %v5674_v10, %v5470_v51  ;;  %v5141_v26 = vmax.f32 %v4756_v48, 0.0  ;;  %v5127_v8 = vmax.f32 %v4953_v55, 0.0  ;;  %v5731_v54 = vadd.f32 %v5730_v16, %v5456_v6 }
 0x4e8   :  { %v5704_v47 = vadd.f32 %v5703_v53, %v5471_v24  ;;  %v5457_v34 = vmul.f32 %v9712_v40, %v5120_v14  ;;  %v5142_v30 = vmax.f32 %v4758_v29, 0.0  ;;  %v4761_v11 = vpop.f32.mrb[198].mxu0  ;;  %v4958_v12 = vpop.f32.mrb[198].mxu1  ;;  %v5128_v57 = vmax.f32 %v4955_v9, 0.0 }
 0x4e9   :  { %v5478_v44 = vmul.f32 %v9768_v23, %v5141_v26  ;;  %v5464_v0 = vmul.f32 %v9732_v63, %v5127_v8  ;;  %v4762_v7 = vadd.f32 %v4761_v11, %v9492_v1  ;;  %v4763_v52 = vpop.f32.mrb[199].mxu0  ;;  %v4960_v17 = vpop.f32.mrb[199].mxu1  ;;  %v4959_v49 = vadd.f32 %v4958_v12, %v9474_v38 }
 0x4ea   :  { %v5760_v35 = vadd.f32 %v5759_v27, %v5457_v34  ;;  %v5479_v62 = vmul.f32 %v9768_v23, %v5142_v30  ;;  %v4764_v56 = vadd.f32 %v4763_v52, %v9492_v1  ;;  %v5465_v10 = vmul.f32 %v9732_v63, %v5128_v57  ;;  %v10418_v27 = vld [vmem:[#allocation28_spill] sm:$0xff] }
 0x4eb   :  { %v5676_v40 = vadd.f32 %v5675_v13, %v5478_v44  ;;  %v5732_v31 = vadd.f32 %v5731_v54, %v5464_v0  ;;  %v5149_v16 = vmax.f32 %v4762_v7, 0.0  ;;  %v5135_v19 = vmax.f32 %v4959_v49, 0.0 }
 0x4ec   :  { %v5705_v25 = vadd.f32 %v5704_v47, %v5479_v62  ;;  %v5150_v53 = vmax.f32 %v4764_v56, 0.0  ;;  %v4961_v37 = vadd.f32 %v4960_v17, %v9474_v38  ;;  %v4767_v59 = vpop.f32.mrb[200].mxu0  ;;  %v4964_v33 = vpop.f32.mrb[200].mxu1  ;;  %v5761_v2 = vadd.f32 %v5760_v35, %v5465_v10 }
 0x4ed   :  { %v5486_v61 = vmul.f32 %v9786_v15, %v5149_v16  ;;  %v4768_v51 = vadd.f32 %v4767_v59, %v10418_v27  ;;  %v4965_v48 = vadd.f32 %v4964_v33, %v10417_v36  ;;  %v4769_v55 = vpop.f32.mrb[201].mxu0  ;;  %v4966_v50 = vpop.f32.mrb[201].mxu1  ;;  %v5472_v4 = vmul.f32 %v9750_v42, %v5135_v19 }
 0x4ee   :  { %v5487_v63 = vmul.f32 %v9786_v15, %v5150_v53  ;;  %v5136_v6 = vmax.f32 %v4961_v37, 0.0  ;;  %v4770_v24 = vadd.f32 %v4769_v55, %v10418_v27  ;;  %v4967_v13 = vadd.f32 %v4966_v50, %v10417_v36  ;;  %v10419_v37 = vld [vmem:[#allocation29_spill] sm:$0xff] }
 0x4ef   :  { %v5677_v14 = vadd.f32 %v5676_v40, %v5486_v61  ;;  %v5157_v38 = vmax.f32 %v4768_v51, 0.0  ;;  %v5143_v29 = vmax.f32 %v4965_v48, 0.0  ;;  %v5733_v26 = vadd.f32 %v5732_v31, %v5472_v4 }
 0x4f0   :  { %v5706_v8 = vadd.f32 %v5705_v25, %v5487_v63  ;;  %v5473_v9 = vmul.f32 %v9750_v42, %v5136_v6  ;;  %v5158_v54 = vmax.f32 %v4770_v24, 0.0  ;;  %v4773_v47 = vpop.f32.mrb[202].mxu0  ;;  %v4970_v34 = vpop.f32.mrb[202].mxu1  ;;  %v5144_v12 = vmax.f32 %v4967_v13, 0.0 }
 0x4f1   :  { %v5494_v30 = vmul.f32 %v9804_v45, %v5157_v38  ;;  %v5480_v11 = vmul.f32 %v9768_v23, %v5143_v29  ;;  %v4774_v44 = vadd.f32 %v4773_v47, %v9519_v22  ;;  %v4775_v0 = vpop.f32.mrb[203].mxu0  ;;  %v4972_v57 = vpop.f32.mrb[203].mxu1  ;;  %v4971_v36 = vadd.f32 %v4970_v34, %v9492_v1 }
 0x4f2   :  { %v5762_v7 = vadd.f32 %v5761_v2, %v5473_v9  ;;  %v5495_v52 = vmul.f32 %v9804_v45, %v5158_v54  ;;  %v4776_v17 = vadd.f32 %v4775_v0, %v9519_v22  ;;  %v5481_v62 = vmul.f32 %v9768_v23, %v5144_v12 }
 0x4f3   :  { %v5678_v42 = vadd.f32 %v5677_v14, %v5494_v30  ;;  %v5734_v35 = vadd.f32 %v5733_v26, %v5480_v11  ;;  %v5165_v49 = vmax.f32 %v4774_v44, 0.0  ;;  %v5151_v40 = vmax.f32 %v4971_v36, 0.0 }
 0x4f4   :  { %v5707_v56 = vadd.f32 %v5706_v8, %v5495_v52  ;;  %v5166_v31 = vmax.f32 %v4776_v17, 0.0  ;;  %v4973_v10 = vadd.f32 %v4972_v57, %v9492_v1  ;;  %v4779_v16 = vpop.f32.mrb[204].mxu0  ;;  %v4976_v25 = vpop.f32.mrb[204].mxu1  ;;  %v5763_v19 = vadd.f32 %v5762_v7, %v5481_v62 }
 0x4f5   :  { %v5502_v53 = vmul.f32 %v9822_v39, %v5165_v49  ;;  %v4780_v59 = vadd.f32 %v4779_v16, %v10419_v37  ;;  %v4977_v33 = vadd.f32 %v4976_v25, %v10418_v27  ;;  %v4781_v2 = vpop.f32.mrb[205].mxu0  ;;  %v4978_v61 = vpop.f32.mrb[205].mxu1  ;;  %v5488_v51 = vmul.f32 %v9786_v15, %v5151_v40 }
 0x4f6   :  { %v5503_v23 = vmul.f32 %v9822_v39, %v5166_v31  ;;  %v5152_v48 = vmax.f32 %v4973_v10, 0.0  ;;  %v4782_v55 = vadd.f32 %v4781_v2, %v10419_v37  ;;  %v4979_v63 = vadd.f32 %v4978_v61, %v10418_v27 }
 0x4f7   :  { %v5679_v50 = vadd.f32 %v5678_v42, %v5502_v53  ;;  %v5173_v1 = vmax.f32 %v4780_v59, 0.0  ;;  %v5159_v4 = vmax.f32 %v4977_v33, 0.0  ;;  %v5735_v6 = vadd.f32 %v5734_v35, %v5488_v51 }
 0x4f8   :  { %v5708_v24 = vadd.f32 %v5707_v56, %v5503_v23  ;;  %v5489_v14 = vmul.f32 %v9786_v15, %v5152_v48  ;;  %v5174_v38 = vmax.f32 %v4782_v55, 0.0  ;;  %v4785_v29 = vpop.f32.mrb[206].mxu0  ;;  %v4982_v13 = vpop.f32.mrb[206].mxu1  ;;  %v5160_v9 = vmax.f32 %v4979_v63, 0.0 }
 0x4f9   :  { %v5510_v26 = vmul.f32 %v9840_v3, %v5173_v1  ;;  %v5496_v8 = vmul.f32 %v9804_v45, %v5159_v4  ;;  %v4786_v54 = vadd.f32 %v4785_v29, %v9539_v18  ;;  %v4787_v47 = vpop.f32.mrb[207].mxu0  ;;  %v4984_v34 = vpop.f32.mrb[207].mxu1  ;;  %v4983_v27 = vadd.f32 %v4982_v13, %v9519_v22 }
 0x4fa   :  { %v5764_v30 = vadd.f32 %v5763_v19, %v5489_v14  ;;  %v5511_v11 = vmul.f32 %v9840_v3, %v5174_v38  ;;  %v4788_v12 = vadd.f32 %v4787_v47, %v9539_v18  ;;  %v5497_v0 = vmul.f32 %v9804_v45, %v5160_v9 }
 0x4fb   :  { %v5680_v15 = vadd.f32 %v5679_v50, %v5510_v26  ;;  %v5736_v44 = vadd.f32 %v5735_v6, %v5496_v8  ;;  %v5181_v57 = vmax.f32 %v4786_v54, 0.0  ;;  %v5167_v52 = vmax.f32 %v4983_v27, 0.0 }
 0x4fc   :  { %v5709_v7 = vadd.f32 %v5708_v24, %v5511_v11  ;;  %v5182_v36 = vmax.f32 %v4788_v12, 0.0  ;;  %v4985_v17 = vadd.f32 %v4984_v34, %v9519_v22  ;;  %v4791_v42 = vpop.f32.mrb[208].mxu0  ;;  %v4988_v35 = vpop.f32.mrb[208].mxu1  ;;  %v5765_v62 = vadd.f32 %v5764_v30, %v5497_v0  ;;  %v10420_v12 = vld [vmem:[#allocation30_spill] sm:$0xff] }
 0x4fd   :  { %v5518_v49 = vmul.f32 %v9858_v5, %v5181_v57  ;;  %v4792_v56 = vadd.f32 %v4791_v42, %v9559_v43  ;;  %v4989_v40 = vadd.f32 %v4988_v35, %v10419_v37  ;;  %v4793_v31 = vpop.f32.mrb[209].mxu0  ;;  %v4990_v10 = vpop.f32.mrb[209].mxu1  ;;  %v5504_v16 = vmul.f32 %v9822_v39, %v5167_v52 }
 0x4fe   :  { %v5519_v45 = vmul.f32 %v9858_v5, %v5182_v36  ;;  %v5168_v25 = vmax.f32 %v4985_v17, 0.0  ;;  %v4794_v19 = vadd.f32 %v4793_v31, %v9559_v43  ;;  %v4991_v33 = vadd.f32 %v4990_v10, %v10419_v37 }
 0x4ff   :  { %v5681_v53 = vadd.f32 %v5680_v15, %v5518_v49  ;;  %v5189_v22 = vmax.f32 %v4792_v56, 0.0  ;;  %v5175_v59 = vmax.f32 %v4989_v40, 0.0  ;;  %v5737_v2 = vadd.f32 %v5736_v44, %v5504_v16 }
 0x500   :  { %v5710_v61 = vadd.f32 %v5709_v7, %v5519_v45  ;;  %v5505_v51 = vmul.f32 %v9822_v39, %v5168_v25  ;;  %v5190_v23 = vmax.f32 %v4794_v19, 0.0  ;;  %v4797_v48 = vpop.f32.mrb[210].mxu0  ;;  %v4994_v55 = vpop.f32.mrb[210].mxu1  ;;  %v5176_v4 = vmax.f32 %v4991_v33, 0.0 }
 0x501   :  { %v5526_v50 = vmul.f32 %v9876_v60, %v5189_v22  ;;  %v5512_v1 = vmul.f32 %v9840_v3, %v5175_v59  ;;  %v4798_v63 = vadd.f32 %v4797_v48, %v9571_v21  ;;  %v4799_v6 = vpop.f32.mrb[211].mxu0  ;;  %v4996_v24 = vpop.f32.mrb[211].mxu1  ;;  %v4995_v37 = vadd.f32 %v4994_v55, %v9539_v18 }
 0x502   :  { %v5766_v14 = vadd.f32 %v5765_v62, %v5505_v51  ;;  %v5527_v38 = vmul.f32 %v9876_v60, %v5190_v23  ;;  %v4800_v29 = vadd.f32 %v4799_v6, %v9571_v21  ;;  %v5513_v26 = vmul.f32 %v9840_v3, %v5176_v4 }
 0x503   :  { %v5682_v39 = vadd.f32 %v5681_v53, %v5526_v50  ;;  %v5738_v13 = vadd.f32 %v5737_v2, %v5512_v1  ;;  %v5197_v8 = vmax.f32 %v4798_v63, 0.0  ;;  %v5183_v54 = vmax.f32 %v4995_v37, 0.0 }
 0x504   :  { %v5711_v9 = vadd.f32 %v5710_v61, %v5527_v38  ;;  %v5198_v47 = vmax.f32 %v4800_v29, 0.0  ;;  %v4997_v34 = vadd.f32 %v4996_v24, %v9539_v18  ;;  %v4803_v30 = vpop.f32.mrb[212].mxu0  ;;  %v5000_v11 = vpop.f32.mrb[212].mxu1  ;;  %v5767_v27 = vadd.f32 %v5766_v14, %v5513_v26 }
 0x505   :  { %v5534_v15 = vmul.f32 %v10420_v12, %v5197_v8  ;;  %v4804_v44 = vadd.f32 %v4803_v30, %v9585_v46  ;;  %v5001_v0 = vadd.f32 %v5000_v11, %v9559_v43  ;;  %v4805_v57 = vpop.f32.mrb[213].mxu0  ;;  %v5002_v7 = vpop.f32.mrb[213].mxu1  ;;  %v5520_v52 = vmul.f32 %v9858_v5, %v5183_v54 }
 0x506   :  { %v5535_v3 = vmul.f32 %v10420_v12, %v5198_v47  ;;  %v5184_v36 = vmax.f32 %v4997_v34, 0.0  ;;  %v4806_v17 = vadd.f32 %v4805_v57, %v9585_v46  ;;  %v5003_v62 = vadd.f32 %v5002_v7, %v9559_v43 }
 0x507   :  { %v5683_v42 = vadd.f32 %v5682_v39, %v5534_v15  ;;  %v5205_v18 = vmax.f32 %v4804_v44, 0.0  ;;  %v5191_v35 = vmax.f32 %v5001_v0, 0.0  ;;  %v5739_v49 = vadd.f32 %v5738_v13, %v5520_v52 }
 0x508   :  { %v5712_v56 = vadd.f32 %v5711_v9, %v5535_v3  ;;  %v5521_v40 = vmul.f32 %v9858_v5, %v5184_v36  ;;  %v5206_v31 = vmax.f32 %v4806_v17, 0.0  ;;  %v5006_v10 = vpop.f32.mrb[214].mxu1  ;;  %v5192_v25 = vmax.f32 %v5003_v62, 0.0 }
 0x509   :  { %v5542_v16 = vmul.f32 %v9894_v32, %v5205_v18  ;;  %v5528_v45 = vmul.f32 %v9876_v60, %v5191_v35  ;;  %v5007_v19 = vadd.f32 %v5006_v10, %v9571_v21  ;;  %v5008_v53 = vpop.f32.mrb[215].mxu1 }
 0x50a   :  { %v5768_v22 = vadd.f32 %v5767_v27, %v5521_v40  ;;  %v5543_v59 = vmul.f32 %v9894_v32, %v5206_v31  ;;  %v5009_v33 = vadd.f32 %v5008_v53, %v9571_v21  ;;  %v5529_v61 = vmul.f32 %v9876_v60, %v5192_v25 }
 0x50b   :  { %v5684_v43 = vadd.f32 %v5683_v42, %v5542_v16  ;;  %v5740_v2 = vadd.f32 %v5739_v49, %v5528_v45  ;;  %v5199_v5 = vmax.f32 %v5007_v19, 0.0  ;;  %v7471_v19 = vmov 1983009808  }
 0x50c   :  { %v5713_v51 = vadd.f32 %v5712_v56, %v5543_v59  ;;  %v5200_v23 = vmax.f32 %v5009_v33, 0.0  ;;  %v5012_v48 = vpop.f32.mrb[216].mxu1  ;;  %v5769_v50 = vadd.f32 %v5768_v22, %v5529_v61  ;;  %v5884_v53 = vunpack.c.l.s4 %v7471_v19 }
 0x50d   :  { %v5685_v55 = vrot.slane %v5684_v43, 4  ;;  %v5536_v1 = vmul.f32 %v10420_v12, %v5199_v5  ;;  %v5013_v4 = vadd.f32 %v5012_v48, %v9585_v46  ;;  %v5014_v63 = vpop.f32.mrb[217].mxu1 }
 0x50e   :  { %v5714_v6 = vrot.slane %v5713_v51, 4  ;;  %v5537_v24 = vmul.f32 %v10420_v12, %v5200_v23  ;;  %v5015_v21 = vadd.f32 %v5014_v63, %v9585_v46  ;;  %v5885_v22 = vunpack.c.0.s8 %v5884_v53 }
 0x50f   :  { %v5686_v14 = vadd.f32 %v5685_v55, %v5684_v43  ;;  %v5741_v38 = vadd.f32 %v5740_v2, %v5536_v1  ;;  %v5207_v37 = vmax.f32 %v5013_v4, 0.0 }
 0x510   :  { %v5715_v60 = vadd.f32 %v5714_v6, %v5713_v51  ;;  %v5770_v29 = vadd.f32 %v5769_v50, %v5537_v24  ;;  %v5208_v39 = vmax.f32 %v5015_v21, 0.0  ;;  %v5888_v59 = vsub.s32 %v5885_v22, %v8128_v28 }
 0x511   :  { %v5687_v13 = vrot.slane %v5686_v14, 2  ;;  %v5544_v26 = vmul.f32 %v9894_v32, %v5207_v37  ;;  %v7472_v6 = vmov 269488144  }
 0x512   :  { %v5716_v8 = vrot.slane %v5715_v60, 2  ;;  %v5545_v9 = vmul.f32 %v9894_v32, %v5208_v39  ;;  %v5928_v24 = vunpack.c.l.s4 %v7472_v6 }
 0x513   :  { %v5688_v54 = vadd.f32 %v5687_v13, %v5686_v14  ;;  %v5742_v47 = vadd.f32 %v5741_v38, %v5544_v26 }
 0x514   :  { %v5717_v34 = vadd.f32 %v5716_v8, %v5715_v60  ;;  %v5771_v30 = vadd.f32 %v5770_v29, %v5545_v9  ;;  %v5929_v21 = vunpack.c.0.s8 %v5928_v24  ;;  %v10421_v8 = vld [vmem:[#allocation10_spill] sm:$0xff] }
 0x515   :  { %v5689_v11 = vrot.slane %v5688_v54, 1  ;;  %v5743_v27 = vrot.slane %v5742_v47, 4  ;;  %v10422_v9 = vld [vmem:[#allocation34_spill] sm:$0xff] }
 0x516   :  { %v5718_v12 = vrot.slane %v5717_v34, 1  ;;  %v5772_v46 = vrot.slane %v5771_v30, 4  ;;  %v5932_v14 = vsub.s32 %v5929_v21, %v8128_v28 }
 0x517   :  { %v5690_v15 = vadd.f32 %v5689_v11, %v5688_v54  ;;  %v5744_v44 = vadd.f32 %v5743_v27, %v5742_v47  ;;  %v5925_v54 = vmul.f32 %v10422_v9, %v10421_v8 }
 0x518   :  { %v5719_v0 = vadd.f32 %v5718_v12, %v5717_v34  ;;  %v5773_v57 = vadd.f32 %v5772_v46, %v5771_v30  ;;  %v10423_v30 = vld [vmem:[#allocation35_spill] sm:$0xff] }
 0x519   :  { %v5791_v7 = vadd.f32 %v9911_v41, %v5690_v15  ;;  %v5745_v52 = vrot.slane %v5744_v44, 2  ;;  %v5939_v34 = vcombine.high %v5925_v54, %v5925_v54 }
 0x51a   :  { %v5792_v3 = vadd.f32 %v9911_v41, %v5719_v0  ;;  %v5774_v36 = vrot.slane %v5773_v57, 2 }
 0x51b   :  { %v5746_v17 = vadd.f32 %v5745_v52, %v5744_v44 }
 0x51c   :  { %v5833_v32 = vcombine.low %v5791_v7, %v5792_v3  ;;  %v5775_v42 = vadd.f32 %v5774_v36, %v5773_v57 }
 0x51d   :  { %v5747_v18 = vrot.slane %v5746_v17, 1 }
 0x51e   :  { %v5776_v35 = vrot.slane %v5775_v42, 1  ;;  %v5841_v10 = vrot.slane %v5833_v32, %v9920_v20 }
 0x51f   :  { %v5748_v62 = vadd.f32 %v5747_v18, %v5746_v17 }
 0x520   :  { %v5777_v49 = vadd.f32 %v5776_v35, %v5775_v42 }
 0x521   :  { %v5793_v56 = vadd.f32 %v9911_v41, %v5748_v62 }
 0x522   :  { %v5794_v40 = vadd.f32 %v9911_v41, %v5777_v49 }
 0x524   :  { %v5834_v31 = vcombine.low %v5793_v56, %v5794_v40 }
 0x526   :  { %v5848_v16 = vrot.slane %v5834_v31, %v9920_v20 }
 0x528   :  { %v5849_v45 = vcombine.low %v5841_v10, %v5848_v16 }
 0x52a   :  { %v5856_v25 = vrot.slane %v5849_v45, %v9920_v20 }
 0x52c   :  { %5859 = vst.msk [vmem:[#allocation5 + $0x1] ss:$2 sm:$0xf] %vm9933_vm3, %v5856_v25 }
 0x533   :  { %v5860_v33 = vld [vmem:[#allocation5] sm:$0xff] }
 0x534   :  { %v5880_v43 = vmul.f32 %v5860_v33, %v5860_v33 }
 0x536   :  { %v5882_v2 = vcombine.high %v5880_v43, %v5880_v43  ;;  %v5889_v41 = vrot.slane %v5880_v43, %v5888_v59 }
 0x538   :  { %v5896_v61 = vrot.slane %v5882_v2, %v5888_v59  ;;  %v5897_v5 = vcombine.high %v5889_v41, %v5889_v41  ;;  %v5904_v23 = vsel %vm5903_vm4, %v5889_v41, 0.0 }
 0x53a   :  { %v5898_v51 = vcombine.high %v5896_v61, %v5896_v61  ;;  %v5905_v48 = vsel %vm5903_vm4, %v5897_v5, 0.0  ;;  %v5907_v20 = vsel %vm5903_vm4, %v5896_v61, 0.0 }
 0x53b   :  { %v5906_v55 = vadd.f32 %v5905_v48, %v5904_v23 }
 0x53c   :  { %v5909_v1 = vsel %vm5903_vm4, %v5898_v51, 0.0 }
 0x53d   :  { %v5908_v50 = vadd.f32 %v5907_v20, %v5906_v55 }
 0x53f   :  { %v5910_v4 = vadd.f32 %v5909_v1, %v5908_v50 }
 0x541   :  { %5911 = vadd.xlane.f32.xlu1 %v5910_v4 }
 0x5ce   :  { %v5912_v58 = vpop.xlane.xlu1 %5911 }
 0x5cf   :  { %v5913_v63 = vmax.f32 %v5912_v58, 1e-16 }
 0x5d1   :  { %7265 = vrsqrt.f32 %v5913_v63 }
 0x5db   :  { %v7266_v38 = vpop.eup %7265 }
 0x5dc   :  { %v5933_v37 = vrot.slane %v7266_v38, %v5932_v14 }
 0x5de   :  { %v5935_v60 = vmul.f32 %v5933_v37, %v5860_v33 }
 0x5e0   :  { %v5950_v29 = vrot.slane %v5935_v60, %v5888_v59  ;;  %v5943_v39 = vcombine.high %v5935_v60, %v5935_v60 }
 0x5e2   :  { %v5958_v13 = vcombine.high %v5950_v29, %v5950_v29  ;;  %v5957_v26 = vrot.slane %v5943_v39, %v5888_v59 }
 0x5e4   :  { %5964 = vmatprep.subr.mxu0 %v5958_v13  ;;  %v5959_v47 = vcombine.high %v5957_v26, %v5957_v26 }
 0x5e5   :  { %5965 = vmatpush1.xpose.msra.mxu0 %v5950_v29 }
 0x5e6   :  { %6034 = vmatprep.subr.mxu0 %v5959_v47 }
 0x5e8   :  { %6029 = vmatmul.mubr.f32.vlgmr.msra.gmra.mrb[214].mxu0 %v10423_v30 }
 0x5e9   :  { %6035 = vmatpush1.xpose.msra.mxu0 %v5957_v26  ;;  %6098 = vmatprep.mubr.f32.mxu0 %v5939_v34 }
 0x5f0   :  { %6099 = vmatmul.mubr.f32.vlgmr.msra.gmra.mrb[214].mxu0 %v5925_v54 }
 0x6c3   :  { %v6100_v28 = vpop.f32.mrb[214].mxu0 }
 0x6c4   :  { %v6104_v11 = vmul.f32 10.0, %v6100_v28  ;;  %v6102_v27 = vpop.f32.mrb[215].mxu0 }
 0x6c6   :  { %v6106_v12 = vsel %vm6105_vm5, %v6104_v11, -inf }
 0x6c7   :  { %6107 = vmax.xlane.f32.xlu0 %v6106_v12 }
 0x754   :  { %v6108_v46 = vpop.xlane.xlu0 %6107 }
 0x755   :  { %v6109_v15 = vsub.f32 %v6104_v11, %v6108_v46 }
 0x757   :  { %v6110_v44 = vmul.f32 1.442695, %v6109_v15 }
 0x759   :  { %7267 = vpow2.f32 %v6110_v44 }
 0x763   :  { %v7268_v0 = vpop.eup %7267 }
 0x764   :  { %v6112_v57 = vsel %vm6105_vm5, %v7268_v0, 0.0 }
 0x765   :  { %6113 = vadd.xlane.f32.xlu1 %v6112_v57 }
 0x7f2   :  { %v6114_v7 = vpop.xlane.xlu1 %6113 }
 0x7f3   :  { %7269 = vlog2.f32 %v6114_v7 }
 0x7fd   :  { %v7270_v52 = vpop.eup %7269 }
 0x7fe   :  { %v6116_v3 = vmul.f32 0.6931472, %v7270_v52 }
 0x800   :  { %v6117_v36 = vsub.f32 %v6109_v15, %v6116_v3 }
 0x802   :  { %6118 = vst.msk [vmem:[%s10152_s10] sm:$0x7] %vm6105_vm5, %v6117_v36 }
 0x803   :  { %6123 = vsyncpa [#allocation8], 1 }

</bundles_post_ra>
